<compile_context>
chip_gen: v7x
topology: tpu7x:2x2x1
jax: 0.10.0
libtpu: 0.0.40
codegen_flags: <defaults>
</compile_context>

<pallas_src>
import jax
import jax.numpy as jnp
from jax.experimental import pallas as pl
from jax.experimental.pallas import tpu as pltpu

P = 28 * 28          # flattened 28x28 spatial domain used inside the conv kernel
PADP = P + 64        # zero-padded length (>= P + max tap offset 2*28 + 2 = 58)


# ----------------------------------------------------------------------------
# Kernel A: conv1 + ReLU + conv2 + ReLU + 2x2 maxpool (B images per grid step)
# ----------------------------------------------------------------------------
def _convpool_kernel(x_ref, w1_ref, b1_ref, w2_ref, b2_ref, out_ref,
                     xrow, xpt, a1_pad, lhs2, acc2):
    f32 = jnp.float32
    bf16 = jnp.bfloat16
    nimg = x_ref.shape[0]

    # Invariant zero fills, done once per grid step (the per-image loop below
    # never overwrites these regions).  Kept per-step rather than hoisted to
    # program_id(0) == 0 so megacore ("parallel") grid sharding stays correct.
    xrow[:, pl.ds(P, PADP - P)] = jnp.zeros((1, PADP - P), f32)
    xpt[pl.ds(9, 7), :] = jnp.zeros((7, P), f32)
    a1_pad[pl.ds(P, PADP - P), :] = jnp.zeros((PADP - P, 32), f32)

    for img in range(nimg):
        # --- flattened input row (lanes = h*28 + w), zero-padded tail --------
        xrow[:, pl.ds(0, P)] = x_ref[img]                     # (1, 784)

        # --- conv1: gather 9 shifted taps as rows, contract taps on the MXU --
        for di in range(3):
            for dj in range(3):
                xpt[pl.ds(di * 3 + dj, 1), :] = xrow[:, pl.ds(di * 28 + dj, P)]
        # (16, 784) contracted with (16, 32) over the tap axis -> (784, 32);
        # bf16 operands keep the MXU single-pass on v5e as well.
        a1 = jax.lax.dot_general(
            xpt[...].astype(bf16), w1_ref[...],
            dimension_numbers=(((0,), (0,)), ((), ())),
            preferred_element_type=f32)
        a1_pad[pl.ds(0, P), :] = jnp.maximum(a1 + b1_ref[...], 0.0)

        # --- conv2: in-VMEM im2col (784, 288) then ONE K=288 matmul ----------
        for di in range(3):
            for dj in range(3):
                k = di * 3 + dj
                lhs2[:, pl.ds(32 * k, 32)] = (
                    a1_pad[pl.ds(di * 28 + dj, P), :].astype(bf16))
        acc2[...] = jnp.dot(lhs2[...], w2_ref[...], preferred_element_type=f32)

        # --- 2x2 maxpool + bias + ReLU; lane-dense (72, 128) per-image tile --
        # Row = (ph//2)*12 + pw, lane = (ph%2)*64 + c.
        # Correctness: only conv2 rows with h, w <= 23 are read, i.e. exactly
        # the region untouched by the wrapped/contaminated columns of the
        # flattened-row convolution (valid for 28x28 inputs, two 3x3 VALID
        # convs, 2x2 pooling).  Bias-after-max and relu-after-max are valid
        # because the bias is a per-channel constant and relu is monotone.
        obase = img * 72
        for phh in range(6):
            halves = []
            for ph in (2 * phh, 2 * phh + 1):
                r = 56 * ph                                   # (2*ph) * 28
                c00 = acc2[pl.ds(r, 12, 2), :]                # (2ph  , 2pw  )
                c01 = acc2[pl.ds(r + 1, 12, 2), :]            # (2ph  , 2pw+1)
                c10 = acc2[pl.ds(r + 28, 12, 2), :]           # (2ph+1, 2pw  )
                c11 = acc2[pl.ds(r + 29, 12, 2), :]           # (2ph+1, 2pw+1)
                halves.append(jnp.maximum(jnp.maximum(c00, c01),
                                          jnp.maximum(c10, c11)))
            m = jnp.concatenate(halves, axis=1)               # (12, 128)
            m = jnp.maximum(m + b2_ref[...], 0.0)
            out_ref[pl.ds(obase + 12 * phh, 12), :] = m.astype(out_ref.dtype)


def _images_per_step(n):
    """Largest divisor of n that is <= 8 while keeping >= 2 grid steps (v7x)."""
    cap = min(8, max(1, n // 2))
    for b in range(cap, 0, -1):
        if n % b == 0:
            return b
    return 1


def conv_pool_call(x_row, w1, b1, w2, b2):
    n = x_row.shape[0]
    bpi = _images_per_step(n)
    return pl.pallas_call(
        _convpool_kernel,
        out_shape=jax.ShapeDtypeStruct((n * 72, 128), jnp.bfloat16),
        grid=(n // bpi,),
        in_specs=[
            pl.BlockSpec((bpi, 1, P), lambda g: (g, 0, 0)),     # B images
            pl.BlockSpec((16, 32), lambda g: (0, 0)),           # conv1 taps
            pl.BlockSpec((1, 32), lambda g: (0, 0)),            # conv1 bias
            pl.BlockSpec((288, 64), lambda g: (0, 0)),          # conv2 im2col W
            pl.BlockSpec((1, 128), lambda g: (0, 0)),           # conv2 bias x2
        ],
        out_specs=pl.BlockSpec((bpi * 72, 128), lambda g: (g, 0)),
        scratch_shapes=[
            pltpu.VMEM((1, PADP), jnp.float32),     # padded flat input row
            pltpu.VMEM((16, P), jnp.float32),       # conv1 tap rows
            pltpu.VMEM((PADP, 32), jnp.float32),    # conv1 output (padded tail)
            pltpu.VMEM((P, 288), jnp.bfloat16),     # conv2 im2col LHS
            pltpu.VMEM((P, 64), jnp.float32),       # conv2 output
        ],
        compiler_params=pltpu.CompilerParams(
            dimension_semantics=("parallel",)),
    )(x_row, w1, b1, w2, b2)


# ----------------------------------------------------------------------------
# Kernel B: fc1 + ReLU + fc2 + log-softmax (resident bf16 fc1, batch tiled)
# ----------------------------------------------------------------------------
def _fc_kernel(x_ref, w1_ref, b1_ref, w2_ref, b2_ref, o_ref):
    f32 = jnp.float32
    h = jnp.dot(x_ref[...], w1_ref[...], preferred_element_type=f32)
    h = jnp.maximum(h + b1_ref[...], 0.0)                        # (tm, 128)
    o = jnp.dot(h, w2_ref[...], preferred_element_type=f32) + b2_ref[...]
    m = jnp.max(o, axis=-1, keepdims=True)
    s = o - m
    lse = jnp.log(jnp.sum(jnp.exp(s), axis=-1, keepdims=True))
    o_ref[...] = (s - lse).astype(o_ref.dtype)


def _fc_rows_per_step(n):
    # Cap at 256 so double-buffered bf16 LHS (~9 MiB) + resident 2.25 MiB fc1
    # weight fits v5e's 16 MiB scoped-VMEM default; keep 2 steps when that
    # splits cleanly so v7x's two TensorCores both work.
    if n > 256:
        return 256
    if n >= 16 and n % 2 == 0 and (n // 2) % 8 == 0:
        return n // 2
    return n


def _resident_spec(shape):
    """Grid-invariant block: single-buffer it when pipeline_mode is supported."""
    try:
        return pl.BlockSpec(shape, lambda i: (0, 0),
                            pipeline_mode=pl.Buffered(1))
    except (TypeError, ValueError, AttributeError):
        return pl.BlockSpec(shape, lambda i: (0, 0))


def fc_call(p_flat, wfc1, bfc1, wfc2, bfc2):
    n = p_flat.shape[0]
    tm = _fc_rows_per_step(n)
    return pl.pallas_call(
        _fc_kernel,
        out_shape=jax.ShapeDtypeStruct((n, 10), jnp.float32),
        grid=(pl.cdiv(n, tm),),
        in_specs=[
            pl.BlockSpec((tm, 9216), lambda i: (i, 0)),
            _resident_spec((9216, 128)),                # resident bf16 fc1 W
            pl.BlockSpec((1, 128), lambda i: (0, 0)),
            pl.BlockSpec((128, 10), lambda i: (0, 0)),
            pl.BlockSpec((1, 10), lambda i: (0, 0)),
        ],
        out_specs=pl.BlockSpec((tm, 10), lambda i: (i, 0)),
        compiler_params=pltpu.CompilerParams(
            dimension_semantics=("parallel",)),
    )(p_flat, wfc1, bfc1, wfc2, bfc2)


# ----------------------------------------------------------------------------
# Forward pass + parameter preparation (PyTorch layouts -> kernel layouts)
# ----------------------------------------------------------------------------
def net_forward(x_nchw, kp):
    n = x_nchw.shape[0]
    x = x_nchw.astype(jnp.float32).reshape(n, 1, P)
    pooled = conv_pool_call(x, kp["w1"], kp["b1"], kp["w2"], kp["b2"])
    p_flat = pooled.reshape(n, 9216)        # ((ph//2)*12+pw)*128 + (ph%2)*64 + c
    return fc_call(p_flat, kp["wfc1"], kp["bfc1"], kp["wfc2"], kp["bfc2"])


def prepare_params(tp):
    """Convert PyTorch-layout parameters to the kernel layouts (one-time)."""
    f32, bf16 = jnp.float32, jnp.bfloat16
    # conv1 (32,1,3,3) -> tap-major (9,32), zero-pad taps to 16, bf16
    w1 = jnp.transpose(tp["c1_w"], (2, 3, 1, 0)).reshape(9, 32)
    w1 = jnp.pad(w1, ((0, 7), (0, 0))).astype(bf16)
    # conv2 (64,32,3,3) -> im2col RHS (tap*cin, cout) = (288, 64) bf16
    w2 = jnp.transpose(tp["c2_w"], (2, 3, 1, 0)).reshape(288, 64).astype(bf16)
    # conv2 bias tiled to the 128-lane pooled layout (lane = (ph%2)*64 + c)
    b2 = jnp.concatenate([tp["c2_b"], tp["c2_b"]]).reshape(1, 128).astype(f32)
    # fc1 (128, 9216) over torch NCHW flatten (c*144 + ph*12 + pw)
    # -> (9216, 128) over the kernel's flatten order
    #    ((ph//2)*12 + pw)*128 + (ph%2)*64 + c
    wfc1 = (tp["fc1_w"].reshape(128, 64, 6, 2, 12)   # (o, c, ph_hi, ph_lo, pw)
            .transpose(2, 4, 3, 1, 0)                # (ph_hi, pw, ph_lo, c, o)
            .reshape(9216, 128).astype(bf16))
    wfc2 = jnp.transpose(tp["fc2_w"]).astype(f32)    # (128, 10)
    return {
        "w1": w1, "b1": tp["c1_b"].reshape(1, 32).astype(f32),
        "w2": w2, "b2": b2,
        "wfc1": wfc1, "bfc1": tp["fc1_b"].reshape(1, 128).astype(f32),
        "wfc2": wfc2, "bfc2": tp["fc2_b"].reshape(1, 10).astype(f32),
    }


def init_torch_params(key):
    """Deterministic synthetic parameters in PyTorch layouts."""
    ks = jax.random.split(key, 8)
    f32 = jnp.float32
    return {
        "c1_w": 0.05 * jax.random.normal(ks[0], (32, 1, 3, 3), f32),
        "c1_b": 0.05 * jax.random.normal(ks[1], (32,), f32),
        "c2_w": 0.05 * jax.random.normal(ks[2], (64, 32, 3, 3), f32),
        "c2_b": 0.05 * jax.random.normal(ks[3], (64,), f32),
        "fc1_w": 0.02 * jax.random.normal(ks[4], (128, 9216), f32),
        "fc1_b": 0.02 * jax.random.normal(ks[5], (128,), f32),
        "fc2_w": 0.1 * jax.random.normal(ks[6], (10, 128), f32),
        "fc2_b": 0.1 * jax.random.normal(ks[7], (10,), f32),
    }


def net_reference(x_nchw, tp):
    """Pure-JAX/XLA f32 reference of the torch module (eval mode)."""
    dn = ("NCHW", "OIHW", "NCHW")
    y = jax.lax.conv_general_dilated(x_nchw.astype(jnp.float32), tp["c1_w"],
                                     (1, 1), "VALID", dimension_numbers=dn)
    y = jax.nn.relu(y + tp["c1_b"][None, :, None, None])
    y = jax.lax.conv_general_dilated(y, tp["c2_w"], (1, 1), "VALID",
                                     dimension_numbers=dn)
    y = jax.nn.relu(y + tp["c2_b"][None, :, None, None])
    n = y.shape[0]
    y = y.reshape(n, 64, 12, 2, 12, 2).max(axis=(3, 5))   # MaxPool2d(2, 2)
    y = y.reshape(n, 9216)                                 # NCHW flatten
    y = jax.nn.relu(y @ tp["fc1_w"].T + tp["fc1_b"])
    y = y @ tp["fc2_w"].T + tp["fc2_b"]
    return jax.nn.log_softmax(y, axis=-1)


if __name__ == "__main__":
    key = jax.random.PRNGKey(0)
    key_x, key_p = jax.random.split(key)
    # Module requires 28x28 single-channel input (9216 = 64 * 12 * 12).
    x = jax.random.normal(key_x, (2, 1, 28, 28), jnp.float32)
    torch_params = init_torch_params(key_p)
    kernel_params = prepare_params(torch_params)

    out = jax.block_until_ready(jax.jit(net_forward)(x, kernel_params))

    assert out.shape == (2, 10), out.shape
    assert bool(jnp.all(jnp.isfinite(out)))
    # log-softmax rows must sum to 1 in probability space
    assert bool(jnp.allclose(jnp.sum(jnp.exp(out), axis=1), 1.0, atol=1e-3))
    # cross-check against an f32 XLA reference of the same module (bf16 tol)
    ref = jax.block_until_ready(jax.jit(net_reference)(x, torch_params))
    max_diff = jnp.max(jnp.abs(out - ref))
    assert bool(max_diff < 0.1), f"max |pallas - reference| = {max_diff}"
    print("KERNEL_OK")
</pallas_src>

<mosaic_0001>
module attributes {stable_mosaic.version = 11 : i64} {
  func.func @_convpool_kernel(%arg0: i32, %arg1: memref<1x1x784xf32, #tpu.memory_space<vmem>>, %arg2: memref<16x32xbf16, #tpu.memory_space<vmem>>, %arg3: memref<1x32xf32, #tpu.memory_space<vmem>>, %arg4: memref<288x64xbf16, #tpu.memory_space<vmem>>, %arg5: memref<1x128xf32, #tpu.memory_space<vmem>>, %arg6: memref<72x128xbf16, #tpu.memory_space<vmem>>, %arg7: memref<1x848xf32, #tpu.memory_space<vmem>>, %arg8: memref<16x784xf32, #tpu.memory_space<vmem>>, %arg9: memref<848x32xf32, #tpu.memory_space<vmem>>, %arg10: memref<784x288xbf16, #tpu.memory_space<vmem>>, %arg11: memref<784x64xf32, #tpu.memory_space<vmem>>) attributes {dimension_semantics = [#tpu.dimension_semantics<parallel>], iteration_bounds = array<i64: 2>, scalar_prefetch = 0 : i64, scratch_operands = 5 : i64, tpu.core_type = #tpu.core_type<tc>, window_params = [{transform_indices = @transform_0, window_bounds = array<i64: 1, 1, 784>}, {pipeline_mode = #tpu.pipeline_mode<synchronous>, transform_indices = @transform_1, window_bounds = array<i64: 16, 32>}, {pipeline_mode = #tpu.pipeline_mode<synchronous>, transform_indices = @transform_2, window_bounds = array<i64: 1, 32>}, {pipeline_mode = #tpu.pipeline_mode<synchronous>, transform_indices = @transform_3, window_bounds = array<i64: 288, 64>}, {pipeline_mode = #tpu.pipeline_mode<synchronous>, transform_indices = @transform_4, window_bounds = array<i64: 1, 128>}, {transform_indices = @transform_5, window_bounds = array<i64: 72, 128>}]} {
    %cst = arith.constant 0.000000e+00 : f32
    %0 = vector.broadcast %cst : f32 to vector<1x64xf32>
    %c0 = arith.constant 0 : index
    %c784 = arith.constant 784 : index
    %1 = vector.load %arg7[%c0, %c784] : memref<1x848xf32, #tpu.memory_space<vmem>>, vector<1x64xf32>
    tpu.vector_store %arg7[%c0, %c784], %0 {strides = array<i32>} : memref<1x848xf32, #tpu.memory_space<vmem>>, vector<1x64xf32>,
    %cst_0 = arith.constant 0.000000e+00 : f32
    %2 = vector.broadcast %cst_0 : f32 to vector<7x784xf32>
    %c9 = arith.constant 9 : index
    %c0_1 = arith.constant 0 : index
    %3 = vector.load %arg8[%c9, %c0_1] : memref<16x784xf32, #tpu.memory_space<vmem>>, vector<7x784xf32>
    tpu.vector_store %arg8[%c9, %c0_1], %2 {strides = array<i32>} : memref<16x784xf32, #tpu.memory_space<vmem>>, vector<7x784xf32>,
    %cst_2 = arith.constant 0.000000e+00 : f32
    %4 = vector.broadcast %cst_2 : f32 to vector<64x32xf32>
    %c784_3 = arith.constant 784 : index
    %c0_4 = arith.constant 0 : index
    %5 = vector.load %arg9[%c784_3, %c0_4] : memref<848x32xf32, #tpu.memory_space<vmem>>, vector<64x32xf32>
    tpu.vector_store %arg9[%c784_3, %c0_4], %4 {strides = array<i32>} : memref<848x32xf32, #tpu.memory_space<vmem>>, vector<64x32xf32>,
    %c0_5 = arith.constant 0 : index
    %c0_6 = arith.constant 0 : index
    %c0_7 = arith.constant 0 : index
    %6 = vector.load %arg1[%c0_5, %c0_6, %c0_7] : memref<1x1x784xf32, #tpu.memory_space<vmem>>, vector<1x1x784xf32>
    %7 = vector.shape_cast %6 : vector<1x1x784xf32> to vector<1x784xf32>
    %c0_8 = arith.constant 0 : index
    %c0_9 = arith.constant 0 : index
    %8 = vector.load %arg7[%c0_8, %c0_9] : memref<1x848xf32, #tpu.memory_space<vmem>>, vector<1x784xf32>
    tpu.vector_store %arg7[%c0_8, %c0_9], %7 {strides = array<i32>} : memref<1x848xf32, #tpu.memory_space<vmem>>, vector<1x784xf32>,
    %c0_10 = arith.constant 0 : index
    %c0_11 = arith.constant 0 : index
    %9 = vector.load %arg7[%c0_10, %c0_11] : memref<1x848xf32, #tpu.memory_space<vmem>>, vector<1x784xf32>
    %c0_12 = arith.constant 0 : index
    %c0_13 = arith.constant 0 : index
    %10 = vector.load %arg8[%c0_12, %c0_13] : memref<16x784xf32, #tpu.memory_space<vmem>>, vector<1x784xf32>
    tpu.vector_store %arg8[%c0_12, %c0_13], %9 {strides = array<i32>} : memref<16x784xf32, #tpu.memory_space<vmem>>, vector<1x784xf32>,
    %c0_14 = arith.constant 0 : index
    %c1 = arith.constant 1 : index
    %11 = vector.load %arg7[%c0_14, %c1] : memref<1x848xf32, #tpu.memory_space<vmem>>, vector<1x784xf32>
    %c1_15 = arith.constant 1 : index
    %c0_16 = arith.constant 0 : index
    %12 = vector.load %arg8[%c1_15, %c0_16] : memref<16x784xf32, #tpu.memory_space<vmem>>, vector<1x784xf32>
    tpu.vector_store %arg8[%c1_15, %c0_16], %11 {strides = array<i32>} : memref<16x784xf32, #tpu.memory_space<vmem>>, vector<1x784xf32>,
    %c0_17 = arith.constant 0 : index
    %c2 = arith.constant 2 : index
    %13 = vector.load %arg7[%c0_17, %c2] : memref<1x848xf32, #tpu.memory_space<vmem>>, vector<1x784xf32>
    %c2_18 = arith.constant 2 : index
    %c0_19 = arith.constant 0 : index
    %14 = vector.load %arg8[%c2_18, %c0_19] : memref<16x784xf32, #tpu.memory_space<vmem>>, vector<1x784xf32>
    tpu.vector_store %arg8[%c2_18, %c0_19], %13 {strides = array<i32>} : memref<16x784xf32, #tpu.memory_space<vmem>>, vector<1x784xf32>,
    %c0_20 = arith.constant 0 : index
    %c28 = arith.constant 28 : index
    %15 = vector.load %arg7[%c0_20, %c28] : memref<1x848xf32, #tpu.memory_space<vmem>>, vector<1x784xf32>
    %c3 = arith.constant 3 : index
    %c0_21 = arith.constant 0 : index
    %16 = vector.load %arg8[%c3, %c0_21] : memref<16x784xf32, #tpu.memory_space<vmem>>, vector<1x784xf32>
    tpu.vector_store %arg8[%c3, %c0_21], %15 {strides = array<i32>} : memref<16x784xf32, #tpu.memory_space<vmem>>, vector<1x784xf32>,
    %c0_22 = arith.constant 0 : index
    %c29 = arith.constant 29 : index
    %17 = vector.load %arg7[%c0_22, %c29] : memref<1x848xf32, #tpu.memory_space<vmem>>, vector<1x784xf32>
    %c4 = arith.constant 4 : index
    %c0_23 = arith.constant 0 : index
    %18 = vector.load %arg8[%c4, %c0_23] : memref<16x784xf32, #tpu.memory_space<vmem>>, vector<1x784xf32>
    tpu.vector_store %arg8[%c4, %c0_23], %17 {strides = array<i32>} : memref<16x784xf32, #tpu.memory_space<vmem>>, vector<1x784xf32>,
    %c0_24 = arith.constant 0 : index
    %c30 = arith.constant 30 : index
    %19 = vector.load %arg7[%c0_24, %c30] : memref<1x848xf32, #tpu.memory_space<vmem>>, vector<1x784xf32>
    %c5 = arith.constant 5 : index
    %c0_25 = arith.constant 0 : index
    %20 = vector.load %arg8[%c5, %c0_25] : memref<16x784xf32, #tpu.memory_space<vmem>>, vector<1x784xf32>
    tpu.vector_store %arg8[%c5, %c0_25], %19 {strides = array<i32>} : memref<16x784xf32, #tpu.memory_space<vmem>>, vector<1x784xf32>,
    %c0_26 = arith.constant 0 : index
    %c56 = arith.constant 56 : index
    %21 = vector.load %arg7[%c0_26, %c56] : memref<1x848xf32, #tpu.memory_space<vmem>>, vector<1x784xf32>
    %c6 = arith.constant 6 : index
    %c0_27 = arith.constant 0 : index
    %22 = vector.load %arg8[%c6, %c0_27] : memref<16x784xf32, #tpu.memory_space<vmem>>, vector<1x784xf32>
    tpu.vector_store %arg8[%c6, %c0_27], %21 {strides = array<i32>} : memref<16x784xf32, #tpu.memory_space<vmem>>, vector<1x784xf32>,
    %c0_28 = arith.constant 0 : index
    %c57 = arith.constant 57 : index
    %23 = vector.load %arg7[%c0_28, %c57] : memref<1x848xf32, #tpu.memory_space<vmem>>, vector<1x784xf32>
    %c7 = arith.constant 7 : index
    %c0_29 = arith.constant 0 : index
    %24 = vector.load %arg8[%c7, %c0_29] : memref<16x784xf32, #tpu.memory_space<vmem>>, vector<1x784xf32>
    tpu.vector_store %arg8[%c7, %c0_29], %23 {strides = array<i32>} : memref<16x784xf32, #tpu.memory_space<vmem>>, vector<1x784xf32>,
    %c0_30 = arith.constant 0 : index
    %c58 = arith.constant 58 : index
    %25 = vector.load %arg7[%c0_30, %c58] : memref<1x848xf32, #tpu.memory_space<vmem>>, vector<1x784xf32>
    %c8 = arith.constant 8 : index
    %c0_31 = arith.constant 0 : index
    %26 = vector.load %arg8[%c8, %c0_31] : memref<16x784xf32, #tpu.memory_space<vmem>>, vector<1x784xf32>
    tpu.vector_store %arg8[%c8, %c0_31], %25 {strides = array<i32>} : memref<16x784xf32, #tpu.memory_space<vmem>>, vector<1x784xf32>,
    %c0_32 = arith.constant 0 : index
    %c0_33 = arith.constant 0 : index
    %27 = vector.load %arg8[%c0_32, %c0_33] : memref<16x784xf32, #tpu.memory_space<vmem>>, vector<16x784xf32>
    %28 = arith.truncf %27 : vector<16x784xf32> to vector<16x784xbf16>
    %c0_34 = arith.constant 0 : index
    %c0_35 = arith.constant 0 : index
    %29 = vector.load %arg2[%c0_34, %c0_35] : memref<16x32xbf16, #tpu.memory_space<vmem>>, vector<16x32xbf16>
    %cst_36 = arith.constant dense<0.000000e+00> : vector<784x32xf32>
    %30 = tpu.matmul %28, %29, %cst_36 {dimension_numbers = #tpu.dot_dimension_numbers<[0], [0], [1], [1], [0, 1, 1, 1], [], []>} : vector<16x784xbf16>, vector<16x32xbf16>, vector<784x32xf32> -> vector<784x32xf32>
    %c0_37 = arith.constant 0 : index
    %c0_38 = arith.constant 0 : index
    %31 = vector.load %arg3[%c0_37, %c0_38] : memref<1x32xf32, #tpu.memory_space<vmem>>, vector<1x32xf32>
    %32 = vector.broadcast %31 : vector<1x32xf32> to vector<784x32xf32>
    %33 = arith.addf %30, %32 : vector<784x32xf32>
    %cst_39 = arith.constant 0.000000e+00 : f32
    %34 = vector.broadcast %cst_39 : f32 to vector<784x32xf32>
    %35 = arith.maximumf %33, %34 : vector<784x32xf32>
    %c0_40 = arith.constant 0 : index
    %c0_41 = arith.constant 0 : index
    %36 = vector.load %arg9[%c0_40, %c0_41] : memref<848x32xf32, #tpu.memory_space<vmem>>, vector<784x32xf32>
    tpu.vector_store %arg9[%c0_40, %c0_41], %35 {strides = array<i32>} : memref<848x32xf32, #tpu.memory_space<vmem>>, vector<784x32xf32>,
    %c0_42 = arith.constant 0 : index
    %c0_43 = arith.constant 0 : index
    %37 = vector.load %arg9[%c0_42, %c0_43] : memref<848x32xf32, #tpu.memory_space<vmem>>, vector<784x32xf32>
    %38 = arith.truncf %37 : vector<784x32xf32> to vector<784x32xbf16>
    %c0_44 = arith.constant 0 : index
    %c0_45 = arith.constant 0 : index
    %39 = vector.load %arg10[%c0_44, %c0_45] : memref<784x288xbf16, #tpu.memory_space<vmem>>, vector<784x32xbf16>
    tpu.vector_store %arg10[%c0_44, %c0_45], %38 {strides = array<i32>} : memref<784x288xbf16, #tpu.memory_space<vmem>>, vector<784x32xbf16>,
    %c1_46 = arith.constant 1 : index
    %c0_47 = arith.constant 0 : index
    %40 = vector.load %arg9[%c1_46, %c0_47] : memref<848x32xf32, #tpu.memory_space<vmem>>, vector<784x32xf32>
    %41 = arith.truncf %40 : vector<784x32xf32> to vector<784x32xbf16>
    %c0_48 = arith.constant 0 : index
    %c32 = arith.constant 32 : index
    %42 = vector.load %arg10[%c0_48, %c32] : memref<784x288xbf16, #tpu.memory_space<vmem>>, vector<784x32xbf16>
    tpu.vector_store %arg10[%c0_48, %c32], %41 {strides = array<i32>} : memref<784x288xbf16, #tpu.memory_space<vmem>>, vector<784x32xbf16>,
    %c2_49 = arith.constant 2 : index
    %c0_50 = arith.constant 0 : index
    %43 = vector.load %arg9[%c2_49, %c0_50] : memref<848x32xf32, #tpu.memory_space<vmem>>, vector<784x32xf32>
    %44 = arith.truncf %43 : vector<784x32xf32> to vector<784x32xbf16>
    %c0_51 = arith.constant 0 : index
    %c64 = arith.constant 64 : index
    %45 = vector.load %arg10[%c0_51, %c64] : memref<784x288xbf16, #tpu.memory_space<vmem>>, vector<784x32xbf16>
    tpu.vector_store %arg10[%c0_51, %c64], %44 {strides = array<i32>} : memref<784x288xbf16, #tpu.memory_space<vmem>>, vector<784x32xbf16>,
    %c28_52 = arith.constant 28 : index
    %c0_53 = arith.constant 0 : index
    %46 = vector.load %arg9[%c28_52, %c0_53] : memref<848x32xf32, #tpu.memory_space<vmem>>, vector<784x32xf32>
    %47 = arith.truncf %46 : vector<784x32xf32> to vector<784x32xbf16>
    %c0_54 = arith.constant 0 : index
    %c96 = arith.constant 96 : index
    %48 = vector.load %arg10[%c0_54, %c96] : memref<784x288xbf16, #tpu.memory_space<vmem>>, vector<784x32xbf16>
    tpu.vector_store %arg10[%c0_54, %c96], %47 {strides = array<i32>} : memref<784x288xbf16, #tpu.memory_space<vmem>>, vector<784x32xbf16>,
    %c29_55 = arith.constant 29 : index
    %c0_56 = arith.constant 0 : index
    %49 = vector.load %arg9[%c29_55, %c0_56] : memref<848x32xf32, #tpu.memory_space<vmem>>, vector<784x32xf32>
    %50 = arith.truncf %49 : vector<784x32xf32> to vector<784x32xbf16>
    %c0_57 = arith.constant 0 : index
    %c128 = arith.constant 128 : index
    %51 = vector.load %arg10[%c0_57, %c128] : memref<784x288xbf16, #tpu.memory_space<vmem>>, vector<784x32xbf16>
    tpu.vector_store %arg10[%c0_57, %c128], %50 {strides = array<i32>} : memref<784x288xbf16, #tpu.memory_space<vmem>>, vector<784x32xbf16>,
    %c30_58 = arith.constant 30 : index
    %c0_59 = arith.constant 0 : index
    %52 = vector.load %arg9[%c30_58, %c0_59] : memref<848x32xf32, #tpu.memory_space<vmem>>, vector<784x32xf32>
    %53 = arith.truncf %52 : vector<784x32xf32> to vector<784x32xbf16>
    %c0_60 = arith.constant 0 : index
    %c160 = arith.constant 160 : index
    %54 = vector.load %arg10[%c0_60, %c160] : memref<784x288xbf16, #tpu.memory_space<vmem>>, vector<784x32xbf16>
    tpu.vector_store %arg10[%c0_60, %c160], %53 {strides = array<i32>} : memref<784x288xbf16, #tpu.memory_space<vmem>>, vector<784x32xbf16>,
    %c56_61 = arith.constant 56 : index
    %c0_62 = arith.constant 0 : index
    %55 = vector.load %arg9[%c56_61, %c0_62] : memref<848x32xf32, #tpu.memory_space<vmem>>, vector<784x32xf32>
    %56 = arith.truncf %55 : vector<784x32xf32> to vector<784x32xbf16>
    %c0_63 = arith.constant 0 : index
    %c192 = arith.constant 192 : index
    %57 = vector.load %arg10[%c0_63, %c192] : memref<784x288xbf16, #tpu.memory_space<vmem>>, vector<784x32xbf16>
    tpu.vector_store %arg10[%c0_63, %c192], %56 {strides = array<i32>} : memref<784x288xbf16, #tpu.memory_space<vmem>>, vector<784x32xbf16>,
    %c57_64 = arith.constant 57 : index
    %c0_65 = arith.constant 0 : index
    %58 = vector.load %arg9[%c57_64, %c0_65] : memref<848x32xf32, #tpu.memory_space<vmem>>, vector<784x32xf32>
    %59 = arith.truncf %58 : vector<784x32xf32> to vector<784x32xbf16>
    %c0_66 = arith.constant 0 : index
    %c224 = arith.constant 224 : index
    %60 = vector.load %arg10[%c0_66, %c224] : memref<784x288xbf16, #tpu.memory_space<vmem>>, vector<784x32xbf16>
    tpu.vector_store %arg10[%c0_66, %c224], %59 {strides = array<i32>} : memref<784x288xbf16, #tpu.memory_space<vmem>>, vector<784x32xbf16>,
    %c58_67 = arith.constant 58 : index
    %c0_68 = arith.constant 0 : index
    %61 = vector.load %arg9[%c58_67, %c0_68] : memref<848x32xf32, #tpu.memory_space<vmem>>, vector<784x32xf32>
    %62 = arith.truncf %61 : vector<784x32xf32> to vector<784x32xbf16>
    %c0_69 = arith.constant 0 : index
    %c256 = arith.constant 256 : index
    %63 = vector.load %arg10[%c0_69, %c256] : memref<784x288xbf16, #tpu.memory_space<vmem>>, vector<784x32xbf16>
    tpu.vector_store %arg10[%c0_69, %c256], %62 {strides = array<i32>} : memref<784x288xbf16, #tpu.memory_space<vmem>>, vector<784x32xbf16>,
    %c0_70 = arith.constant 0 : index
    %c0_71 = arith.constant 0 : index
    %64 = vector.load %arg10[%c0_70, %c0_71] : memref<784x288xbf16, #tpu.memory_space<vmem>>, vector<784x288xbf16>
    %c0_72 = arith.constant 0 : index
    %c0_73 = arith.constant 0 : index
    %65 = vector.load %arg4[%c0_72, %c0_73] : memref<288x64xbf16, #tpu.memory_space<vmem>>, vector<288x64xbf16>
    %cst_74 = arith.constant dense<0.000000e+00> : vector<784x64xf32>
    %66 = tpu.matmul %64, %65, %cst_74 {dimension_numbers = #tpu.dot_dimension_numbers<[1], [0], [0], [1], [0, 0, 1, 1], [], []>} : vector<784x288xbf16>, vector<288x64xbf16>, vector<784x64xf32> -> vector<784x64xf32>
    %c0_75 = arith.constant 0 : index
    %c0_76 = arith.constant 0 : index
    %67 = vector.load %arg11[%c0_75, %c0_76] : memref<784x64xf32, #tpu.memory_space<vmem>>, vector<784x64xf32>
    tpu.vector_store %arg11[%c0_75, %c0_76], %66 {strides = array<i32>} : memref<784x64xf32, #tpu.memory_space<vmem>>, vector<784x64xf32>,
    %c0_77 = arith.constant 0 : index
    %c0_78 = arith.constant 0 : index
    %68 = tpu.strided_load %arg11[%c0_77, %c0_78] {strides = array<i32: 2, 1>} : memref<784x64xf32, #tpu.memory_space<vmem>>, vector<12x64xf32>
    %c1_79 = arith.constant 1 : index
    %c0_80 = arith.constant 0 : index
    %69 = tpu.strided_load %arg11[%c1_79, %c0_80] {strides = array<i32: 2, 1>} : memref<784x64xf32, #tpu.memory_space<vmem>>, vector<12x64xf32>
    %c28_81 = arith.constant 28 : index
    %c0_82 = arith.constant 0 : index
    %70 = tpu.strided_load %arg11[%c28_81, %c0_82] {strides = array<i32: 2, 1>} : memref<784x64xf32, #tpu.memory_space<vmem>>, vector<12x64xf32>
    %c29_83 = arith.constant 29 : index
    %c0_84 = arith.constant 0 : index
    %71 = tpu.strided_load %arg11[%c29_83, %c0_84] {strides = array<i32: 2, 1>} : memref<784x64xf32, #tpu.memory_space<vmem>>, vector<12x64xf32>
    %72 = arith.maximumf %68, %69 : vector<12x64xf32>
    %73 = arith.maximumf %70, %71 : vector<12x64xf32>
    %74 = arith.maximumf %72, %73 : vector<12x64xf32>
    %c56_85 = arith.constant 56 : index
    %c0_86 = arith.constant 0 : index
    %75 = tpu.strided_load %arg11[%c56_85, %c0_86] {strides = array<i32: 2, 1>} : memref<784x64xf32, #tpu.memory_space<vmem>>, vector<12x64xf32>
    %c57_87 = arith.constant 57 : index
    %c0_88 = arith.constant 0 : index
    %76 = tpu.strided_load %arg11[%c57_87, %c0_88] {strides = array<i32: 2, 1>} : memref<784x64xf32, #tpu.memory_space<vmem>>, vector<12x64xf32>
    %c84 = arith.constant 84 : index
    %c0_89 = arith.constant 0 : index
    %77 = tpu.strided_load %arg11[%c84, %c0_89] {strides = array<i32: 2, 1>} : memref<784x64xf32, #tpu.memory_space<vmem>>, vector<12x64xf32>
    %c85 = arith.constant 85 : index
    %c0_90 = arith.constant 0 : index
    %78 = tpu.strided_load %arg11[%c85, %c0_90] {strides = array<i32: 2, 1>} : memref<784x64xf32, #tpu.memory_space<vmem>>, vector<12x64xf32>
    %79 = arith.maximumf %75, %76 : vector<12x64xf32>
    %80 = arith.maximumf %77, %78 : vector<12x64xf32>
    %81 = arith.maximumf %79, %80 : vector<12x64xf32>
    %82 = tpu.concatenate %74, %81 in 1 : vector<12x64xf32>, vector<12x64xf32> -> vector<12x128xf32>
    %c0_91 = arith.constant 0 : index
    %c0_92 = arith.constant 0 : index
    %83 = vector.load %arg5[%c0_91, %c0_92] : memref<1x128xf32, #tpu.memory_space<vmem>>, vector<1x128xf32>
    %84 = vector.broadcast %83 : vector<1x128xf32> to vector<12x128xf32>
    %85 = arith.addf %82, %84 : vector<12x128xf32>
    %cst_93 = arith.constant 0.000000e+00 : f32
    %86 = vector.broadcast %cst_93 : f32 to vector<12x128xf32>
    %87 = arith.maximumf %85, %86 : vector<12x128xf32>
    %88 = arith.truncf %87 : vector<12x128xf32> to vector<12x128xbf16>
    %c0_94 = arith.constant 0 : index
    %c0_95 = arith.constant 0 : index
    %89 = vector.load %arg6[%c0_94, %c0_95] : memref<72x128xbf16, #tpu.memory_space<vmem>>, vector<12x128xbf16>
    tpu.vector_store %arg6[%c0_94, %c0_95], %88 {strides = array<i32>} : memref<72x128xbf16, #tpu.memory_space<vmem>>, vector<12x128xbf16>,
    %c112 = arith.constant 112 : index
    %c0_96 = arith.constant 0 : index
    %90 = tpu.strided_load %arg11[%c112, %c0_96] {strides = array<i32: 2, 1>} : memref<784x64xf32, #tpu.memory_space<vmem>>, vector<12x64xf32>
    %c113 = arith.constant 113 : index
    %c0_97 = arith.constant 0 : index
    %91 = tpu.strided_load %arg11[%c113, %c0_97] {strides = array<i32: 2, 1>} : memref<784x64xf32, #tpu.memory_space<vmem>>, vector<12x64xf32>
    %c140 = arith.constant 140 : index
    %c0_98 = arith.constant 0 : index
    %92 = tpu.strided_load %arg11[%c140, %c0_98] {strides = array<i32: 2, 1>} : memref<784x64xf32, #tpu.memory_space<vmem>>, vector<12x64xf32>
    %c141 = arith.constant 141 : index
    %c0_99 = arith.constant 0 : index
    %93 = tpu.strided_load %arg11[%c141, %c0_99] {strides = array<i32: 2, 1>} : memref<784x64xf32, #tpu.memory_space<vmem>>, vector<12x64xf32>
    %94 = arith.maximumf %90, %91 : vector<12x64xf32>
    %95 = arith.maximumf %92, %93 : vector<12x64xf32>
    %96 = arith.maximumf %94, %95 : vector<12x64xf32>
    %c168 = arith.constant 168 : index
    %c0_100 = arith.constant 0 : index
    %97 = tpu.strided_load %arg11[%c168, %c0_100] {strides = array<i32: 2, 1>} : memref<784x64xf32, #tpu.memory_space<vmem>>, vector<12x64xf32>
    %c169 = arith.constant 169 : index
    %c0_101 = arith.constant 0 : index
    %98 = tpu.strided_load %arg11[%c169, %c0_101] {strides = array<i32: 2, 1>} : memref<784x64xf32, #tpu.memory_space<vmem>>, vector<12x64xf32>
    %c196 = arith.constant 196 : index
    %c0_102 = arith.constant 0 : index
    %99 = tpu.strided_load %arg11[%c196, %c0_102] {strides = array<i32: 2, 1>} : memref<784x64xf32, #tpu.memory_space<vmem>>, vector<12x64xf32>
    %c197 = arith.constant 197 : index
    %c0_103 = arith.constant 0 : index
    %100 = tpu.strided_load %arg11[%c197, %c0_103] {strides = array<i32: 2, 1>} : memref<784x64xf32, #tpu.memory_space<vmem>>, vector<12x64xf32>
    %101 = arith.maximumf %97, %98 : vector<12x64xf32>
    %102 = arith.maximumf %99, %100 : vector<12x64xf32>
    %103 = arith.maximumf %101, %102 : vector<12x64xf32>
    %104 = tpu.concatenate %96, %103 in 1 : vector<12x64xf32>, vector<12x64xf32> -> vector<12x128xf32>
    %c0_104 = arith.constant 0 : index
    %c0_105 = arith.constant 0 : index
    %105 = vector.load %arg5[%c0_104, %c0_105] : memref<1x128xf32, #tpu.memory_space<vmem>>, vector<1x128xf32>
    %106 = vector.broadcast %105 : vector<1x128xf32> to vector<12x128xf32>
    %107 = arith.addf %104, %106 : vector<12x128xf32>
    %cst_106 = arith.constant 0.000000e+00 : f32
    %108 = vector.broadcast %cst_106 : f32 to vector<12x128xf32>
    %109 = arith.maximumf %107, %108 : vector<12x128xf32>
    %110 = arith.truncf %109 : vector<12x128xf32> to vector<12x128xbf16>
    %c12 = arith.constant 12 : index
    %c0_107 = arith.constant 0 : index
    %111 = vector.load %arg6[%c12, %c0_107] : memref<72x128xbf16, #tpu.memory_space<vmem>>, vector<12x128xbf16>
    tpu.vector_store %arg6[%c12, %c0_107], %110 {strides = array<i32>} : memref<72x128xbf16, #tpu.memory_space<vmem>>, vector<12x128xbf16>,
    %c224_108 = arith.constant 224 : index
    %c0_109 = arith.constant 0 : index
    %112 = tpu.strided_load %arg11[%c224_108, %c0_109] {strides = array<i32: 2, 1>} : memref<784x64xf32, #tpu.memory_space<vmem>>, vector<12x64xf32>
    %c225 = arith.constant 225 : index
    %c0_110 = arith.constant 0 : index
    %113 = tpu.strided_load %arg11[%c225, %c0_110] {strides = array<i32: 2, 1>} : memref<784x64xf32, #tpu.memory_space<vmem>>, vector<12x64xf32>
    %c252 = arith.constant 252 : index
    %c0_111 = arith.constant 0 : index
    %114 = tpu.strided_load %arg11[%c252, %c0_111] {strides = array<i32: 2, 1>} : memref<784x64xf32, #tpu.memory_space<vmem>>, vector<12x64xf32>
    %c253 = arith.constant 253 : index
    %c0_112 = arith.constant 0 : index
    %115 = tpu.strided_load %arg11[%c253, %c0_112] {strides = array<i32: 2, 1>} : memref<784x64xf32, #tpu.memory_space<vmem>>, vector<12x64xf32>
    %116 = arith.maximumf %112, %113 : vector<12x64xf32>
    %117 = arith.maximumf %114, %115 : vector<12x64xf32>
    %118 = arith.maximumf %116, %117 : vector<12x64xf32>
    %c280 = arith.constant 280 : index
    %c0_113 = arith.constant 0 : index
    %119 = tpu.strided_load %arg11[%c280, %c0_113] {strides = array<i32: 2, 1>} : memref<784x64xf32, #tpu.memory_space<vmem>>, vector<12x64xf32>
    %c281 = arith.constant 281 : index
    %c0_114 = arith.constant 0 : index
    %120 = tpu.strided_load %arg11[%c281, %c0_114] {strides = array<i32: 2, 1>} : memref<784x64xf32, #tpu.memory_space<vmem>>, vector<12x64xf32>
    %c308 = arith.constant 308 : index
    %c0_115 = arith.constant 0 : index
    %121 = tpu.strided_load %arg11[%c308, %c0_115] {strides = array<i32: 2, 1>} : memref<784x64xf32, #tpu.memory_space<vmem>>, vector<12x64xf32>
    %c309 = arith.constant 309 : index
    %c0_116 = arith.constant 0 : index
    %122 = tpu.strided_load %arg11[%c309, %c0_116] {strides = array<i32: 2, 1>} : memref<784x64xf32, #tpu.memory_space<vmem>>, vector<12x64xf32>
    %123 = arith.maximumf %119, %120 : vector<12x64xf32>
    %124 = arith.maximumf %121, %122 : vector<12x64xf32>
    %125 = arith.maximumf %123, %124 : vector<12x64xf32>
    %126 = tpu.concatenate %118, %125 in 1 : vector<12x64xf32>, vector<12x64xf32> -> vector<12x128xf32>
    %c0_117 = arith.constant 0 : index
    %c0_118 = arith.constant 0 : index
    %127 = vector.load %arg5[%c0_117, %c0_118] : memref<1x128xf32, #tpu.memory_space<vmem>>, vector<1x128xf32>
    %128 = vector.broadcast %127 : vector<1x128xf32> to vector<12x128xf32>
    %129 = arith.addf %126, %128 : vector<12x128xf32>
    %cst_119 = arith.constant 0.000000e+00 : f32
    %130 = vector.broadcast %cst_119 : f32 to vector<12x128xf32>
    %131 = arith.maximumf %129, %130 : vector<12x128xf32>
    %132 = arith.truncf %131 : vector<12x128xf32> to vector<12x128xbf16>
    %c24 = arith.constant 24 : index
    %c0_120 = arith.constant 0 : index
    %133 = vector.load %arg6[%c24, %c0_120] : memref<72x128xbf16, #tpu.memory_space<vmem>>, vector<12x128xbf16>
    tpu.vector_store %arg6[%c24, %c0_120], %132 {strides = array<i32>} : memref<72x128xbf16, #tpu.memory_space<vmem>>, vector<12x128xbf16>,
    %c336 = arith.constant 336 : index
    %c0_121 = arith.constant 0 : index
    %134 = tpu.strided_load %arg11[%c336, %c0_121] {strides = array<i32: 2, 1>} : memref<784x64xf32, #tpu.memory_space<vmem>>, vector<12x64xf32>
    %c337 = arith.constant 337 : index
    %c0_122 = arith.constant 0 : index
    %135 = tpu.strided_load %arg11[%c337, %c0_122] {strides = array<i32: 2, 1>} : memref<784x64xf32, #tpu.memory_space<vmem>>, vector<12x64xf32>
    %c364 = arith.constant 364 : index
    %c0_123 = arith.constant 0 : index
    %136 = tpu.strided_load %arg11[%c364, %c0_123] {strides = array<i32: 2, 1>} : memref<784x64xf32, #tpu.memory_space<vmem>>, vector<12x64xf32>
    %c365 = arith.constant 365 : index
    %c0_124 = arith.constant 0 : index
    %137 = tpu.strided_load %arg11[%c365, %c0_124] {strides = array<i32: 2, 1>} : memref<784x64xf32, #tpu.memory_space<vmem>>, vector<12x64xf32>
    %138 = arith.maximumf %134, %135 : vector<12x64xf32>
    %139 = arith.maximumf %136, %137 : vector<12x64xf32>
    %140 = arith.maximumf %138, %139 : vector<12x64xf32>
    %c392 = arith.constant 392 : index
    %c0_125 = arith.constant 0 : index
    %141 = tpu.strided_load %arg11[%c392, %c0_125] {strides = array<i32: 2, 1>} : memref<784x64xf32, #tpu.memory_space<vmem>>, vector<12x64xf32>
    %c393 = arith.constant 393 : index
    %c0_126 = arith.constant 0 : index
    %142 = tpu.strided_load %arg11[%c393, %c0_126] {strides = array<i32: 2, 1>} : memref<784x64xf32, #tpu.memory_space<vmem>>, vector<12x64xf32>
    %c420 = arith.constant 420 : index
    %c0_127 = arith.constant 0 : index
    %143 = tpu.strided_load %arg11[%c420, %c0_127] {strides = array<i32: 2, 1>} : memref<784x64xf32, #tpu.memory_space<vmem>>, vector<12x64xf32>
    %c421 = arith.constant 421 : index
    %c0_128 = arith.constant 0 : index
    %144 = tpu.strided_load %arg11[%c421, %c0_128] {strides = array<i32: 2, 1>} : memref<784x64xf32, #tpu.memory_space<vmem>>, vector<12x64xf32>
    %145 = arith.maximumf %141, %142 : vector<12x64xf32>
    %146 = arith.maximumf %143, %144 : vector<12x64xf32>
    %147 = arith.maximumf %145, %146 : vector<12x64xf32>
    %148 = tpu.concatenate %140, %147 in 1 : vector<12x64xf32>, vector<12x64xf32> -> vector<12x128xf32>
    %c0_129 = arith.constant 0 : index
    %c0_130 = arith.constant 0 : index
    %149 = vector.load %arg5[%c0_129, %c0_130] : memref<1x128xf32, #tpu.memory_space<vmem>>, vector<1x128xf32>
    %150 = vector.broadcast %149 : vector<1x128xf32> to vector<12x128xf32>
    %151 = arith.addf %148, %150 : vector<12x128xf32>
    %cst_131 = arith.constant 0.000000e+00 : f32
    %152 = vector.broadcast %cst_131 : f32 to vector<12x128xf32>
    %153 = arith.maximumf %151, %152 : vector<12x128xf32>
    %154 = arith.truncf %153 : vector<12x128xf32> to vector<12x128xbf16>
    %c36 = arith.constant 36 : index
    %c0_132 = arith.constant 0 : index
    %155 = vector.load %arg6[%c36, %c0_132] : memref<72x128xbf16, #tpu.memory_space<vmem>>, vector<12x128xbf16>
    tpu.vector_store %arg6[%c36, %c0_132], %154 {strides = array<i32>} : memref<72x128xbf16, #tpu.memory_space<vmem>>, vector<12x128xbf16>,
    %c448 = arith.constant 448 : index
    %c0_133 = arith.constant 0 : index
    %156 = tpu.strided_load %arg11[%c448, %c0_133] {strides = array<i32: 2, 1>} : memref<784x64xf32, #tpu.memory_space<vmem>>, vector<12x64xf32>
    %c449 = arith.constant 449 : index
    %c0_134 = arith.constant 0 : index
    %157 = tpu.strided_load %arg11[%c449, %c0_134] {strides = array<i32: 2, 1>} : memref<784x64xf32, #tpu.memory_space<vmem>>, vector<12x64xf32>
    %c476 = arith.constant 476 : index
    %c0_135 = arith.constant 0 : index
    %158 = tpu.strided_load %arg11[%c476, %c0_135] {strides = array<i32: 2, 1>} : memref<784x64xf32, #tpu.memory_space<vmem>>, vector<12x64xf32>
    %c477 = arith.constant 477 : index
    %c0_136 = arith.constant 0 : index
    %159 = tpu.strided_load %arg11[%c477, %c0_136] {strides = array<i32: 2, 1>} : memref<784x64xf32, #tpu.memory_space<vmem>>, vector<12x64xf32>
    %160 = arith.maximumf %156, %157 : vector<12x64xf32>
    %161 = arith.maximumf %158, %159 : vector<12x64xf32>
    %162 = arith.maximumf %160, %161 : vector<12x64xf32>
    %c504 = arith.constant 504 : index
    %c0_137 = arith.constant 0 : index
    %163 = tpu.strided_load %arg11[%c504, %c0_137] {strides = array<i32: 2, 1>} : memref<784x64xf32, #tpu.memory_space<vmem>>, vector<12x64xf32>
    %c505 = arith.constant 505 : index
    %c0_138 = arith.constant 0 : index
    %164 = tpu.strided_load %arg11[%c505, %c0_138] {strides = array<i32: 2, 1>} : memref<784x64xf32, #tpu.memory_space<vmem>>, vector<12x64xf32>
    %c532 = arith.constant 532 : index
    %c0_139 = arith.constant 0 : index
    %165 = tpu.strided_load %arg11[%c532, %c0_139] {strides = array<i32: 2, 1>} : memref<784x64xf32, #tpu.memory_space<vmem>>, vector<12x64xf32>
    %c533 = arith.constant 533 : index
    %c0_140 = arith.constant 0 : index
    %166 = tpu.strided_load %arg11[%c533, %c0_140] {strides = array<i32: 2, 1>} : memref<784x64xf32, #tpu.memory_space<vmem>>, vector<12x64xf32>
    %167 = arith.maximumf %163, %164 : vector<12x64xf32>
    %168 = arith.maximumf %165, %166 : vector<12x64xf32>
    %169 = arith.maximumf %167, %168 : vector<12x64xf32>
    %170 = tpu.concatenate %162, %169 in 1 : vector<12x64xf32>, vector<12x64xf32> -> vector<12x128xf32>
    %c0_141 = arith.constant 0 : index
    %c0_142 = arith.constant 0 : index
    %171 = vector.load %arg5[%c0_141, %c0_142] : memref<1x128xf32, #tpu.memory_space<vmem>>, vector<1x128xf32>
    %172 = vector.broadcast %171 : vector<1x128xf32> to vector<12x128xf32>
    %173 = arith.addf %170, %172 : vector<12x128xf32>
    %cst_143 = arith.constant 0.000000e+00 : f32
    %174 = vector.broadcast %cst_143 : f32 to vector<12x128xf32>
    %175 = arith.maximumf %173, %174 : vector<12x128xf32>
    %176 = arith.truncf %175 : vector<12x128xf32> to vector<12x128xbf16>
    %c48 = arith.constant 48 : index
    %c0_144 = arith.constant 0 : index
    %177 = vector.load %arg6[%c48, %c0_144] : memref<72x128xbf16, #tpu.memory_space<vmem>>, vector<12x128xbf16>
    tpu.vector_store %arg6[%c48, %c0_144], %176 {strides = array<i32>} : memref<72x128xbf16, #tpu.memory_space<vmem>>, vector<12x128xbf16>,
    %c560 = arith.constant 560 : index
    %c0_145 = arith.constant 0 : index
    %178 = tpu.strided_load %arg11[%c560, %c0_145] {strides = array<i32: 2, 1>} : memref<784x64xf32, #tpu.memory_space<vmem>>, vector<12x64xf32>
    %c561 = arith.constant 561 : index
    %c0_146 = arith.constant 0 : index
    %179 = tpu.strided_load %arg11[%c561, %c0_146] {strides = array<i32: 2, 1>} : memref<784x64xf32, #tpu.memory_space<vmem>>, vector<12x64xf32>
    %c588 = arith.constant 588 : index
    %c0_147 = arith.constant 0 : index
    %180 = tpu.strided_load %arg11[%c588, %c0_147] {strides = array<i32: 2, 1>} : memref<784x64xf32, #tpu.memory_space<vmem>>, vector<12x64xf32>
    %c589 = arith.constant 589 : index
    %c0_148 = arith.constant 0 : index
    %181 = tpu.strided_load %arg11[%c589, %c0_148] {strides = array<i32: 2, 1>} : memref<784x64xf32, #tpu.memory_space<vmem>>, vector<12x64xf32>
    %182 = arith.maximumf %178, %179 : vector<12x64xf32>
    %183 = arith.maximumf %180, %181 : vector<12x64xf32>
    %184 = arith.maximumf %182, %183 : vector<12x64xf32>
    %c616 = arith.constant 616 : index
    %c0_149 = arith.constant 0 : index
    %185 = tpu.strided_load %arg11[%c616, %c0_149] {strides = array<i32: 2, 1>} : memref<784x64xf32, #tpu.memory_space<vmem>>, vector<12x64xf32>
    %c617 = arith.constant 617 : index
    %c0_150 = arith.constant 0 : index
    %186 = tpu.strided_load %arg11[%c617, %c0_150] {strides = array<i32: 2, 1>} : memref<784x64xf32, #tpu.memory_space<vmem>>, vector<12x64xf32>
    %c644 = arith.constant 644 : index
    %c0_151 = arith.constant 0 : index
    %187 = tpu.strided_load %arg11[%c644, %c0_151] {strides = array<i32: 2, 1>} : memref<784x64xf32, #tpu.memory_space<vmem>>, vector<12x64xf32>
    %c645 = arith.constant 645 : index
    %c0_152 = arith.constant 0 : index
    %188 = tpu.strided_load %arg11[%c645, %c0_152] {strides = array<i32: 2, 1>} : memref<784x64xf32, #tpu.memory_space<vmem>>, vector<12x64xf32>
    %189 = arith.maximumf %185, %186 : vector<12x64xf32>
    %190 = arith.maximumf %187, %188 : vector<12x64xf32>
    %191 = arith.maximumf %189, %190 : vector<12x64xf32>
    %192 = tpu.concatenate %184, %191 in 1 : vector<12x64xf32>, vector<12x64xf32> -> vector<12x128xf32>
    %c0_153 = arith.constant 0 : index
    %c0_154 = arith.constant 0 : index
    %193 = vector.load %arg5[%c0_153, %c0_154] : memref<1x128xf32, #tpu.memory_space<vmem>>, vector<1x128xf32>
    %194 = vector.broadcast %193 : vector<1x128xf32> to vector<12x128xf32>
    %195 = arith.addf %192, %194 : vector<12x128xf32>
    %cst_155 = arith.constant 0.000000e+00 : f32
    %196 = vector.broadcast %cst_155 : f32 to vector<12x128xf32>
    %197 = arith.maximumf %195, %196 : vector<12x128xf32>
    %198 = arith.truncf %197 : vector<12x128xf32> to vector<12x128xbf16>
    %c60 = arith.constant 60 : index
    %c0_156 = arith.constant 0 : index
    %199 = vector.load %arg6[%c60, %c0_156] : memref<72x128xbf16, #tpu.memory_space<vmem>>, vector<12x128xbf16>
    tpu.vector_store %arg6[%c60, %c0_156], %198 {strides = array<i32>} : memref<72x128xbf16, #tpu.memory_space<vmem>>, vector<12x128xbf16>,
    return
  }
  func.func @transform_0(%arg0: i32) -> (i32, i32, i32) {
    %c0_i32 = arith.constant 0 : i32
    %c0_i32_0 = arith.constant 0 : i32
    %c0_i32_1 = arith.constant 0 : i32
    return %arg0, %c0_i32, %c0_i32_0 : i32, i32, i32
  }
  func.func @transform_1(%arg0: i32) -> (i32, i32) {
    %c0_i32 = arith.constant 0 : i32
    %c0_i32_0 = arith.constant 0 : i32
    %c0_i32_1 = arith.constant 0 : i32
    return %c0_i32, %c0_i32_0 : i32, i32
  }
  func.func @transform_2(%arg0: i32) -> (i32, i32) {
    %c0_i32 = arith.constant 0 : i32
    %c0_i32_0 = arith.constant 0 : i32
    %c0_i32_1 = arith.constant 0 : i32
    return %c0_i32, %c0_i32_0 : i32, i32
  }
  func.func @transform_3(%arg0: i32) -> (i32, i32) {
    %c0_i32 = arith.constant 0 : i32
    %c0_i32_0 = arith.constant 0 : i32
    %c0_i32_1 = arith.constant 0 : i32
    return %c0_i32, %c0_i32_0 : i32, i32
  }
  func.func @transform_4(%arg0: i32) -> (i32, i32) {
    %c0_i32 = arith.constant 0 : i32
    %c0_i32_0 = arith.constant 0 : i32
    %c0_i32_1 = arith.constant 0 : i32
    return %c0_i32, %c0_i32_0 : i32, i32
  }
  func.func @transform_5(%arg0: i32) -> (i32, i32) {
    %c0_i32 = arith.constant 0 : i32
    %c0_i32_0 = arith.constant 0 : i32
    return %arg0, %c0_i32 : i32, i32
  }
}

module attributes {stable_mosaic.version = 11 : i64} {
  func.func @_fc_kernel(%arg0: i32, %arg1: memref<2x9216xbf16, #tpu.memory_space<vmem>>, %arg2: memref<9216x128xbf16, #tpu.memory_space<vmem>>, %arg3: memref<1x128xf32, #tpu.memory_space<vmem>>, %arg4: memref<128x10xf32, #tpu.memory_space<vmem>>, %arg5: memref<1x10xf32, #tpu.memory_space<vmem>>, %arg6: memref<2x10xf32, #tpu.memory_space<vmem>>) attributes {dimension_semantics = [#tpu.dimension_semantics<parallel>], iteration_bounds = array<i64: 1>, scalar_prefetch = 0 : i64, scratch_operands = 0 : i64, tpu.core_type = #tpu.core_type<tc>, window_params = [{transform_indices = @transform_0, window_bounds = array<i64: 2, 9216>}, {pipeline_mode = #tpu.pipeline_mode<synchronous>, transform_indices = @transform_1, window_bounds = array<i64: 9216, 128>}, {pipeline_mode = #tpu.pipeline_mode<synchronous>, transform_indices = @transform_2, window_bounds = array<i64: 1, 128>}, {pipeline_mode = #tpu.pipeline_mode<synchronous>, transform_indices = @transform_3, window_bounds = array<i64: 128, 10>}, {pipeline_mode = #tpu.pipeline_mode<synchronous>, transform_indices = @transform_4, window_bounds = array<i64: 1, 10>}, {transform_indices = @transform_5, window_bounds = array<i64: 2, 10>}]} {
    %c0 = arith.constant 0 : index
    %c0_0 = arith.constant 0 : index
    %0 = vector.load %arg1[%c0, %c0_0] : memref<2x9216xbf16, #tpu.memory_space<vmem>>, vector<2x9216xbf16>
    %c0_1 = arith.constant 0 : index
    %c0_2 = arith.constant 0 : index
    %1 = vector.load %arg2[%c0_1, %c0_2] : memref<9216x128xbf16, #tpu.memory_space<vmem>>, vector<9216x128xbf16>
    %cst = arith.constant dense<0.000000e+00> : vector<2x128xf32>
    %2 = tpu.matmul %0, %1, %cst {dimension_numbers = #tpu.dot_dimension_numbers<[1], [0], [0], [1], [0, 0, 1, 1], [], []>} : vector<2x9216xbf16>, vector<9216x128xbf16>, vector<2x128xf32> -> vector<2x128xf32>
    %c0_3 = arith.constant 0 : index
    %c0_4 = arith.constant 0 : index
    %3 = vector.load %arg3[%c0_3, %c0_4] : memref<1x128xf32, #tpu.memory_space<vmem>>, vector<1x128xf32>
    %4 = vector.broadcast %3 : vector<1x128xf32> to vector<2x128xf32>
    %5 = arith.addf %2, %4 : vector<2x128xf32>
    %cst_5 = arith.constant 0.000000e+00 : f32
    %6 = vector.broadcast %cst_5 : f32 to vector<2x128xf32>
    %7 = arith.maximumf %5, %6 : vector<2x128xf32>
    %c0_6 = arith.constant 0 : index
    %c0_7 = arith.constant 0 : index
    %8 = vector.load %arg4[%c0_6, %c0_7] : memref<128x10xf32, #tpu.memory_space<vmem>>, vector<128x10xf32>
    %cst_8 = arith.constant dense<0.000000e+00> : vector<2x10xf32>
    %9 = tpu.matmul %7, %8, %cst_8 {dimension_numbers = #tpu.dot_dimension_numbers<[1], [0], [0], [1], [0, 0, 1, 1], [], []>} : vector<2x128xf32>, vector<128x10xf32>, vector<2x10xf32> -> vector<2x10xf32>
    %c0_9 = arith.constant 0 : index
    %c0_10 = arith.constant 0 : index
    %10 = vector.load %arg5[%c0_9, %c0_10] : memref<1x10xf32, #tpu.memory_space<vmem>>, vector<1x10xf32>
    %11 = vector.broadcast %10 : vector<1x10xf32> to vector<2x10xf32>
    %12 = arith.addf %9, %11 : vector<2x10xf32>
    %cst_11 = arith.constant dense<0xFF800000> : vector<2xf32>
    %13 = vector.multi_reduction <maximumf>, %12, %cst_11 [1] : vector<2x10xf32> to vector<2xf32>
    %14 = vector.shape_cast %13 : vector<2xf32> to vector<2x1xf32>
    %15 = vector.broadcast %14 : vector<2x1xf32> to vector<2x10xf32>
    %16 = arith.subf %12, %15 : vector<2x10xf32>
    %17 = math.exp %16 : vector<2x10xf32>
    %cst_12 = arith.constant dense<0.000000e+00> : vector<2xf32>
    %18 = vector.multi_reduction <add>, %17, %cst_12 [1] : vector<2x10xf32> to vector<2xf32>
    %19 = vector.shape_cast %18 : vector<2xf32> to vector<2x1xf32>
    %20 = math.log %19 : vector<2x1xf32>
    %21 = vector.broadcast %20 : vector<2x1xf32> to vector<2x10xf32>
    %22 = arith.subf %16, %21 : vector<2x10xf32>
    %c0_13 = arith.constant 0 : index
    %c0_14 = arith.constant 0 : index
    %23 = vector.load %arg6[%c0_13, %c0_14] : memref<2x10xf32, #tpu.memory_space<vmem>>, vector<2x10xf32>
    tpu.vector_store %arg6[%c0_13, %c0_14], %22 {strides = array<i32>} : memref<2x10xf32, #tpu.memory_space<vmem>>, vector<2x10xf32>,
    return
  }
  func.func @transform_0(%arg0: i32) -> (i32, i32) {
    %c0_i32 = arith.constant 0 : i32
    %c0_i32_0 = arith.constant 0 : i32
    return %arg0, %c0_i32 : i32, i32
  }
  func.func @transform_1(%arg0: i32) -> (i32, i32) {
    %c0_i32 = arith.constant 0 : i32
    %c0_i32_0 = arith.constant 0 : i32
    %c0_i32_1 = arith.constant 0 : i32
    return %c0_i32, %c0_i32_0 : i32, i32
  }
  func.func @transform_2(%arg0: i32) -> (i32, i32) {
    %c0_i32 = arith.constant 0 : i32
    %c0_i32_0 = arith.constant 0 : i32
    %c0_i32_1 = arith.constant 0 : i32
    return %c0_i32, %c0_i32_0 : i32, i32
  }
  func.func @transform_3(%arg0: i32) -> (i32, i32) {
    %c0_i32 = arith.constant 0 : i32
    %c0_i32_0 = arith.constant 0 : i32
    %c0_i32_1 = arith.constant 0 : i32
    return %c0_i32, %c0_i32_0 : i32, i32
  }
  func.func @transform_4(%arg0: i32) -> (i32, i32) {
    %c0_i32 = arith.constant 0 : i32
    %c0_i32_0 = arith.constant 0 : i32
    %c0_i32_1 = arith.constant 0 : i32
    return %c0_i32, %c0_i32_0 : i32, i32
  }
  func.func @transform_5(%arg0: i32) -> (i32, i32) {
    %c0_i32 = arith.constant 0 : i32
    %c0_i32_0 = arith.constant 0 : i32
    return %arg0, %c0_i32 : i32, i32
  }
}

</mosaic_0001>

<bundles_post_ra>
// kernel: net_forward.2
= control target key start
LH: loop header
LB: loop body
LE: loop exit
PB: predicated region body
PF: predicated region fallthrough
CT: control target
= control target key end

     0   :  { %10 = vsyncpa [#allocation8], 0  ;;  %s9458_s0 = inlined_call_operand.vmem [shape: f32[2,1,784], index: 0, kind: input, shape index: {}]   ;;  %s9459_s1 = inlined_call_operand.hbm [shape: bf16[16,32], index: 1, kind: input, shape index: {}]   ;;  %s9460_s2 = inlined_call_operand.hbm [shape: f32[1,32], index: 2, kind: input, shape index: {}]   ;;  %s9461_s3 = inlined_call_operand.vmem [shape: bf16[288,64], index: 3, kind: input, shape index: {}]   ;;  %s9462_s4 = inlined_call_operand.hbm [shape: f32[1,128], index: 4, kind: input, shape index: {}]   ;;  %s9463_s5 = inlined_call_operand.vmem [shape: bf16[144,128], index: 5, kind: output, shape index: {}]  }
   0x1   :  { %11 = vsyncpa [#allocation10], 0  ;;  %s7239_s18 = smov 0  }
   0x2 LB: > { %s7190_s19 = smov [#allocation9]   ;;  %s7245_s21 = sadd.s32 4294967295, %s7188_s18   ;;  %s7188_s18 = sphi %s7239_s18, %s17_s18  }
   0x3   : > { %s184_s20 = sshll.u32 %s7190_s19, 4  ;;  %p6182_p0 = scmp.ge.s32.totalorder %s7188_s18, 1  ;;  %s185_s20 = int_to_ptr.vmem [resolvable:$true] %s184_s20 }
   0x4   : > { %p158_p1 = scmp.lt.s32.totalorder %s7188_s18, 3  ;;  %p9464_p2 = scmp.eq.s32.totalorder %s7245_s21, 0 }
   0x5   : > { %s7191_s23 = smov [#allocation7]   ;;  %s7192_s26 = smov [#allocation11]  }
   0x6   : > { %p7250_p3 = pnand %p6182_p0, %p158_p1  ;;  %s170_s24 = sshll.u32 %s7191_s23, 4  ;;  %s7262_s24 = int_to_ptr.vmem [resolvable:$true] %s170_s24 }
   0x7   : > { %s198_s27 = sshll.u32 %s7192_s26, 4  ;;  %s7090_s30 = scalar_lea.hbm %s9460_s2, 16  ;;  %s7264_s27 = int_to_ptr.vmem [resolvable:$true] %s198_s27 }
   0x8   : > { %s9466_s22 = scalar_select %p7250_p3, 1, 0 }
   0x9   : > { %p7026_p4 = pneg %p7250_p3  ;;  %p7091_p6 = scmp.ne.s32.totalorder %s9460_s2, %s7090_s30 }
   0xa   : > { %p7097_p10 = scmp.lt.u32.totalorder %s7090_s30, %s9460_s2 }
   0xb   : > { %p7258_p5 = pnand %p9464_p2, %p7026_p4 }
   0xd   : > { %p7274_p7 = pneg %p7258_p5 }
   0xf   : > { %p7093_p8 = pnand %p7274_p7, %p7091_p6 }
  0x11   : > { %p7094_p9 = pneg %p7093_p8 }
  0x13   : > { %p7099_p11 = pnand %p7097_p10, %p7094_p9 }
  0x15   : > { %7102 = shalt.err (!%p7099_p11)
}
  0x16   : > { %s7103_s11 = scalar_lea.vmem %s185_s20, 16  ;;  %s7110_s12 = scalar_lea.vmem %s185_s20, 32 }
  0x17   : > { %p7104_p12 = scmp.ne.s32.totalorder %s185_s20, %s7103_s11  ;;  %p7111_p1 = scmp.lt.s32.totalorder %s185_s20, %s185_s20 }
  0x18   : > { %p7112_p4 = scmp.lt.s32.totalorder %s7110_s12, %s7103_s11 }
  0x19   : > { %p7106_p13 = pnand %p7104_p12, %p7274_p7 }
  0x1a   : > { %p7113_p2 = por %p7112_p4, %p7111_p1 }
  0x1b   : > { %p7107_p0 = pneg %p7106_p13 }
  0x1d   : > { %p7114_p3 = pnand %p7113_p2, %p7107_p0 }
  0x1f   : > { %7117 = shalt.err (!%p7114_p3)
}
  0x20   : > { %7032 = dma.hbm_to_vmem [thread:$0]  (!%p7258_p5), %s9460_s2, 16, %s185_s20, [#allocation10]  }
  0x21   : > { %s7118_s17 = scalar_lea.hbm %s9459_s1, 128 }
  0x22   : > { %p7119_p6 = scmp.ne.s32.totalorder %s9459_s1, %s7118_s17  ;;  %p7125_p2 = scmp.lt.u32.totalorder %s7118_s17, %s9459_s1 }
  0x24   : > { %p7121_p8 = pnand %p7119_p6, %p7274_p7 }
  0x26   : > { %p7122_p9 = pneg %p7121_p8 }
  0x28   : > { %p7127_p3 = pnand %p7125_p2, %p7122_p9 }
  0x2a   : > { %7130 = shalt.err (!%p7127_p3)
}
  0x2b   : > { %s7131_s20 = scalar_lea.vmem %s7262_s24, 128  ;;  %p7139_p13 = scmp.lt.s32.totalorder %s7262_s24, %s7262_s24 }
  0x2c   : > { %p7132_p10 = scmp.ne.s32.totalorder %s7262_s24, %s7131_s20  ;;  %p7140_p0 = scmp.lt.s32.totalorder %s7131_s20, %s7131_s20 }
  0x2e   : > { %p7134_p11 = pnand %p7132_p10, %p7274_p7  ;;  %p7141_p1 = por %p7140_p0, %p7139_p13 }
  0x30   : > { %p7135_p12 = pneg %p7134_p11 }
  0x32   : > { %p7142_p4 = pnand %p7141_p1, %p7135_p12 }
  0x34   : > { %7145 = shalt.err (!%p7142_p4)
}
  0x35   : > { %s7193_s29 = smov 64   ;;  %s7194_s30 = smov 4  }
  0x36   : > { %7029 = dma.hbm_to_vmem [thread:$0]  (!%p7258_p5), %s9459_s1, 128, %s7262_s24, [#allocation8], %s7193_s29, %s7193_s29, %s7194_s30  }
  0x37   : > { %s7146_s11 = scalar_lea.hbm %s9462_s4, 16 }
  0x38   : > { %p7147_p6 = scmp.ne.s32.totalorder %s9462_s4, %s7146_s11  ;;  %p7153_p2 = scmp.lt.u32.totalorder %s7146_s11, %s9462_s4 }
  0x3a   : > { %p7149_p8 = pnand %p7147_p6, %p7274_p7 }
  0x3c   : > { %p7150_p9 = pneg %p7149_p8 }
  0x3e   : > { %p7155_p3 = pnand %p7153_p2, %p7150_p9 }
  0x40   : > { %7158 = shalt.err (!%p7155_p3)
}
  0x41   : > { %s7159_s24 = scalar_lea.vmem %s7264_s27, 16  ;;  %s7166_s16 = scalar_lea.vmem %s7264_s27, 32 }
  0x42   : > { %p7160_p10 = scmp.ne.s32.totalorder %s7264_s27, %s7159_s24  ;;  %p7167_p13 = scmp.lt.s32.totalorder %s7264_s27, %s7264_s27 }
  0x43   : > { %p7168_p0 = scmp.lt.s32.totalorder %s7166_s16, %s7159_s24 }
  0x44   : > { %p7162_p11 = pnand %p7160_p10, %p7274_p7 }
  0x45   : > { %p7169_p1 = por %p7168_p0, %p7167_p13 }
  0x46   : > { %p7163_p12 = pneg %p7162_p11 }
  0x48   : > { %p7170_p4 = pnand %p7169_p1, %p7163_p12 }
  0x4a   : > { %7173 = shalt.err (!%p7170_p4)
}
  0x4b   : > { %7035 = dma.hbm_to_vmem [thread:$0]  (!%p7258_p5), %s9462_s4, 16, %s7264_s27, [#allocation10]  }
  0x4c   : > { %p9469_p6 = scmp.ne.s32.totalorder %s9466_s22, 0 }
  0x4d   : > { %p9470_p7 = scmp.eq.s32.totalorder (!%p9469_p6), %s7245_s21, 0 }
  0x4e   : > { %218 = sbr.rel (%p9469_p6) target bundleno = 1885 (0x75d), region = 40 }
  0x55   : > { %7179 = dma.done.wait (%p9470_p7), [#allocation8], 128   ;;  %p9471_p8 = pmov %p9470_p7 }
  0x56   : > { %p9472_p9 = pmov %p9470_p7 }
  0x57   : > { %7181 = vsyncadd (%p9471_p8), [#allocation8], 4294967168 }
  0x58   : > { %7183 = dma.done.wait (%p9472_p9), [#allocation10], 32   ;;  %p9473_p2 = pmov %p9470_p7 }
  0x59   : > { %p253_p3 = scmp.lt.s32.totalorder %s7245_s21, 1  ;;  %v264_v0 = vlaneseq  ;;  %v7195_v1 = vmov 0.0   ;;  %s7196_s26 = smov 100   ;;  %vm275_vm4 = vcmask 130049   ;;  %v7069_v13 = vld [vmem:[#allocation7] sm:$0xff]   ;;  %vm7204_vm5 = vmmov 0  }
  0x5a   : > { %7185 = vsyncadd (%p9473_p2), [#allocation10], 4294967264  ;;  %269 = vst [vmem:[#allocation3 + $0x38] sm:$0xfe] %v7195_v1  ;;  %6443 = vmatprep.subr.bf16.mxu0 %v7195_v1  ;;  %s7197_s28 = smov 127   ;;  %s7198_s20 = smov 99   ;;  %6445 = vmatprep.mubr.msk.bf16.mxu0 %vm7204_vm5, %v7195_v1 }
  0x5b   : > { %270 = vst [vmem:[#allocation3 + $0x40] sm:$0xfe] %v7195_v1  ;;  %271 = vst [vmem:[#allocation3 + $0x48] sm:$0xfe] %v7195_v1  ;;  %s254_s22 = scalar_select %p253_p3, %s7245_s21, 1  ;;  %vm265_vm0 = vcmp.ge.s32.totalorder %v264_v0, 16  ;;  %6444 = vmatpush3.bf16.msra.mxu0 %v7069_v13 }
  0x5c   : > { %272 = vst [vmem:[#allocation3 + $0x50] sm:$0xfe] %v7195_v1  ;;  %273 = vst [vmem:[#allocation3 + $0x58] sm:$0xfe] %v7195_v1  ;;  %vm266_vm1 = vcmp.lt.s32.totalorder %v264_v0, 80  ;;  %vm7357_vm3 = vcmp.lt.s32.totalorder %v264_v0, 784 }
  0x5d   : > { %274 = vst [vmem:[#allocation3 + $0x60] sm:$0xfe] %v7195_v1  ;;  %vm267_vm2 = vmand %vm265_vm0, %vm266_vm1  ;;  %s7013_s25 = smul.u32 7, %s254_s22  ;;  %s7199_s29 = smov 126   ;;  %vm321_vm6 = vcmask 818176   ;;  %vm299_vm7 = vcmask 1039360  }
  0x5e   : > { %268 = vst.msk [vmem:[#allocation2 + $0x6] sm:$0x1] %vm267_vm2, %v7195_v1  ;;  %s7200_s30 = smov 72   ;;  %s7201_s6 = smov 98   ;;  %vm332_vm8 = vcmask 809984   ;;  %vm310_vm9 = vcmask 1031168  }
  0x5f   : > { %s256_s23 = scalar_lea.vmem %s9458_s0, %s7013_s25  ;;  %276 = vst.msk [vmem:[#allocation3 + $0x68] sm:$0xfe] %vm275_vm4, %v7195_v1  ;;  %s7202_s7 = smov 70   ;;  %vm354_vm10 = vcmask 588800   ;;  %vm343_vm11 = vcmask 801792   ;;  %vm376_vm12 = vcmask 572416  }
  0x60   : > { %v286_v3 = vld [vmem:[%s256_s23] sm:$0x7f]  ;;  %s7203_s9 = smov 71   ;;  %vm365_vm13 = vcmask 580608   ;;  %vm530_vm14 = vcmask 130048   ;;  %vm277_vm15 = vcmask 261120  }
  0x61   : > { %290 = vst.msk [vmem:[#allocation2] sm:$0x7f] %vm7357_vm3, %v286_v3  ;;  %s7205_s10 = smov 64   ;;  %s7206_s11 = smov 96   ;;  %vm1838_vm0 = vcmask 523520   ;;  %vm2231_vm1 = vcmask 785920  }
  0x62   : > { %278 = vst.msk [vmem:[#allocation4 + $0x310] sm:$0xff] %vm277_vm15, %v7195_v1  ;;  %279 = vst.msk [vmem:[#allocation4 + $0x318] sm:$0xff] %vm277_vm15, %v7195_v1  ;;  %vm2624_vm2 = vcmask 1048320   ;;  %vm5774_vm4 = vcmask 1041408  }
  0x63   : > { %280 = vst.msk [vmem:[#allocation4 + $0x320] sm:$0xff] %vm277_vm15, %v7195_v1  ;;  %281 = vst.msk [vmem:[#allocation4 + $0x328] sm:$0xff] %vm277_vm15, %v7195_v1 }
  0x64   : > { %282 = vst.msk [vmem:[#allocation4 + $0x330] sm:$0xff] %vm277_vm15, %v7195_v1  ;;  %283 = vst.msk [vmem:[#allocation4 + $0x338] sm:$0xff] %vm277_vm15, %v7195_v1 }
  0x65   : > { %284 = vst.msk [vmem:[#allocation4 + $0x340] sm:$0xff] %vm277_vm15, %v7195_v1  ;;  %285 = vst.msk [vmem:[#allocation4 + $0x348] sm:$0xff] %vm277_vm15, %v7195_v1 }
  0x68   : > { %v316_v4 = vld [vmem:[#allocation2] sm:$0x7f] }
  0x69   : > { %v294_v5 = vld [vmem:[#allocation2] sm:$0x7f]  ;;  %318 = vrot.lane.b32.xlu1 %v316_v4, %s7196_s26 }
  0x6a   : > { %296 = vrot.lane.b32.xlu0 %v294_v5, %s7197_s28  ;;  %v327_v6 = vld [vmem:[#allocation2] sm:$0x7f] }
  0x6b   : > { %v305_v7 = vld [vmem:[#allocation2] sm:$0x7f] }
  0x6c   : > { %v291_v8 = vld [vmem:[#allocation2] sm:$0x7f] }
  0x6d   : > { %v349_v9 = vld [vmem:[#allocation2] sm:$0x7f]  ;;  %292 = vst.msk [vmem:[#allocation3] ss:$8 sm:$0xf] %vm7357_vm3, %v291_v8  ;;  %329 = vrot.lane.b32.xlu1 %v327_v6, %s7198_s20 }
  0x6e   : > { %v338_v10 = vld [vmem:[#allocation2] sm:$0x7f]  ;;  %293 = vst.msk [vmem:[#allocation3] ss:$8 sm:$0x70] %vm7357_vm3, %v291_v8  ;;  %307 = vrot.lane.b32.xlu0 %v305_v7, %s7199_s29 }
  0x6f   : > { %v371_v11 = vld [vmem:[#allocation2] sm:$0x7f] }
  0x70   : > { %v360_v12 = vld [vmem:[#allocation2] sm:$0x7f] }
  0x71   : > { %351 = vrot.lane.b32.xlu1 %v349_v9, %s7200_s30 }
  0x72   : > { %340 = vrot.lane.b32.xlu0 %v338_v10, %s7201_s6 }
  0x75   : > { %373 = vrot.lane.b32.xlu1 %v371_v11, %s7202_s7 }
  0x76   : > { %362 = vrot.lane.b32.xlu0 %v360_v12, %s7203_s9  ;;  %s7208_s9 = smov 32  }
  0xdb   : > { %v319_v14 = vpop.permute.xlu1 %318 }
  0xdc   : > { %v297_v15 = vpop.permute.xlu0 %296  ;;  %v320_v16 = vrot.slane %v319_v14, 1 }
  0xdd   : > { %v298_v17 = vrot.slane %v297_v15, 1 }
  0xde   : > { %v322_v18 = vsel %vm321_vm6, %v319_v14, %v320_v16 }
  0xdf   : > { %v300_v19 = vsel %vm299_vm7, %v297_v15, %v298_v17  ;;  %325 = vst.msk [vmem:[#allocation3 + $0x3] ss:$8 sm:$0xf] %vm7357_vm3, %v322_v18  ;;  %326 = vst.msk [vmem:[#allocation3 + $0x3] ss:$8 sm:$0x70] %vm7357_vm3, %v322_v18  ;;  %v330_v20 = vpop.permute.xlu1 %329 }
  0xe0   : > { %303 = vst.msk [vmem:[#allocation3 + $0x1] ss:$8 sm:$0xf] %vm7357_vm3, %v300_v19  ;;  %304 = vst.msk [vmem:[#allocation3 + $0x1] ss:$8 sm:$0x70] %vm7357_vm3, %v300_v19  ;;  %v308_v21 = vpop.permute.xlu0 %307 }
  0xe1   : > { %v331_v22 = vrot.slane %v330_v20, 1  ;;  %v309_v23 = vrot.slane %v308_v21, 1 }
  0xe3   : > { %v333_v24 = vsel %vm332_vm8, %v330_v20, %v331_v22  ;;  %v311_v25 = vsel %vm310_vm9, %v308_v21, %v309_v23  ;;  %v352_v26 = vpop.permute.xlu1 %351  ;;  %v7500_v23 = vld [vmem:[#allocation9] ss:$0 sm:$0xff] }
  0xe4   : > { %336 = vst.msk [vmem:[#allocation3 + $0x4] ss:$8 sm:$0xf] %vm7357_vm3, %v333_v24  ;;  %337 = vst.msk [vmem:[#allocation3 + $0x4] ss:$8 sm:$0x70] %vm7357_vm3, %v333_v24  ;;  %v341_v27 = vpop.permute.xlu0 %340 }
  0xe5   : > { %314 = vst.msk [vmem:[#allocation3 + $0x2] ss:$8 sm:$0xf] %vm7357_vm3, %v311_v25  ;;  %315 = vst.msk [vmem:[#allocation3 + $0x2] ss:$8 sm:$0x70] %vm7357_vm3, %v311_v25 }
  0xe6   : > { %v353_v28 = vrot.slane %v352_v26, 1  ;;  %v342_v29 = vrot.slane %v341_v27, 1 }
  0xe7   : > { %v374_v32 = vpop.permute.xlu1 %373 }
  0xe8   : > { %v355_v30 = vsel %vm354_vm10, %v352_v26, %v353_v28  ;;  %v344_v31 = vsel %vm343_vm11, %v341_v27, %v342_v29  ;;  %v363_v33 = vpop.permute.xlu0 %362  ;;  %v375_v34 = vrot.slane %v374_v32, 1 }
  0xe9   : > { %358 = vst.msk [vmem:[#allocation3 + $0x6] ss:$8 sm:$0xf] %vm7357_vm3, %v355_v30  ;;  %359 = vst.msk [vmem:[#allocation3 + $0x6] ss:$8 sm:$0x70] %vm7357_vm3, %v355_v30 }
  0xea   : > { %347 = vst.msk [vmem:[#allocation3 + $0x5] ss:$8 sm:$0xf] %vm7357_vm3, %v344_v31  ;;  %348 = vst.msk [vmem:[#allocation3 + $0x5] ss:$8 sm:$0x70] %vm7357_vm3, %v344_v31  ;;  %v377_v36 = vsel %vm376_vm12, %v374_v32, %v375_v34 }
  0xeb   : > { %v364_v35 = vrot.slane %v363_v33, 1  ;;  %380 = vst.msk [vmem:[#allocation3 + $0x38] ss:$8 sm:$0xf] %vm7357_vm3, %v377_v36 }
  0xec   : > { %381 = vst.msk [vmem:[#allocation3 + $0x38] ss:$8 sm:$0x70] %vm7357_vm3, %v377_v36 }
  0xed   : > { %v366_v37 = vsel %vm365_vm13, %v363_v33, %v364_v35 }
  0xee   : > { %369 = vst.msk [vmem:[#allocation3 + $0x7] ss:$8 sm:$0xf] %vm7357_vm3, %v366_v37  ;;  %370 = vst.msk [vmem:[#allocation3 + $0x7] ss:$8 sm:$0x70] %vm7357_vm3, %v366_v37 }
  0xef   : > { %vm5530_vm3 = vcmask 523264  }
  0xf2   : > { %v390_v39 = vld [vmem:[#allocation3 + $0x40] sm:$0xff]  ;;  %v389_v42 = vld [vmem:[#allocation3 + $0x38] sm:$0xff]  ;;  %v392_v45 = vld [vmem:[#allocation3 + $0x50] sm:$0xff] }
  0xf3   : > { %v391_v47 = vld [vmem:[#allocation3 + $0x48] sm:$0xff]  ;;  %v394_v51 = vld [vmem:[#allocation3 + $0x60] sm:$0xff]  ;;  %v393_v53 = vld [vmem:[#allocation3 + $0x58] sm:$0xff] }
  0xf4   : > { %v395_v57 = vld [vmem:[#allocation3 + $0x68] sm:$0xff] }
  0xf5   : > { %v383_v38 = vld [vmem:[#allocation3 + $0x8] sm:$0xff]  ;;  %v382_v40 = vld [vmem:[#allocation3] sm:$0xff]  ;;  %v385_v44 = vld [vmem:[#allocation3 + $0x18] sm:$0xff] }
  0xf6   : > { %v397_v41 = vpack.c.bf16 %v390_v39, %v383_v38  ;;  %v396_v43 = vpack.c.bf16 %v389_v42, %v382_v40  ;;  %v384_v46 = vld [vmem:[#allocation3 + $0x10] sm:$0xff]  ;;  %v399_v48 = vpack.c.bf16 %v392_v45, %v385_v44  ;;  %v387_v50 = vld [vmem:[#allocation3 + $0x28] sm:$0xff]  ;;  %v386_v52 = vld [vmem:[#allocation3 + $0x20] sm:$0xff] }
  0xf7   : > { %v398_v49 = vpack.c.bf16 %v391_v47, %v384_v46  ;;  %v401_v54 = vpack.c.bf16 %v394_v51, %v387_v50  ;;  %v400_v55 = vpack.c.bf16 %v393_v53, %v386_v52  ;;  %v388_v56 = vld [vmem:[#allocation3 + $0x30] sm:$0xff] }
  0xf8   : > { %428 = vxpose.xlu1.c.b16.start.end [1/1] (short) %v397_v41, 128  ;;  %412 = vxpose.xlu0.c.b16.start.end [1/1] (short) %v396_v43, 128  ;;  %v402_v58 = vpack.c.bf16 %v395_v57, %v388_v56 }
 0x115   : > { %460 = vxpose.xlu1.c.b16.start.end [1/1] (short) %v399_v48, 128  ;;  %444 = vxpose.xlu0.c.b16.start.end [1/1] (short) %v398_v49, 128 }
 0x132   : > { %492 = vxpose.xlu1.c.b16.start.end [1/1] (short) %v401_v54, 128  ;;  %476 = vxpose.xlu0.c.b16.start.end [1/1] (short) %v400_v55, 128 }
 0x14f   : > { %508 = vxpose.xlu0.c.b16.start.end [1/1] (short) (narrow) %v402_v58, 16 }
 0x15e   : > { %v420_v59 = vpop.trf.xlu0  ;;  %v436_v4 = vpop.trf.xlu1 }
 0x15f   : > { %6446 = vmatmul.mubr.msk.bf16.vlgmr.msra.gmra.mrb[0].mxu0 %vm530_vm14, %v420_v59 }
 0x160   : > { %6449 = vmatprep.mubr.msk.bf16.mxu0 %vm7204_vm5, %v7195_v1 }
 0x162   : > { %v421_v60 = vpop.trf.xlu0  ;;  %v437_v5 = vpop.trf.xlu1 }
 0x166   : > { %v422_v61 = vpop.trf.xlu0  ;;  %v438_v6 = vpop.trf.xlu1 }
 0x167   : > { %6450 = vmatmul.mubr.msk.bf16.gmra.mrb[4].mxu0 %vm530_vm14, %v421_v60 }
 0x168   : > { %6453 = vmatprep.mubr.msk.bf16.mxu0 %vm7204_vm5, %v7195_v1 }
 0x16a   : > { %v423_v62 = vpop.trf.xlu0  ;;  %v439_v7 = vpop.trf.xlu1 }
 0x16e   : > { %v424_v63 = vpop.trf.xlu0  ;;  %v440_v8 = vpop.trf.xlu1 }
 0x16f   : > { %6454 = vmatmul.mubr.msk.bf16.gmra.mrb[8].mxu0 %vm530_vm14, %v422_v61 }
 0x170   : > { %6457 = vmatprep.mubr.msk.bf16.mxu0 %vm7204_vm5, %v7195_v1 }
 0x172   : > { %v425_v0 = vpop.trf.xlu0  ;;  %v441_v9 = vpop.trf.xlu1 }
 0x176   : > { %v426_v2 = vpop.trf.xlu0  ;;  %v442_v10 = vpop.trf.xlu1 }
 0x177   : > { %6458 = vmatmul.mubr.msk.bf16.gmra.mrb[12].mxu0 %vm530_vm14, %v423_v62 }
 0x178   : > { %6461 = vmatprep.mubr.msk.bf16.mxu0 %vm7204_vm5, %v7195_v1 }
 0x17a   : > { %v427_v3 = vpop.trf.xlu0  ;;  %v443_v11 = vpop.trf.xlu1 }
 0x17e   : > { %v452_v12 = vpop.trf.xlu0  ;;  %v468_v20 = vpop.trf.xlu1 }
 0x17f   : > { %6462 = vmatmul.mubr.msk.bf16.gmra.mrb[16].mxu0 %vm530_vm14, %v424_v63 }
 0x180   : > { %6465 = vmatprep.mubr.msk.bf16.mxu0 %vm7204_vm5, %v7195_v1 }
 0x182   : > { %v453_v13 = vpop.trf.xlu0  ;;  %v469_v21 = vpop.trf.xlu1 }
 0x186   : > { %v454_v14 = vpop.trf.xlu0  ;;  %v470_v22 = vpop.trf.xlu1 }
 0x187   : > { %6466 = vmatmul.mubr.msk.bf16.gmra.mrb[20].mxu0 %vm530_vm14, %v425_v0 }
 0x188   : > { %6469 = vmatprep.mubr.msk.bf16.mxu0 %vm7204_vm5, %v7195_v1 }
 0x18a   : > { %v455_v15 = vpop.trf.xlu0  ;;  %v471_v28 = vpop.trf.xlu1 }
 0x18e   : > { %v456_v16 = vpop.trf.xlu0  ;;  %v472_v37 = vpop.trf.xlu1 }
 0x18f   : > { %6470 = vmatmul.mubr.msk.bf16.gmra.mrb[24].mxu0 %vm530_vm14, %v426_v2 }
 0x190   : > { %6473 = vmatprep.mubr.msk.bf16.mxu0 %vm7204_vm5, %v7195_v1 }
 0x192   : > { %v457_v17 = vpop.trf.xlu0  ;;  %v473_v49 = vpop.trf.xlu1 }
 0x196   : > { %v458_v18 = vpop.trf.xlu0  ;;  %v474_v61 = vpop.trf.xlu1 }
 0x197   : > { %6474 = vmatmul.mubr.msk.bf16.gmra.mrb[28].mxu0 %vm530_vm14, %v427_v3 }
 0x198   : > { %6477 = vmatprep.mubr.msk.bf16.mxu0 %vm7204_vm5, %v7195_v1 }
 0x19a   : > { %v459_v19 = vpop.trf.xlu0 }
 0x19f   : > { %6478 = vmatmul.mubr.msk.bf16.gmra.mrb[32].mxu0 %vm530_vm14, %v436_v4 }
 0x1a0   : > { %6481 = vmatprep.mubr.msk.bf16.mxu0 %vm7204_vm5, %v7195_v1 }
 0x1a7   : > { %6482 = vmatmul.mubr.msk.bf16.gmra.mrb[36].mxu0 %vm530_vm14, %v437_v5 }
 0x1a8   : > { %6485 = vmatprep.mubr.msk.bf16.mxu0 %vm7204_vm5, %v7195_v1 }
 0x1af   : > { %6486 = vmatmul.mubr.msk.bf16.gmra.mrb[40].mxu0 %vm530_vm14, %v438_v6 }
 0x1b0   : > { %6489 = vmatprep.mubr.msk.bf16.mxu0 %vm7204_vm5, %v7195_v1 }
 0x1b7   : > { %6490 = vmatmul.mubr.msk.bf16.gmra.mrb[44].mxu0 %vm530_vm14, %v439_v7 }
 0x1b8   : > { %6493 = vmatprep.mubr.msk.bf16.mxu0 %vm7204_vm5, %v7195_v1 }
 0x1bf   : > { %6494 = vmatmul.mubr.msk.bf16.gmra.mrb[48].mxu0 %vm530_vm14, %v440_v8 }
 0x1c0   : > { %6497 = vmatprep.mubr.msk.bf16.mxu0 %vm7204_vm5, %v7195_v1 }
 0x1c7   : > { %6498 = vmatmul.mubr.msk.bf16.gmra.mrb[52].mxu0 %vm530_vm14, %v441_v9 }
 0x1c8   : > { %6501 = vmatprep.mubr.msk.bf16.mxu0 %vm7204_vm5, %v7195_v1 }
 0x1cf   : > { %6502 = vmatmul.mubr.msk.bf16.gmra.mrb[56].mxu0 %vm530_vm14, %v442_v10 }
 0x1d0   : > { %6505 = vmatprep.mubr.msk.bf16.mxu0 %vm7204_vm5, %v7195_v1 }
 0x1d7   : > { %6506 = vmatmul.mubr.msk.bf16.gmra.mrb[60].mxu0 %vm530_vm14, %v443_v11 }
 0x1d8   : > { %6509 = vmatprep.mubr.msk.bf16.mxu0 %vm7204_vm5, %v7195_v1 }
 0x1df   : > { %6510 = vmatmul.mubr.msk.bf16.gmra.mrb[64].mxu0 %vm530_vm14, %v452_v12 }
 0x1e0   : > { %6513 = vmatprep.mubr.msk.bf16.mxu0 %vm7204_vm5, %v7195_v1 }
 0x1e7   : > { %6514 = vmatmul.mubr.msk.bf16.gmra.mrb[68].mxu0 %vm530_vm14, %v453_v13  ;;  %v475_v13 = vpop.trf.xlu1 }
 0x1e8   : > { %6517 = vmatprep.mubr.msk.bf16.mxu0 %vm7204_vm5, %v7195_v1 }
 0x1ef   : > { %6518 = vmatmul.mubr.msk.bf16.gmra.mrb[72].mxu0 %vm530_vm14, %v454_v14 }
 0x1f0   : > { %6521 = vmatprep.mubr.msk.bf16.mxu0 %vm7204_vm5, %v7195_v1 }
 0x1f7   : > { %6522 = vmatmul.mubr.msk.bf16.gmra.mrb[76].mxu0 %vm530_vm14, %v455_v15 }
 0x1f8   : > { %6525 = vmatprep.mubr.msk.bf16.mxu0 %vm7204_vm5, %v7195_v1 }
 0x1ff   : > { %6526 = vmatmul.mubr.msk.bf16.gmra.mrb[80].mxu0 %vm530_vm14, %v456_v16 }
 0x200   : > { %6529 = vmatprep.mubr.msk.bf16.mxu0 %vm7204_vm5, %v7195_v1 }
 0x207   : > { %6530 = vmatmul.mubr.msk.bf16.gmra.mrb[84].mxu0 %vm530_vm14, %v457_v17 }
 0x208   : > { %6533 = vmatprep.mubr.msk.bf16.mxu0 %vm7204_vm5, %v7195_v1 }
 0x20f   : > { %6534 = vmatmul.mubr.msk.bf16.gmra.mrb[88].mxu0 %vm530_vm14, %v458_v18 }
 0x210   : > { %6537 = vmatprep.mubr.msk.bf16.mxu0 %vm7204_vm5, %v7195_v1 }
 0x217   : > { %6538 = vmatmul.mubr.msk.bf16.gmra.mrb[92].mxu0 %vm530_vm14, %v459_v19 }
 0x218   : > { %6541 = vmatprep.mubr.msk.bf16.mxu0 %vm7204_vm5, %v7195_v1 }
 0x21f   : > { %6542 = vmatmul.mubr.msk.bf16.gmra.mrb[96].mxu0 %vm530_vm14, %v468_v20 }
 0x220   : > { %6545 = vmatprep.mubr.msk.bf16.mxu0 %vm7204_vm5, %v7195_v1 }
 0x227   : > { %6546 = vmatmul.mubr.msk.bf16.gmra.mrb[100].mxu0 %vm530_vm14, %v469_v21 }
 0x228   : > { %6549 = vmatprep.mubr.msk.bf16.mxu0 %vm7204_vm5, %v7195_v1 }
 0x22f   : > { %6550 = vmatmul.mubr.msk.bf16.gmra.mrb[104].mxu0 %vm530_vm14, %v470_v22 }
 0x230   : > { %6553 = vmatprep.mubr.msk.bf16.mxu0 %vm7204_vm5, %v7195_v1 }
 0x232   : > { %v712_v24 = vpop.f32.mrb[0].mxu0 }
 0x233   : > { %v713_v25 = vadd.f32 %v7500_v23, %v712_v24  ;;  %v6447_v26 = vpop.f32.mrb[1].mxu0 }
 0x234   : > { %v715_v27 = vpop.f32.mrb[2].mxu0 }
 0x235   : > { %v1103_v29 = vmax.f32 %v713_v25, 0.0  ;;  %v716_v30 = vadd.f32 %v7500_v23, %v715_v27  ;;  %v6448_v31 = vpop.f32.mrb[3].mxu0 }
 0x237   : > { %1201 = vst.msk [vmem:[#allocation4] sm:$0xff] %vm277_vm15, %v1103_v29  ;;  %v1104_v32 = vmax.f32 %v716_v30, 0.0  ;;  %6554 = vmatmul.mubr.msk.bf16.gmra.mrb[108].mxu0 %vm530_vm14, %v471_v28  ;;  %v484_v29 = vpop.trf.xlu0 }
 0x238   : > { %6557 = vmatprep.mubr.msk.bf16.mxu0 %vm7204_vm5, %v7195_v1 }
 0x239   : > { %1202 = vst.msk [vmem:[#allocation4 + $0x8] sm:$0xff] %vm277_vm15, %v1104_v32 }
 0x23a   : > { %v720_v33 = vpop.f32.mrb[4].mxu0 }
 0x23b   : > { %v721_v34 = vadd.f32 %v7500_v23, %v720_v33  ;;  %v6451_v35 = vpop.f32.mrb[5].mxu0 }
 0x23c   : > { %v723_v36 = vpop.f32.mrb[6].mxu0 }
 0x23d   : > { %v1105_v38 = vmax.f32 %v721_v34, 0.0  ;;  %v724_v39 = vadd.f32 %v7500_v23, %v723_v36  ;;  %v6452_v40 = vpop.f32.mrb[7].mxu0 }
 0x23e   : > { %v1299_v42 = vld [vmem:[#allocation4] sm:$0xff] }
 0x23f   : > { %1203 = vst.msk [vmem:[#allocation4 + $0x10] sm:$0xff] %vm277_vm15, %v1105_v38  ;;  %v1106_v41 = vmax.f32 %v724_v39, 0.0  ;;  %6558 = vmatmul.mubr.msk.bf16.gmra.mrb[112].mxu0 %vm530_vm14, %v472_v37 }
 0x240   : > { %6561 = vmatprep.mubr.msk.bf16.mxu0 %vm7204_vm5, %v7195_v1  ;;  %v1300_v43 = vld [vmem:[#allocation4 + $0x8] sm:$0xff] }
 0x241   : > { %1204 = vst.msk [vmem:[#allocation4 + $0x18] sm:$0xff] %vm277_vm15, %v1106_v41  ;;  %v1397_v44 = vpack.c.bf16 %v1300_v43, %v1299_v42 }
 0x242   : > { %v728_v45 = vpop.f32.mrb[8].mxu0 }
 0x243   : > { %v729_v46 = vadd.f32 %v7500_v23, %v728_v45  ;;  %v6455_v47 = vpop.f32.mrb[9].mxu0  ;;  %1446 = vst.msk [vmem:[#allocation5] sm:$0xff] %vm277_vm15, %v1397_v44 }
 0x244   : > { %v731_v48 = vpop.f32.mrb[10].mxu0 }
 0x245   : > { %v1107_v50 = vmax.f32 %v729_v46, 0.0  ;;  %v732_v51 = vadd.f32 %v7500_v23, %v731_v48  ;;  %v6456_v52 = vpop.f32.mrb[11].mxu0  ;;  %v485_v46 = vpop.trf.xlu0 }
 0x246   : > { %v1301_v54 = vld [vmem:[#allocation4 + $0x10] sm:$0xff] }
 0x247   : > { %1205 = vst.msk [vmem:[#allocation4 + $0x20] sm:$0xff] %vm277_vm15, %v1107_v50  ;;  %v1108_v53 = vmax.f32 %v732_v51, 0.0  ;;  %6562 = vmatmul.mubr.msk.bf16.gmra.mrb[116].mxu0 %vm530_vm14, %v473_v49 }
 0x248   : > { %6565 = vmatprep.mubr.msk.bf16.mxu0 %vm7204_vm5, %v7195_v1  ;;  %v1302_v55 = vld [vmem:[#allocation4 + $0x18] sm:$0xff] }
 0x249   : > { %1206 = vst.msk [vmem:[#allocation4 + $0x28] sm:$0xff] %vm277_vm15, %v1108_v53  ;;  %v1398_v56 = vpack.c.bf16 %v1302_v55, %v1301_v54 }
 0x24a   : > { %v736_v57 = vpop.f32.mrb[12].mxu0 }
 0x24b   : > { %v737_v58 = vadd.f32 %v7500_v23, %v736_v57  ;;  %v6459_v59 = vpop.f32.mrb[13].mxu0  ;;  %1447 = vst.msk [vmem:[#allocation5 + $0x18] sm:$0xff] %vm277_vm15, %v1398_v56 }
 0x24c   : > { %v739_v60 = vpop.f32.mrb[14].mxu0 }
 0x24d   : > { %v1109_v62 = vmax.f32 %v737_v58, 0.0  ;;  %v740_v63 = vadd.f32 %v7500_v23, %v739_v60  ;;  %v6460_v0 = vpop.f32.mrb[15].mxu0 }
 0x24e   : > { %v2674_v3 = vld [vmem:[#allocation4 + $0x1d] sm:$0xff]  ;;  %v486_v0 = vpop.trf.xlu0 }
 0x24f   : > { %1207 = vst.msk [vmem:[#allocation4 + $0x30] sm:$0xff] %vm277_vm15, %v1109_v62  ;;  %v1110_v2 = vmax.f32 %v740_v63, 0.0  ;;  %6566 = vmatmul.mubr.msk.bf16.gmra.mrb[120].mxu0 %vm530_vm14, %v474_v61  ;;  %v1303_v5 = vld [vmem:[#allocation4 + $0x20] sm:$0xff] }
 0x250   : > { %6569 = vmatprep.mubr.msk.bf16.mxu0 %vm7204_vm5, %v7195_v1  ;;  %v2675_v4 = vld [vmem:[#allocation4 + $0x25] sm:$0xff] }
 0x251   : > { %1208 = vst.msk [vmem:[#allocation4 + $0x38] sm:$0xff] %vm277_vm15, %v1110_v2  ;;  %v1304_v6 = vld [vmem:[#allocation4 + $0x28] sm:$0xff]  ;;  %v2772_v8 = vpack.c.bf16 %v2675_v4, %v2674_v3 }
 0x252   : > { %v744_v7 = vpop.f32.mrb[16].mxu0  ;;  %v1399_v9 = vpack.c.bf16 %v1304_v6, %v1303_v5 }
 0x253   : > { %v745_v10 = vadd.f32 %v7500_v23, %v744_v7  ;;  %v6463_v11 = vpop.f32.mrb[17].mxu0  ;;  %2821 = vst.msk [vmem:[#allocation5 + $0x8] sm:$0xff] %vm277_vm15, %v2772_v8 }
 0x254   : > { %v747_v12 = vpop.f32.mrb[18].mxu0  ;;  %1448 = vst.msk [vmem:[#allocation5 + $0x30] sm:$0xff] %vm277_vm15, %v1399_v9 }
 0x255   : > { %v1111_v14 = vmax.f32 %v745_v10, 0.0  ;;  %v748_v15 = vadd.f32 %v7500_v23, %v747_v12  ;;  %v6464_v16 = vpop.f32.mrb[19].mxu0 }
 0x256   : > { %v2676_v18 = vld [vmem:[#allocation4 + $0x2d] sm:$0xff] }
 0x257   : > { %1209 = vst.msk [vmem:[#allocation4 + $0x40] sm:$0xff] %vm277_vm15, %v1111_v14  ;;  %v1112_v17 = vmax.f32 %v748_v15, 0.0  ;;  %6570 = vmatmul.mubr.msk.bf16.gmra.mrb[124].mxu0 %vm530_vm14, %v475_v13  ;;  %v1305_v22 = vld [vmem:[#allocation4 + $0x30] sm:$0xff] }
 0x258   : > { %6573 = vmatprep.mubr.msk.bf16.mxu0 %vm7204_vm5, %v7195_v1  ;;  %v2677_v19 = vld [vmem:[#allocation4 + $0x35] sm:$0xff] }
 0x259   : > { %1210 = vst.msk [vmem:[#allocation4 + $0x48] sm:$0xff] %vm277_vm15, %v1112_v17  ;;  %v2773_v21 = vpack.c.bf16 %v2677_v19, %v2676_v18  ;;  %v1306_v24 = vld [vmem:[#allocation4 + $0x38] sm:$0xff]  ;;  %v487_v19 = vpop.trf.xlu0 }
 0x25a   : > { %v752_v20 = vpop.f32.mrb[20].mxu0  ;;  %v1400_v27 = vpack.c.bf16 %v1306_v24, %v1305_v22 }
 0x25b   : > { %v753_v25 = vadd.f32 %v7500_v23, %v752_v20  ;;  %v6467_v26 = vpop.f32.mrb[21].mxu0  ;;  %2822 = vst.msk [vmem:[#allocation5 + $0x20] sm:$0xff] %vm277_vm15, %v2773_v21 }
 0x25c   : > { %v755_v28 = vpop.f32.mrb[22].mxu0  ;;  %1449 = vst.msk [vmem:[#allocation5 + $0x48] sm:$0xff] %vm277_vm15, %v1400_v27 }
 0x25d   : > { %v1113_v30 = vmax.f32 %v753_v25, 0.0  ;;  %v756_v31 = vadd.f32 %v7500_v23, %v755_v28  ;;  %v6468_v32 = vpop.f32.mrb[23].mxu0 }
 0x25e   : > { %v4046_v34 = vld [vmem:[#allocation4 + $0x3a] sm:$0xff] }
 0x25f   : > { %1211 = vst.msk [vmem:[#allocation4 + $0x50] sm:$0xff] %vm277_vm15, %v1113_v30  ;;  %v1114_v33 = vmax.f32 %v756_v31, 0.0  ;;  %6574 = vmatmul.mubr.msk.bf16.gmra.mrb[128].mxu0 %vm530_vm14, %v484_v29  ;;  %v2678_v38 = vld [vmem:[#allocation4 + $0x3d] sm:$0xff] }
 0x260   : > { %v4047_v35 = vld [vmem:[#allocation4 + $0x42] sm:$0xff]  ;;  %6577 = vmatprep.mubr.msk.bf16.mxu0 %vm7204_vm5, %v7195_v1 }
 0x261   : > { %v4144_v36 = vpack.c.bf16 %v4047_v35, %v4046_v34  ;;  %1212 = vst.msk [vmem:[#allocation4 + $0x58] sm:$0xff] %vm277_vm15, %v1114_v33  ;;  %v2679_v39 = vld [vmem:[#allocation4 + $0x45] sm:$0xff] }
 0x262   : > { %v760_v37 = vpop.f32.mrb[24].mxu0  ;;  %v2774_v42 = vpack.c.bf16 %v2679_v39, %v2678_v38  ;;  %v1307_v43 = vld [vmem:[#allocation4 + $0x40] sm:$0xff]  ;;  %v1308_v44 = vld [vmem:[#allocation4 + $0x48] sm:$0xff]  ;;  %v488_v38 = vpop.trf.xlu0 }
 0x263   : > { %4193 = vst.msk [vmem:[#allocation5 + $0x10] sm:$0xff] %vm277_vm15, %v4144_v36  ;;  %v761_v40 = vadd.f32 %v7500_v23, %v760_v37  ;;  %v6471_v41 = vpop.f32.mrb[25].mxu0  ;;  %v1401_v47 = vpack.c.bf16 %v1308_v44, %v1307_v43 }
 0x264   : > { %v763_v45 = vpop.f32.mrb[26].mxu0  ;;  %2823 = vst.msk [vmem:[#allocation5 + $0x38] sm:$0xff] %vm277_vm15, %v2774_v42 }
 0x265   : > { %v1115_v48 = vmax.f32 %v761_v40, 0.0  ;;  %v764_v49 = vadd.f32 %v7500_v23, %v763_v45  ;;  %v6472_v50 = vpop.f32.mrb[27].mxu0  ;;  %1450 = vst.msk [vmem:[#allocation5 + $0x60] sm:$0xff] %vm277_vm15, %v1401_v47 }
 0x266   : > { %v4048_v52 = vld [vmem:[#allocation4 + $0x4a] sm:$0xff] }
 0x267   : > { %1213 = vst.msk [vmem:[#allocation4 + $0x60] sm:$0xff] %vm277_vm15, %v1115_v48  ;;  %v1116_v51 = vmax.f32 %v764_v49, 0.0  ;;  %6578 = vmatmul.mubr.msk.bf16.gmra.mrb[132].mxu0 %vm530_vm14, %v485_v46  ;;  %v2680_v56 = vld [vmem:[#allocation4 + $0x4d] sm:$0xff] }
 0x268   : > { %v4049_v53 = vld [vmem:[#allocation4 + $0x52] sm:$0xff]  ;;  %6581 = vmatprep.mubr.msk.bf16.mxu0 %vm7204_vm5, %v7195_v1 }
 0x269   : > { %1214 = vst.msk [vmem:[#allocation4 + $0x68] sm:$0xff] %vm277_vm15, %v1116_v51  ;;  %v4145_v54 = vpack.c.bf16 %v4049_v53, %v4048_v52  ;;  %v2681_v57 = vld [vmem:[#allocation4 + $0x55] sm:$0xff] }
 0x26a   : > { %v768_v55 = vpop.f32.mrb[28].mxu0  ;;  %v2775_v60 = vpack.c.bf16 %v2681_v57, %v2680_v56  ;;  %v1309_v61 = vld [vmem:[#allocation4 + $0x50] sm:$0xff]  ;;  %v1310_v62 = vld [vmem:[#allocation4 + $0x58] sm:$0xff]  ;;  %v489_v56 = vpop.trf.xlu0 }
 0x26b   : > { %v769_v58 = vadd.f32 %v7500_v23, %v768_v55  ;;  %v6475_v59 = vpop.f32.mrb[29].mxu0  ;;  %4194 = vst.msk [vmem:[#allocation5 + $0x28] sm:$0xff] %vm277_vm15, %v4145_v54  ;;  %v1402_v2 = vpack.c.bf16 %v1310_v62, %v1309_v61 }
 0x26c   : > { %v771_v63 = vpop.f32.mrb[30].mxu0  ;;  %2824 = vst.msk [vmem:[#allocation5 + $0x50] sm:$0xff] %vm277_vm15, %v2775_v60 }
 0x26d   : > { %v1117_v3 = vmax.f32 %v769_v58, 0.0  ;;  %v772_v4 = vadd.f32 %v7500_v23, %v771_v63  ;;  %v6476_v5 = vpop.f32.mrb[31].mxu0  ;;  %1451 = vst.msk [vmem:[#allocation5 + $0x78] sm:$0xff] %vm277_vm15, %v1402_v2 }
 0x26e   : > { %v4050_v7 = vld [vmem:[#allocation4 + $0x5a] sm:$0xff] }
 0x26f   : > { %1215 = vst.msk [vmem:[#allocation4 + $0x70] sm:$0xff] %vm277_vm15, %v1117_v3  ;;  %v1118_v6 = vmax.f32 %v772_v4, 0.0  ;;  %6582 = vmatmul.mubr.msk.bf16.gmra.mrb[136].mxu0 %vm530_vm14, %v486_v0  ;;  %v2682_v11 = vld [vmem:[#allocation4 + $0x5d] sm:$0xff] }
 0x270   : > { %v4051_v8 = vld [vmem:[#allocation4 + $0x62] sm:$0xff]  ;;  %6585 = vmatprep.mubr.msk.bf16.mxu0 %vm7204_vm5, %v7195_v1 }
 0x271   : > { %1216 = vst.msk [vmem:[#allocation4 + $0x78] sm:$0xff] %vm277_vm15, %v1118_v6  ;;  %v4146_v9 = vpack.c.bf16 %v4051_v8, %v4050_v7  ;;  %v2683_v12 = vld [vmem:[#allocation4 + $0x65] sm:$0xff] }
 0x272   : > { %v776_v10 = vpop.f32.mrb[32].mxu0  ;;  %v2776_v15 = vpack.c.bf16 %v2683_v12, %v2682_v11  ;;  %v1311_v16 = vld [vmem:[#allocation4 + $0x60] sm:$0xff]  ;;  %v1312_v17 = vld [vmem:[#allocation4 + $0x68] sm:$0xff]  ;;  %v490_v11 = vpop.trf.xlu0 }
 0x273   : > { %v777_v13 = vadd.f32 %v7500_v23, %v776_v10  ;;  %v6479_v14 = vpop.f32.mrb[33].mxu0  ;;  %4195 = vst.msk [vmem:[#allocation5 + $0x40] sm:$0xff] %vm277_vm15, %v4146_v9  ;;  %v1403_v20 = vpack.c.bf16 %v1312_v17, %v1311_v16 }
 0x274   : > { %v779_v18 = vpop.f32.mrb[34].mxu0  ;;  %2825 = vst.msk [vmem:[#allocation5 + $0x68] sm:$0xff] %vm277_vm15, %v2776_v15 }
 0x275   : > { %v1119_v21 = vmax.f32 %v777_v13, 0.0  ;;  %v780_v22 = vadd.f32 %v7500_v23, %v779_v18  ;;  %v6480_v24 = vpop.f32.mrb[35].mxu0  ;;  %1452 = vst.msk [vmem:[#allocation5 + $0x90] sm:$0xff] %vm277_vm15, %v1403_v20 }
 0x276   : > { %v4052_v26 = vld [vmem:[#allocation4 + $0x6a] sm:$0xff] }
 0x277   : > { %1217 = vst.msk [vmem:[#allocation4 + $0x80] sm:$0xff] %vm277_vm15, %v1119_v21  ;;  %v1120_v25 = vmax.f32 %v780_v22, 0.0  ;;  %6586 = vmatmul.mubr.msk.bf16.gmra.mrb[140].mxu0 %vm530_vm14, %v487_v19  ;;  %v2684_v30 = vld [vmem:[#allocation4 + $0x6d] sm:$0xff] }
 0x278   : > { %v4053_v27 = vld [vmem:[#allocation4 + $0x72] sm:$0xff]  ;;  %6589 = vmatprep.mubr.msk.bf16.mxu0 %vm7204_vm5, %v7195_v1 }
 0x279   : > { %1218 = vst.msk [vmem:[#allocation4 + $0x88] sm:$0xff] %vm277_vm15, %v1120_v25  ;;  %v4147_v28 = vpack.c.bf16 %v4053_v27, %v4052_v26  ;;  %v2685_v31 = vld [vmem:[#allocation4 + $0x75] sm:$0xff] }
 0x27a   : > { %v784_v29 = vpop.f32.mrb[36].mxu0  ;;  %v2777_v34 = vpack.c.bf16 %v2685_v31, %v2684_v30  ;;  %v1313_v35 = vld [vmem:[#allocation4 + $0x70] sm:$0xff]  ;;  %v1314_v36 = vld [vmem:[#allocation4 + $0x78] sm:$0xff]  ;;  %v491_v30 = vpop.trf.xlu0 }
 0x27b   : > { %v785_v32 = vadd.f32 %v7500_v23, %v784_v29  ;;  %v6483_v33 = vpop.f32.mrb[37].mxu0  ;;  %4196 = vst.msk [vmem:[#allocation5 + $0x58] sm:$0xff] %vm277_vm15, %v4147_v28  ;;  %v1404_v39 = vpack.c.bf16 %v1314_v36, %v1313_v35 }
 0x27c   : > { %v787_v37 = vpop.f32.mrb[38].mxu0  ;;  %2826 = vst.msk [vmem:[#allocation5 + $0x80] sm:$0xff] %vm277_vm15, %v2777_v34 }
 0x27d   : > { %v1121_v40 = vmax.f32 %v785_v32, 0.0  ;;  %v788_v41 = vadd.f32 %v7500_v23, %v787_v37  ;;  %v6484_v42 = vpop.f32.mrb[39].mxu0  ;;  %1453 = vst.msk [vmem:[#allocation5 + $0xa8] sm:$0xff] %vm277_vm15, %v1404_v39 }
 0x27e   : > { %v4054_v44 = vld [vmem:[#allocation4 + $0x7a] sm:$0xff] }
 0x27f   : > { %1219 = vst.msk [vmem:[#allocation4 + $0x90] sm:$0xff] %vm277_vm15, %v1121_v40  ;;  %v1122_v43 = vmax.f32 %v788_v41, 0.0  ;;  %6590 = vmatmul.mubr.msk.bf16.gmra.mrb[144].mxu0 %vm530_vm14, %v488_v38  ;;  %v2686_v48 = vld [vmem:[#allocation4 + $0x7d] sm:$0xff] }
 0x280   : > { %v4055_v45 = vld [vmem:[#allocation4 + $0x82] sm:$0xff]  ;;  %6593 = vmatprep.mubr.msk.bf16.mxu0 %vm7204_vm5, %v7195_v1 }
 0x281   : > { %1220 = vst.msk [vmem:[#allocation4 + $0x98] sm:$0xff] %vm277_vm15, %v1122_v43  ;;  %v4148_v46 = vpack.c.bf16 %v4055_v45, %v4054_v44  ;;  %v2687_v49 = vld [vmem:[#allocation4 + $0x85] sm:$0xff] }
 0x282   : > { %v792_v47 = vpop.f32.mrb[40].mxu0  ;;  %v2778_v52 = vpack.c.bf16 %v2687_v49, %v2686_v48  ;;  %v1315_v53 = vld [vmem:[#allocation4 + $0x80] sm:$0xff]  ;;  %v1316_v54 = vld [vmem:[#allocation4 + $0x88] sm:$0xff]  ;;  %v500_v48 = vpop.trf.xlu1 }
 0x283   : > { %v793_v50 = vadd.f32 %v7500_v23, %v792_v47  ;;  %v6487_v51 = vpop.f32.mrb[41].mxu0  ;;  %4197 = vst.msk [vmem:[#allocation5 + $0x70] sm:$0xff] %vm277_vm15, %v4148_v46  ;;  %v1405_v57 = vpack.c.bf16 %v1316_v54, %v1315_v53 }
 0x284   : > { %v795_v55 = vpop.f32.mrb[42].mxu0  ;;  %2827 = vst.msk [vmem:[#allocation5 + $0x98] sm:$0xff] %vm277_vm15, %v2778_v52 }
 0x285   : > { %v1123_v58 = vmax.f32 %v793_v50, 0.0  ;;  %v796_v59 = vadd.f32 %v7500_v23, %v795_v55  ;;  %v6488_v60 = vpop.f32.mrb[43].mxu0  ;;  %1454 = vst.msk [vmem:[#allocation5 + $0xc0] sm:$0xff] %vm277_vm15, %v1405_v57 }
 0x286   : > { %v4056_v62 = vld [vmem:[#allocation4 + $0x8a] sm:$0xff] }
 0x287   : > { %1221 = vst.msk [vmem:[#allocation4 + $0xa0] sm:$0xff] %vm277_vm15, %v1123_v58  ;;  %v1124_v61 = vmax.f32 %v796_v59, 0.0  ;;  %6594 = vmatmul.mubr.msk.bf16.gmra.mrb[148].mxu0 %vm530_vm14, %v489_v56  ;;  %v2688_v3 = vld [vmem:[#allocation4 + $0x8d] sm:$0xff] }
 0x288   : > { %v4057_v63 = vld [vmem:[#allocation4 + $0x92] sm:$0xff]  ;;  %6597 = vmatprep.mubr.msk.bf16.mxu0 %vm7204_vm5, %v7195_v1 }
 0x289   : > { %1222 = vst.msk [vmem:[#allocation4 + $0xa8] sm:$0xff] %vm277_vm15, %v1124_v61  ;;  %v4149_v0 = vpack.c.bf16 %v4057_v63, %v4056_v62  ;;  %v2689_v4 = vld [vmem:[#allocation4 + $0x95] sm:$0xff] }
 0x28a   : > { %v800_v2 = vpop.f32.mrb[44].mxu0  ;;  %v2779_v7 = vpack.c.bf16 %v2689_v4, %v2688_v3  ;;  %v1317_v8 = vld [vmem:[#allocation4 + $0x90] sm:$0xff]  ;;  %v1318_v9 = vld [vmem:[#allocation4 + $0x98] sm:$0xff]  ;;  %v501_v3 = vpop.trf.xlu1 }
 0x28b   : > { %v801_v5 = vadd.f32 %v7500_v23, %v800_v2  ;;  %v6491_v6 = vpop.f32.mrb[45].mxu0  ;;  %4198 = vst.msk [vmem:[#allocation5 + $0x88] sm:$0xff] %vm277_vm15, %v4149_v0  ;;  %v1406_v12 = vpack.c.bf16 %v1318_v9, %v1317_v8  ;;  %v3354_v9 = vld [vmem:[#allocation4 + $0x318] sm:$0xff] }
 0x28c   : > { %v803_v10 = vpop.f32.mrb[46].mxu0  ;;  %2828 = vst.msk [vmem:[#allocation5 + $0xb0] sm:$0xff] %vm277_vm15, %v2779_v7 }
 0x28d   : > { %v1125_v13 = vmax.f32 %v801_v5, 0.0  ;;  %v804_v14 = vadd.f32 %v7500_v23, %v803_v10  ;;  %v6492_v15 = vpop.f32.mrb[47].mxu0  ;;  %1455 = vst.msk [vmem:[#allocation5 + $0xd8] sm:$0xff] %vm277_vm15, %v1406_v12  ;;  %v3355_v10 = vld [vmem:[#allocation4 + $0x320] sm:$0xff] }
 0x28e   : > { %v4058_v17 = vld [vmem:[#allocation4 + $0x9a] sm:$0xff] }
 0x28f   : > { %1223 = vst.msk [vmem:[#allocation4 + $0xb0] sm:$0xff] %vm277_vm15, %v1125_v13  ;;  %v1126_v16 = vmax.f32 %v804_v14, 0.0  ;;  %6598 = vmatmul.mubr.msk.bf16.gmra.mrb[152].mxu0 %vm530_vm14, %v490_v11  ;;  %v2690_v21 = vld [vmem:[#allocation4 + $0x9d] sm:$0xff]  ;;  %v3406_v13 = vpack.c.bf16 %v3355_v10, %v3354_v9 }
 0x290   : > { %v4059_v18 = vld [vmem:[#allocation4 + $0xa2] sm:$0xff]  ;;  %6601 = vmatprep.mubr.msk.bf16.mxu0 %vm7204_vm5, %v7195_v1 }
 0x291   : > { %1224 = vst.msk [vmem:[#allocation4 + $0xb8] sm:$0xff] %vm277_vm15, %v1126_v16  ;;  %v4150_v19 = vpack.c.bf16 %v4059_v18, %v4058_v17  ;;  %v2691_v22 = vld [vmem:[#allocation4 + $0xa5] sm:$0xff]  ;;  %3550 = vrot.lane.b32.xlu1 %v3406_v13, %s7205_s10  ;;  %v3746_v18 = vld [vmem:[#allocation4 + $0x319] sm:$0xff] }
 0x292   : > { %v808_v20 = vpop.f32.mrb[48].mxu0  ;;  %v2780_v26 = vpack.c.bf16 %v2691_v22, %v2690_v21  ;;  %v1319_v27 = vld [vmem:[#allocation4 + $0xa0] sm:$0xff]  ;;  %v1320_v28 = vld [vmem:[#allocation4 + $0xa8] sm:$0xff]  ;;  %v502_v22 = vpop.trf.xlu1 }
 0x293   : > { %v809_v24 = vadd.f32 %v7500_v23, %v808_v20  ;;  %v6495_v25 = vpop.f32.mrb[49].mxu0  ;;  %4199 = vst.msk [vmem:[#allocation5 + $0xa0] sm:$0xff] %vm277_vm15, %v4150_v19  ;;  %v1407_v31 = vpack.c.bf16 %v1320_v28, %v1319_v27  ;;  %v3747_v19 = vld [vmem:[#allocation4 + $0x321] sm:$0xff] }
 0x294   : > { %v811_v29 = vpop.f32.mrb[50].mxu0  ;;  %2829 = vst.msk [vmem:[#allocation5 + $0xc8] sm:$0xff] %vm277_vm15, %v2780_v26 }
 0x295   : > { %v1127_v32 = vmax.f32 %v809_v24, 0.0  ;;  %v812_v33 = vadd.f32 %v7500_v23, %v811_v29  ;;  %v6496_v34 = vpop.f32.mrb[51].mxu0  ;;  %1456 = vst.msk [vmem:[#allocation5 + $0xf0] sm:$0xff] %vm277_vm15, %v1407_v31  ;;  %v3798_v24 = vpack.c.bf16 %v3747_v19, %v3746_v18 }
 0x296   : > { %v4060_v36 = vld [vmem:[#allocation4 + $0xaa] sm:$0xff] }
 0x297   : > { %1225 = vst.msk [vmem:[#allocation4 + $0xc0] sm:$0xff] %vm277_vm15, %v1127_v32  ;;  %v1128_v35 = vmax.f32 %v812_v33, 0.0  ;;  %6602 = vmatmul.mubr.msk.bf16.gmra.mrb[156].mxu0 %vm530_vm14, %v491_v30  ;;  %v2692_v40 = vld [vmem:[#allocation4 + $0xad] sm:$0xff]  ;;  %3942 = vrot.lane.b32.xlu1 %v3798_v24, %s7206_s11 }
 0x298   : > { %v4061_v37 = vld [vmem:[#allocation4 + $0xb2] sm:$0xff]  ;;  %6605 = vmatprep.mubr.msk.bf16.mxu0 %vm7204_vm5, %v7195_v1  ;;  %v3356_v34 = vld [vmem:[#allocation4 + $0x328] sm:$0xff] }
 0x299   : > { %1226 = vst.msk [vmem:[#allocation4 + $0xc8] sm:$0xff] %vm277_vm15, %v1128_v35  ;;  %v4151_v38 = vpack.c.bf16 %v4061_v37, %v4060_v36  ;;  %v2693_v41 = vld [vmem:[#allocation4 + $0xb5] sm:$0xff] }
 0x29a   : > { %v816_v39 = vpop.f32.mrb[52].mxu0  ;;  %v2781_v44 = vpack.c.bf16 %v2693_v41, %v2692_v40  ;;  %v1321_v45 = vld [vmem:[#allocation4 + $0xb0] sm:$0xff]  ;;  %v1322_v46 = vld [vmem:[#allocation4 + $0xb8] sm:$0xff] }
 0x29b   : > { %v817_v42 = vadd.f32 %v7500_v23, %v816_v39  ;;  %v6499_v43 = vpop.f32.mrb[53].mxu0  ;;  %4200 = vst.msk [vmem:[#allocation5 + $0xb8] sm:$0xff] %vm277_vm15, %v4151_v38  ;;  %v1408_v49 = vpack.c.bf16 %v1322_v46, %v1321_v45  ;;  %v3357_v35 = vld [vmem:[#allocation4 + $0x330] sm:$0xff]  ;;  %v503_v46 = vpop.trf.xlu1 }
 0x29c   : > { %v819_v47 = vpop.f32.mrb[54].mxu0  ;;  %2830 = vst.msk [vmem:[#allocation5 + $0xe0] sm:$0xff] %vm277_vm15, %v2781_v44  ;;  %v3407_v38 = vpack.c.bf16 %v3357_v35, %v3356_v34 }
 0x29d   : > { %v1129_v50 = vmax.f32 %v817_v42, 0.0  ;;  %v820_v51 = vadd.f32 %v7500_v23, %v819_v47  ;;  %v6500_v52 = vpop.f32.mrb[55].mxu0  ;;  %1457 = vst.msk [vmem:[#allocation5 + $0x108] sm:$0xff] %vm277_vm15, %v1408_v49 }
 0x29e   : > { %v4062_v54 = vld [vmem:[#allocation4 + $0xba] sm:$0xff]  ;;  %3552 = vrot.lane.b32.xlu1 %v3407_v38, %s7205_s10 }
 0x29f   : > { %1227 = vst.msk [vmem:[#allocation4 + $0xd0] sm:$0xff] %vm277_vm15, %v1129_v50  ;;  %v1130_v53 = vmax.f32 %v820_v51, 0.0  ;;  %6606 = vmatmul.mubr.msk.bf16.gmra.mrb[160].mxu0 %vm530_vm14, %v500_v48  ;;  %v2694_v58 = vld [vmem:[#allocation4 + $0xbd] sm:$0xff] }
 0x2a0   : > { %v4063_v55 = vld [vmem:[#allocation4 + $0xc2] sm:$0xff]  ;;  %6609 = vmatprep.mubr.msk.bf16.mxu0 %vm7204_vm5, %v7195_v1 }
 0x2a1   : > { %1228 = vst.msk [vmem:[#allocation4 + $0xd8] sm:$0xff] %vm277_vm15, %v1130_v53  ;;  %v4152_v56 = vpack.c.bf16 %v4063_v55, %v4062_v54  ;;  %v2695_v59 = vld [vmem:[#allocation4 + $0xc5] sm:$0xff] }
 0x2a2   : > { %v824_v57 = vpop.f32.mrb[56].mxu0  ;;  %v2782_v62 = vpack.c.bf16 %v2695_v59, %v2694_v58  ;;  %v1323_v63 = vld [vmem:[#allocation4 + $0xc0] sm:$0xff]  ;;  %v1324_v0 = vld [vmem:[#allocation4 + $0xc8] sm:$0xff] }
 0x2a3   : > { %v825_v60 = vadd.f32 %v7500_v23, %v824_v57  ;;  %v6503_v61 = vpop.f32.mrb[57].mxu0  ;;  %4201 = vst.msk [vmem:[#allocation5 + $0xd0] sm:$0xff] %vm277_vm15, %v4152_v56  ;;  %v1409_v4 = vpack.c.bf16 %v1324_v0, %v1323_v63 }
 0x2a4   : > { %v827_v2 = vpop.f32.mrb[58].mxu0  ;;  %2831 = vst.msk [vmem:[#allocation5 + $0xf8] sm:$0xff] %vm277_vm15, %v2782_v62 }
 0x2a5   : > { %v1131_v5 = vmax.f32 %v825_v60, 0.0  ;;  %v828_v6 = vadd.f32 %v7500_v23, %v827_v2  ;;  %v6504_v7 = vpop.f32.mrb[59].mxu0  ;;  %1458 = vst.msk [vmem:[#allocation5 + $0x120] sm:$0xff] %vm277_vm15, %v1409_v4  ;;  %v504_v4 = vpop.trf.xlu1 }
 0x2a6   : > { %v4064_v11 = vld [vmem:[#allocation4 + $0xca] sm:$0xff] }
 0x2a7   : > { %1229 = vst.msk [vmem:[#allocation4 + $0xe0] sm:$0xff] %vm277_vm15, %v1131_v5  ;;  %v1132_v8 = vmax.f32 %v828_v6, 0.0  ;;  %6610 = vmatmul.mubr.msk.bf16.gmra.mrb[164].mxu0 %vm530_vm14, %v501_v3  ;;  %v2696_v20 = vld [vmem:[#allocation4 + $0xcd] sm:$0xff] }
 0x2a8   : > { %v4065_v12 = vld [vmem:[#allocation4 + $0xd2] sm:$0xff]  ;;  %6613 = vmatprep.mubr.msk.bf16.mxu0 %vm7204_vm5, %v7195_v1 }
 0x2a9   : > { %v4153_v14 = vpack.c.bf16 %v4065_v12, %v4064_v11  ;;  %1230 = vst.msk [vmem:[#allocation4 + $0xe8] sm:$0xff] %vm277_vm15, %v1132_v8  ;;  %v2697_v25 = vld [vmem:[#allocation4 + $0xd5] sm:$0xff] }
 0x2aa   : > { %v832_v15 = vpop.f32.mrb[60].mxu0  ;;  %v1325_v26 = vld [vmem:[#allocation4 + $0xd0] sm:$0xff]  ;;  %v1326_v27 = vld [vmem:[#allocation4 + $0xd8] sm:$0xff]  ;;  %v2783_v31 = vpack.c.bf16 %v2697_v25, %v2696_v20 }
 0x2ab   : > { %4202 = vst.msk [vmem:[#allocation5 + $0xe8] sm:$0xff] %vm277_vm15, %v4153_v14  ;;  %v833_v16 = vadd.f32 %v7500_v23, %v832_v15  ;;  %v6507_v17 = vpop.f32.mrb[61].mxu0  ;;  %v1410_v32 = vpack.c.bf16 %v1326_v27, %v1325_v26 }
 0x2ac   : > { %v835_v21 = vpop.f32.mrb[62].mxu0  ;;  %2832 = vst.msk [vmem:[#allocation5 + $0x110] sm:$0xff] %vm277_vm15, %v2783_v31 }
 0x2ad   : > { %v1133_v28 = vmax.f32 %v833_v16, 0.0  ;;  %v836_v29 = vadd.f32 %v7500_v23, %v835_v21  ;;  %v6508_v30 = vpop.f32.mrb[63].mxu0  ;;  %1459 = vst.msk [vmem:[#allocation5 + $0x138] sm:$0xff] %vm277_vm15, %v1410_v32 }
 0x2ae   : > { %v4066_v36 = vld [vmem:[#allocation4 + $0xda] sm:$0xff] }
 0x2af   : > { %1231 = vst.msk [vmem:[#allocation4 + $0xf0] sm:$0xff] %vm277_vm15, %v1133_v28  ;;  %v1134_v33 = vmax.f32 %v836_v29, 0.0  ;;  %6614 = vmatmul.mubr.msk.bf16.gmra.mrb[168].mxu0 %vm530_vm14, %v502_v22  ;;  %v2698_v43 = vld [vmem:[#allocation4 + $0xdd] sm:$0xff]  ;;  %v505_v22 = vpop.trf.xlu1 }
 0x2b0   : > { %v4067_v37 = vld [vmem:[#allocation4 + $0xe2] sm:$0xff]  ;;  %6617 = vmatprep.mubr.msk.bf16.mxu0 %vm7204_vm5, %v7195_v1 }
 0x2b1   : > { %v4154_v39 = vpack.c.bf16 %v4067_v37, %v4066_v36  ;;  %1232 = vst.msk [vmem:[#allocation4 + $0xf8] sm:$0xff] %vm277_vm15, %v1134_v33  ;;  %v2699_v44 = vld [vmem:[#allocation4 + $0xe5] sm:$0xff] }
 0x2b2   : > { %v840_v40 = vpop.f32.mrb[64].mxu0  ;;  %v2784_v47 = vpack.c.bf16 %v2699_v44, %v2698_v43  ;;  %v1327_v48 = vld [vmem:[#allocation4 + $0xe0] sm:$0xff]  ;;  %v1328_v49 = vld [vmem:[#allocation4 + $0xe8] sm:$0xff] }
 0x2b3   : > { %4203 = vst.msk [vmem:[#allocation5 + $0x100] sm:$0xff] %vm277_vm15, %v4154_v39  ;;  %v841_v41 = vadd.f32 %v7500_v23, %v840_v40  ;;  %v6511_v42 = vpop.f32.mrb[65].mxu0  ;;  %v1411_v53 = vpack.c.bf16 %v1328_v49, %v1327_v48 }
 0x2b4   : > { %v843_v45 = vpop.f32.mrb[66].mxu0  ;;  %2833 = vst.msk [vmem:[#allocation5 + $0x128] sm:$0xff] %vm277_vm15, %v2784_v47 }
 0x2b5   : > { %v1135_v50 = vmax.f32 %v841_v41, 0.0  ;;  %v844_v51 = vadd.f32 %v7500_v23, %v843_v45  ;;  %v6512_v52 = vpop.f32.mrb[67].mxu0  ;;  %1460 = vst.msk [vmem:[#allocation5 + $0x150] sm:$0xff] %vm277_vm15, %v1411_v53  ;;  %v506_v41 = vpop.trf.xlu1 }
 0x2b6   : > { %v4068_v55 = vld [vmem:[#allocation4 + $0xea] sm:$0xff] }
 0x2b7   : > { %1233 = vst.msk [vmem:[#allocation4 + $0x100] sm:$0xff] %vm277_vm15, %v1135_v50  ;;  %v1136_v54 = vmax.f32 %v844_v51, 0.0  ;;  %6618 = vmatmul.mubr.msk.bf16.gmra.mrb[172].mxu0 %vm530_vm14, %v503_v46  ;;  %v2700_v59 = vld [vmem:[#allocation4 + $0xed] sm:$0xff] }
 0x2b8   : > { %v4069_v56 = vld [vmem:[#allocation4 + $0xf2] sm:$0xff]  ;;  %6621 = vmatprep.mubr.msk.bf16.mxu0 %vm7204_vm5, %v7195_v1 }
 0x2b9   : > { %v4155_v57 = vpack.c.bf16 %v4069_v56, %v4068_v55  ;;  %1234 = vst.msk [vmem:[#allocation4 + $0x108] sm:$0xff] %vm277_vm15, %v1136_v54  ;;  %v2701_v60 = vld [vmem:[#allocation4 + $0xf5] sm:$0xff] }
 0x2ba   : > { %v848_v58 = vpop.f32.mrb[68].mxu0  ;;  %v2785_v63 = vpack.c.bf16 %v2701_v60, %v2700_v59  ;;  %v1329_v0 = vld [vmem:[#allocation4 + $0xf0] sm:$0xff]  ;;  %v1330_v2 = vld [vmem:[#allocation4 + $0xf8] sm:$0xff]  ;;  %v507_v59 = vpop.trf.xlu1 }
 0x2bb   : > { %4204 = vst.msk [vmem:[#allocation5 + $0x118] sm:$0xff] %vm277_vm15, %v4155_v57  ;;  %v849_v61 = vadd.f32 %v7500_v23, %v848_v58  ;;  %v6515_v62 = vpop.f32.mrb[69].mxu0  ;;  %v1412_v5 = vpack.c.bf16 %v1330_v2, %v1329_v0 }
 0x2bc   : > { %v851_v3 = vpop.f32.mrb[70].mxu0  ;;  %2834 = vst.msk [vmem:[#allocation5 + $0x140] sm:$0xff] %vm277_vm15, %v2785_v63 }
 0x2bd   : > { %v1137_v6 = vmax.f32 %v849_v61, 0.0  ;;  %v852_v7 = vadd.f32 %v7500_v23, %v851_v3  ;;  %v6516_v8 = vpop.f32.mrb[71].mxu0  ;;  %1461 = vst.msk [vmem:[#allocation5 + $0x168] sm:$0xff] %vm277_vm15, %v1412_v5 }
 0x2be   : > { %v4070_v10 = vld [vmem:[#allocation4 + $0xfa] sm:$0xff] }
 0x2bf   : > { %1235 = vst.msk [vmem:[#allocation4 + $0x110] sm:$0xff] %vm277_vm15, %v1137_v6  ;;  %v1138_v9 = vmax.f32 %v852_v7, 0.0  ;;  %6622 = vmatmul.mubr.msk.bf16.gmra.mrb[176].mxu0 %vm530_vm14, %v504_v4  ;;  %v2702_v14 = vld [vmem:[#allocation4 + $0xfd] sm:$0xff] }
 0x2c0   : > { %v4071_v11 = vld [vmem:[#allocation4 + $0x102] sm:$0xff]  ;;  %6625 = vmatprep.mubr.msk.bf16.mxu0 %vm7204_vm5, %v7195_v1 }
 0x2c1   : > { %v4156_v12 = vpack.c.bf16 %v4071_v11, %v4070_v10  ;;  %1236 = vst.msk [vmem:[#allocation4 + $0x118] sm:$0xff] %vm277_vm15, %v1138_v9  ;;  %v2703_v15 = vld [vmem:[#allocation4 + $0x105] sm:$0xff] }
 0x2c2   : > { %v856_v13 = vpop.f32.mrb[72].mxu0  ;;  %v2786_v18 = vpack.c.bf16 %v2703_v15, %v2702_v14  ;;  %v1331_v19 = vld [vmem:[#allocation4 + $0x100] sm:$0xff]  ;;  %v1332_v20 = vld [vmem:[#allocation4 + $0x108] sm:$0xff]  ;;  %v516_v14 = vpop.trf.xlu0 }
 0x2c3   : > { %4205 = vst.msk [vmem:[#allocation5 + $0x130] sm:$0xff] %vm277_vm15, %v4156_v12  ;;  %v857_v16 = vadd.f32 %v7500_v23, %v856_v13  ;;  %v6519_v17 = vpop.f32.mrb[73].mxu0  ;;  %v1413_v24 = vpack.c.bf16 %v1332_v20, %v1331_v19 }
 0x2c4   : > { %v859_v21 = vpop.f32.mrb[74].mxu0  ;;  %2835 = vst.msk [vmem:[#allocation5 + $0x158] sm:$0xff] %vm277_vm15, %v2786_v18 }
 0x2c5   : > { %v1139_v25 = vmax.f32 %v857_v16, 0.0  ;;  %v860_v26 = vadd.f32 %v7500_v23, %v859_v21  ;;  %v6520_v27 = vpop.f32.mrb[75].mxu0  ;;  %1462 = vst.msk [vmem:[#allocation5 + $0x180] sm:$0xff] %vm277_vm15, %v1413_v24 }
 0x2c6   : > { %v4072_v29 = vld [vmem:[#allocation4 + $0x10a] sm:$0xff] }
 0x2c7   : > { %1237 = vst.msk [vmem:[#allocation4 + $0x120] sm:$0xff] %vm277_vm15, %v1139_v25  ;;  %v1140_v28 = vmax.f32 %v860_v26, 0.0  ;;  %6626 = vmatmul.mubr.msk.bf16.gmra.mrb[180].mxu0 %vm530_vm14, %v505_v22  ;;  %v2704_v33 = vld [vmem:[#allocation4 + $0x10d] sm:$0xff] }
 0x2c8   : > { %v4073_v30 = vld [vmem:[#allocation4 + $0x112] sm:$0xff]  ;;  %6629 = vmatprep.mubr.msk.bf16.mxu0 %vm7204_vm5, %v7195_v1 }
 0x2c9   : > { %v4157_v31 = vpack.c.bf16 %v4073_v30, %v4072_v29  ;;  %1238 = vst.msk [vmem:[#allocation4 + $0x128] sm:$0xff] %vm277_vm15, %v1140_v28  ;;  %v2705_v34 = vld [vmem:[#allocation4 + $0x115] sm:$0xff] }
 0x2ca   : > { %v864_v32 = vpop.f32.mrb[76].mxu0  ;;  %v2787_v37 = vpack.c.bf16 %v2705_v34, %v2704_v33  ;;  %v1333_v38 = vld [vmem:[#allocation4 + $0x110] sm:$0xff]  ;;  %v1334_v39 = vld [vmem:[#allocation4 + $0x118] sm:$0xff] }
 0x2cb   : > { %4206 = vst.msk [vmem:[#allocation5 + $0x148] sm:$0xff] %vm277_vm15, %v4157_v31  ;;  %v865_v35 = vadd.f32 %v7500_v23, %v864_v32  ;;  %v6523_v36 = vpop.f32.mrb[77].mxu0  ;;  %v1414_v42 = vpack.c.bf16 %v1334_v39, %v1333_v38 }
 0x2cc   : > { %v867_v40 = vpop.f32.mrb[78].mxu0  ;;  %2836 = vst.msk [vmem:[#allocation5 + $0x170] sm:$0xff] %vm277_vm15, %v2787_v37 }
 0x2cd   : > { %v1141_v43 = vmax.f32 %v865_v35, 0.0  ;;  %v868_v44 = vadd.f32 %v7500_v23, %v867_v40  ;;  %v6524_v45 = vpop.f32.mrb[79].mxu0  ;;  %1463 = vst.msk [vmem:[#allocation5 + $0x198] sm:$0xff] %vm277_vm15, %v1414_v42 }
 0x2ce   : > { %v4074_v47 = vld [vmem:[#allocation4 + $0x11a] sm:$0xff] }
 0x2cf   : > { %1239 = vst.msk [vmem:[#allocation4 + $0x130] sm:$0xff] %vm277_vm15, %v1141_v43  ;;  %v1142_v46 = vmax.f32 %v868_v44, 0.0  ;;  %6630 = vmatmul.mubr.msk.bf16.gmra.mrb[184].mxu0 %vm530_vm14, %v506_v41  ;;  %v2706_v51 = vld [vmem:[#allocation4 + $0x11d] sm:$0xff] }
 0x2d0   : > { %v4075_v48 = vld [vmem:[#allocation4 + $0x122] sm:$0xff]  ;;  %6633 = vmatprep.mubr.msk.bf16.mxu0 %vm7204_vm5, %v7195_v1 }
 0x2d1   : > { %v4158_v49 = vpack.c.bf16 %v4075_v48, %v4074_v47  ;;  %1240 = vst.msk [vmem:[#allocation4 + $0x138] sm:$0xff] %vm277_vm15, %v1142_v46  ;;  %v2707_v52 = vld [vmem:[#allocation4 + $0x125] sm:$0xff] }
 0x2d2   : > { %v872_v50 = vpop.f32.mrb[80].mxu0  ;;  %v2788_v55 = vpack.c.bf16 %v2707_v52, %v2706_v51  ;;  %v1335_v56 = vld [vmem:[#allocation4 + $0x120] sm:$0xff]  ;;  %v1336_v57 = vld [vmem:[#allocation4 + $0x128] sm:$0xff] }
 0x2d3   : > { %4207 = vst.msk [vmem:[#allocation5 + $0x160] sm:$0xff] %vm277_vm15, %v4158_v49  ;;  %v873_v53 = vadd.f32 %v7500_v23, %v872_v50  ;;  %v6527_v54 = vpop.f32.mrb[81].mxu0  ;;  %v1415_v60 = vpack.c.bf16 %v1336_v57, %v1335_v56 }
 0x2d4   : > { %v875_v58 = vpop.f32.mrb[82].mxu0  ;;  %2837 = vst.msk [vmem:[#allocation5 + $0x188] sm:$0xff] %vm277_vm15, %v2788_v55 }
 0x2d5   : > { %v1143_v61 = vmax.f32 %v873_v53, 0.0  ;;  %v876_v62 = vadd.f32 %v7500_v23, %v875_v58  ;;  %v6528_v63 = vpop.f32.mrb[83].mxu0  ;;  %1464 = vst.msk [vmem:[#allocation5 + $0x1b0] sm:$0xff] %vm277_vm15, %v1415_v60 }
 0x2d6   : > { %v4076_v2 = vld [vmem:[#allocation4 + $0x12a] sm:$0xff] }
 0x2d7   : > { %1241 = vst.msk [vmem:[#allocation4 + $0x140] sm:$0xff] %vm277_vm15, %v1143_v61  ;;  %v1144_v0 = vmax.f32 %v876_v62, 0.0  ;;  %6634 = vmatmul.mubr.msk.bf16.gmra.mrb[188].mxu0 %vm530_vm14, %v507_v59  ;;  %v2708_v6 = vld [vmem:[#allocation4 + $0x12d] sm:$0xff] }
 0x2d8   : > { %v4077_v3 = vld [vmem:[#allocation4 + $0x132] sm:$0xff]  ;;  %6637 = vmatprep.mubr.msk.bf16.mxu0 %vm7204_vm5, %v7195_v1 }
 0x2d9   : > { %v4159_v4 = vpack.c.bf16 %v4077_v3, %v4076_v2  ;;  %1242 = vst.msk [vmem:[#allocation4 + $0x148] sm:$0xff] %vm277_vm15, %v1144_v0  ;;  %v2709_v7 = vld [vmem:[#allocation4 + $0x135] sm:$0xff] }
 0x2da   : > { %v880_v5 = vpop.f32.mrb[84].mxu0  ;;  %v2789_v10 = vpack.c.bf16 %v2709_v7, %v2708_v6  ;;  %v1337_v11 = vld [vmem:[#allocation4 + $0x130] sm:$0xff]  ;;  %v1338_v12 = vld [vmem:[#allocation4 + $0x138] sm:$0xff] }
 0x2db   : > { %4208 = vst.msk [vmem:[#allocation5 + $0x178] sm:$0xff] %vm277_vm15, %v4159_v4  ;;  %v881_v8 = vadd.f32 %v7500_v23, %v880_v5  ;;  %v6531_v9 = vpop.f32.mrb[85].mxu0  ;;  %v1416_v15 = vpack.c.bf16 %v1338_v12, %v1337_v11 }
 0x2dc   : > { %v883_v13 = vpop.f32.mrb[86].mxu0  ;;  %2838 = vst.msk [vmem:[#allocation5 + $0x1a0] sm:$0xff] %vm277_vm15, %v2789_v10 }
 0x2dd   : > { %v1145_v16 = vmax.f32 %v881_v8, 0.0  ;;  %v884_v17 = vadd.f32 %v7500_v23, %v883_v13  ;;  %v6532_v18 = vpop.f32.mrb[87].mxu0  ;;  %1465 = vst.msk [vmem:[#allocation5 + $0x1c8] sm:$0xff] %vm277_vm15, %v1416_v15  ;;  %v7714_v23 = vld [vmem:[#allocation9] ss:$0 sm:$0xff] }
 0x2de   : > { %v4078_v20 = vld [vmem:[#allocation4 + $0x13a] sm:$0xff] }
 0x2df   : > { %1243 = vst.msk [vmem:[#allocation4 + $0x150] sm:$0xff] %vm277_vm15, %v1145_v16  ;;  %v1146_v19 = vmax.f32 %v884_v17, 0.0  ;;  %6638 = vmatmul.mubr.msk.bf16.gmra.mrb[192].mxu0 %vm530_vm14, %v516_v14  ;;  %v2710_v25 = vld [vmem:[#allocation4 + $0x13d] sm:$0xff] }
 0x2e0   : > { %v4079_v21 = vld [vmem:[#allocation4 + $0x142] sm:$0xff] }
 0x2e1   : > { %v4160_v22 = vpack.c.bf16 %v4079_v21, %v4078_v20  ;;  %1244 = vst.msk [vmem:[#allocation4 + $0x158] sm:$0xff] %vm277_vm15, %v1146_v19  ;;  %v2711_v26 = vld [vmem:[#allocation4 + $0x145] sm:$0xff] }
 0x2e2   : > { %v888_v24 = vpop.f32.mrb[88].mxu0  ;;  %v2790_v29 = vpack.c.bf16 %v2711_v26, %v2710_v25  ;;  %v1339_v30 = vld [vmem:[#allocation4 + $0x140] sm:$0xff]  ;;  %v1340_v31 = vld [vmem:[#allocation4 + $0x148] sm:$0xff]  ;;  %v7207_v26 = vmov 0  }
 0x2e3   : > { %4209 = vst.msk [vmem:[#allocation5 + $0x190] sm:$0xff] %vm277_vm15, %v4160_v22  ;;  %v889_v27 = vadd.f32 %v7714_v23, %v888_v24  ;;  %v6535_v28 = vpop.f32.mrb[89].mxu0  ;;  %v1417_v33 = vpack.c.bf16 %v1340_v31, %v1339_v30  ;;  %6841 = vmatprep.subr.bf16.mxu1 %v7207_v26  ;;  %4680 = vmatprep.subr.bf16.mxu0 %v7207_v26  ;;  %v7070_v31 = vld [vmem:[%s9461_s3] sm:$0xff]  }
 0x2e4   : > { %v891_v32 = vpop.f32.mrb[90].mxu0  ;;  %2839 = vst.msk [vmem:[#allocation5 + $0x1b8] sm:$0xff] %vm277_vm15, %v2790_v29  ;;  %6857 = vmatpush1.bf16.msra.mxu1 %v7070_v31  ;;  %4681 = vmatpush1.bf16.msra.mxu0 %v7070_v31 }
 0x2e5   : > { %v1147_v34 = vmax.f32 %v889_v27, 0.0  ;;  %v892_v35 = vadd.f32 %v7714_v23, %v891_v32  ;;  %v6536_v36 = vpop.f32.mrb[91].mxu0  ;;  %1466 = vst.msk [vmem:[#allocation5 + $0x1e0] sm:$0xff] %vm277_vm15, %v1417_v33  ;;  %6842 = vmatprep.subr.bf16.mxu1 %v7207_v26  ;;  %4682 = vmatprep.subr.bf16.mxu0 %v7207_v26 }
 0x2e6   : > { %v4080_v38 = vld [vmem:[#allocation4 + $0x14a] sm:$0xff] }
 0x2e7   : > { %1245 = vst.msk [vmem:[#allocation4 + $0x160] sm:$0xff] %vm277_vm15, %v1147_v34  ;;  %v1148_v37 = vmax.f32 %v892_v35, 0.0  ;;  %v2712_v42 = vld [vmem:[#allocation4 + $0x14d] sm:$0xff] }
 0x2e8   : > { %v4081_v39 = vld [vmem:[#allocation4 + $0x152] sm:$0xff] }
 0x2e9   : > { %v4161_v40 = vpack.c.bf16 %v4081_v39, %v4080_v38  ;;  %1246 = vst.msk [vmem:[#allocation4 + $0x168] sm:$0xff] %vm277_vm15, %v1148_v37  ;;  %v2713_v43 = vld [vmem:[#allocation4 + $0x155] sm:$0xff] }
 0x2ea   : > { %v896_v41 = vpop.f32.mrb[92].mxu0  ;;  %v2791_v46 = vpack.c.bf16 %v2713_v43, %v2712_v42  ;;  %v1341_v47 = vld [vmem:[#allocation4 + $0x150] sm:$0xff]  ;;  %v1342_v48 = vld [vmem:[#allocation4 + $0x158] sm:$0xff] }
 0x2eb   : > { %4210 = vst.msk [vmem:[#allocation5 + $0x1a8] sm:$0xff] %vm277_vm15, %v4161_v40  ;;  %v897_v44 = vadd.f32 %v7714_v23, %v896_v41  ;;  %v6539_v45 = vpop.f32.mrb[93].mxu0  ;;  %v1418_v50 = vpack.c.bf16 %v1342_v48, %v1341_v47 }
 0x2ec   : > { %v899_v49 = vpop.f32.mrb[94].mxu0  ;;  %2840 = vst.msk [vmem:[#allocation5 + $0x1d0] sm:$0xff] %vm277_vm15, %v2791_v46  ;;  %v7071_v45 = vld [vmem:[%s9461_s3 + $0x8] sm:$0xff]  }
 0x2ed   : > { %v1149_v51 = vmax.f32 %v897_v44, 0.0  ;;  %v900_v52 = vadd.f32 %v7714_v23, %v899_v49  ;;  %v6540_v53 = vpop.f32.mrb[95].mxu0  ;;  %1467 = vst.msk [vmem:[#allocation5 + $0x1f8] sm:$0xff] %vm277_vm15, %v1418_v50  ;;  %6858 = vmatpush1.bf16.msra.mxu1 %v7071_v45  ;;  %4683 = vmatpush1.bf16.msra.mxu0 %v7071_v45  ;;  %v7072_v50 = vld [vmem:[%s9461_s3 + $0x10] sm:$0xff]  }
 0x2ee   : > { %v4082_v55 = vld [vmem:[#allocation4 + $0x15a] sm:$0xff]  ;;  %6843 = vmatprep.subr.bf16.mxu1 %v7207_v26  ;;  %4684 = vmatprep.subr.bf16.mxu0 %v7207_v26 }
 0x2ef   : > { %1247 = vst.msk [vmem:[#allocation4 + $0x170] sm:$0xff] %vm277_vm15, %v1149_v51  ;;  %v1150_v54 = vmax.f32 %v900_v52, 0.0  ;;  %v2714_v59 = vld [vmem:[#allocation4 + $0x15d] sm:$0xff] }
 0x2f0   : > { %v4083_v56 = vld [vmem:[#allocation4 + $0x162] sm:$0xff] }
 0x2f1   : > { %v4162_v57 = vpack.c.bf16 %v4083_v56, %v4082_v55  ;;  %1248 = vst.msk [vmem:[#allocation4 + $0x178] sm:$0xff] %vm277_vm15, %v1150_v54  ;;  %v2715_v60 = vld [vmem:[#allocation4 + $0x165] sm:$0xff]  ;;  %6859 = vmatpush1.bf16.msra.mxu1 %v7072_v50  ;;  %4685 = vmatpush1.bf16.msra.mxu0 %v7072_v50 }
 0x2f2   : > { %v904_v58 = vpop.f32.mrb[96].mxu0  ;;  %v2792_v63 = vpack.c.bf16 %v2715_v60, %v2714_v59  ;;  %v1343_v0 = vld [vmem:[#allocation4 + $0x160] sm:$0xff]  ;;  %v1344_v2 = vld [vmem:[#allocation4 + $0x168] sm:$0xff]  ;;  %6844 = vmatprep.subr.bf16.mxu1 %v7207_v26  ;;  %4686 = vmatprep.subr.bf16.mxu0 %v7207_v26 }
 0x2f3   : > { %4211 = vst.msk [vmem:[#allocation5 + $0x1c0] sm:$0xff] %vm277_vm15, %v4162_v57  ;;  %v905_v61 = vadd.f32 %v7714_v23, %v904_v58  ;;  %v6543_v62 = vpop.f32.mrb[97].mxu0  ;;  %v1419_v4 = vpack.c.bf16 %v1344_v2, %v1343_v0  ;;  %v7073_v0 = vld [vmem:[%s9461_s3 + $0x18] sm:$0xff]  }
 0x2f4   : > { %v907_v3 = vpop.f32.mrb[98].mxu0  ;;  %2841 = vst.msk [vmem:[#allocation5 + $0x1e8] sm:$0xff] %vm277_vm15, %v2792_v63 }
 0x2f5   : > { %v1151_v5 = vmax.f32 %v905_v61, 0.0  ;;  %v908_v6 = vadd.f32 %v7714_v23, %v907_v3  ;;  %v6544_v7 = vpop.f32.mrb[99].mxu0  ;;  %1468 = vst.msk [vmem:[#allocation5 + $0x210] sm:$0xff] %vm277_vm15, %v1419_v4  ;;  %6860 = vmatpush1.bf16.msra.mxu1 %v7073_v0  ;;  %4687 = vmatpush1.bf16.msra.mxu0 %v7073_v0 }
 0x2f6   : > { %v4084_v9 = vld [vmem:[#allocation4 + $0x16a] sm:$0xff]  ;;  %6845 = vmatprep.subr.bf16.mxu1 %v7207_v26  ;;  %4688 = vmatprep.subr.bf16.mxu0 %v7207_v26 }
 0x2f7   : > { %1249 = vst.msk [vmem:[#allocation4 + $0x180] sm:$0xff] %vm277_vm15, %v1151_v5  ;;  %v1152_v8 = vmax.f32 %v908_v6, 0.0  ;;  %v2716_v13 = vld [vmem:[#allocation4 + $0x16d] sm:$0xff] }
 0x2f8   : > { %v4085_v10 = vld [vmem:[#allocation4 + $0x172] sm:$0xff]  ;;  %v7074_v6 = vld [vmem:[%s9461_s3 + $0x20] sm:$0xff]  }
 0x2f9   : > { %v4163_v11 = vpack.c.bf16 %v4085_v10, %v4084_v9  ;;  %1250 = vst.msk [vmem:[#allocation4 + $0x188] sm:$0xff] %vm277_vm15, %v1152_v8  ;;  %v2717_v14 = vld [vmem:[#allocation4 + $0x175] sm:$0xff]  ;;  %6861 = vmatpush1.bf16.msra.mxu1 %v7074_v6  ;;  %4689 = vmatpush1.bf16.msra.mxu0 %v7074_v6 }
 0x2fa   : > { %v912_v12 = vpop.f32.mrb[100].mxu0  ;;  %v2793_v17 = vpack.c.bf16 %v2717_v14, %v2716_v13  ;;  %v1345_v18 = vld [vmem:[#allocation4 + $0x170] sm:$0xff]  ;;  %v1346_v19 = vld [vmem:[#allocation4 + $0x178] sm:$0xff]  ;;  %6846 = vmatprep.subr.bf16.mxu1 %v7207_v26  ;;  %4690 = vmatprep.subr.bf16.mxu0 %v7207_v26 }
 0x2fb   : > { %4212 = vst.msk [vmem:[#allocation5 + $0x1d8] sm:$0xff] %vm277_vm15, %v4163_v11  ;;  %v913_v15 = vadd.f32 %v7714_v23, %v912_v12  ;;  %v6547_v16 = vpop.f32.mrb[101].mxu0  ;;  %v1420_v21 = vpack.c.bf16 %v1346_v19, %v1345_v18 }
 0x2fc   : > { %v915_v20 = vpop.f32.mrb[102].mxu0  ;;  %2842 = vst.msk [vmem:[#allocation5 + $0x200] sm:$0xff] %vm277_vm15, %v2793_v17 }
 0x2fd   : > { %v1153_v22 = vmax.f32 %v913_v15, 0.0  ;;  %v916_v24 = vadd.f32 %v7714_v23, %v915_v20  ;;  %v6548_v25 = vpop.f32.mrb[103].mxu0  ;;  %1469 = vst.msk [vmem:[#allocation5 + $0x228] sm:$0xff] %vm277_vm15, %v1420_v21  ;;  %v7075_v20 = vld [vmem:[%s9461_s3 + $0x28] sm:$0xff]  }
 0x2fe   : > { %v4086_v28 = vld [vmem:[#allocation4 + $0x17a] sm:$0xff]  ;;  %6862 = vmatpush1.bf16.msra.mxu1 %v7075_v20  ;;  %4691 = vmatpush1.bf16.msra.mxu0 %v7075_v20 }
 0x2ff   : > { %1251 = vst.msk [vmem:[#allocation4 + $0x190] sm:$0xff] %vm277_vm15, %v1153_v22  ;;  %v1154_v27 = vmax.f32 %v916_v24, 0.0  ;;  %v2718_v33 = vld [vmem:[#allocation4 + $0x17d] sm:$0xff]  ;;  %6847 = vmatprep.subr.bf16.mxu1 %v7207_v26  ;;  %4692 = vmatprep.subr.bf16.mxu0 %v7207_v26 }
 0x300   : > { %v4087_v29 = vld [vmem:[#allocation4 + $0x182] sm:$0xff] }
 0x301   : > { %v4164_v30 = vpack.c.bf16 %v4087_v29, %v4086_v28  ;;  %1252 = vst.msk [vmem:[#allocation4 + $0x198] sm:$0xff] %vm277_vm15, %v1154_v27  ;;  %v2719_v36 = vld [vmem:[#allocation4 + $0x185] sm:$0xff]  ;;  %v7076_v27 = vld [vmem:[%s9461_s3 + $0x30] sm:$0xff]  }
 0x302   : > { %v920_v32 = vpop.f32.mrb[104].mxu0  ;;  %v1347_v37 = vld [vmem:[#allocation4 + $0x180] sm:$0xff]  ;;  %v1348_v38 = vld [vmem:[#allocation4 + $0x188] sm:$0xff]  ;;  %v2794_v40 = vpack.c.bf16 %v2719_v36, %v2718_v33  ;;  %6863 = vmatpush1.bf16.msra.mxu1 %v7076_v27  ;;  %4693 = vmatpush1.bf16.msra.mxu0 %v7076_v27 }
 0x303   : > { %4213 = vst.msk [vmem:[#allocation5 + $0x1f0] sm:$0xff] %vm277_vm15, %v4164_v30  ;;  %v921_v34 = vadd.f32 %v7714_v23, %v920_v32  ;;  %v6551_v35 = vpop.f32.mrb[105].mxu0  ;;  %v1421_v41 = vpack.c.bf16 %v1348_v38, %v1347_v37  ;;  %6848 = vmatprep.subr.bf16.mxu1 %v7207_v26  ;;  %4694 = vmatprep.subr.bf16.mxu0 %v7207_v26  ;;  %v7081_v27 = vld [vmem:[%s9461_s3 + $0x58] sm:$0xff]  }
 0x304   : > { %v923_v39 = vpop.f32.mrb[106].mxu0  ;;  %2843 = vst.msk [vmem:[#allocation5 + $0x218] sm:$0xff] %vm277_vm15, %v2794_v40 }
 0x305   : > { %v1155_v42 = vmax.f32 %v921_v34, 0.0  ;;  %v924_v43 = vadd.f32 %v7714_v23, %v923_v39  ;;  %v6552_v44 = vpop.f32.mrb[107].mxu0  ;;  %1470 = vst.msk [vmem:[#allocation5 + $0x240] sm:$0xff] %vm277_vm15, %v1421_v41  ;;  %v7077_v41 = vld [vmem:[%s9461_s3 + $0x38] sm:$0xff]  }
 0x306   : > { %v4088_v47 = vld [vmem:[#allocation4 + $0x18a] sm:$0xff]  ;;  %6864 = vmatpush1.bf16.msra.mxu1 %v7077_v41  ;;  %4695 = vmatpush1.bf16.msra.mxu0 %v7077_v41 }
 0x307   : > { %1253 = vst.msk [vmem:[#allocation4 + $0x1a0] sm:$0xff] %vm277_vm15, %v1155_v42  ;;  %v1156_v46 = vmax.f32 %v924_v43, 0.0  ;;  %v2720_v52 = vld [vmem:[#allocation4 + $0x18d] sm:$0xff]  ;;  %6849 = vmatprep.subr.bf16.mxu1 %v7207_v26  ;;  %4696 = vmatprep.subr.bf16.mxu0 %v7207_v26 }
 0x308   : > { %v4089_v48 = vld [vmem:[#allocation4 + $0x192] sm:$0xff] }
 0x309   : > { %v4165_v49 = vpack.c.bf16 %v4089_v48, %v4088_v47  ;;  %1254 = vst.msk [vmem:[#allocation4 + $0x1a8] sm:$0xff] %vm277_vm15, %v1156_v46  ;;  %v2721_v55 = vld [vmem:[#allocation4 + $0x195] sm:$0xff] }
 0x30a   : > { %v928_v51 = vpop.f32.mrb[108].mxu0  ;;  %v1349_v56 = vld [vmem:[#allocation4 + $0x190] sm:$0xff]  ;;  %v1350_v57 = vld [vmem:[#allocation4 + $0x198] sm:$0xff]  ;;  %v2795_v59 = vpack.c.bf16 %v2721_v55, %v2720_v52 }
 0x30b   : > { %4214 = vst.msk [vmem:[#allocation5 + $0x208] sm:$0xff] %vm277_vm15, %v4165_v49  ;;  %v929_v53 = vadd.f32 %v7714_v23, %v928_v51  ;;  %v6555_v54 = vpop.f32.mrb[109].mxu0  ;;  %v1422_v60 = vpack.c.bf16 %v1350_v57, %v1349_v56  ;;  %v7078_v49 = vld [vmem:[%s9461_s3 + $0x40] sm:$0xff]  }
 0x30c   : > { %v931_v58 = vpop.f32.mrb[110].mxu0  ;;  %2844 = vst.msk [vmem:[#allocation5 + $0x230] sm:$0xff] %vm277_vm15, %v2795_v59  ;;  %6865 = vmatpush1.bf16.msra.mxu1 %v7078_v49  ;;  %4697 = vmatpush1.bf16.msra.mxu0 %v7078_v49  ;;  %v7083_v49 = vld [vmem:[%s9461_s3 + $0x68] sm:$0xff]  }
 0x30d   : > { %v1157_v61 = vmax.f32 %v929_v53, 0.0  ;;  %v932_v62 = vadd.f32 %v7714_v23, %v931_v58  ;;  %v6556_v63 = vpop.f32.mrb[111].mxu0  ;;  %1471 = vst.msk [vmem:[#allocation5 + $0x258] sm:$0xff] %vm277_vm15, %v1422_v60  ;;  %6850 = vmatprep.subr.bf16.mxu1 %v7207_v26  ;;  %4698 = vmatprep.subr.bf16.mxu0 %v7207_v26 }
 0x30e   : > { %v4090_v3 = vld [vmem:[#allocation4 + $0x19a] sm:$0xff] }
 0x30f   : > { %1255 = vst.msk [vmem:[#allocation4 + $0x1b0] sm:$0xff] %vm277_vm15, %v1157_v61  ;;  %v1158_v2 = vmax.f32 %v932_v62, 0.0  ;;  %v2722_v8 = vld [vmem:[#allocation4 + $0x19d] sm:$0xff] }
 0x310   : > { %v4091_v4 = vld [vmem:[#allocation4 + $0x1a2] sm:$0xff] }
 0x311   : > { %v4166_v5 = vpack.c.bf16 %v4091_v4, %v4090_v3  ;;  %1256 = vst.msk [vmem:[#allocation4 + $0x1b8] sm:$0xff] %vm277_vm15, %v1158_v2  ;;  %v2723_v11 = vld [vmem:[#allocation4 + $0x1a5] sm:$0xff]  ;;  %v7079_v2 = vld [vmem:[%s9461_s3 + $0x48] sm:$0xff]  }
 0x312   : > { %v936_v7 = vpop.f32.mrb[112].mxu0  ;;  %v1351_v12 = vld [vmem:[#allocation4 + $0x1a0] sm:$0xff]  ;;  %v1352_v13 = vld [vmem:[#allocation4 + $0x1a8] sm:$0xff]  ;;  %v2796_v15 = vpack.c.bf16 %v2723_v11, %v2722_v8  ;;  %6866 = vmatpush1.bf16.msra.mxu1 %v7079_v2  ;;  %4699 = vmatpush1.bf16.msra.mxu0 %v7079_v2 }
 0x313   : > { %4215 = vst.msk [vmem:[#allocation5 + $0x220] sm:$0xff] %vm277_vm15, %v4166_v5  ;;  %v937_v9 = vadd.f32 %v7714_v23, %v936_v7  ;;  %v6559_v10 = vpop.f32.mrb[113].mxu0  ;;  %v1423_v16 = vpack.c.bf16 %v1352_v13, %v1351_v12  ;;  %v7080_v8 = vld [vmem:[%s9461_s3 + $0x50] sm:$0xff]   ;;  %6851 = vmatprep.subr.bf16.mxu1 %v7207_v26  ;;  %4700 = vmatprep.subr.bf16.mxu0 %v7207_v26 }
 0x314   : > { %v939_v14 = vpop.f32.mrb[114].mxu0  ;;  %2845 = vst.msk [vmem:[#allocation5 + $0x248] sm:$0xff] %vm277_vm15, %v2796_v15  ;;  %v7084_v2 = vld [vmem:[%s9461_s3 + $0x70] sm:$0xff]  }
 0x315   : > { %v1159_v17 = vmax.f32 %v937_v9, 0.0  ;;  %v940_v18 = vadd.f32 %v7714_v23, %v939_v14  ;;  %v6560_v19 = vpop.f32.mrb[115].mxu0  ;;  %1472 = vst.msk [vmem:[#allocation5 + $0x270] sm:$0xff] %vm277_vm15, %v1423_v16 }
 0x316   : > { %v4092_v22 = vld [vmem:[#allocation4 + $0x1aa] sm:$0xff]  ;;  %6867 = vmatpush1.bf16.msra.mxu1 %v7080_v8  ;;  %4701 = vmatpush1.bf16.msra.mxu0 %v7080_v8 }
 0x317   : > { %1257 = vst.msk [vmem:[#allocation4 + $0x1c0] sm:$0xff] %vm277_vm15, %v1159_v17  ;;  %v1160_v21 = vmax.f32 %v940_v18, 0.0  ;;  %v2724_v29 = vld [vmem:[#allocation4 + $0x1ad] sm:$0xff]  ;;  %6852 = vmatprep.subr.bf16.mxu1 %v7207_v26  ;;  %4702 = vmatprep.subr.bf16.mxu0 %v7207_v26 }
 0x318   : > { %v4093_v24 = vld [vmem:[#allocation4 + $0x1b2] sm:$0xff] }
 0x319   : > { %v4167_v25 = vpack.c.bf16 %v4093_v24, %v4092_v22  ;;  %1258 = vst.msk [vmem:[#allocation4 + $0x1c8] sm:$0xff] %vm277_vm15, %v1160_v21  ;;  %v2725_v32 = vld [vmem:[#allocation4 + $0x1b5] sm:$0xff] }
 0x31a   : > { %v944_v28 = vpop.f32.mrb[116].mxu0  ;;  %v1353_v33 = vld [vmem:[#allocation4 + $0x1b0] sm:$0xff]  ;;  %v1354_v34 = vld [vmem:[#allocation4 + $0x1b8] sm:$0xff]  ;;  %v2797_v36 = vpack.c.bf16 %v2725_v32, %v2724_v29  ;;  %6868 = vmatpush1.bf16.msra.mxu1 %v7081_v27  ;;  %4703 = vmatpush1.bf16.msra.mxu0 %v7081_v27 }
 0x31b   : > { %4216 = vst.msk [vmem:[#allocation5 + $0x238] sm:$0xff] %vm277_vm15, %v4167_v25  ;;  %v945_v30 = vadd.f32 %v7714_v23, %v944_v28  ;;  %v6563_v31 = vpop.f32.mrb[117].mxu0  ;;  %v1424_v37 = vpack.c.bf16 %v1354_v34, %v1353_v33  ;;  %6853 = vmatprep.subr.bf16.mxu1 %v7207_v26  ;;  %4704 = vmatprep.subr.bf16.mxu0 %v7207_v26 }
 0x31c   : > { %v947_v35 = vpop.f32.mrb[118].mxu0  ;;  %2846 = vst.msk [vmem:[#allocation5 + $0x260] sm:$0xff] %vm277_vm15, %v2797_v36 }
 0x31d   : > { %v1161_v38 = vmax.f32 %v945_v30, 0.0  ;;  %v948_v39 = vadd.f32 %v7714_v23, %v947_v35  ;;  %v6564_v40 = vpop.f32.mrb[119].mxu0  ;;  %1473 = vst.msk [vmem:[#allocation5 + $0x288] sm:$0xff] %vm277_vm15, %v1424_v37 }
 0x31e   : > { %v4094_v42 = vld [vmem:[#allocation4 + $0x1ba] sm:$0xff] }
 0x31f   : > { %1259 = vst.msk [vmem:[#allocation4 + $0x1d0] sm:$0xff] %vm277_vm15, %v1161_v38  ;;  %v1162_v43 = vmax.f32 %v948_v39, 0.0  ;;  %v1355_v45 = vld [vmem:[#allocation4 + $0x1c0] sm:$0xff]  ;;  %v7082_v39 = vld [vmem:[%s9461_s3 + $0x60] sm:$0xff]  }
 0x320   : > { %v4095_v44 = vld [vmem:[#allocation4 + $0x1c2] sm:$0xff]  ;;  %6869 = vmatpush1.bf16.msra.mxu1 %v7082_v39  ;;  %4705 = vmatpush1.bf16.msra.mxu0 %v7082_v39 }
 0x321   : > { %v1356_v46 = vld [vmem:[#allocation4 + $0x1c8] sm:$0xff]  ;;  %v4168_v47 = vpack.c.bf16 %v4095_v44, %v4094_v42  ;;  %1260 = vst.msk [vmem:[#allocation4 + $0x1d8] sm:$0xff] %vm277_vm15, %v1162_v43  ;;  %v2726_v53 = vld [vmem:[#allocation4 + $0x1bd] sm:$0xff]  ;;  %6854 = vmatprep.subr.bf16.mxu1 %v7207_v26  ;;  %4706 = vmatprep.subr.bf16.mxu0 %v7207_v26 }
 0x322   : > { %v1425_v48 = vpack.c.bf16 %v1356_v46, %v1355_v45  ;;  %v952_v50 = vpop.f32.mrb[120].mxu0  ;;  %v2727_v54 = vld [vmem:[#allocation4 + $0x1c5] sm:$0xff] }
 0x323   : > { %4217 = vst.msk [vmem:[#allocation5 + $0x250] sm:$0xff] %vm277_vm15, %v4168_v47  ;;  %v953_v51 = vadd.f32 %v7714_v23, %v952_v50  ;;  %v6567_v52 = vpop.f32.mrb[121].mxu0  ;;  %v2798_v56 = vpack.c.bf16 %v2727_v54, %v2726_v53  ;;  %v1551_v60 = vld [vmem:[#allocation4 + $0x1c1] sm:$0xff] }
 0x324   : > { %1474 = vst.msk [vmem:[#allocation5 + $0x2a0] sm:$0xff] %vm277_vm15, %v1425_v48  ;;  %v955_v55 = vpop.f32.mrb[122].mxu0  ;;  %6870 = vmatpush1.bf16.msra.mxu1 %v7083_v49  ;;  %4707 = vmatpush1.bf16.msra.mxu0 %v7083_v49 }
 0x325   : > { %v1163_v57 = vmax.f32 %v953_v51, 0.0  ;;  %v956_v58 = vadd.f32 %v7714_v23, %v955_v55  ;;  %v6568_v59 = vpop.f32.mrb[123].mxu0  ;;  %2847 = vst.msk [vmem:[#allocation5 + $0x278] sm:$0xff] %vm277_vm15, %v2798_v56  ;;  %6855 = vmatprep.subr.bf16.mxu1 %v7207_v26  ;;  %4708 = vmatprep.subr.bf16.mxu0 %v7207_v26 }
 0x326   : > { %v1552_v61 = vld [vmem:[#allocation4 + $0x1c9] sm:$0xff] }
 0x327   : > { %v4096_v62 = vld [vmem:[#allocation4 + $0x1ca] sm:$0xff]  ;;  %1261 = vst.msk [vmem:[#allocation4 + $0x1e0] sm:$0xff] %vm277_vm15, %v1163_v57  ;;  %v1164_v63 = vmax.f32 %v956_v58, 0.0  ;;  %v1621_v0 = vpack.c.bf16 %v1552_v61, %v1551_v60 }
 0x328   : > { %v7827_v3 = vld [vmem:[#allocation4 + $0x1d2] sm:$0xff]  ;;  %v2014_v12 = vpack.c.bf16 %v4096_v62, %v4095_v44  ;;  %6871 = vmatpush1.bf16.msra.mxu1 %v7084_v2  ;;  %4709 = vmatpush1.bf16.msra.mxu0 %v7084_v2 }
 0x329   : > { %v1357_v4 = vld [vmem:[#allocation4 + $0x1d0] sm:$0xff]  ;;  %v1358_v5 = vld [vmem:[#allocation4 + $0x1d8] sm:$0xff]  ;;  %v4169_v6 = vpack.c.bf16 %v7827_v3, %v4096_v62  ;;  %1262 = vst.msk [vmem:[#allocation4 + $0x1e8] sm:$0xff] %vm277_vm15, %v1164_v63  ;;  %1747 = vrot.lane.b32.xlu0 %v1621_v0, %s7208_s9  ;;  %6856 = vmatprep.subr.bf16.mxu1 %v7207_v26 }
 0x32a   : > { %v1426_v7 = vpack.c.bf16 %v1358_v5, %v1357_v4  ;;  %v960_v9 = vpop.f32.mrb[124].mxu0  ;;  %v2728_v14 = vld [vmem:[#allocation4 + $0x1cd] sm:$0xff]  ;;  %v2729_v15 = vld [vmem:[#allocation4 + $0x1d5] sm:$0xff]  ;;  %4710 = vmatprep.subr.bf16.mxu0 %v7207_v26 }
 0x32b   : > { %4218 = vst.msk [vmem:[#allocation5 + $0x268] sm:$0xff] %vm277_vm15, %v4169_v6  ;;  %v961_v10 = vadd.f32 %v7714_v23, %v960_v9  ;;  %v6571_v11 = vpop.f32.mrb[125].mxu0  ;;  %v2799_v19 = vpack.c.bf16 %v2729_v15, %v2728_v14  ;;  %v1553_v20 = vld [vmem:[#allocation4 + $0x1d1] sm:$0xff]  ;;  %v7085_v15 = vld [vmem:[%s9461_s3 + $0x78] sm:$0xff]  }
 0x32c   : > { %1475 = vst.msk [vmem:[#allocation5 + $0x2b8] sm:$0xff] %vm277_vm15, %v1426_v7  ;;  %v963_v13 = vpop.f32.mrb[126].mxu0  ;;  %6872 = vmatpush1.bf16.msra.mxu1 %v7085_v15  ;;  %4711 = vmatpush1.bf16.msra.mxu0 %v7085_v15 }
 0x32d   : > { %v1165_v16 = vmax.f32 %v961_v10, 0.0  ;;  %v964_v17 = vadd.f32 %v7714_v23, %v963_v13  ;;  %2140 = vrot.lane.b32.xlu0 %v2014_v12, %s7205_s10  ;;  %v6572_v18 = vpop.f32.mrb[127].mxu0  ;;  %2848 = vst.msk [vmem:[#allocation5 + $0x290] sm:$0xff] %vm277_vm15, %v2799_v19  ;;  %6641 = vmatprep.subr.bf16.mxu1 %v7195_v1 }
 0x32e   : > { %v1554_v21 = vld [vmem:[#allocation4 + $0x1d9] sm:$0xff] }
 0x32f   : > { %v4098_v22 = vld [vmem:[#allocation4 + $0x1da] sm:$0xff]  ;;  %1263 = vst.msk [vmem:[#allocation4 + $0x1f0] sm:$0xff] %vm277_vm15, %v1165_v16  ;;  %v1166_v24 = vmax.f32 %v964_v17, 0.0  ;;  %v1622_v25 = vpack.c.bf16 %v1554_v21, %v1553_v20 }
 0x330   : > { %v7849_v28 = vld [vmem:[#allocation4 + $0x1e2] sm:$0xff]  ;;  %v2015_v42 = vpack.c.bf16 %v4098_v22, %v7827_v3 }
 0x331   : > { %v2926_v29 = vld [vmem:[#allocation4 + $0x1de] sm:$0xff]  ;;  %v2927_v30 = vld [vmem:[#allocation4 + $0x1e6] sm:$0xff]  ;;  %v4170_v31 = vpack.c.bf16 %v7849_v28, %v4098_v22  ;;  %1264 = vst.msk [vmem:[#allocation4 + $0x1f8] sm:$0xff] %vm277_vm15, %v1166_v24  ;;  %1749 = vrot.lane.b32.xlu0 %v1622_v25, %s7208_s9 }
 0x332   : > { %v2996_v32 = vpack.c.bf16 %v2927_v30, %v2926_v29  ;;  %v2730_v33 = vld [vmem:[#allocation4 + $0x1dd] sm:$0xff]  ;;  %v2731_v34 = vld [vmem:[#allocation4 + $0x1e5] sm:$0xff]  ;;  %v968_v35 = vpop.f32.mrb[128].mxu0 }
 0x333   : > { %v2800_v36 = vpack.c.bf16 %v2731_v34, %v2730_v33  ;;  %v1359_v37 = vld [vmem:[#allocation4 + $0x1e0] sm:$0xff]  ;;  %v1360_v38 = vld [vmem:[#allocation4 + $0x1e8] sm:$0xff]  ;;  %4219 = vst.msk [vmem:[#allocation5 + $0x280] sm:$0xff] %vm277_vm15, %v4170_v31  ;;  %v969_v40 = vadd.f32 %v7714_v23, %v968_v35  ;;  %v6575_v41 = vpop.f32.mrb[129].mxu0 }
 0x334   : > { %3122 = vrot.lane.b32.xlu1 %v2996_v32, %s7208_s9  ;;  %v1427_v43 = vpack.c.bf16 %v1360_v38, %v1359_v37  ;;  %v971_v44 = vpop.f32.mrb[130].mxu0  ;;  %v2338_v45 = vld [vmem:[#allocation4 + $0x1e4] sm:$0xff]  ;;  %v2337_v50 = vld [vmem:[#allocation4 + $0x1dc] sm:$0xff] }
 0x335   : > { %2849 = vst.msk [vmem:[#allocation5 + $0x2a8] sm:$0xff] %vm277_vm15, %v2800_v36  ;;  %v1167_v46 = vmax.f32 %v969_v40, 0.0  ;;  %v972_v47 = vadd.f32 %v7714_v23, %v971_v44  ;;  %2142 = vrot.lane.b32.xlu0 %v2015_v42, %s7205_s10  ;;  %v6576_v48 = vpop.f32.mrb[131].mxu0  ;;  %v2407_v53 = vpack.c.bf16 %v2338_v45, %v2337_v50  ;;  %v1555_v60 = vld [vmem:[#allocation4 + $0x1e1] sm:$0xff] }
 0x336   : > { %1476 = vst.msk [vmem:[#allocation5 + $0x2d0] sm:$0xff] %vm277_vm15, %v1427_v43  ;;  %v4100_v51 = vld [vmem:[#allocation4 + $0x1ea] sm:$0xff] }
 0x337   : > { %1265 = vst.msk [vmem:[#allocation4 + $0x200] sm:$0xff] %vm277_vm15, %v1167_v46  ;;  %v1168_v52 = vmax.f32 %v972_v47, 0.0  ;;  %v2928_v54 = vld [vmem:[#allocation4 + $0x1ee] sm:$0xff]  ;;  %v2016_v17 = vpack.c.bf16 %v4100_v51, %v7849_v28 }
 0x338   : > { %v7873_v55 = vld [vmem:[#allocation4 + $0x1f2] sm:$0xff]  ;;  %v1556_v57 = vld [vmem:[#allocation4 + $0x1e9] sm:$0xff] }
 0x339   : > { %v2929_v56 = vld [vmem:[#allocation4 + $0x1f6] sm:$0xff]  ;;  %v4171_v58 = vpack.c.bf16 %v7873_v55, %v4100_v51  ;;  %1266 = vst.msk [vmem:[#allocation4 + $0x208] sm:$0xff] %vm277_vm15, %v1168_v52  ;;  %2533 = vrot.lane.b32.xlu0 %v2407_v53, %s7206_s11  ;;  %v2732_v61 = vld [vmem:[#allocation4 + $0x1ed] sm:$0xff]  ;;  %v1623_v7 = vpack.c.bf16 %v1556_v57, %v1555_v60 }
 0x33a   : > { %v2997_v59 = vpack.c.bf16 %v2929_v56, %v2928_v54  ;;  %v2733_v62 = vld [vmem:[#allocation4 + $0x1f5] sm:$0xff]  ;;  %v976_v63 = vpop.f32.mrb[132].mxu0  ;;  %v2339_v25 = vld [vmem:[#allocation4 + $0x1ec] sm:$0xff] }
 0x33b   : > { %v2801_v0 = vpack.c.bf16 %v2733_v62, %v2732_v61  ;;  %v1361_v3 = vld [vmem:[#allocation4 + $0x1f0] sm:$0xff]  ;;  %v1362_v4 = vld [vmem:[#allocation4 + $0x1f8] sm:$0xff]  ;;  %4220 = vst.msk [vmem:[#allocation5 + $0x298] sm:$0xff] %vm277_vm15, %v4171_v58  ;;  %v977_v5 = vadd.f32 %v7714_v23, %v976_v63  ;;  %v6579_v6 = vpop.f32.mrb[133].mxu0 }
 0x33c   : > { %3124 = vrot.lane.b32.xlu1 %v2997_v59, %s7208_s9  ;;  %v1428_v8 = vpack.c.bf16 %v1362_v4, %v1361_v3  ;;  %v979_v9 = vpop.f32.mrb[134].mxu0  ;;  %v3318_v13 = vld [vmem:[#allocation4 + $0x1f8] sm:$0xff] }
 0x33d   : > { %2850 = vst.msk [vmem:[#allocation5 + $0x2c0] sm:$0xff] %vm277_vm15, %v2801_v0  ;;  %v1169_v10 = vmax.f32 %v977_v5, 0.0  ;;  %v980_v11 = vadd.f32 %v7714_v23, %v979_v9  ;;  %1751 = vrot.lane.b32.xlu0 %v1623_v7, %s7208_s9  ;;  %v6580_v12 = vpop.f32.mrb[135].mxu0  ;;  %v2340_v19 = vld [vmem:[#allocation4 + $0x1f4] sm:$0xff] }
 0x33e   : > { %1477 = vst.msk [vmem:[#allocation5 + $0x2e8] sm:$0xff] %vm277_vm15, %v1428_v8  ;;  %v3319_v14 = vld [vmem:[#allocation4 + $0x200] sm:$0xff]  ;;  %v2408_v35 = vpack.c.bf16 %v2340_v19, %v2339_v25  ;;  %v1557_v43 = vld [vmem:[#allocation4 + $0x1f1] sm:$0xff] }
 0x33f   : > { %1267 = vst.msk [vmem:[#allocation4 + $0x210] sm:$0xff] %vm277_vm15, %v1169_v10  ;;  %v1170_v16 = vmax.f32 %v980_v11, 0.0  ;;  %v3388_v18 = vpack.c.bf16 %v3319_v14, %v3318_v13  ;;  %v7897_v20 = vld [vmem:[#allocation4 + $0x1fa] sm:$0xff] }
 0x340   : > { %v7899_v21 = vld [vmem:[#allocation4 + $0x202] sm:$0xff]  ;;  %v3710_v26 = vld [vmem:[#allocation4 + $0x1f9] sm:$0xff]  ;;  %v2017_v62 = vpack.c.bf16 %v7897_v20, %v7873_v55 }
 0x341   : > { %v7901_v22 = vld [vmem:[#allocation4 + $0x201] sm:$0xff]  ;;  %v4172_v24 = vpack.c.bf16 %v7899_v21, %v7897_v20  ;;  %1268 = vst.msk [vmem:[#allocation4 + $0x218] sm:$0xff] %vm277_vm15, %v1170_v16  ;;  %2144 = vrot.lane.b32.xlu0 %v2016_v17, %s7205_s10  ;;  %3514 = vrot.lane.b32.xlu1 %v3388_v18, %s7205_s10  ;;  %v1624_v46 = vpack.c.bf16 %v3710_v26, %v1557_v43 }
 0x342   : > { %v2734_v27 = vld [vmem:[#allocation4 + $0x1fd] sm:$0xff]  ;;  %v2735_v28 = vld [vmem:[#allocation4 + $0x205] sm:$0xff]  ;;  %v984_v29 = vpop.f32.mrb[136].mxu0  ;;  %v3780_v36 = vpack.c.bf16 %v7901_v22, %v3710_v26 }
 0x343   : > { %v2802_v30 = vpack.c.bf16 %v2735_v28, %v2734_v27  ;;  %v1363_v31 = vld [vmem:[#allocation4 + $0x200] sm:$0xff]  ;;  %v1364_v32 = vld [vmem:[#allocation4 + $0x208] sm:$0xff]  ;;  %4221 = vst.msk [vmem:[#allocation5 + $0x2b0] sm:$0xff] %vm277_vm15, %v4172_v24  ;;  %v985_v33 = vadd.f32 %v7714_v23, %v984_v29  ;;  %v6583_v34 = vpop.f32.mrb[137].mxu0 }
 0x344   : > { %v1429_v37 = vpack.c.bf16 %v1364_v32, %v1363_v31  ;;  %v987_v38 = vpop.f32.mrb[138].mxu0  ;;  %v2931_v39 = vld [vmem:[#allocation4 + $0x206] sm:$0xff]  ;;  %v2930_v44 = vld [vmem:[#allocation4 + $0x1fe] sm:$0xff] }
 0x345   : > { %2851 = vst.msk [vmem:[#allocation5 + $0x2d8] sm:$0xff] %vm277_vm15, %v2802_v30  ;;  %v1171_v40 = vmax.f32 %v985_v33, 0.0  ;;  %v988_v41 = vadd.f32 %v7714_v23, %v987_v38  ;;  %2535 = vrot.lane.b32.xlu0 %v2408_v35, %s7206_s11  ;;  %3906 = vrot.lane.b32.xlu1 %v3780_v36, %s7206_s11  ;;  %v6584_v42 = vpop.f32.mrb[139].mxu0  ;;  %v2998_v47 = vpack.c.bf16 %v2931_v39, %v2930_v44  ;;  %v3320_v56 = vld [vmem:[#allocation4 + $0x208] sm:$0xff]  ;;  %v2341_v8 = vld [vmem:[#allocation4 + $0x1fc] sm:$0xff] }
 0x346   : > { %1478 = vst.msk [vmem:[#allocation5 + $0x300] sm:$0xff] %vm277_vm15, %v1429_v37  ;;  %v7918_v48 = vld [vmem:[#allocation4 + $0x20a] sm:$0xff] }
 0x347   : > { %1269 = vst.msk [vmem:[#allocation4 + $0x220] sm:$0xff] %vm277_vm15, %v1171_v40  ;;  %v1172_v45 = vmax.f32 %v988_v41, 0.0  ;;  %v3321_v50 = vld [vmem:[#allocation4 + $0x210] sm:$0xff]  ;;  %v2342_v3 = vld [vmem:[#allocation4 + $0x204] sm:$0xff]  ;;  %v2018_v37 = vpack.c.bf16 %v7918_v48, %v7899_v21 }
 0x348   : > { %v7920_v49 = vld [vmem:[#allocation4 + $0x212] sm:$0xff]  ;;  %v3389_v63 = vpack.c.bf16 %v3321_v50, %v3320_v56  ;;  %v3712_v55 = vld [vmem:[#allocation4 + $0x209] sm:$0xff]  ;;  %v2409_v10 = vpack.c.bf16 %v2342_v3, %v2341_v8 }
 0x349   : > { %v4173_v51 = vpack.c.bf16 %v7920_v49, %v7918_v48  ;;  %1270 = vst.msk [vmem:[#allocation4 + $0x228] sm:$0xff] %vm277_vm15, %v1172_v45  ;;  %1753 = vrot.lane.b32.xlu0 %v1624_v46, %s7208_s9  ;;  %3126 = vrot.lane.b32.xlu1 %v2998_v47, %s7208_s9  ;;  %v2736_v52 = vld [vmem:[#allocation4 + $0x20d] sm:$0xff]  ;;  %v2737_v53 = vld [vmem:[#allocation4 + $0x215] sm:$0xff]  ;;  %v1625_v28 = vpack.c.bf16 %v3712_v55, %v7901_v22 }
 0x34a   : > { %v992_v54 = vpop.f32.mrb[140].mxu0  ;;  %v2803_v57 = vpack.c.bf16 %v2737_v53, %v2736_v52  ;;  %v1365_v58 = vld [vmem:[#allocation4 + $0x210] sm:$0xff]  ;;  %v1366_v59 = vld [vmem:[#allocation4 + $0x218] sm:$0xff] }
 0x34b   : > { %4222 = vst.msk [vmem:[#allocation5 + $0x2c8] sm:$0xff] %vm277_vm15, %v4173_v51  ;;  %v993_v60 = vadd.f32 %v7714_v23, %v992_v54  ;;  %v6587_v61 = vpop.f32.mrb[141].mxu0  ;;  %v1430_v0 = vpack.c.bf16 %v1366_v59, %v1365_v58  ;;  %v7931_v4 = vld [vmem:[#allocation4 + $0x211] sm:$0xff] }
 0x34c   : > { %v995_v2 = vpop.f32.mrb[142].mxu0  ;;  %2852 = vst.msk [vmem:[#allocation5 + $0x2f0] sm:$0xff] %vm277_vm15, %v2803_v57  ;;  %v3781_v11 = vpack.c.bf16 %v7931_v4, %v3712_v55  ;;  %v2933_v14 = vld [vmem:[#allocation4 + $0x216] sm:$0xff]  ;;  %v2932_v19 = vld [vmem:[#allocation4 + $0x20e] sm:$0xff] }
 0x34d   : > { %v1173_v5 = vmax.f32 %v993_v60, 0.0  ;;  %v996_v6 = vadd.f32 %v7714_v23, %v995_v2  ;;  %2146 = vrot.lane.b32.xlu0 %v2017_v62, %s7205_s10  ;;  %3516 = vrot.lane.b32.xlu1 %v3389_v63, %s7205_s10  ;;  %v6588_v7 = vpop.f32.mrb[143].mxu0  ;;  %1479 = vst.msk [vmem:[#allocation5 + $0x318] sm:$0xff] %vm277_vm15, %v1430_v0  ;;  %v2999_v29 = vpack.c.bf16 %v2933_v14, %v2932_v19  ;;  %v3322_v36 = vld [vmem:[#allocation4 + $0x218] sm:$0xff]  ;;  %v2343_v44 = vld [vmem:[#allocation4 + $0x20c] sm:$0xff] }
 0x34e   : > { %v7940_v12 = vld [vmem:[#allocation4 + $0x21a] sm:$0xff] }
 0x34f   : > { %1271 = vst.msk [vmem:[#allocation4 + $0x230] sm:$0xff] %vm277_vm15, %v1173_v5  ;;  %v1174_v9 = vmax.f32 %v996_v6, 0.0  ;;  %v2738_v16 = vld [vmem:[#allocation4 + $0x21d] sm:$0xff]  ;;  %v2344_v39 = vld [vmem:[#allocation4 + $0x214] sm:$0xff] }
 0x350   : > { %v7942_v13 = vld [vmem:[#allocation4 + $0x222] sm:$0xff]  ;;  %v3714_v46 = vld [vmem:[#allocation4 + $0x219] sm:$0xff]  ;;  %v2410_v52 = vpack.c.bf16 %v2344_v39, %v2343_v44 }
 0x351   : > { %v4174_v15 = vpack.c.bf16 %v7942_v13, %v7940_v12  ;;  %1272 = vst.msk [vmem:[#allocation4 + $0x238] sm:$0xff] %vm277_vm15, %v1174_v9  ;;  %2537 = vrot.lane.b32.xlu0 %v2409_v10, %s7206_s11  ;;  %3908 = vrot.lane.b32.xlu1 %v3781_v11, %s7206_s11  ;;  %v2739_v17 = vld [vmem:[#allocation4 + $0x225] sm:$0xff]  ;;  %v1626_v2 = vpack.c.bf16 %v3714_v46, %v7931_v4 }
 0x352   : > { %v1000_v18 = vpop.f32.mrb[144].mxu0  ;;  %v2804_v20 = vpack.c.bf16 %v2739_v17, %v2738_v16  ;;  %v1367_v24 = vld [vmem:[#allocation4 + $0x220] sm:$0xff]  ;;  %v1368_v25 = vld [vmem:[#allocation4 + $0x228] sm:$0xff] }
 0x353   : > { %4223 = vst.msk [vmem:[#allocation5 + $0x2e0] sm:$0xff] %vm277_vm15, %v4174_v15  ;;  %v1001_v27 = vadd.f32 %v7714_v23, %v1000_v18  ;;  %v6591_v26 = vpop.f32.mrb[145].mxu0  ;;  %v1431_v30 = vpack.c.bf16 %v1368_v25, %v1367_v24  ;;  %v3323_v32 = vld [vmem:[#allocation4 + $0x220] sm:$0xff]  ;;  %v3324_v8 = vld [vmem:[#allocation4 + $0x228] sm:$0xff]  ;;  %v2019_v15 = vpack.c.bf16 %v7940_v12, %v7920_v49 }
 0x354   : > { %v1003_v31 = vpop.f32.mrb[146].mxu0  ;;  %2853 = vst.msk [vmem:[#allocation5 + $0x308] sm:$0xff] %vm277_vm15, %v2804_v20  ;;  %v3390_v38 = vpack.c.bf16 %v3323_v32, %v3322_v36  ;;  %v7964_v42 = vld [vmem:[#allocation4 + $0x221] sm:$0xff]  ;;  %v7993_v17 = vld [vmem:[#allocation9] ss:$0 sm:$0xff] }
 0x355   : > { %v1175_v33 = vmax.f32 %v1001_v27, 0.0  ;;  %1755 = vrot.lane.b32.xlu0 %v1625_v28, %s7208_s9  ;;  %3128 = vrot.lane.b32.xlu1 %v2999_v29, %s7208_s9  ;;  %v1004_v34 = vadd.f32 %v7714_v23, %v1003_v31  ;;  %v6592_v35 = vpop.f32.mrb[147].mxu0  ;;  %1480 = vst.msk [vmem:[#allocation5 + $0x330] sm:$0xff] %vm277_vm15, %v1431_v30  ;;  %v3782_v53 = vpack.c.bf16 %v7964_v42, %v3714_v46  ;;  %v2935_v58 = vld [vmem:[#allocation4 + $0x226] sm:$0xff]  ;;  %v2934_v0 = vld [vmem:[#allocation4 + $0x21e] sm:$0xff] }
 0x356   : > { %v7960_v40 = vld [vmem:[#allocation4 + $0x22a] sm:$0xff]  ;;  %v3000_v3 = vpack.c.bf16 %v2935_v58, %v2934_v0  ;;  %v2345_v26 = vld [vmem:[#allocation4 + $0x21c] sm:$0xff] }
 0x357   : > { %1273 = vst.msk [vmem:[#allocation4 + $0x240] sm:$0xff] %vm277_vm15, %v1175_v33  ;;  %v1176_v22 = vmax.f32 %v1004_v34, 0.0  ;;  %v2740_v45 = vld [vmem:[#allocation4 + $0x22d] sm:$0xff]  ;;  %v2346_v24 = vld [vmem:[#allocation4 + $0x224] sm:$0xff]  ;;  %v2020_v58 = vpack.c.bf16 %v7960_v40, %v7942_v13 }
 0x358   : > { %v7962_v41 = vld [vmem:[#allocation4 + $0x232] sm:$0xff]  ;;  %v3716_v30 = vld [vmem:[#allocation4 + $0x229] sm:$0xff]  ;;  %v2411_v31 = vpack.c.bf16 %v2346_v24, %v2345_v26 }
 0x359   : > { %v4175_v43 = vpack.c.bf16 %v7962_v41, %v7960_v40  ;;  %1274 = vst.msk [vmem:[#allocation4 + $0x248] sm:$0xff] %vm277_vm15, %v1176_v22  ;;  %2148 = vrot.lane.b32.xlu0 %v2018_v37, %s7205_s10  ;;  %3518 = vrot.lane.b32.xlu1 %v3390_v38, %s7205_s10  ;;  %v2741_v21 = vld [vmem:[#allocation4 + $0x235] sm:$0xff]  ;;  %v1627_v38 = vpack.c.bf16 %v3716_v30, %v7964_v42  ;;  %v2347_v40 = vld [vmem:[#allocation4 + $0x22c] sm:$0xff] }
 0x35a   : > { %v1008_v47 = vpop.f32.mrb[148].mxu0  ;;  %v2805_v48 = vpack.c.bf16 %v2741_v21, %v2740_v45  ;;  %v1369_v50 = vld [vmem:[#allocation4 + $0x230] sm:$0xff]  ;;  %v1370_v51 = vld [vmem:[#allocation4 + $0x238] sm:$0xff] }
 0x35b   : > { %4224 = vst.msk [vmem:[#allocation5 + $0x2f8] sm:$0xff] %vm277_vm15, %v4175_v43  ;;  %v1009_v54 = vadd.f32 %v7714_v23, %v1008_v47  ;;  %v6595_v56 = vpop.f32.mrb[149].mxu0  ;;  %v1432_v57 = vpack.c.bf16 %v1370_v51, %v1369_v50  ;;  %v3325_v55 = vld [vmem:[#allocation4 + $0x230] sm:$0xff]  ;;  %v3326_v51 = vld [vmem:[#allocation4 + $0x238] sm:$0xff] }
 0x35c   : > { %v1011_v59 = vpop.f32.mrb[150].mxu0  ;;  %2854 = vst.msk [vmem:[#allocation5 + $0x320] sm:$0xff] %vm277_vm15, %v2805_v48  ;;  %v3391_v16 = vpack.c.bf16 %v3325_v55, %v3324_v8  ;;  %v7996_v25 = vld [vmem:[#allocation4 + $0x231] sm:$0xff] }
 0x35d   : > { %2539 = vrot.lane.b32.xlu0 %v2410_v52, %s7206_s11  ;;  %3910 = vrot.lane.b32.xlu1 %v3782_v53, %s7206_s11  ;;  %v1177_v60 = vmax.f32 %v1009_v54, 0.0  ;;  %v1012_v61 = vadd.f32 %v7714_v23, %v1011_v59  ;;  %v6596_v62 = vpop.f32.mrb[151].mxu0  ;;  %1481 = vst.msk [vmem:[#allocation5 + $0x348] sm:$0xff] %vm277_vm15, %v1432_v57  ;;  %v3783_v32 = vpack.c.bf16 %v7996_v25, %v3716_v30  ;;  %v2937_v35 = vld [vmem:[#allocation4 + $0x236] sm:$0xff]  ;;  %v2936_v22 = vld [vmem:[#allocation4 + $0x22e] sm:$0xff] }
 0x35e   : > { %v7979_v63 = vld [vmem:[#allocation4 + $0x23a] sm:$0xff]  ;;  %v3001_v21 = vpack.c.bf16 %v2937_v35, %v2936_v22 }
 0x35f   : > { %1275 = vst.msk [vmem:[#allocation4 + $0x250] sm:$0xff] %vm277_vm15, %v1177_v60  ;;  %v1178_v5 = vmax.f32 %v1012_v61, 0.0  ;;  %v2742_v6 = vld [vmem:[#allocation4 + $0x23d] sm:$0xff]  ;;  %v2348_v60 = vld [vmem:[#allocation4 + $0x234] sm:$0xff] }
 0x360   : > { %v7983_v7 = vld [vmem:[#allocation4 + $0x242] sm:$0xff] }
 0x361   : > { %v4176_v23 = vpack.c.bf16 %v7983_v7, %v7979_v63  ;;  %1757 = vrot.lane.b32.xlu0 %v1626_v2, %s7208_s9  ;;  %3130 = vrot.lane.b32.xlu1 %v3000_v3, %s7208_s9  ;;  %1276 = vst.msk [vmem:[#allocation4 + $0x258] sm:$0xff] %vm277_vm15, %v1178_v5  ;;  %v2743_v9 = vld [vmem:[#allocation4 + $0x245] sm:$0xff]  ;;  %v3718_v2 = vld [vmem:[#allocation4 + $0x239] sm:$0xff] }
 0x362   : > { %v1016_v10 = vpop.f32.mrb[152].mxu0  ;;  %v2806_v11 = vpack.c.bf16 %v2743_v9, %v2742_v6  ;;  %v1371_v4 = vld [vmem:[#allocation4 + $0x240] sm:$0xff]  ;;  %v1372_v14 = vld [vmem:[#allocation4 + $0x248] sm:$0xff]  ;;  %v2412_v9 = vpack.c.bf16 %v2348_v60, %v2347_v40 }
 0x363   : > { %4225 = vst.msk [vmem:[#allocation5 + $0x310] sm:$0xff] %vm277_vm15, %v4176_v23  ;;  %v1017_v18 = vadd.f32 %v7993_v17, %v1016_v10  ;;  %v6599_v19 = vpop.f32.mrb[153].mxu0  ;;  %v1433_v20 = vpack.c.bf16 %v1372_v14, %v1371_v4  ;;  %v3327_v52 = vld [vmem:[#allocation4 + $0x240] sm:$0xff] }
 0x364   : > { %v1019_v27 = vpop.f32.mrb[154].mxu0  ;;  %2855 = vst.msk [vmem:[#allocation5 + $0x338] sm:$0xff] %vm277_vm15, %v2806_v11  ;;  %v3392_v59 = vpack.c.bf16 %v3327_v52, %v3326_v51  ;;  %v8029_v3 = vld [vmem:[#allocation4 + $0x241] sm:$0xff] }
 0x365   : > { %2150 = vrot.lane.b32.xlu0 %v2019_v15, %s7205_s10  ;;  %3520 = vrot.lane.b32.xlu1 %v3391_v16, %s7205_s10  ;;  %v1179_v28 = vmax.f32 %v1017_v18, 0.0  ;;  %v1020_v49 = vadd.f32 %v7993_v17, %v1019_v27  ;;  %v6600_v12 = vpop.f32.mrb[155].mxu0  ;;  %1482 = vst.msk [vmem:[#allocation5 + $0x360] sm:$0xff] %vm277_vm15, %v1433_v20  ;;  %v3784_v10 = vpack.c.bf16 %v8029_v3, %v3718_v2  ;;  %v2938_v15 = vld [vmem:[#allocation4 + $0x23e] sm:$0xff]  ;;  %v2939_v16 = vld [vmem:[#allocation4 + $0x246] sm:$0xff] }
 0x366   : > { %v8003_v29 = vld [vmem:[#allocation4 + $0x24a] sm:$0xff] }
 0x367   : > { %1277 = vst.msk [vmem:[#allocation4 + $0x260] sm:$0xff] %vm277_vm15, %v1179_v28  ;;  %v1180_v33 = vmax.f32 %v1020_v49, 0.0  ;;  %v2744_v37 = vld [vmem:[#allocation4 + $0x24d] sm:$0xff]  ;;  %v1628_v28 = vpack.c.bf16 %v3718_v2, %v7996_v25  ;;  %v3002_v49 = vpack.c.bf16 %v2939_v16, %v2938_v15 }
 0x368   : > { %v8007_v34 = vld [vmem:[#allocation4 + $0x252] sm:$0xff] }
 0x369   : > { %v4177_v36 = vpack.c.bf16 %v8007_v34, %v8003_v29  ;;  %2541 = vrot.lane.b32.xlu0 %v2411_v31, %s7206_s11  ;;  %3912 = vrot.lane.b32.xlu1 %v3783_v32, %s7206_s11  ;;  %1278 = vst.msk [vmem:[#allocation4 + $0x268] sm:$0xff] %vm277_vm15, %v1180_v33  ;;  %v2745_v43 = vld [vmem:[#allocation4 + $0x255] sm:$0xff]  ;;  %v3328_v31 = vld [vmem:[#allocation4 + $0x248] sm:$0xff] }
 0x36a   : > { %v1024_v39 = vpop.f32.mrb[156].mxu0  ;;  %v1373_v44 = vld [vmem:[#allocation4 + $0x250] sm:$0xff]  ;;  %v1374_v45 = vld [vmem:[#allocation4 + $0x258] sm:$0xff]  ;;  %v2807_v48 = vpack.c.bf16 %v2745_v43, %v2744_v37 }
 0x36b   : > { %4226 = vst.msk [vmem:[#allocation5 + $0x328] sm:$0xff] %vm277_vm15, %v4177_v36  ;;  %v1025_v46 = vadd.f32 %v7993_v17, %v1024_v39  ;;  %v6603_v47 = vpop.f32.mrb[157].mxu0  ;;  %v1434_v50 = vpack.c.bf16 %v1374_v45, %v1373_v44  ;;  %v3329_v32 = vld [vmem:[#allocation4 + $0x250] sm:$0xff]  ;;  %v2349_v43 = vld [vmem:[#allocation4 + $0x23c] sm:$0xff] }
 0x36c   : > { %v1027_v53 = vpop.f32.mrb[158].mxu0  ;;  %2856 = vst.msk [vmem:[#allocation5 + $0x350] sm:$0xff] %vm277_vm15, %v2807_v48  ;;  %v3393_v39 = vpack.c.bf16 %v3329_v32, %v3328_v31  ;;  %v3720_v47 = vld [vmem:[#allocation4 + $0x249] sm:$0xff]  ;;  %v8059_v48 = vld [vmem:[#allocation4 + $0x251] sm:$0xff] }
 0x36d   : > { %1759 = vrot.lane.b32.xlu0 %v1627_v38, %s7208_s9  ;;  %3132 = vrot.lane.b32.xlu1 %v3001_v21, %s7208_s9  ;;  %v1181_v42 = vmax.f32 %v1025_v46, 0.0  ;;  %v1028_v54 = vadd.f32 %v7993_v17, %v1027_v53  ;;  %v6604_v56 = vpop.f32.mrb[159].mxu0  ;;  %1483 = vst.msk [vmem:[#allocation5 + $0x378] sm:$0xff] %vm277_vm15, %v1434_v50  ;;  %v2021_v38 = vpack.c.bf16 %v7979_v63, %v7962_v41  ;;  %v2350_v46 = vld [vmem:[#allocation4 + $0x244] sm:$0xff] }
 0x36e   : > { %v8022_v57 = vld [vmem:[#allocation4 + $0x25a] sm:$0xff]  ;;  %v2413_v53 = vpack.c.bf16 %v2350_v46, %v2349_v43 }
 0x36f   : > { %1279 = vst.msk [vmem:[#allocation4 + $0x270] sm:$0xff] %vm277_vm15, %v1181_v42  ;;  %v1182_v61 = vmax.f32 %v1028_v54, 0.0  ;;  %v2746_v62 = vld [vmem:[#allocation4 + $0x25d] sm:$0xff]  ;;  %v3785_v42 = vpack.c.bf16 %v8059_v48, %v3720_v47 }
 0x370   : > { %v8027_v0 = vld [vmem:[#allocation4 + $0x262] sm:$0xff] }
 0x371   : > { %v4178_v5 = vpack.c.bf16 %v8027_v0, %v8022_v57  ;;  %2152 = vrot.lane.b32.xlu0 %v2020_v58, %s7205_s10  ;;  %3522 = vrot.lane.b32.xlu1 %v3392_v59, %s7205_s10  ;;  %1280 = vst.msk [vmem:[#allocation4 + $0x278] sm:$0xff] %vm277_vm15, %v1182_v61  ;;  %v2747_v13 = vld [vmem:[#allocation4 + $0x265] sm:$0xff]  ;;  %v2940_v58 = vld [vmem:[#allocation4 + $0x24e] sm:$0xff]  ;;  %v2941_v59 = vld [vmem:[#allocation4 + $0x256] sm:$0xff] }
 0x372   : > { %v1032_v6 = vpop.f32.mrb[160].mxu0  ;;  %v2808_v8 = vpack.c.bf16 %v2747_v13, %v2746_v62  ;;  %v1375_v55 = vld [vmem:[#allocation4 + $0x260] sm:$0xff]  ;;  %v1376_v23 = vld [vmem:[#allocation4 + $0x268] sm:$0xff]  ;;  %v1629_v13 = vpack.c.bf16 %v3720_v47, %v8029_v3  ;;  %v3003_v40 = vpack.c.bf16 %v2941_v59, %v2940_v58 }
 0x373   : > { %4227 = vst.msk [vmem:[#allocation5 + $0x340] sm:$0xff] %vm277_vm15, %v4178_v5  ;;  %v1033_v11 = vadd.f32 %v7993_v17, %v1032_v6  ;;  %v6607_v4 = vpop.f32.mrb[161].mxu0  ;;  %v1435_v14 = vpack.c.bf16 %v1376_v23, %v1375_v55  ;;  %v2942_v43 = vld [vmem:[#allocation4 + $0x25e] sm:$0xff] }
 0x374   : > { %v1035_v18 = vpop.f32.mrb[162].mxu0  ;;  %2857 = vst.msk [vmem:[#allocation5 + $0x368] sm:$0xff] %vm277_vm15, %v2808_v8 }
 0x375   : > { %2543 = vrot.lane.b32.xlu0 %v2412_v9, %s7206_s11  ;;  %3914 = vrot.lane.b32.xlu1 %v3784_v10, %s7206_s11  ;;  %v1183_v19 = vmax.f32 %v1033_v11, 0.0  ;;  %v1036_v20 = vadd.f32 %v7993_v17, %v1035_v18  ;;  %v6608_v24 = vpop.f32.mrb[163].mxu0  ;;  %1484 = vst.msk [vmem:[#allocation5 + $0x390] sm:$0xff] %vm277_vm15, %v1435_v14  ;;  %v3330_v9 = vld [vmem:[#allocation4 + $0x258] sm:$0xff]  ;;  %v3331_v10 = vld [vmem:[#allocation4 + $0x260] sm:$0xff]  ;;  %v2022_v18 = vpack.c.bf16 %v8003_v29, %v7983_v7 }
 0x376   : > { %v8044_v27 = vld [vmem:[#allocation4 + $0x26a] sm:$0xff]  ;;  %v2352_v24 = vld [vmem:[#allocation4 + $0x254] sm:$0xff] }
 0x377   : > { %1281 = vst.msk [vmem:[#allocation4 + $0x280] sm:$0xff] %vm277_vm15, %v1183_v19  ;;  %v1184_v12 = vmax.f32 %v1036_v20, 0.0  ;;  %v2748_v26 = vld [vmem:[#allocation4 + $0x26d] sm:$0xff]  ;;  %v3394_v19 = vpack.c.bf16 %v3331_v10, %v3330_v9 }
 0x378   : > { %v8048_v30 = vld [vmem:[#allocation4 + $0x272] sm:$0xff]  ;;  %v3724_v9 = vld [vmem:[#allocation4 + $0x269] sm:$0xff] }
 0x379   : > { %1761 = vrot.lane.b32.xlu0 %v1628_v28, %s7208_s9  ;;  %3134 = vrot.lane.b32.xlu1 %v3002_v49, %s7208_s9  ;;  %v4179_v33 = vpack.c.bf16 %v8048_v30, %v8044_v27  ;;  %1282 = vst.msk [vmem:[#allocation4 + $0x288] sm:$0xff] %vm277_vm15, %v1184_v12  ;;  %v2749_v35 = vld [vmem:[#allocation4 + $0x275] sm:$0xff]  ;;  %v2351_v20 = vld [vmem:[#allocation4 + $0x24c] sm:$0xff]  ;;  %v8090_v12 = vld [vmem:[#allocation4 + $0x261] sm:$0xff] }
 0x37a   : > { %v1040_v25 = vpop.f32.mrb[164].mxu0  ;;  %v2809_v36 = vpack.c.bf16 %v2749_v35, %v2748_v26  ;;  %v1377_v22 = vld [vmem:[#allocation4 + $0x270] sm:$0xff]  ;;  %v1378_v37 = vld [vmem:[#allocation4 + $0x278] sm:$0xff]  ;;  %v2414_v7 = vpack.c.bf16 %v2352_v24, %v2351_v20 }
 0x37b   : > { %4228 = vst.msk [vmem:[#allocation5 + $0x358] sm:$0xff] %vm277_vm15, %v4179_v33  ;;  %v1041_v44 = vadd.f32 %v7993_v17, %v1040_v25  ;;  %v6611_v45 = vpop.f32.mrb[165].mxu0  ;;  %v1436_v21 = vpack.c.bf16 %v1378_v37, %v1377_v22  ;;  %v3722_v28 = vld [vmem:[#allocation4 + $0x259] sm:$0xff]  ;;  %v8124_v10 = vld [vmem:[#allocation4 + $0x271] sm:$0xff] }
 0x37c   : > { %v1043_v50 = vpop.f32.mrb[166].mxu0  ;;  %2858 = vst.msk [vmem:[#allocation5 + $0x380] sm:$0xff] %vm277_vm15, %v2809_v36  ;;  %v3786_v36 = vpack.c.bf16 %v8090_v12, %v3722_v28  ;;  %v2945_v24 = vld [vmem:[#allocation4 + $0x276] sm:$0xff] }
 0x37d   : > { %2154 = vrot.lane.b32.xlu0 %v2021_v38, %s7205_s10  ;;  %3524 = vrot.lane.b32.xlu1 %v3393_v39, %s7205_s10  ;;  %v1185_v51 = vmax.f32 %v1041_v44, 0.0  ;;  %v1044_v41 = vadd.f32 %v7993_v17, %v1043_v50  ;;  %v6612_v63 = vpop.f32.mrb[167].mxu0  ;;  %1485 = vst.msk [vmem:[#allocation5 + $0x3a8] sm:$0xff] %vm277_vm15, %v1436_v21  ;;  %v2943_v44 = vld [vmem:[#allocation4 + $0x266] sm:$0xff] }
 0x37e   : > { %v8066_v52 = vld [vmem:[#allocation4 + $0x27a] sm:$0xff]  ;;  %v3332_v63 = vld [vmem:[#allocation4 + $0x268] sm:$0xff] }
 0x37f   : > { %1283 = vst.msk [vmem:[#allocation4 + $0x290] sm:$0xff] %vm277_vm15, %v1185_v51  ;;  %v1186_v54 = vmax.f32 %v1044_v41, 0.0  ;;  %v2750_v56 = vld [vmem:[#allocation4 + $0x27d] sm:$0xff]  ;;  %v1630_v51 = vpack.c.bf16 %v3722_v28, %v8059_v48  ;;  %v3004_v41 = vpack.c.bf16 %v2943_v44, %v2942_v43 }
 0x380   : > { %v8070_v60 = vld [vmem:[#allocation4 + $0x282] sm:$0xff]  ;;  %v3334_v43 = vld [vmem:[#allocation4 + $0x278] sm:$0xff] }
 0x381   : > { %2545 = vrot.lane.b32.xlu0 %v2413_v53, %s7206_s11  ;;  %3916 = vrot.lane.b32.xlu1 %v3785_v42, %s7206_s11  ;;  %v4180_v61 = vpack.c.bf16 %v8070_v60, %v8066_v52  ;;  %1284 = vst.msk [vmem:[#allocation4 + $0x298] sm:$0xff] %vm277_vm15, %v1186_v54  ;;  %v2751_v62 = vld [vmem:[#allocation4 + $0x285] sm:$0xff]  ;;  %v3333_v42 = vld [vmem:[#allocation4 + $0x270] sm:$0xff] }
 0x382   : > { %v1048_v2 = vpop.f32.mrb[168].mxu0  ;;  %v2810_v5 = vpack.c.bf16 %v2751_v62, %v2750_v56  ;;  %v1379_v55 = vld [vmem:[#allocation4 + $0x280] sm:$0xff]  ;;  %v1380_v23 = vld [vmem:[#allocation4 + $0x288] sm:$0xff]  ;;  %v2023_v62 = vpack.c.bf16 %v8022_v57, %v8007_v34 }
 0x383   : > { %4229 = vst.msk [vmem:[#allocation5 + $0x370] sm:$0xff] %vm277_vm15, %v4180_v61  ;;  %v1049_v6 = vadd.f32 %v7993_v17, %v1048_v2  ;;  %v6615_v8 = vpop.f32.mrb[169].mxu0  ;;  %v1437_v4 = vpack.c.bf16 %v1380_v23, %v1379_v55  ;;  %v3395_v2 = vpack.c.bf16 %v3333_v42, %v3332_v63  ;;  %v2354_v23 = vld [vmem:[#allocation4 + $0x264] sm:$0xff] }
 0x384   : > { %v1051_v11 = vpop.f32.mrb[170].mxu0  ;;  %2859 = vst.msk [vmem:[#allocation5 + $0x398] sm:$0xff] %vm277_vm15, %v2810_v5  ;;  %v8120_v5 = vpop.permute.xlu1 %3550  ;;  %v3335_v44 = vld [vmem:[#allocation4 + $0x280] sm:$0xff] }
 0x385   : > { %1763 = vrot.lane.b32.xlu0 %v1629_v13, %s7208_s9  ;;  %3136 = vrot.lane.b32.xlu1 %v3003_v40, %s7208_s9  ;;  %v1187_v14 = vmax.f32 %v1049_v6, 0.0  ;;  %v1052_v3 = vadd.f32 %v7993_v17, %v1051_v11  ;;  %v6616_v15 = vpop.f32.mrb[171].mxu0  ;;  %1486 = vst.msk [vmem:[#allocation5 + $0x3c0] sm:$0xff] %vm277_vm15, %v1437_v4  ;;  %v2353_v13 = vld [vmem:[#allocation4 + $0x25c] sm:$0xff]  ;;  %v3396_v42 = vpack.c.bf16 %v3335_v44, %v3334_v43 }
 0x386   : > { %v8084_v16 = vld [vmem:[#allocation4 + $0x28a] sm:$0xff]  ;;  %v2415_v15 = vpack.c.bf16 %v2354_v23, %v2353_v13 }
 0x387   : > { %1285 = vst.msk [vmem:[#allocation4 + $0x2a0] sm:$0xff] %vm277_vm15, %v1187_v14  ;;  %v1188_v49 = vmax.f32 %v1052_v3, 0.0  ;;  %v2752_v31 = vld [vmem:[#allocation4 + $0x28d] sm:$0xff] }
 0x388   : > { %v8092_v26 = vld [vmem:[#allocation4 + $0x292] sm:$0xff] }
 0x389   : > { %2156 = vrot.lane.b32.xlu0 %v2022_v18, %s7205_s10  ;;  %3526 = vrot.lane.b32.xlu1 %v3394_v19, %s7205_s10  ;;  %v4181_v32 = vpack.c.bf16 %v8092_v26, %v8084_v16  ;;  %1286 = vst.msk [vmem:[#allocation4 + $0x2a8] sm:$0xff] %vm277_vm15, %v1188_v49  ;;  %v2753_v33 = vld [vmem:[#allocation4 + $0x295] sm:$0xff]  ;;  %v3787_v18 = vpack.c.bf16 %v8124_v10, %v3724_v9 }
 0x38a   : > { %v1056_v29 = vpop.f32.mrb[172].mxu0  ;;  %v1381_v35 = vld [vmem:[#allocation4 + $0x290] sm:$0xff]  ;;  %v1382_v25 = vld [vmem:[#allocation4 + $0x298] sm:$0xff]  ;;  %v2811_v38 = vpack.c.bf16 %v2753_v33, %v2752_v31  ;;  %v8139_v31 = vpop.permute.xlu1 %3942 }
 0x38b   : > { %4230 = vst.msk [vmem:[#allocation5 + $0x388] sm:$0xff] %vm277_vm15, %v4181_v32  ;;  %v1057_v22 = vadd.f32 %v7993_v17, %v1056_v29  ;;  %v6619_v37 = vpop.f32.mrb[173].mxu0  ;;  %v1438_v39 = vpack.c.bf16 %v1382_v25, %v1381_v35  ;;  %v2944_v19 = vld [vmem:[#allocation4 + $0x26e] sm:$0xff]  ;;  %v1631_v25 = vpack.c.bf16 %v3724_v9, %v8090_v12 }
 0x38c   : > { %v1059_v45 = vpop.f32.mrb[174].mxu0  ;;  %2860 = vst.msk [vmem:[#allocation5 + $0x3b0] sm:$0xff] %vm277_vm15, %v2811_v38 }
 0x38d   : > { %2547 = vrot.lane.b32.xlu0 %v2414_v7, %s7206_s11  ;;  %3918 = vrot.lane.b32.xlu1 %v3786_v36, %s7206_s11  ;;  %v1189_v21 = vmax.f32 %v1057_v22, 0.0  ;;  %v1060_v46 = vadd.f32 %v7993_v17, %v1059_v45  ;;  %v6620_v47 = vpop.f32.mrb[175].mxu0  ;;  %1487 = vst.msk [vmem:[#allocation5 + $0x3d8] sm:$0xff] %vm277_vm15, %v1438_v39  ;;  %v3005_v36 = vpack.c.bf16 %v2945_v24, %v2944_v19 }
 0x38e   : > { %v8107_v50 = vld [vmem:[#allocation4 + $0x29a] sm:$0xff]  ;;  %v8155_v63 = vpop.permute.xlu1 %3552 }
 0x38f   : > { %1287 = vst.msk [vmem:[#allocation4 + $0x2b0] sm:$0xff] %vm277_vm15, %v1189_v21  ;;  %v1190_v53 = vmax.f32 %v1060_v46, 0.0  ;;  %v2754_v56 = vld [vmem:[#allocation4 + $0x29d] sm:$0xff] }
 0x390   : > { %v8111_v54 = vld [vmem:[#allocation4 + $0x2a2] sm:$0xff] }
 0x391   : > { %1765 = vrot.lane.b32.xlu0 %v1630_v51, %s7208_s9  ;;  %3138 = vrot.lane.b32.xlu1 %v3004_v41, %s7208_s9  ;;  %v4182_v58 = vpack.c.bf16 %v8111_v54, %v8107_v50  ;;  %1288 = vst.msk [vmem:[#allocation4 + $0x2b8] sm:$0xff] %vm277_vm15, %v1190_v53  ;;  %v2755_v48 = vld [vmem:[#allocation4 + $0x2a5] sm:$0xff]  ;;  %v2024_v53 = vpack.c.bf16 %v8044_v27, %v8027_v0 }
 0x392   : > { %v1064_v59 = vpop.f32.mrb[176].mxu0  ;;  %v1383_v61 = vld [vmem:[#allocation4 + $0x2a0] sm:$0xff]  ;;  %v2812_v8 = vpack.c.bf16 %v2755_v48, %v2754_v56  ;;  %v1384_v55 = vld [vmem:[#allocation4 + $0x2a8] sm:$0xff] }
 0x393   : > { %4231 = vst.msk [vmem:[#allocation5 + $0x3a0] sm:$0xff] %vm277_vm15, %v4182_v58  ;;  %v1065_v40 = vadd.f32 %v7993_v17, %v1064_v59  ;;  %v6623_v6 = vpop.f32.mrb[177].mxu0  ;;  %v1439_v4 = vpack.c.bf16 %v1384_v55, %v1383_v61  ;;  %v2355_v56 = vld [vmem:[#allocation4 + $0x26c] sm:$0xff]  ;;  %v2356_v58 = vld [vmem:[#allocation4 + $0x274] sm:$0xff]  ;;  %v8161_v61 = vld [vmem:[#allocation4 + $0x281] sm:$0xff] }
 0x394   : > { %v1067_v11 = vpop.f32.mrb[178].mxu0  ;;  %2861 = vst.msk [vmem:[#allocation5 + $0x3c8] sm:$0xff] %vm277_vm15, %v2812_v8  ;;  %v3726_v59 = vld [vmem:[#allocation4 + $0x279] sm:$0xff]  ;;  %v2416_v8 = vpack.c.bf16 %v2356_v58, %v2355_v56  ;;  %v3728_v56 = vld [vmem:[#allocation4 + $0x289] sm:$0xff]  ;;  %v8197_v58 = vld [vmem:[#allocation4 + $0x291] sm:$0xff] }
 0x395   : > { %2158 = vrot.lane.b32.xlu0 %v2023_v62, %s7205_s10  ;;  %3528 = vrot.lane.b32.xlu1 %v3395_v2, %s7205_s10  ;;  %v1191_v34 = vmax.f32 %v1065_v40, 0.0  ;;  %v1068_v57 = vadd.f32 %v7993_v17, %v1067_v11  ;;  %v6624_v14 = vpop.f32.mrb[179].mxu0  ;;  %1488 = vst.msk [vmem:[#allocation5 + $0x3f0] sm:$0xff] %vm277_vm15, %v1439_v4  ;;  %v3788_v55 = vpack.c.bf16 %v8161_v61, %v3726_v59 }
 0x396   : > { %v8130_v3 = vld [vmem:[#allocation4 + $0x2aa] sm:$0xff] }
 0x397   : > { %1289 = vst.msk [vmem:[#allocation4 + $0x2c0] sm:$0xff] %vm277_vm15, %v1191_v34  ;;  %v1192_v20 = vmax.f32 %v1068_v57, 0.0  ;;  %v2756_v49 = vld [vmem:[#allocation4 + $0x2ad] sm:$0xff]  ;;  %v2946_v34 = vld [vmem:[#allocation4 + $0x27e] sm:$0xff] }
 0x398   : > { %v8135_v28 = vld [vmem:[#allocation4 + $0x2b2] sm:$0xff]  ;;  %v2947_v57 = vld [vmem:[#allocation4 + $0x286] sm:$0xff] }
 0x399   : > { %2549 = vrot.lane.b32.xlu0 %v2415_v15, %s7206_s11  ;;  %3920 = vrot.lane.b32.xlu1 %v3787_v18, %s7206_s11  ;;  %v4183_v32 = vpack.c.bf16 %v8135_v28, %v8130_v3  ;;  %1290 = vst.msk [vmem:[#allocation4 + $0x2c8] sm:$0xff] %vm277_vm15, %v1192_v20  ;;  %v2757_v29 = vld [vmem:[#allocation4 + $0x2b5] sm:$0xff] }
 0x39a   : > { %v1072_v7 = vpop.f32.mrb[180].mxu0  ;;  %v1385_v33 = vld [vmem:[#allocation4 + $0x2b0] sm:$0xff]  ;;  %v2813_v38 = vpack.c.bf16 %v2757_v29, %v2756_v49  ;;  %v1386_v39 = vld [vmem:[#allocation4 + $0x2b8] sm:$0xff]  ;;  %v3006_v29 = vpack.c.bf16 %v2947_v57, %v2946_v34 }
 0x39b   : > { %v1748_v35 = vpop.permute.xlu0 %1747  ;;  %4232 = vst.msk [vmem:[#allocation5 + $0x3b8] sm:$0xff] %vm277_vm15, %v4183_v32  ;;  %v1073_v22 = vadd.f32 %v7993_v17, %v1072_v7  ;;  %v6627_v37 = vpop.f32.mrb[181].mxu0  ;;  %v1440_v21 = vpack.c.bf16 %v1386_v39, %v1385_v33  ;;  %v1632_v7 = vpack.c.bf16 %v3726_v59, %v8124_v10 }
 0x39c   : > { %1867 = vst.msk [vmem:[#allocation5 + $0x2a0] sm:$0xff] %vm1838_vm0, %v1748_v35  ;;  %v1075_v45 = vpop.f32.mrb[182].mxu0 }
 0x39d   : > { %1767 = vrot.lane.b32.xlu0 %v1631_v25, %s7208_s9  ;;  %3140 = vrot.lane.b32.xlu1 %v3005_v36, %s7208_s9  ;;  %v1193_v12 = vmax.f32 %v1073_v22, 0.0  ;;  %v1076_v46 = vadd.f32 %v7993_v17, %v1075_v45  ;;  %v6628_v47 = vpop.f32.mrb[183].mxu0  ;;  %2862 = vst.msk [vmem:[#allocation5 + $0x3e0] sm:$0xff] %vm277_vm15, %v2813_v38  ;;  %1489 = vst.msk [vmem:[#allocation5 + $0x408] sm:$0xff] %vm277_vm15, %v1440_v21  ;;  %v3336_v25 = vld [vmem:[#allocation4 + $0x288] sm:$0xff]  ;;  %v3337_v36 = vld [vmem:[#allocation4 + $0x290] sm:$0xff]  ;;  %v2025_v21 = vpack.c.bf16 %v8066_v52, %v8048_v30 }
 0x39e   : > { %v8152_v51 = vld [vmem:[#allocation4 + $0x2ba] sm:$0xff] }
 0x39f   : > { %v2141_v41 = vpop.permute.xlu0 %2140  ;;  %1291 = vst.msk [vmem:[#allocation4 + $0x2d0] sm:$0xff] %vm277_vm15, %v1193_v12  ;;  %v1194_v48 = vmax.f32 %v1076_v46, 0.0  ;;  %v2758_v2 = vld [vmem:[#allocation4 + $0x2bd] sm:$0xff]  ;;  %v3397_v12 = vpack.c.bf16 %v3337_v36, %v3336_v25 }
 0x3a0   : > { %2260 = vst.msk [vmem:[#allocation5 + $0x2a0] sm:$0xff] %vm2231_vm1, %v2141_v41  ;;  %v8163_v62 = vld [vmem:[#allocation4 + $0x2c2] sm:$0xff] }
 0x3a1   : > { %2160 = vrot.lane.b32.xlu0 %v2024_v53, %s7205_s10  ;;  %3530 = vrot.lane.b32.xlu1 %v3396_v42, %s7205_s10  ;;  %v4184_v0 = vpack.c.bf16 %v8163_v62, %v8152_v51  ;;  %1292 = vst.msk [vmem:[#allocation4 + $0x2d8] sm:$0xff] %vm277_vm15, %v1194_v48  ;;  %v2759_v13 = vld [vmem:[#allocation4 + $0x2c5] sm:$0xff]  ;;  %v2357_v46 = vld [vmem:[#allocation4 + $0x27c] sm:$0xff] }
 0x3a2   : > { %v1080_v27 = vpop.f32.mrb[184].mxu0  ;;  %v1387_v40 = vld [vmem:[#allocation4 + $0x2c0] sm:$0xff]  ;;  %v2814_v11 = vpack.c.bf16 %v2759_v13, %v2758_v2  ;;  %v1388_v4 = vld [vmem:[#allocation4 + $0x2c8] sm:$0xff] }
 0x3a3   : > { %v1750_v6 = vpop.permute.xlu0 %1749  ;;  %4233 = vst.msk [vmem:[#allocation5 + $0x3d0] sm:$0xff] %vm277_vm15, %v4184_v0  ;;  %v1081_v23 = vadd.f32 %v7993_v17, %v1080_v27  ;;  %v6631_v9 = vpop.f32.mrb[185].mxu0  ;;  %v1441_v15 = vpack.c.bf16 %v1388_v4, %v1387_v40  ;;  %v2358_v42 = vld [vmem:[#allocation4 + $0x284] sm:$0xff]  ;;  %v3789_v40 = vpack.c.bf16 %v8197_v58, %v3728_v56 }
 0x3a4   : > { %1868 = vst.msk [vmem:[#allocation5 + $0x2b8] sm:$0xff] %vm1838_vm0, %v1750_v6  ;;  %v1083_v14 = vpop.f32.mrb[186].mxu0  ;;  %v2417_v13 = vpack.c.bf16 %v2358_v42, %v2357_v46  ;;  %v2949_v9 = vld [vmem:[#allocation4 + $0x296] sm:$0xff] }
 0x3a5   : > { %2551 = vrot.lane.b32.xlu0 %v2416_v8, %s7206_s11  ;;  %3922 = vrot.lane.b32.xlu1 %v3788_v55, %s7206_s11  ;;  %v1195_v19 = vmax.f32 %v1081_v23, 0.0  ;;  %v1084_v20 = vadd.f32 %v7993_v17, %v1083_v14  ;;  %v6632_v24 = vpop.f32.mrb[187].mxu0  ;;  %2863 = vst.msk [vmem:[#allocation5 + $0x3f8] sm:$0xff] %vm277_vm15, %v2814_v11  ;;  %1490 = vst.msk [vmem:[#allocation5 + $0x420] sm:$0xff] %vm277_vm15, %v1441_v15  ;;  %v2948_v23 = vld [vmem:[#allocation4 + $0x28e] sm:$0xff] }
 0x3a6   : > { %v3123_v18 = vpop.permute.xlu1 %3122  ;;  %v8179_v49 = vld [vmem:[#allocation4 + $0x2ca] sm:$0xff]  ;;  %v1633_v24 = vpack.c.bf16 %v3728_v56, %v8161_v61 }
 0x3a7   : > { %3241 = vst.msk [vmem:[#allocation5 + $0x2a8] sm:$0xff] %vm1838_vm0, %v3123_v18  ;;  %v2143_v32 = vpop.permute.xlu0 %2142  ;;  %v1196_v33 = vmax.f32 %v1084_v20, 0.0  ;;  %v2760_v35 = vld [vmem:[#allocation4 + $0x2cd] sm:$0xff] }
 0x3a8   : > { %1293 = vst.msk [vmem:[#allocation4 + $0x2e0] sm:$0xff] %vm277_vm15, %v1195_v19  ;;  %v8185_v22 = vld [vmem:[#allocation4 + $0x2d2] sm:$0xff] }
 0x3a9   : > { %2261 = vst.msk [vmem:[#allocation5 + $0x2b8] sm:$0xff] %vm2231_vm1, %v2143_v32  ;;  %1769 = vrot.lane.b32.xlu0 %v1632_v7, %s7208_s9  ;;  %3142 = vrot.lane.b32.xlu1 %v3006_v29, %s7208_s9  ;;  %v4185_v37 = vpack.c.bf16 %v8185_v22, %v8179_v49  ;;  %v2761_v10 = vld [vmem:[#allocation4 + $0x2d5] sm:$0xff]  ;;  %v3007_v32 = vpack.c.bf16 %v2949_v9, %v2948_v23 }
 0x3aa   : > { %1294 = vst.msk [vmem:[#allocation4 + $0x2e8] sm:$0xff] %vm277_vm15, %v1196_v33  ;;  %v1088_v38 = vpop.f32.mrb[188].mxu0  ;;  %v2815_v39 = vpack.c.bf16 %v2761_v10, %v2760_v35  ;;  %v1389_v43 = vld [vmem:[#allocation4 + $0x2d0] sm:$0xff]  ;;  %v1390_v44 = vld [vmem:[#allocation4 + $0x2d8] sm:$0xff]  ;;  %v3339_v35 = vld [vmem:[#allocation4 + $0x2a0] sm:$0xff] }
 0x3ab   : > { %v2534_v45 = vpop.permute.xlu0 %2533  ;;  %4234 = vst.msk [vmem:[#allocation5 + $0x3e8] sm:$0xff] %vm277_vm15, %v4185_v37  ;;  %v1089_v47 = vadd.f32 %v7993_v17, %v1088_v38  ;;  %v6635_v41 = vpop.f32.mrb[189].mxu0  ;;  %v1442_v53 = vpack.c.bf16 %v1390_v44, %v1389_v43  ;;  %v3338_v33 = vld [vmem:[#allocation4 + $0x298] sm:$0xff]  ;;  %v2026_v44 = vpack.c.bf16 %v8084_v16, %v8070_v60 }
 0x3ac   : > { %2653 = vst.msk [vmem:[#allocation5 + $0x2a0] sm:$0xff] %vm2624_vm2, %v2534_v45  ;;  %v1091_v59 = vpop.f32.mrb[190].mxu0  ;;  %v3398_v45 = vpack.c.bf16 %v3339_v35, %v3338_v33  ;;  %v8238_v41 = vld [vmem:[#allocation4 + $0x2a1] sm:$0xff] }
 0x3ad   : > { %2864 = vst.msk [vmem:[#allocation5 + $0x410] sm:$0xff] %vm277_vm15, %v2815_v39  ;;  %2162 = vrot.lane.b32.xlu0 %v2025_v21, %s7205_s10  ;;  %3532 = vrot.lane.b32.xlu1 %v3397_v12, %s7205_s10  ;;  %v1197_v30 = vmax.f32 %v1089_v47, 0.0  ;;  %v1092_v52 = vadd.f32 %v7993_v17, %v1091_v59  ;;  %v6636_v2 = vpop.f32.mrb[191].mxu0  ;;  %1491 = vst.msk [vmem:[#allocation5 + $0x438] sm:$0xff] %vm277_vm15, %v1442_v53  ;;  %v2359_v21 = vld [vmem:[#allocation4 + $0x28c] sm:$0xff]  ;;  %v2360_v12 = vld [vmem:[#allocation4 + $0x294] sm:$0xff] }
 0x3ae   : > { %v3125_v48 = vpop.permute.xlu1 %3124  ;;  %v2418_v2 = vpack.c.bf16 %v2360_v12, %v2359_v21  ;;  %v8281_v21 = vld [vmem:[#allocation4 + $0x2b1] sm:$0xff] }
 0x3af   : > { %3242 = vst.msk [vmem:[#allocation5 + $0x2c0] sm:$0xff] %vm1838_vm0, %v3125_v48  ;;  %v8205_v0 = vld [vmem:[#allocation4 + $0x2da] sm:$0xff]  ;;  %v1752_v27 = vpop.permute.xlu0 %1751  ;;  %v1198_v6 = vmax.f32 %v1092_v52, 0.0 }
 0x3b0   : > { %1295 = vst.msk [vmem:[#allocation4 + $0x2f0] sm:$0xff] %vm277_vm15, %v1197_v30  ;;  %v2031_v8 = vpack.c.bf16 %v8205_v0, %v8185_v22  ;;  %v2762_v55 = vld [vmem:[#allocation4 + $0x2dd] sm:$0xff] }
 0x3b1   : > { %1869 = vst.msk [vmem:[#allocation5 + $0x2d0] sm:$0xff] %vm1838_vm0, %v1752_v27  ;;  %v8212_v11 = vld [vmem:[#allocation4 + $0x2e2] sm:$0xff]  ;;  %2553 = vrot.lane.b32.xlu0 %v2417_v13, %s7206_s11  ;;  %3924 = vrot.lane.b32.xlu1 %v3789_v40, %s7206_s11 }
 0x3b2   : > { %v4186_v4 = vpack.c.bf16 %v8212_v11, %v8205_v0  ;;  %1296 = vst.msk [vmem:[#allocation4 + $0x2f8] sm:$0xff] %vm277_vm15, %v1198_v6  ;;  %v2763_v34 = vld [vmem:[#allocation4 + $0x2e5] sm:$0xff]  ;;  %v1096_v57 = vpop.f32.mrb[192].mxu0 }
 0x3b3   : > { %v2816_v14 = vpack.c.bf16 %v2763_v34, %v2762_v55  ;;  %v1391_v15 = vld [vmem:[#allocation4 + $0x2e0] sm:$0xff]  ;;  %v1392_v18 = vld [vmem:[#allocation4 + $0x2e8] sm:$0xff]  ;;  %v3515_v19 = vpop.permute.xlu1 %3514  ;;  %v2145_v20 = vpop.permute.xlu0 %2144  ;;  %v1097_v7 = vadd.f32 %v7993_v17, %v1096_v57 }
 0x3b4   : > { %4235 = vst.msk [vmem:[#allocation5 + $0x400] sm:$0xff] %vm277_vm15, %v4186_v4  ;;  %v1443_v29 = vpack.c.bf16 %v1392_v18, %v1391_v15  ;;  %v6639_v25 = vpop.f32.mrb[193].mxu0  ;;  %v2950_v40 = vld [vmem:[#allocation4 + $0x29e] sm:$0xff]  ;;  %v2951_v6 = vld [vmem:[#allocation4 + $0x2a6] sm:$0xff] }
 0x3b5   : > { %3633 = vst.msk [vmem:[#allocation5 + $0x2a8] sm:$0xff] %vm2231_vm1, %v3515_v19  ;;  %2262 = vst.msk [vmem:[#allocation5 + $0x2d0] sm:$0xff] %vm2231_vm1, %v2145_v20  ;;  %1771 = vrot.lane.b32.xlu0 %v1633_v24, %s7208_s9  ;;  %3144 = vrot.lane.b32.xlu1 %v3007_v32, %s7208_s9  ;;  %v1199_v61 = vmax.f32 %v1097_v7, 0.0  ;;  %v1099_v36 = vpop.f32.mrb[194].mxu0  ;;  %v3008_v57 = vpack.c.bf16 %v2951_v6, %v2950_v40  ;;  %v7086_v15 = vld [vmem:[%s9461_s3 + $0x80] sm:$0xff]   ;;  %v2769_v24 = vld [vmem:[#allocation4 + $0x315] sm:$0xff] }
 0x3b6   : > { %2865 = vst.msk [vmem:[#allocation5 + $0x428] sm:$0xff] %vm277_vm15, %v2816_v14  ;;  %1492 = vst.msk [vmem:[#allocation5 + $0x450] sm:$0xff] %vm277_vm15, %v1443_v29  ;;  %v1100_v10 = vadd.f32 %v7993_v17, %v1099_v36  ;;  %v6640_v38 = vpop.f32.mrb[195].mxu0  ;;  %v3730_v17 = vld [vmem:[#allocation4 + $0x299] sm:$0xff]  ;;  %v3340_v19 = vld [vmem:[#allocation4 + $0x2a8] sm:$0xff] }
 0x3b7   : > { %v8228_v37 = vld [vmem:[#allocation4 + $0x2ea] sm:$0xff]  ;;  %v3907_v39 = vpop.permute.xlu1 %3906  ;;  %v2536_v43 = vpop.permute.xlu0 %2535  ;;  %1297 = vst.msk [vmem:[#allocation4 + $0x300] sm:$0xff] %vm277_vm15, %v1199_v61  ;;  %v3790_v27 = vpack.c.bf16 %v8238_v41, %v3730_v17  ;;  %v1634_v34 = vpack.c.bf16 %v3730_v17, %v8197_v58  ;;  %v4137_v14 = vld [vmem:[#allocation4 + $0x312] sm:$0xff]  ;;  %v2361_v29 = vld [vmem:[#allocation4 + $0x29c] sm:$0xff] }
 0x3b8   : > { %v2032_v46 = vpack.c.bf16 %v8228_v37, %v8212_v11  ;;  %v2764_v47 = vld [vmem:[#allocation4 + $0x2ed] sm:$0xff]  ;;  %4025 = vst.msk [vmem:[#allocation5 + $0x2a8] sm:$0xff] %vm2624_vm2, %v3907_v39  ;;  %2654 = vst.msk [vmem:[#allocation5 + $0x2b8] sm:$0xff] %vm2624_vm2, %v2536_v43  ;;  %v1200_v42 = vmax.f32 %v1100_v10, 0.0  ;;  %v2027_v39 = vpack.c.bf16 %v8107_v50, %v8092_v26 }
 0x3b9   : > { %v8240_v53 = vld [vmem:[#allocation4 + $0x2f2] sm:$0xff]  ;;  %2164 = vrot.lane.b32.xlu0 %v2026_v44, %s7205_s10  ;;  %3534 = vrot.lane.b32.xlu1 %v3398_v45, %s7205_s10  ;;  %v2362_v44 = vld [vmem:[#allocation4 + $0x2a4] sm:$0xff] }
 0x3ba   : > { %v4187_v60 = vpack.c.bf16 %v8240_v53, %v8228_v37  ;;  %v8246_v16 = vld [vmem:[#allocation4 + $0x2f8] sm:$0xff]  ;;  %1298 = vst.msk [vmem:[#allocation4 + $0x308] sm:$0xff] %vm277_vm15, %v1200_v42  ;;  %v1393_v48 = vld [vmem:[#allocation4 + $0x2f0] sm:$0xff] }
 0x3bb   : > { %v2765_v56 = vld [vmem:[#allocation4 + $0x2f5] sm:$0xff]  ;;  %v3127_v30 = vpop.permute.xlu1 %3126  ;;  %v1754_v52 = vpop.permute.xlu0 %1753  ;;  %v1444_v13 = vpack.c.bf16 %v8246_v16, %v1393_v48  ;;  %v3732_v45 = vld [vmem:[#allocation4 + $0x2a9] sm:$0xff] }
 0x3bc   : > { %v2817_v59 = vpack.c.bf16 %v2765_v56, %v2764_v47  ;;  %4236 = vst.msk [vmem:[#allocation5 + $0x418] sm:$0xff] %vm277_vm15, %v4187_v60  ;;  %v3341_v20 = vld [vmem:[#allocation4 + $0x2b0] sm:$0xff]  ;;  %v3791_v48 = vpack.c.bf16 %v8281_v21, %v3732_v45  ;;  %v1635_v40 = vpack.c.bf16 %v3732_v45, %v8238_v41 }
 0x3bd   : > { %3243 = vst.msk [vmem:[#allocation5 + $0x2d8] sm:$0xff] %vm1838_vm0, %v3127_v30  ;;  %1870 = vst.msk [vmem:[#allocation5 + $0x2e8] sm:$0xff] %vm1838_vm0, %v1754_v52  ;;  %2555 = vrot.lane.b32.xlu0 %v2418_v2, %s7206_s11  ;;  %3926 = vrot.lane.b32.xlu1 %v3790_v27, %s7206_s11  ;;  %v4326_v58 = vld [vmem:[#allocation5 + $0x2a0] sm:$0xff]  ;;  %v3399_v43 = vpack.c.bf16 %v3341_v20, %v3340_v19  ;;  %v3734_v20 = vld [vmem:[#allocation4 + $0x2b9] sm:$0xff] }
 0x3be   : > { %2866 = vst.msk [vmem:[#allocation5 + $0x440] sm:$0xff] %vm277_vm15, %v2817_v59  ;;  %1493 = vst.msk [vmem:[#allocation5 + $0x468] sm:$0xff] %vm277_vm15, %v1444_v13  ;;  %v8258_v55 = vld [vmem:[#allocation4 + $0x2fa] sm:$0xff]  ;;  %v2419_v59 = vpack.c.bf16 %v2362_v44, %v2361_v29  ;;  %v2952_v30 = vld [vmem:[#allocation4 + $0x2ae] sm:$0xff] }
 0x3bf   : > { %v3517_v23 = vpop.permute.xlu1 %3516  ;;  %v2147_v9 = vpop.permute.xlu0 %2146  ;;  %v4327_v4 = vld [vmem:[#allocation5 + $0x2a8] sm:$0xff]  ;;  %v2033_v18 = vpack.c.bf16 %v8258_v55, %v8240_v53  ;;  %v1395_v36 = vld [vmem:[#allocation4 + $0x300] sm:$0xff]  ;;  %v3345_v44 = vld [vmem:[#allocation4 + $0x2d0] sm:$0xff] }
 0x3c0   : > { %3634 = vst.msk [vmem:[#allocation5 + $0x2c0] sm:$0xff] %vm2231_vm1, %v3517_v23  ;;  %2263 = vst.msk [vmem:[#allocation5 + $0x2e8] sm:$0xff] %vm2231_vm1, %v2147_v9  ;;  %4936 = vmatprep.mubr.bf16.mxu1 %v4327_v4  ;;  %v2766_v61 = vld [vmem:[#allocation4 + $0x2fd] sm:$0xff]  ;;  %v4329_v4 = vld [vmem:[#allocation5 + $0x2b8] sm:$0xff] }
 0x3c1   : > { %1773 = vrot.lane.b32.xlu0 %v1634_v34, %s7208_s9  ;;  %3146 = vrot.lane.b32.xlu1 %v3008_v57, %s7208_s9  ;;  %v8270_v32 = vld [vmem:[#allocation4 + $0x302] sm:$0xff]  ;;  %v8272_v7 = vld [vmem:[#allocation4 + $0x30a] sm:$0xff]  ;;  %v2953_v52 = vld [vmem:[#allocation4 + $0x2b6] sm:$0xff] }
 0x3c2   : > { %4937 = vmatmul.mubr.bf16.vlgmr.msra.gmra.mrb[0].mxu1 %v4326_v58  ;;  %v4188_v33 = vpack.c.bf16 %v8270_v32, %v8258_v55  ;;  %v4189_v35 = vpack.c.bf16 %v4137_v14, %v8272_v7  ;;  %v2034_v25 = vpack.c.bf16 %v8272_v7, %v8270_v32  ;;  %v2767_v12 = vld [vmem:[#allocation4 + $0x305] sm:$0xff]  ;;  %v2768_v47 = vld [vmem:[#allocation4 + $0x30d] sm:$0xff]  ;;  %v3009_v6 = vpack.c.bf16 %v2953_v52, %v2952_v30  ;;  %v3342_v23 = vld [vmem:[#allocation4 + $0x2b8] sm:$0xff] }
 0x3c3   : > { %v3909_v10 = vpop.permute.xlu1 %3908  ;;  %v2538_v38 = vpop.permute.xlu0 %2537  ;;  %6642 = vmatpush3.bf16.msra.mxu1 %v7086_v15  ;;  %v1396_v17 = vld [vmem:[#allocation4 + $0x308] sm:$0xff]  ;;  %v2818_v26 = vpack.c.bf16 %v2767_v12, %v2766_v61  ;;  %v2819_v50 = vpack.c.bf16 %v2769_v24, %v2768_v47  ;;  %v3343_v9 = vld [vmem:[#allocation4 + $0x2c0] sm:$0xff]  ;;  %v2028_v14 = vpack.c.bf16 %v8130_v3, %v8111_v54  ;;  %v2364_v19 = vld [vmem:[#allocation4 + $0x2b4] sm:$0xff] }
 0x3c4   : > { %4026 = vst.msk [vmem:[#allocation5 + $0x2c0] sm:$0xff] %vm2624_vm2, %v3909_v10  ;;  %2655 = vst.msk [vmem:[#allocation5 + $0x2d0] sm:$0xff] %vm2624_vm2, %v2538_v38  ;;  %6643 = vmatprep.subr.bf16.mxu1 %v7195_v1  ;;  %v1445_v42 = vpack.c.bf16 %v1396_v17, %v1395_v36  ;;  %v3400_v41 = vpack.c.bf16 %v3343_v9, %v3342_v23  ;;  %v2363_v15 = vld [vmem:[#allocation4 + $0x2ac] sm:$0xff]  ;;  %v3735_v24 = vld [vmem:[#allocation4 + $0x2c1] sm:$0xff]  ;;  %v1636_v38 = vpack.c.bf16 %v3734_v20, %v8281_v21 }
 0x3c5   : > { %4237 = vst.msk [vmem:[#allocation5 + $0x430] sm:$0xff] %vm277_vm15, %v4188_v33  ;;  %4238 = vst.msk [vmem:[#allocation5 + $0x448] sm:$0xff] %vm277_vm15, %v4189_v35  ;;  %2166 = vrot.lane.b32.xlu0 %v2027_v39, %s7205_s10  ;;  %3536 = vrot.lane.b32.xlu1 %v3399_v43, %s7205_s10  ;;  %v2420_v33 = vpack.c.bf16 %v2364_v19, %v2363_v15  ;;  %v3792_v35 = vpack.c.bf16 %v3735_v24, %v3734_v20  ;;  %v2954_v54 = vld [vmem:[#allocation4 + $0x2be] sm:$0xff]  ;;  %v2955_v3 = vld [vmem:[#allocation4 + $0x2c6] sm:$0xff] }
 0x3c6   : > { %2867 = vst.msk [vmem:[#allocation5 + $0x458] sm:$0xff] %vm277_vm15, %v2818_v26  ;;  %2868 = vst.msk [vmem:[#allocation5 + $0x470] sm:$0xff] %vm277_vm15, %v2819_v50  ;;  %v3010_v39 = vpack.c.bf16 %v2955_v3, %v2954_v54  ;;  %v3344_v43 = vld [vmem:[#allocation4 + $0x2c8] sm:$0xff]  ;;  %v2029_v17 = vpack.c.bf16 %v8152_v51, %v8135_v28  ;;  %v2365_v26 = vld [vmem:[#allocation4 + $0x2bc] sm:$0xff] }
 0x3c7   : > { %v3129_v60 = vpop.permute.xlu1 %3128  ;;  %v1756_v56 = vpop.permute.xlu0 %1755  ;;  %1494 = vst.msk [vmem:[#allocation5 + $0x480] sm:$0xff] %vm277_vm15, %v1445_v42  ;;  %v3401_v21 = vpack.c.bf16 %v3345_v44, %v3344_v43  ;;  %v2366_v50 = vld [vmem:[#allocation4 + $0x2c4] sm:$0xff]  ;;  %v2956_v30 = vld [vmem:[#allocation4 + $0x2ce] sm:$0xff]  ;;  %v2957_v52 = vld [vmem:[#allocation4 + $0x2d6] sm:$0xff] }
 0x3c8   : > { %3244 = vst.msk [vmem:[#allocation5 + $0x2f0] sm:$0xff] %vm1838_vm0, %v3129_v60  ;;  %1871 = vst.msk [vmem:[#allocation5 + $0x300] sm:$0xff] %vm1838_vm0, %v1756_v56  ;;  %v3736_v42 = vld [vmem:[#allocation4 + $0x2c9] sm:$0xff]  ;;  %v3737_v60 = vld [vmem:[#allocation4 + $0x2d1] sm:$0xff]  ;;  %v2421_v28 = vpack.c.bf16 %v2366_v50, %v2365_v26 }
 0x3c9   : > { %2557 = vrot.lane.b32.xlu0 %v2419_v59, %s7206_s11  ;;  %3928 = vrot.lane.b32.xlu1 %v3791_v48, %s7206_s11  ;;  %v7087_v56 = vld [vmem:[%s9461_s3 + $0x88] sm:$0xff]   ;;  %v3793_v51 = vpack.c.bf16 %v3737_v60, %v3736_v42  ;;  %v3347_v9 = vld [vmem:[#allocation4 + $0x2e0] sm:$0xff] }
 0x3ca   : > { %6644 = vmatpush3.bf16.msra.mxu1 %v7087_v56  ;;  %v3346_v23 = vld [vmem:[#allocation4 + $0x2d8] sm:$0xff]  ;;  %v2367_v15 = vld [vmem:[#allocation4 + $0x2cc] sm:$0xff]  ;;  %v3739_v20 = vld [vmem:[#allocation4 + $0x2e1] sm:$0xff] }
 0x3cb   : > { %v3519_v2 = vpop.permute.xlu1 %3518  ;;  %v2149_v27 = vpop.permute.xlu0 %2148  ;;  %v4330_v13 = vld [vmem:[#allocation5 + $0x2c0] sm:$0xff]  ;;  %v4332_v45 = vld [vmem:[#allocation5 + $0x2d0] sm:$0xff] }
 0x3cc   : > { %3635 = vst.msk [vmem:[#allocation5 + $0x2d8] sm:$0xff] %vm2231_vm1, %v3519_v2  ;;  %2264 = vst.msk [vmem:[#allocation5 + $0x300] sm:$0xff] %vm2231_vm1, %v2149_v27  ;;  %4944 = vmatprep.mubr.bf16.mxu1 %v4330_v13  ;;  %v3738_v19 = vld [vmem:[#allocation4 + $0x2d9] sm:$0xff]  ;;  %v2370_v26 = vld [vmem:[#allocation4 + $0x2e4] sm:$0xff] }
 0x3cd   : > { %1775 = vrot.lane.b32.xlu0 %v1635_v40, %s7208_s9  ;;  %3148 = vrot.lane.b32.xlu1 %v3009_v6, %s7208_s9  ;;  %v1637_v40 = vpack.c.bf16 %v3736_v42, %v3735_v24  ;;  %v3011_v6 = vpack.c.bf16 %v2957_v52, %v2956_v30  ;;  %v2368_v24 = vld [vmem:[#allocation4 + $0x2d4] sm:$0xff]  ;;  %v3351_v0 = vld [vmem:[#allocation4 + $0x300] sm:$0xff] }
 0x3ce   : > { %4945 = vmatmul.mubr.bf16.gmra.mrb[4].mxu1 %v4329_v4  ;;  %v2966_v55 = vld [vmem:[#allocation4 + $0x31e] sm:$0xff] }
 0x3cf   : > { %v3911_v34 = vpop.permute.xlu1 %3910  ;;  %v2540_v57 = vpop.permute.xlu0 %2539  ;;  %v1888_v32 = vld [vmem:[#allocation4 + $0x2] sm:$0xff] }
 0x3d0   : > { %4027 = vst.msk [vmem:[#allocation5 + $0x2d8] sm:$0xff] %vm2624_vm2, %v3911_v34  ;;  %2656 = vst.msk [vmem:[#allocation5 + $0x2e8] sm:$0xff] %vm2624_vm2, %v2540_v57 }
 0x3d1   : > { %2168 = vrot.lane.b32.xlu0 %v2028_v14, %s7205_s10  ;;  %3538 = vrot.lane.b32.xlu1 %v3400_v41, %s7205_s10  ;;  %v3402_v14 = vpack.c.bf16 %v3347_v9, %v3346_v23  ;;  %v2030_v41 = vpack.c.bf16 %v8179_v49, %v8163_v62  ;;  %v2958_v62 = vld [vmem:[#allocation4 + $0x2de] sm:$0xff]  ;;  %v2959_v49 = vld [vmem:[#allocation4 + $0x2e6] sm:$0xff]  ;;  %v2372_v9 = vld [vmem:[#allocation4 + $0x2f4] sm:$0xff] }
 0x3d2   : > { %v8367_v23 = vld [vmem:[#allocation4 + $0x301] sm:$0xff] }
 0x3d3   : > { %v3131_v58 = vpop.permute.xlu1 %3130  ;;  %v1758_v29 = vpop.permute.xlu0 %1757 }
 0x3d4   : > { %3245 = vst.msk [vmem:[#allocation5 + $0x308] sm:$0xff] %vm1838_vm0, %v3131_v58  ;;  %1872 = vst.msk [vmem:[#allocation5 + $0x318] sm:$0xff] %vm1838_vm0, %v1758_v29 }
 0x3d5   : > { %2559 = vrot.lane.b32.xlu0 %v2420_v33, %s7206_s11  ;;  %3930 = vrot.lane.b32.xlu1 %v3792_v35, %s7206_s11  ;;  %v3794_v33 = vpack.c.bf16 %v3739_v20, %v3738_v19  ;;  %v2422_v35 = vpack.c.bf16 %v2368_v24, %v2367_v15  ;;  %v3745_v24 = vld [vmem:[#allocation4 + $0x311] sm:$0xff] }
 0x3d7   : > { %v3521_v61 = vpop.permute.xlu1 %3520  ;;  %v2151_v36 = vpop.permute.xlu0 %2150  ;;  %v4333_v10 = vld [vmem:[#allocation5 + $0x2d8] sm:$0xff]  ;;  %v4335_v4 = vld [vmem:[#allocation5 + $0x2e8] sm:$0xff] }
 0x3d8   : > { %3636 = vst.msk [vmem:[#allocation5 + $0x2f0] sm:$0xff] %vm2231_vm1, %v3521_v61  ;;  %2265 = vst.msk [vmem:[#allocation5 + $0x318] sm:$0xff] %vm2231_vm1, %v2151_v36  ;;  %4952 = vmatprep.mubr.bf16.mxu1 %v4333_v10  ;;  %v3012_v36 = vpack.c.bf16 %v2959_v49, %v2958_v62  ;;  %v1638_v10 = vpack.c.bf16 %v3738_v19, %v3737_v60  ;;  %v2771_v62 = vld [vmem:[#allocation4 + $0x325] sm:$0xff] }
 0x3d9   : > { %1777 = vrot.lane.b32.xlu0 %v1636_v38, %s7208_s9  ;;  %3150 = vrot.lane.b32.xlu1 %v3010_v39, %s7208_s9  ;;  %v3348_v38 = vld [vmem:[#allocation4 + $0x2e8] sm:$0xff]  ;;  %v3349_v39 = vld [vmem:[#allocation4 + $0x2f0] sm:$0xff] }
 0x3da   : > { %4953 = vmatmul.mubr.bf16.gmra.mrb[8].mxu1 %v4332_v45 }
 0x3db   : > { %v3913_v12 = vpop.permute.xlu1 %3912  ;;  %v2542_v47 = vpop.permute.xlu0 %2541 }
 0x3dc   : > { %4028 = vst.msk [vmem:[#allocation5 + $0x2f0] sm:$0xff] %vm2624_vm2, %v3913_v12  ;;  %2657 = vst.msk [vmem:[#allocation5 + $0x300] sm:$0xff] %vm2624_vm2, %v2542_v47  ;;  %v3403_v12 = vpack.c.bf16 %v3349_v39, %v3348_v38  ;;  %v2369_v47 = vld [vmem:[#allocation4 + $0x2dc] sm:$0xff] }
 0x3dd   : > { %2170 = vrot.lane.b32.xlu0 %v2029_v17, %s7205_s10  ;;  %3540 = vrot.lane.b32.xlu1 %v3401_v21, %s7205_s10  ;;  %v3740_v17 = vld [vmem:[#allocation4 + $0x2e9] sm:$0xff]  ;;  %v3741_v21 = vld [vmem:[#allocation4 + $0x2f1] sm:$0xff]  ;;  %v2423_v56 = vpack.c.bf16 %v2370_v26, %v2369_v47  ;;  %v2377_v39 = vld [vmem:[#allocation4 + $0x31c] sm:$0xff] }
 0x3de   : > { %v3795_v60 = vpack.c.bf16 %v3741_v21, %v3740_v17  ;;  %v1639_v22 = vpack.c.bf16 %v3740_v17, %v3739_v20  ;;  %v2962_v47 = vld [vmem:[#allocation4 + $0x2fe] sm:$0xff]  ;;  %v2963_v17 = vld [vmem:[#allocation4 + $0x306] sm:$0xff] }
 0x3df   : > { %v3133_v59 = vpop.permute.xlu1 %3132  ;;  %v1760_v48 = vpop.permute.xlu0 %1759 }
 0x3e0   : > { %3246 = vst.msk [vmem:[#allocation5 + $0x320] sm:$0xff] %vm1838_vm0, %v3133_v59  ;;  %1873 = vst.msk [vmem:[#allocation5 + $0x330] sm:$0xff] %vm1838_vm0, %v1760_v48  ;;  %v2960_v59 = vld [vmem:[#allocation4 + $0x2ee] sm:$0xff]  ;;  %v2961_v48 = vld [vmem:[#allocation4 + $0x2f6] sm:$0xff] }
 0x3e1   : > { %2561 = vrot.lane.b32.xlu0 %v2421_v28, %s7206_s11  ;;  %3932 = vrot.lane.b32.xlu1 %v3793_v51, %s7206_s11  ;;  %v3013_v52 = vpack.c.bf16 %v2961_v48, %v2960_v59 }
 0x3e3   : > { %v3523_v2 = vpop.permute.xlu1 %3522  ;;  %v2153_v27 = vpop.permute.xlu0 %2152  ;;  %v4336_v13 = vld [vmem:[#allocation5 + $0x2f0] sm:$0xff]  ;;  %v4338_v43 = vld [vmem:[#allocation5 + $0x300] sm:$0xff] }
 0x3e4   : > { %3637 = vst.msk [vmem:[#allocation5 + $0x308] sm:$0xff] %vm2231_vm1, %v3523_v2  ;;  %2266 = vst.msk [vmem:[#allocation5 + $0x330] sm:$0xff] %vm2231_vm1, %v2153_v27  ;;  %4960 = vmatprep.mubr.bf16.mxu1 %v4336_v13  ;;  %v3404_v13 = vpack.c.bf16 %v3351_v0, %v8246_v16  ;;  %v3358_v0 = vld [vmem:[#allocation4 + $0x338] sm:$0xff] }
 0x3e5   : > { %1779 = vrot.lane.b32.xlu0 %v1637_v40, %s7208_s9  ;;  %3152 = vrot.lane.b32.xlu1 %v3011_v6, %s7208_s9  ;;  %v2371_v40 = vld [vmem:[#allocation4 + $0x2ec] sm:$0xff]  ;;  %v3742_v6 = vld [vmem:[#allocation4 + $0x2f9] sm:$0xff] }
 0x3e6   : > { %4961 = vmatmul.mubr.bf16.gmra.mrb[12].mxu1 %v4335_v4  ;;  %v3796_v16 = vpack.c.bf16 %v8367_v23, %v3742_v6  ;;  %v1640_v37 = vpack.c.bf16 %v3742_v6, %v3741_v21 }
 0x3e7   : > { %v3915_v34 = vpop.permute.xlu1 %3914  ;;  %v2544_v57 = vpop.permute.xlu0 %2543 }
 0x3e8   : > { %4029 = vst.msk [vmem:[#allocation5 + $0x308] sm:$0xff] %vm2624_vm2, %v3915_v34  ;;  %2658 = vst.msk [vmem:[#allocation5 + $0x318] sm:$0xff] %vm2624_vm2, %v2544_v57  ;;  %v2424_v57 = vpack.c.bf16 %v2372_v9, %v2371_v40  ;;  %v3750_v9 = vld [vmem:[#allocation4 + $0x339] sm:$0xff] }
 0x3e9   : > { %3542 = vrot.lane.b32.xlu1 %v3402_v14, %s7205_s10  ;;  %2172 = vrot.lane.b32.xlu0 %v2030_v41, %s7205_s10  ;;  %v3352_v14 = vld [vmem:[#allocation4 + $0x308] sm:$0xff]  ;;  %v3353_v41 = vld [vmem:[#allocation4 + $0x310] sm:$0xff] }
 0x3ea   : > { %v3405_v11 = vpack.c.bf16 %v3353_v41, %v3352_v14 }
 0x3eb   : > { %v3135_v58 = vpop.permute.xlu1 %3134  ;;  %v1762_v29 = vpop.permute.xlu0 %1761 }
 0x3ec   : > { %3247 = vst.msk [vmem:[#allocation5 + $0x338] sm:$0xff] %vm1838_vm0, %v3135_v58  ;;  %1874 = vst.msk [vmem:[#allocation5 + $0x348] sm:$0xff] %vm1838_vm0, %v1762_v29  ;;  %v3748_v29 = vld [vmem:[#allocation4 + $0x329] sm:$0xff] }
 0x3ed   : > { %3934 = vrot.lane.b32.xlu1 %v3794_v33, %s7206_s11  ;;  %2563 = vrot.lane.b32.xlu0 %v2422_v35, %s7206_s11  ;;  %v3749_v33 = vld [vmem:[#allocation4 + $0x331] sm:$0xff]  ;;  %v2770_v35 = vld [vmem:[#allocation4 + $0x31d] sm:$0xff] }
 0x3ee   : > { %v3799_v38 = vpack.c.bf16 %v3749_v33, %v3748_v29  ;;  %v3263_v33 = vld [vmem:[#allocation4 + $0x40] sm:$0xff] }
 0x3ef   : > { %v3525_v54 = vpop.permute.xlu1 %3524  ;;  %v2155_v3 = vpop.permute.xlu0 %2154  ;;  %v4339_v61 = vld [vmem:[#allocation5 + $0x308] sm:$0xff] }
 0x3f0   : > { %3638 = vst.msk [vmem:[#allocation5 + $0x320] sm:$0xff] %vm2231_vm1, %v3525_v54  ;;  %2267 = vst.msk [vmem:[#allocation5 + $0x348] sm:$0xff] %vm2231_vm1, %v2155_v3  ;;  %4968 = vmatprep.mubr.bf16.mxu1 %v4339_v61  ;;  %v2820_v61 = vpack.c.bf16 %v2771_v62, %v2770_v35  ;;  %v2282_v35 = vld [vmem:[#allocation4 + $0x24] sm:$0xff]  ;;  %v3262_v62 = vld [vmem:[#allocation4 + $0x38] sm:$0xff] }
 0x3f1   : > { %3154 = vrot.lane.b32.xlu1 %v3012_v36, %s7208_s9  ;;  %1781 = vrot.lane.b32.xlu0 %v1638_v10, %s7208_s9  ;;  %v2373_v36 = vld [vmem:[#allocation4 + $0x2fc] sm:$0xff]  ;;  %v2374_v10 = vld [vmem:[#allocation4 + $0x304] sm:$0xff] }
 0x3f2   : > { %4969 = vmatmul.mubr.bf16.gmra.mrb[16].mxu1 %v4338_v43  ;;  %2869 = vst.msk [vmem:[#allocation5 + $0x488] sm:$0xff] %vm277_vm15, %v2820_v61  ;;  %v2378_v43 = vld [vmem:[#allocation4 + $0x324] sm:$0xff] }
 0x3f3   : > { %v3917_v44 = vpop.permute.xlu1 %3916  ;;  %v2546_v45 = vpop.permute.xlu0 %2545  ;;  %v2427_v53 = vpack.c.bf16 %v2378_v43, %v2377_v39  ;;  %v1498_v39 = vld [vmem:[#allocation4 + $0x19] sm:$0xff] }
 0x3f4   : > { %4030 = vst.msk [vmem:[#allocation5 + $0x320] sm:$0xff] %vm2624_vm2, %v3917_v44  ;;  %2659 = vst.msk [vmem:[#allocation5 + $0x330] sm:$0xff] %vm2624_vm2, %v2546_v45 }
 0x3f5   : > { %3544 = vrot.lane.b32.xlu1 %v3403_v12, %s7205_s10  ;;  %2174 = vrot.lane.b32.xlu0 %v2031_v8, %s7205_s10  ;;  %v4341_v8 = vld [vmem:[#allocation5 + $0x318] sm:$0xff]  ;;  %v2425_v12 = vpack.c.bf16 %v2374_v10, %v2373_v36  ;;  %v3360_v36 = vpack.c.bf16 %v3263_v33, %v3262_v62 }
 0x3f7   : > { %v3137_v50 = vpop.permute.xlu1 %3136  ;;  %v1764_v42 = vpop.permute.xlu0 %1763 }
 0x3f8   : > { %3248 = vst.msk [vmem:[#allocation5 + $0x350] sm:$0xff] %vm1838_vm0, %v3137_v50  ;;  %1875 = vst.msk [vmem:[#allocation5 + $0x360] sm:$0xff] %vm1838_vm0, %v1764_v42  ;;  %v3014_v42 = vpack.c.bf16 %v2963_v17, %v2962_v47 }
 0x3f9   : > { %3936 = vrot.lane.b32.xlu1 %v3795_v60, %s7206_s11  ;;  %2565 = vrot.lane.b32.xlu0 %v2423_v56, %s7206_s11  ;;  %v2375_v60 = vld [vmem:[#allocation4 + $0x30c] sm:$0xff]  ;;  %v2376_v56 = vld [vmem:[#allocation4 + $0x314] sm:$0xff] }
 0x3fb   : > { %v3527_v28 = vpop.permute.xlu1 %3526  ;;  %v2157_v51 = vpop.permute.xlu0 %2156  ;;  %v4342_v30 = vld [vmem:[#allocation5 + $0x320] sm:$0xff]  ;;  %v4344_v58 = vld [vmem:[#allocation5 + $0x330] sm:$0xff] }
 0x3fc   : > { %3639 = vst.msk [vmem:[#allocation5 + $0x338] sm:$0xff] %vm2231_vm1, %v3527_v28  ;;  %2268 = vst.msk [vmem:[#allocation5 + $0x360] sm:$0xff] %vm2231_vm1, %v2157_v51  ;;  %4976 = vmatprep.mubr.bf16.mxu1 %v4342_v30  ;;  %v2426_v30 = vpack.c.bf16 %v2376_v56, %v2375_v60 }
 0x3fd   : > { %3156 = vrot.lane.b32.xlu1 %v3013_v52, %s7208_s9  ;;  %1783 = vrot.lane.b32.xlu0 %v1639_v22, %s7208_s9  ;;  %v2964_v52 = vld [vmem:[#allocation4 + $0x30e] sm:$0xff]  ;;  %v2965_v22 = vld [vmem:[#allocation4 + $0x316] sm:$0xff] }
 0x3fe   : > { %4977 = vmatmul.mubr.bf16.gmra.mrb[20].mxu1 %v4341_v8  ;;  %v3359_v8 = vld [vmem:[#allocation4 + $0x340] sm:$0xff] }
 0x3ff   : > { %v3919_v2 = vpop.permute.xlu1 %3918  ;;  %v2548_v27 = vpop.permute.xlu0 %2547  ;;  %v3408_v6 = vpack.c.bf16 %v3359_v8, %v3358_v0 }
 0x400   : > { %4031 = vst.msk [vmem:[#allocation5 + $0x338] sm:$0xff] %vm2624_vm2, %v3919_v2  ;;  %2660 = vst.msk [vmem:[#allocation5 + $0x348] sm:$0xff] %vm2624_vm2, %v2548_v27 }
 0x401   : > { %3546 = vrot.lane.b32.xlu1 %v3404_v13, %s7205_s10  ;;  %2176 = vrot.lane.b32.xlu0 %v2032_v46, %s7205_s10  ;;  %v8381_v46 = vld [vmem:[#allocation4 + $0x309] sm:$0xff]  ;;  %v3015_v13 = vpack.c.bf16 %v2965_v22, %v2964_v52 }
 0x402   : > { %v3797_v3 = vpack.c.bf16 %v3745_v24, %v8381_v46  ;;  %v1641_v40 = vpack.c.bf16 %v8381_v46, %v8367_v23  ;;  %v1496_v23 = vld [vmem:[#allocation4 + $0x9] sm:$0xff]  ;;  %v2870_v24 = vld [vmem:[#allocation4 + $0x1e] sm:$0xff] }
 0x403   : > { %v3139_v4 = vpop.permute.xlu1 %3138  ;;  %v1766_v34 = vpop.permute.xlu0 %1765  ;;  %v1889_v46 = vld [vmem:[#allocation4 + $0xa] sm:$0xff] }
 0x404   : > { %3249 = vst.msk [vmem:[#allocation5 + $0x368] sm:$0xff] %vm1838_vm0, %v3139_v4  ;;  %1876 = vst.msk [vmem:[#allocation5 + $0x378] sm:$0xff] %vm1838_vm0, %v1766_v34  ;;  %v3751_v4 = vld [vmem:[#allocation4 + $0x341] sm:$0xff]  ;;  %v1986_v29 = vpack.c.bf16 %v1889_v46, %v1888_v32 }
 0x405   : > { %3938 = vrot.lane.b32.xlu1 %v3796_v16, %s7206_s11  ;;  %2567 = vrot.lane.b32.xlu0 %v2424_v57, %s7206_s11  ;;  %v3800_v41 = vpack.c.bf16 %v3751_v4, %v3750_v9  ;;  %v2286_v46 = vld [vmem:[#allocation4 + $0x44] sm:$0xff]  ;;  %v2285_v32 = vld [vmem:[#allocation4 + $0x3c] sm:$0xff] }
 0x406   : > { %v2381_v33 = vpack.c.bf16 %v2286_v46, %v2285_v32  ;;  %v8508_v46 = vld [vmem:[#allocation4 + $0x79] sm:$0xff] }
 0x407   : > { %v3529_v15 = vpop.permute.xlu1 %3528  ;;  %v2159_v19 = vpop.permute.xlu0 %2158  ;;  %v4345_v20 = vld [vmem:[#allocation5 + $0x338] sm:$0xff]  ;;  %v4347_v59 = vld [vmem:[#allocation5 + $0x348] sm:$0xff] }
 0x408   : > { %3640 = vst.msk [vmem:[#allocation5 + $0x350] sm:$0xff] %vm2231_vm1, %v3529_v15  ;;  %2269 = vst.msk [vmem:[#allocation5 + $0x378] sm:$0xff] %vm2231_vm1, %v2159_v19  ;;  %4984 = vmatprep.mubr.bf16.mxu1 %v4345_v20  ;;  %v1495_v15 = vld [vmem:[#allocation4 + $0x1] sm:$0xff] }
 0x409   : > { %3548 = vrot.lane.b32.xlu1 %v3405_v11, %s7205_s10  ;;  %1785 = vrot.lane.b32.xlu0 %v1640_v37, %s7208_s9  ;;  %v1593_v11 = vpack.c.bf16 %v1496_v23, %v1495_v15  ;;  %v2871_v37 = vld [vmem:[#allocation4 + $0x26] sm:$0xff] }
 0x40a   : > { %4985 = vmatmul.mubr.bf16.gmra.mrb[24].mxu1 %v4344_v58  ;;  %v2968_v58 = vpack.c.bf16 %v2871_v37, %v2870_v24  ;;  %v1893_v23 = vld [vmem:[#allocation4 + $0x2a] sm:$0xff]  ;;  %v3267_v37 = vld [vmem:[#allocation4 + $0x60] sm:$0xff]  ;;  %v3266_v24 = vld [vmem:[#allocation4 + $0x58] sm:$0xff] }
 0x40b   : > { %v3921_v49 = vpop.permute.xlu1 %3920  ;;  %v2550_v54 = vpop.permute.xlu0 %2549 }
 0x40c   : > { %4032 = vst.msk [vmem:[#allocation5 + $0x350] sm:$0xff] %vm2624_vm2, %v3921_v49  ;;  %2661 = vst.msk [vmem:[#allocation5 + $0x360] sm:$0xff] %vm2624_vm2, %v2550_v54  ;;  %v2281_v49 = vld [vmem:[#allocation4 + $0x1c] sm:$0xff] }
 0x40d   : > { %3940 = vrot.lane.b32.xlu1 %v3797_v3, %s7206_s11  ;;  %2178 = vrot.lane.b32.xlu0 %v2033_v18, %s7205_s10  ;;  %v2967_v18 = vld [vmem:[#allocation4 + $0x326] sm:$0xff]  ;;  %v2379_v10 = vpack.c.bf16 %v2282_v35, %v2281_v49  ;;  %v8469_v49 = vld [vmem:[#allocation4 + $0x59] sm:$0xff] }
 0x40e   : > { %v3016_v48 = vpack.c.bf16 %v2967_v18, %v2966_v55  ;;  %v2873_v55 = vld [vmem:[#allocation4 + $0x36] sm:$0xff]  ;;  %v8465_v35 = vld [vmem:[#allocation4 + $0x61] sm:$0xff] }
 0x40f   : > { %v3141_v44 = vpop.permute.xlu1 %3140  ;;  %v1768_v45 = vpop.permute.xlu0 %1767  ;;  %v1891_v18 = vld [vmem:[#allocation4 + $0x1a] sm:$0xff] }
 0x410   : > { %3250 = vst.msk [vmem:[#allocation5 + $0x380] sm:$0xff] %vm1838_vm0, %v3141_v44  ;;  %1877 = vst.msk [vmem:[#allocation5 + $0x390] sm:$0xff] %vm1838_vm0, %v1768_v45  ;;  %v8433_v44 = vld [vmem:[#allocation4 + $0x39] sm:$0xff]  ;;  %v1497_v45 = vld [vmem:[#allocation4 + $0x11] sm:$0xff] }
 0x411   : > { %3944 = vrot.lane.b32.xlu1 %v3799_v38, %s7206_s11  ;;  %2569 = vrot.lane.b32.xlu0 %v2425_v12, %s7206_s11  ;;  %v8429_v38 = vld [vmem:[#allocation4 + $0x41] sm:$0xff] }
 0x412   : > { %v3752_v17 = vpack.c.bf16 %v8429_v38, %v8433_v44 }
 0x413   : > { %v3531_v21 = vpop.permute.xlu1 %3530  ;;  %v2161_v26 = vpop.permute.xlu0 %2160  ;;  %v4348_v50 = vld [vmem:[#allocation5 + $0x350] sm:$0xff]  ;;  %v4350_v14 = vld [vmem:[#allocation5 + $0x360] sm:$0xff] }
 0x414   : > { %3641 = vst.msk [vmem:[#allocation5 + $0x368] sm:$0xff] %vm2231_vm1, %v3531_v21  ;;  %2270 = vst.msk [vmem:[#allocation5 + $0x390] sm:$0xff] %vm2231_vm1, %v2161_v26  ;;  %4992 = vmatprep.mubr.bf16.mxu1 %v4348_v50  ;;  %v2872_v21 = vld [vmem:[#allocation4 + $0x2e] sm:$0xff] }
 0x415   : > { %3158 = vrot.lane.b32.xlu1 %v3014_v42, %s7208_s9  ;;  %2573 = vrot.lane.b32.xlu0 %v2427_v53, %s7206_s11  ;;  %v1594_v53 = vpack.c.bf16 %v1498_v39, %v1497_v45  ;;  %v1890_v26 = vld [vmem:[#allocation4 + $0x12] sm:$0xff]  ;;  %v2969_v60 = vpack.c.bf16 %v2873_v55, %v2872_v21  ;;  %v3268_v21 = vld [vmem:[#allocation4 + $0x68] sm:$0xff] }
 0x416   : > { %4993 = vmatmul.mubr.bf16.gmra.mrb[28].mxu1 %v4347_v59  ;;  %v1987_v56 = vpack.c.bf16 %v1891_v18, %v1890_v26  ;;  %v3265_v59 = vld [vmem:[#allocation4 + $0x50] sm:$0xff] }
 0x417   : > { %v3923_v28 = vpop.permute.xlu1 %3922  ;;  %v2552_v51 = vpop.permute.xlu0 %2551  ;;  %v2877_v39 = vld [vmem:[#allocation4 + $0x56] sm:$0xff]  ;;  %v2876_v45 = vld [vmem:[#allocation4 + $0x4e] sm:$0xff] }
 0x418   : > { %4033 = vst.msk [vmem:[#allocation5 + $0x368] sm:$0xff] %vm2624_vm2, %v3923_v28  ;;  %2662 = vst.msk [vmem:[#allocation5 + $0x378] sm:$0xff] %vm2624_vm2, %v2552_v51  ;;  %v3264_v28 = vld [vmem:[#allocation4 + $0x48] sm:$0xff]  ;;  %v2288_v18 = vld [vmem:[#allocation4 + $0x54] sm:$0xff] }
 0x419   : > { %3162 = vrot.lane.b32.xlu1 %v3016_v48, %s7208_s9  ;;  %2571 = vrot.lane.b32.xlu0 %v2426_v30, %s7206_s11  ;;  %v2284_v48 = vld [vmem:[#allocation4 + $0x34] sm:$0xff]  ;;  %v2283_v51 = vld [vmem:[#allocation4 + $0x2c] sm:$0xff]  ;;  %v3361_v0 = vpack.c.bf16 %v3265_v59, %v3264_v28 }
 0x41a   : > { %v2380_v8 = vpack.c.bf16 %v2284_v48, %v2283_v51  ;;  %v2287_v26 = vld [vmem:[#allocation4 + $0x4c] sm:$0xff] }
 0x41b   : > { %v3143_v2 = vpop.permute.xlu1 %3142  ;;  %v1770_v27 = vpop.permute.xlu0 %1769  ;;  %v2382_v59 = vpack.c.bf16 %v2288_v18, %v2287_v26  ;;  %v8484_v48 = vld [vmem:[#allocation4 + $0x71] sm:$0xff]  ;;  %v8488_v51 = vld [vmem:[#allocation4 + $0x69] sm:$0xff] }
 0x41c   : > { %3251 = vst.msk [vmem:[#allocation5 + $0x398] sm:$0xff] %vm1838_vm0, %v3143_v2  ;;  %1878 = vst.msk [vmem:[#allocation5 + $0x3a8] sm:$0xff] %vm1838_vm0, %v1770_v27  ;;  %v8447_v2 = vld [vmem:[#allocation4 + $0x51] sm:$0xff]  ;;  %v1500_v27 = vld [vmem:[#allocation4 + $0x29] sm:$0xff] }
 0x41d   : > { %3160 = vrot.lane.b32.xlu1 %v3015_v13, %s7208_s9  ;;  %1787 = vrot.lane.b32.xlu0 %v1641_v40, %s7208_s9  ;;  %v8451_v40 = vld [vmem:[#allocation4 + $0x49] sm:$0xff] }
 0x41f   : > { %v3533_v34 = vpop.permute.xlu1 %3532  ;;  %v2163_v16 = vpop.permute.xlu0 %2162  ;;  %v4351_v57 = vld [vmem:[#allocation5 + $0x368] sm:$0xff]  ;;  %v4353_v43 = vld [vmem:[#allocation5 + $0x378] sm:$0xff] }
 0x420   : > { %3642 = vst.msk [vmem:[#allocation5 + $0x380] sm:$0xff] %vm2231_vm1, %v3533_v34  ;;  %2271 = vst.msk [vmem:[#allocation5 + $0x3a8] sm:$0xff] %vm2231_vm1, %v2163_v16  ;;  %5000 = vmatprep.mubr.bf16.mxu1 %v4351_v57  ;;  %v3753_v34 = vpack.c.bf16 %v8447_v2, %v8451_v40  ;;  %v2875_v57 = vld [vmem:[#allocation4 + $0x46] sm:$0xff] }
 0x421   : > { %3554 = vrot.lane.b32.xlu1 %v3408_v6, %s7205_s10  ;;  %2180 = vrot.lane.b32.xlu0 %v2034_v25, %s7205_s10  ;;  %v1499_v6 = vld [vmem:[#allocation4 + $0x21] sm:$0xff] }
 0x422   : > { %5001 = vmatmul.mubr.bf16.gmra.mrb[32].mxu1 %v4350_v14  ;;  %v1595_v16 = vpack.c.bf16 %v1500_v27, %v1499_v6  ;;  %v2874_v14 = vld [vmem:[#allocation4 + $0x3e] sm:$0xff]  ;;  %v1897_v27 = vld [vmem:[#allocation4 + $0x4a] sm:$0xff] }
 0x423   : > { %v3925_v19 = vpop.permute.xlu1 %3924  ;;  %v2554_v20 = vpop.permute.xlu0 %2553  ;;  %v1896_v6 = vld [vmem:[#allocation4 + $0x42] sm:$0xff] }
 0x424   : > { %4034 = vst.msk [vmem:[#allocation5 + $0x380] sm:$0xff] %vm2624_vm2, %v3925_v19  ;;  %2663 = vst.msk [vmem:[#allocation5 + $0x390] sm:$0xff] %vm2624_vm2, %v2554_v20  ;;  %v2970_v20 = vpack.c.bf16 %v2875_v57, %v2874_v14  ;;  %v3270_v57 = vld [vmem:[#allocation4 + $0x78] sm:$0xff] }
 0x425   : > { %3946 = vrot.lane.b32.xlu1 %v3800_v41, %s7206_s11  ;;  %1691 = vrot.lane.b32.xlu0 %v1593_v11, %s7208_s9  ;;  %v1892_v41 = vld [vmem:[#allocation4 + $0x22] sm:$0xff] }
 0x426   : > { %v1988_v11 = vpack.c.bf16 %v1893_v23, %v1892_v41  ;;  %v2289_v23 = vld [vmem:[#allocation4 + $0x5c] sm:$0xff] }
 0x427   : > { %v3145_v7 = vpop.permute.xlu1 %3144  ;;  %v1772_v25 = vpop.permute.xlu0 %1771 }
 0x428   : > { %3252 = vst.msk [vmem:[#allocation5 + $0x3b0] sm:$0xff] %vm1838_vm0, %v3145_v7  ;;  %1879 = vst.msk [vmem:[#allocation5 + $0x3c0] sm:$0xff] %vm1838_vm0, %v1772_v25 }
 0x429   : > { %3066 = vrot.lane.b32.xlu1 %v2968_v58, %s7208_s9  ;;  %2084 = vrot.lane.b32.xlu0 %v1986_v29, %s7205_s10  ;;  %v3362_v29 = vpack.c.bf16 %v3267_v37, %v3266_v24 }
 0x42b   : > { %v3535_v54 = vpop.permute.xlu1 %3534  ;;  %v2165_v3 = vpop.permute.xlu0 %2164  ;;  %v4354_v61 = vld [vmem:[#allocation5 + $0x380] sm:$0xff]  ;;  %v4356_v13 = vld [vmem:[#allocation5 + $0x390] sm:$0xff] }
 0x42c   : > { %3643 = vst.msk [vmem:[#allocation5 + $0x398] sm:$0xff] %vm2231_vm1, %v3535_v54  ;;  %2272 = vst.msk [vmem:[#allocation5 + $0x3c0] sm:$0xff] %vm2231_vm1, %v2165_v3  ;;  %5008 = vmatprep.mubr.bf16.mxu1 %v4354_v61  ;;  %v1501_v54 = vld [vmem:[#allocation4 + $0x31] sm:$0xff] }
 0x42d   : > { %3458 = vrot.lane.b32.xlu1 %v3360_v36, %s7205_s10  ;;  %2477 = vrot.lane.b32.xlu0 %v2379_v10, %s7206_s11  ;;  %v3754_v36 = vpack.c.bf16 %v8465_v35, %v8469_v49  ;;  %v1596_v10 = vpack.c.bf16 %v8433_v44, %v1501_v54  ;;  %v3269_v44 = vld [vmem:[#allocation4 + $0x70] sm:$0xff] }
 0x42e   : > { %5009 = vmatmul.mubr.bf16.gmra.mrb[36].mxu1 %v4353_v43  ;;  %v1895_v43 = vld [vmem:[#allocation4 + $0x3a] sm:$0xff] }
 0x42f   : > { %v3927_v12 = vpop.permute.xlu1 %3926  ;;  %v2556_v47 = vpop.permute.xlu0 %2555 }
 0x430   : > { %4035 = vst.msk [vmem:[#allocation5 + $0x398] sm:$0xff] %vm2624_vm2, %v3927_v12  ;;  %2664 = vst.msk [vmem:[#allocation5 + $0x3a8] sm:$0xff] %vm2624_vm2, %v2556_v47  ;;  %v1894_v12 = vld [vmem:[#allocation4 + $0x32] sm:$0xff] }
 0x431   : > { %3850 = vrot.lane.b32.xlu1 %v3752_v17, %s7206_s11  ;;  %1693 = vrot.lane.b32.xlu0 %v1594_v53, %s7208_s9  ;;  %v2971_v53 = vpack.c.bf16 %v2877_v39, %v2876_v45  ;;  %v1989_v55 = vpack.c.bf16 %v1895_v43, %v1894_v12  ;;  %v2291_v39 = vld [vmem:[#allocation4 + $0x6c] sm:$0xff] }
 0x433   : > { %v3147_v50 = vpop.permute.xlu1 %3146  ;;  %v1774_v42 = vpop.permute.xlu0 %1773 }
 0x434   : > { %3253 = vst.msk [vmem:[#allocation5 + $0x3c8] sm:$0xff] %vm1838_vm0, %v3147_v50  ;;  %1880 = vst.msk [vmem:[#allocation5 + $0x3d8] sm:$0xff] %vm1838_vm0, %v1774_v42 }
 0x435   : > { %3068 = vrot.lane.b32.xlu1 %v2969_v60, %s7208_s9  ;;  %2086 = vrot.lane.b32.xlu0 %v1987_v56, %s7205_s10  ;;  %v3363_v56 = vpack.c.bf16 %v3269_v44, %v3268_v21  ;;  %v8528_v44 = vld [vmem:[#allocation4 + $0x89] sm:$0xff] }
 0x437   : > { %v3537_v30 = vpop.permute.xlu1 %3536  ;;  %v2167_v52 = vpop.permute.xlu0 %2166  ;;  %v4357_v22 = vld [vmem:[#allocation5 + $0x398] sm:$0xff]  ;;  %v4359_v62 = vld [vmem:[#allocation5 + $0x3a8] sm:$0xff] }
 0x438   : > { %3644 = vst.msk [vmem:[#allocation5 + $0x3b0] sm:$0xff] %vm2231_vm1, %v3537_v30  ;;  %2273 = vst.msk [vmem:[#allocation5 + $0x3d8] sm:$0xff] %vm2231_vm1, %v2167_v52  ;;  %5016 = vmatprep.mubr.bf16.mxu1 %v4357_v22  ;;  %v3755_v22 = vpack.c.bf16 %v8484_v48, %v8488_v51 }
 0x439   : > { %3460 = vrot.lane.b32.xlu1 %v3361_v0, %s7205_s10  ;;  %2479 = vrot.lane.b32.xlu0 %v2380_v8, %s7206_s11  ;;  %v1597_v0 = vpack.c.bf16 %v8451_v40, %v8429_v38  ;;  %v2879_v8 = vld [vmem:[#allocation4 + $0x66] sm:$0xff] }
 0x43a   : > { %5017 = vmatmul.mubr.bf16.gmra.mrb[40].mxu1 %v4356_v13  ;;  %v2878_v13 = vld [vmem:[#allocation4 + $0x5e] sm:$0xff] }
 0x43b   : > { %v3929_v9 = vpop.permute.xlu1 %3928  ;;  %v2558_v4 = vpop.permute.xlu0 %2557  ;;  %v3271_v38 = vld [vmem:[#allocation4 + $0x80] sm:$0xff] }
 0x43c   : > { %4036 = vst.msk [vmem:[#allocation5 + $0x3b0] sm:$0xff] %vm2624_vm2, %v3929_v9  ;;  %2665 = vst.msk [vmem:[#allocation5 + $0x3c0] sm:$0xff] %vm2624_vm2, %v2558_v4  ;;  %v2290_v40 = vld [vmem:[#allocation4 + $0x64] sm:$0xff] }
 0x43d   : > { %3852 = vrot.lane.b32.xlu1 %v3753_v34, %s7206_s11  ;;  %1695 = vrot.lane.b32.xlu0 %v1595_v16, %s7208_s9  ;;  %v2972_v34 = vpack.c.bf16 %v2879_v8, %v2878_v13  ;;  %v1990_v16 = vpack.c.bf16 %v1897_v27, %v1896_v6  ;;  %v2293_v8 = vld [vmem:[#allocation4 + $0x7c] sm:$0xff] }
 0x43f   : > { %v3149_v15 = vpop.permute.xlu1 %3148  ;;  %v1776_v19 = vpop.permute.xlu0 %1775 }
 0x440   : > { %3254 = vst.msk [vmem:[#allocation5 + $0x3e0] sm:$0xff] %vm1838_vm0, %v3149_v15  ;;  %1881 = vst.msk [vmem:[#allocation5 + $0x3f0] sm:$0xff] %vm1838_vm0, %v1776_v19  ;;  %v3364_v19 = vpack.c.bf16 %v3271_v38, %v3270_v57  ;;  %v8548_v38 = vld [vmem:[#allocation4 + $0x99] sm:$0xff] }
 0x441   : > { %3070 = vrot.lane.b32.xlu1 %v2970_v20, %s7208_s9  ;;  %2088 = vrot.lane.b32.xlu0 %v1988_v11, %s7205_s10  ;;  %v2383_v20 = vpack.c.bf16 %v2290_v40, %v2289_v23  ;;  %v8504_v11 = vld [vmem:[#allocation4 + $0x81] sm:$0xff] }
 0x443   : > { %v3539_v7 = vpop.permute.xlu1 %3538  ;;  %v2169_v25 = vpop.permute.xlu0 %2168  ;;  %v4360_v58 = vld [vmem:[#allocation5 + $0x3b0] sm:$0xff]  ;;  %v4362_v28 = vld [vmem:[#allocation5 + $0x3c0] sm:$0xff] }
 0x444   : > { %3645 = vst.msk [vmem:[#allocation5 + $0x3c8] sm:$0xff] %vm2231_vm1, %v3539_v7  ;;  %2274 = vst.msk [vmem:[#allocation5 + $0x3f0] sm:$0xff] %vm2231_vm1, %v2169_v25  ;;  %5024 = vmatprep.mubr.bf16.mxu1 %v4360_v58  ;;  %v3756_v7 = vpack.c.bf16 %v8504_v11, %v8508_v46  ;;  %v1598_v25 = vpack.c.bf16 %v8469_v49, %v8447_v2  ;;  %v2881_v58 = vld [vmem:[#allocation4 + $0x76] sm:$0xff] }
 0x445   : > { %3462 = vrot.lane.b32.xlu1 %v3362_v29, %s7205_s10  ;;  %2481 = vrot.lane.b32.xlu0 %v2381_v33, %s7206_s11  ;;  %v1899_v29 = vld [vmem:[#allocation4 + $0x5a] sm:$0xff]  ;;  %v2880_v33 = vld [vmem:[#allocation4 + $0x6e] sm:$0xff] }
 0x446   : > { %5025 = vmatmul.mubr.bf16.gmra.mrb[44].mxu1 %v4359_v62  ;;  %v1898_v62 = vld [vmem:[#allocation4 + $0x52] sm:$0xff] }
 0x447   : > { %v3931_v3 = vpop.permute.xlu1 %3930  ;;  %v2560_v61 = vpop.permute.xlu0 %2559  ;;  %v3273_v2 = vld [vmem:[#allocation4 + $0x90] sm:$0xff] }
 0x448   : > { %4037 = vst.msk [vmem:[#allocation5 + $0x3c8] sm:$0xff] %vm2624_vm2, %v3931_v3  ;;  %2666 = vst.msk [vmem:[#allocation5 + $0x3d8] sm:$0xff] %vm2624_vm2, %v2560_v61  ;;  %v2973_v61 = vpack.c.bf16 %v2881_v58, %v2880_v33  ;;  %v2292_v49 = vld [vmem:[#allocation4 + $0x74] sm:$0xff]  ;;  %v2295_v58 = vld [vmem:[#allocation4 + $0x8c] sm:$0xff] }
 0x449   : > { %3854 = vrot.lane.b32.xlu1 %v3754_v36, %s7206_s11  ;;  %1697 = vrot.lane.b32.xlu0 %v1596_v10, %s7208_s9  ;;  %v1991_v36 = vpack.c.bf16 %v1899_v29, %v1898_v62  ;;  %v3272_v10 = vld [vmem:[#allocation4 + $0x88] sm:$0xff] }
 0x44b   : > { %v3151_v47 = vpop.permute.xlu1 %3150  ;;  %v1778_v17 = vpop.permute.xlu0 %1777 }
 0x44c   : > { %3255 = vst.msk [vmem:[#allocation5 + $0x3f8] sm:$0xff] %vm1838_vm0, %v3151_v47  ;;  %1882 = vst.msk [vmem:[#allocation5 + $0x408] sm:$0xff] %vm1838_vm0, %v1778_v17  ;;  %v3365_v47 = vpack.c.bf16 %v3273_v2, %v3272_v10  ;;  %v2384_v17 = vpack.c.bf16 %v2292_v49, %v2291_v39  ;;  %v8568_v2 = vld [vmem:[#allocation4 + $0xa9] sm:$0xff] }
 0x44d   : > { %3072 = vrot.lane.b32.xlu1 %v2971_v53, %s7208_s9  ;;  %2090 = vrot.lane.b32.xlu0 %v1989_v55, %s7205_s10  ;;  %v8524_v53 = vld [vmem:[#allocation4 + $0x91] sm:$0xff] }
 0x44e   : > { %v3757_v26 = vpack.c.bf16 %v8524_v53, %v8528_v44 }
 0x44f   : > { %v3541_v50 = vpop.permute.xlu1 %3540  ;;  %v2171_v42 = vpop.permute.xlu0 %2170  ;;  %v4363_v60 = vld [vmem:[#allocation5 + $0x3c8] sm:$0xff]  ;;  %v4365_v37 = vld [vmem:[#allocation5 + $0x3d8] sm:$0xff] }
 0x450   : > { %3646 = vst.msk [vmem:[#allocation5 + $0x3e0] sm:$0xff] %vm2231_vm1, %v3541_v50  ;;  %2275 = vst.msk [vmem:[#allocation5 + $0x408] sm:$0xff] %vm2231_vm1, %v2171_v42  ;;  %5032 = vmatprep.mubr.bf16.mxu1 %v4363_v60  ;;  %v1599_v50 = vpack.c.bf16 %v8488_v51, %v8465_v35  ;;  %v2883_v42 = vld [vmem:[#allocation4 + $0x86] sm:$0xff] }
 0x451   : > { %3464 = vrot.lane.b32.xlu1 %v3363_v56, %s7205_s10  ;;  %2483 = vrot.lane.b32.xlu0 %v2382_v59, %s7206_s11  ;;  %v1901_v60 = vld [vmem:[#allocation4 + $0x6a] sm:$0xff]  ;;  %v2882_v56 = vld [vmem:[#allocation4 + $0x7e] sm:$0xff] }
 0x452   : > { %5033 = vmatmul.mubr.bf16.gmra.mrb[48].mxu1 %v4362_v28  ;;  %v1900_v59 = vld [vmem:[#allocation4 + $0x62] sm:$0xff] }
 0x453   : > { %v3933_v30 = vpop.permute.xlu1 %3932  ;;  %v2562_v52 = vpop.permute.xlu0 %2561  ;;  %v3275_v35 = vld [vmem:[#allocation4 + $0xa0] sm:$0xff] }
 0x454   : > { %4038 = vst.msk [vmem:[#allocation5 + $0x3e0] sm:$0xff] %vm2624_vm2, %v3933_v30  ;;  %2667 = vst.msk [vmem:[#allocation5 + $0x3f0] sm:$0xff] %vm2624_vm2, %v2562_v52  ;;  %v2974_v52 = vpack.c.bf16 %v2883_v42, %v2882_v56  ;;  %v2294_v51 = vld [vmem:[#allocation4 + $0x84] sm:$0xff]  ;;  %v2297_v56 = vld [vmem:[#allocation4 + $0x9c] sm:$0xff] }
 0x455   : > { %3856 = vrot.lane.b32.xlu1 %v3755_v22, %s7206_s11  ;;  %1699 = vrot.lane.b32.xlu0 %v1597_v0, %s7208_s9  ;;  %v1992_v22 = vpack.c.bf16 %v1901_v60, %v1900_v59  ;;  %v3274_v0 = vld [vmem:[#allocation4 + $0x98] sm:$0xff]  ;;  %v3279_v42 = vld [vmem:[#allocation4 + $0xc0] sm:$0xff] }
 0x456   : > { %v3278_v60 = vld [vmem:[#allocation4 + $0xb8] sm:$0xff] }
 0x457   : > { %v3153_v9 = vpop.permute.xlu1 %3152  ;;  %v1780_v4 = vpop.permute.xlu0 %1779 }
 0x458   : > { %3256 = vst.msk [vmem:[#allocation5 + $0x410] sm:$0xff] %vm1838_vm0, %v3153_v9  ;;  %1883 = vst.msk [vmem:[#allocation5 + $0x420] sm:$0xff] %vm1838_vm0, %v1780_v4  ;;  %v3366_v9 = vpack.c.bf16 %v3275_v35, %v3274_v0  ;;  %v2385_v4 = vpack.c.bf16 %v2294_v51, %v2293_v8  ;;  %v1602_v0 = vpack.c.bf16 %v8548_v38, %v8524_v53  ;;  %v2889_v8 = vld [vmem:[#allocation4 + $0xb6] sm:$0xff] }
 0x459   : > { %3074 = vrot.lane.b32.xlu1 %v2972_v34, %s7208_s9  ;;  %2092 = vrot.lane.b32.xlu0 %v1990_v16, %s7205_s10  ;;  %v8544_v34 = vld [vmem:[#allocation4 + $0xa1] sm:$0xff]  ;;  %v1906_v53 = vld [vmem:[#allocation4 + $0x92] sm:$0xff] }
 0x45a   : > { %v3758_v23 = vpack.c.bf16 %v8544_v34, %v8548_v38 }
 0x45b   : > { %v3543_v14 = vpop.permute.xlu1 %3542  ;;  %v2173_v41 = vpop.permute.xlu0 %2172  ;;  %v4366_v15 = vld [vmem:[#allocation5 + $0x3e0] sm:$0xff]  ;;  %v4368_v55 = vld [vmem:[#allocation5 + $0x3f0] sm:$0xff] }
 0x45c   : > { %3647 = vst.msk [vmem:[#allocation5 + $0x3f8] sm:$0xff] %vm2231_vm1, %v3543_v14  ;;  %2276 = vst.msk [vmem:[#allocation5 + $0x420] sm:$0xff] %vm2231_vm1, %v2173_v41  ;;  %5040 = vmatprep.mubr.bf16.mxu1 %v4366_v15  ;;  %v1600_v14 = vpack.c.bf16 %v8508_v46, %v8484_v48  ;;  %v2885_v41 = vld [vmem:[#allocation4 + $0x96] sm:$0xff] }
 0x45d   : > { %3466 = vrot.lane.b32.xlu1 %v3364_v19, %s7205_s10  ;;  %2485 = vrot.lane.b32.xlu0 %v2383_v20, %s7206_s11  ;;  %v1903_v15 = vld [vmem:[#allocation4 + $0x7a] sm:$0xff]  ;;  %v2884_v19 = vld [vmem:[#allocation4 + $0x8e] sm:$0xff] }
 0x45e   : > { %5041 = vmatmul.mubr.bf16.gmra.mrb[52].mxu1 %v4365_v37  ;;  %v1902_v20 = vld [vmem:[#allocation4 + $0x72] sm:$0xff] }
 0x45f   : > { %v3935_v24 = vpop.permute.xlu1 %3934  ;;  %v2564_v32 = vpop.permute.xlu0 %2563  ;;  %v3277_v48 = vld [vmem:[#allocation4 + $0xb0] sm:$0xff] }
 0x460   : > { %4039 = vst.msk [vmem:[#allocation5 + $0x3f8] sm:$0xff] %vm2624_vm2, %v3935_v24  ;;  %2668 = vst.msk [vmem:[#allocation5 + $0x408] sm:$0xff] %vm2624_vm2, %v2564_v32  ;;  %v2975_v32 = vpack.c.bf16 %v2885_v41, %v2884_v19  ;;  %v2296_v46 = vld [vmem:[#allocation4 + $0x94] sm:$0xff] }
 0x461   : > { %3858 = vrot.lane.b32.xlu1 %v3756_v7, %s7206_s11  ;;  %1701 = vrot.lane.b32.xlu0 %v1598_v25, %s7208_s9  ;;  %v1993_v7 = vpack.c.bf16 %v1903_v15, %v1902_v20  ;;  %v3276_v25 = vld [vmem:[#allocation4 + $0xa8] sm:$0xff] }
 0x463   : > { %v3155_v54 = vpop.permute.xlu1 %3154  ;;  %v1782_v3 = vpop.permute.xlu0 %1781 }
 0x464   : > { %3257 = vst.msk [vmem:[#allocation5 + $0x428] sm:$0xff] %vm1838_vm0, %v3155_v54  ;;  %1884 = vst.msk [vmem:[#allocation5 + $0x438] sm:$0xff] %vm1838_vm0, %v1782_v3  ;;  %v3367_v54 = vpack.c.bf16 %v3277_v48, %v3276_v25  ;;  %v2386_v3 = vpack.c.bf16 %v2296_v46, %v2295_v58  ;;  %v1603_v58 = vpack.c.bf16 %v8568_v2, %v8544_v34  ;;  %v3283_v34 = vld [vmem:[#allocation4 + $0xe0] sm:$0xff] }
 0x465   : > { %3076 = vrot.lane.b32.xlu1 %v2973_v61, %s7208_s9  ;;  %2094 = vrot.lane.b32.xlu0 %v1991_v36, %s7205_s10  ;;  %v8564_v61 = vld [vmem:[#allocation4 + $0xb1] sm:$0xff] }
 0x466   : > { %v3759_v39 = vpack.c.bf16 %v8564_v61, %v8568_v2  ;;  %v2302_v2 = vld [vmem:[#allocation4 + $0xc4] sm:$0xff] }
 0x467   : > { %v3545_v43 = vpop.permute.xlu1 %3544  ;;  %v2175_v45 = vpop.permute.xlu0 %2174  ;;  %v4369_v12 = vld [vmem:[#allocation5 + $0x3f8] sm:$0xff]  ;;  %v4371_v16 = vld [vmem:[#allocation5 + $0x408] sm:$0xff] }
 0x468   : > { %3648 = vst.msk [vmem:[#allocation5 + $0x410] sm:$0xff] %vm2231_vm1, %v3545_v43  ;;  %2277 = vst.msk [vmem:[#allocation5 + $0x438] sm:$0xff] %vm2231_vm1, %v2175_v45  ;;  %5048 = vmatprep.mubr.bf16.mxu1 %v4369_v12  ;;  %v1601_v43 = vpack.c.bf16 %v8528_v44, %v8504_v11  ;;  %v2887_v45 = vld [vmem:[#allocation4 + $0xa6] sm:$0xff] }
 0x469   : > { %3468 = vrot.lane.b32.xlu1 %v3365_v47, %s7205_s10  ;;  %2487 = vrot.lane.b32.xlu0 %v2384_v17, %s7206_s11  ;;  %v1905_v12 = vld [vmem:[#allocation4 + $0x8a] sm:$0xff]  ;;  %v2886_v47 = vld [vmem:[#allocation4 + $0x9e] sm:$0xff] }
 0x46a   : > { %5049 = vmatmul.mubr.bf16.gmra.mrb[56].mxu1 %v4368_v55  ;;  %v1904_v17 = vld [vmem:[#allocation4 + $0x82] sm:$0xff] }
 0x46b   : > { %v3937_v18 = vpop.permute.xlu1 %3936  ;;  %v2566_v21 = vpop.permute.xlu0 %2565  ;;  %v2298_v11 = vld [vmem:[#allocation4 + $0xa4] sm:$0xff] }
 0x46c   : > { %4040 = vst.msk [vmem:[#allocation5 + $0x410] sm:$0xff] %vm2624_vm2, %v3937_v18  ;;  %2669 = vst.msk [vmem:[#allocation5 + $0x420] sm:$0xff] %vm2624_vm2, %v2566_v21 }
 0x46d   : > { %3860 = vrot.lane.b32.xlu1 %v3757_v26, %s7206_s11  ;;  %1703 = vrot.lane.b32.xlu0 %v1599_v50, %s7208_s9  ;;  %v2976_v26 = vpack.c.bf16 %v2887_v45, %v2886_v47  ;;  %v1994_v50 = vpack.c.bf16 %v1905_v12, %v1904_v17  ;;  %v3282_v45 = vld [vmem:[#allocation4 + $0xd8] sm:$0xff] }
 0x46e   : > { %v2301_v12 = vld [vmem:[#allocation4 + $0xbc] sm:$0xff] }
 0x46f   : > { %v3157_v28 = vpop.permute.xlu1 %3156  ;;  %v1784_v30 = vpop.permute.xlu0 %1783 }
 0x470   : > { %3258 = vst.msk [vmem:[#allocation5 + $0x440] sm:$0xff] %vm1838_vm0, %v3157_v28  ;;  %1885 = vst.msk [vmem:[#allocation5 + $0x450] sm:$0xff] %vm1838_vm0, %v1784_v30  ;;  %v3368_v30 = vpack.c.bf16 %v3279_v42, %v3278_v60  ;;  %v2893_v60 = vld [vmem:[#allocation4 + $0xd6] sm:$0xff] }
 0x471   : > { %3078 = vrot.lane.b32.xlu1 %v2974_v52, %s7208_s9  ;;  %2096 = vrot.lane.b32.xlu0 %v1992_v22, %s7205_s10  ;;  %v2387_v52 = vpack.c.bf16 %v2298_v11, %v2297_v56  ;;  %v8590_v22 = vld [vmem:[#allocation4 + $0xb9] sm:$0xff] }
 0x472   : > { %v1911_v56 = vld [vmem:[#allocation4 + $0xba] sm:$0xff] }
 0x473   : > { %v3547_v27 = vpop.permute.xlu1 %3546  ;;  %v2177_v13 = vpop.permute.xlu0 %2176  ;;  %v4372_v6 = vld [vmem:[#allocation5 + $0x410] sm:$0xff]  ;;  %v4374_v36 = vld [vmem:[#allocation5 + $0x420] sm:$0xff] }
 0x474   : > { %3649 = vst.msk [vmem:[#allocation5 + $0x428] sm:$0xff] %vm2231_vm1, %v3547_v27  ;;  %2278 = vst.msk [vmem:[#allocation5 + $0x450] sm:$0xff] %vm2231_vm1, %v2177_v13  ;;  %5056 = vmatprep.mubr.bf16.mxu1 %v4372_v6  ;;  %v1907_v27 = vld [vmem:[#allocation4 + $0x9a] sm:$0xff] }
 0x475   : > { %3470 = vrot.lane.b32.xlu1 %v3366_v9, %s7205_s10  ;;  %2489 = vrot.lane.b32.xlu0 %v2385_v4, %s7206_s11  ;;  %v2888_v9 = vld [vmem:[#allocation4 + $0xae] sm:$0xff] }
 0x476   : > { %5057 = vmatmul.mubr.bf16.gmra.mrb[60].mxu1 %v4371_v16  ;;  %v2977_v38 = vpack.c.bf16 %v2889_v8, %v2888_v9 }
 0x477   : > { %v3939_v40 = vpop.permute.xlu1 %3938  ;;  %v2568_v57 = vpop.permute.xlu0 %2567 }
 0x478   : > { %4041 = vst.msk [vmem:[#allocation5 + $0x428] sm:$0xff] %vm2624_vm2, %v3939_v40  ;;  %2670 = vst.msk [vmem:[#allocation5 + $0x438] sm:$0xff] %vm2624_vm2, %v2568_v57  ;;  %v1995_v40 = vpack.c.bf16 %v1907_v27, %v1906_v53  ;;  %v2300_v57 = vld [vmem:[#allocation4 + $0xb4] sm:$0xff]  ;;  %v3284_v27 = vld [vmem:[#allocation4 + $0xe8] sm:$0xff] }
 0x479   : > { %3862 = vrot.lane.b32.xlu1 %v3758_v23, %s7206_s11  ;;  %1705 = vrot.lane.b32.xlu0 %v1600_v14, %s7208_s9  ;;  %v3280_v23 = vld [vmem:[#allocation4 + $0xc8] sm:$0xff] }
 0x47a   : > { %v2299_v14 = vld [vmem:[#allocation4 + $0xac] sm:$0xff] }
 0x47b   : > { %v3549_v37 = vpop.permute.xlu1 %3548  ;;  %v1786_v24 = vpop.permute.xlu0 %1785  ;;  %v2388_v20 = vpack.c.bf16 %v2300_v57, %v2299_v14 }
 0x47c   : > { %3650 = vst.msk [vmem:[#allocation5 + $0x440] sm:$0xff] %vm2231_vm1, %v3549_v37  ;;  %v8610_v37 = vld [vmem:[#allocation4 + $0xd1] sm:$0xff] }
 0x47d   : > { %1886 = vst.msk [vmem:[#allocation5 + $0x468] sm:$0xff] %vm1838_vm0, %v1786_v24  ;;  %3080 = vrot.lane.b32.xlu1 %v2975_v32, %s7208_s9  ;;  %2098 = vrot.lane.b32.xlu0 %v1993_v7, %s7205_s10  ;;  %v8614_v7 = vld [vmem:[#allocation4 + $0xc9] sm:$0xff] }
 0x47e   : > { %v3761_v25 = vpack.c.bf16 %v8610_v37, %v8614_v7 }
 0x47f   : > { %v3941_v29 = vpop.permute.xlu1 %3940  ;;  %v2179_v33 = vpop.permute.xlu0 %2178  ;;  %v4375_v62 = vld [vmem:[#allocation5 + $0x428] sm:$0xff]  ;;  %v4377_v44 = vld [vmem:[#allocation5 + $0x438] sm:$0xff] }
 0x480   : > { %4042 = vst.msk [vmem:[#allocation5 + $0x440] sm:$0xff] %vm2624_vm2, %v3941_v29  ;;  %5064 = vmatprep.mubr.bf16.mxu1 %v4375_v62  ;;  %v2891_v29 = vld [vmem:[#allocation4 + $0xc6] sm:$0xff]  ;;  %v2890_v62 = vld [vmem:[#allocation4 + $0xbe] sm:$0xff] }
 0x481   : > { %2279 = vst.msk [vmem:[#allocation5 + $0x468] sm:$0xff] %vm2231_vm1, %v2179_v33  ;;  %3472 = vrot.lane.b32.xlu1 %v3367_v54, %s7205_s10  ;;  %2491 = vrot.lane.b32.xlu0 %v2386_v3, %s7206_s11  ;;  %v1909_v33 = vld [vmem:[#allocation4 + $0xaa] sm:$0xff]  ;;  %v1908_v54 = vld [vmem:[#allocation4 + $0xa2] sm:$0xff] }
 0x482   : > { %5065 = vmatmul.mubr.bf16.gmra.mrb[64].mxu1 %v4374_v36 }
 0x483   : > { %v3945_v49 = vpop.permute.xlu1 %3944  ;;  %v2570_v10 = vpop.permute.xlu0 %2569 }
 0x484   : > { %2671 = vst.msk [vmem:[#allocation5 + $0x450] sm:$0xff] %vm2624_vm2, %v2570_v10  ;;  %v2978_v10 = vpack.c.bf16 %v2891_v29, %v2890_v62  ;;  %v4250_v29 = vld [vmem:[#allocation5 + $0x40] sm:$0xff]  ;;  %v2305_v62 = vld [vmem:[#allocation4 + $0xdc] sm:$0xff] }
 0x485   : > { %3864 = vrot.lane.b32.xlu1 %v3759_v39, %s7206_s11  ;;  %1707 = vrot.lane.b32.xlu0 %v1601_v43, %s7208_s9  ;;  %v1996_v39 = vpack.c.bf16 %v1909_v33, %v1908_v54  ;;  %v3286_v33 = vld [vmem:[#allocation4 + $0xf8] sm:$0xff] }
 0x487   : > { %v3159_v55 = vpop.permute.xlu1 %3158  ;;  %v2574_v18 = vpop.permute.xlu0 %2573  ;;  %v4378_v21 = vld [vmem:[#allocation5 + $0x440] sm:$0xff] }
 0x488   : > { %3259 = vst.msk [vmem:[#allocation5 + $0x458] sm:$0xff] %vm1838_vm0, %v3159_v55  ;;  %5072 = vmatprep.mubr.bf16.mxu1 %v4378_v21  ;;  %v3370_v55 = vpack.c.bf16 %v3283_v34, %v3282_v45  ;;  %v8630_v21 = vld [vmem:[#allocation4 + $0xe1] sm:$0xff] }
 0x489   : > { %3651 = vst.msk [vmem:[#allocation5 + $0x458] sm:$0xff] %vm2231_vm1, %v8120_v5  ;;  %3082 = vrot.lane.b32.xlu1 %v2976_v26, %s7208_s9  ;;  %2100 = vrot.lane.b32.xlu0 %v1994_v50, %s7205_s10  ;;  %v8586_v5 = vld [vmem:[#allocation4 + $0xc1] sm:$0xff]  ;;  %v8636_v26 = vld [vmem:[#allocation4 + $0xd9] sm:$0xff] }
 0x48a   : > { %4043 = vst.msk [vmem:[#allocation5 + $0x458] sm:$0xff] %vm2624_vm2, %v8139_v31  ;;  %5073 = vmatmul.mubr.bf16.gmra.mrb[68].mxu1 %v4377_v44  ;;  %v3760_v51 = vpack.c.bf16 %v8586_v5, %v8590_v22  ;;  %v3762_v11 = vpack.c.bf16 %v8630_v21, %v8636_v26  ;;  %v1604_v44 = vpack.c.bf16 %v8590_v22, %v8564_v61  ;;  %v3285_v22 = vld [vmem:[#allocation4 + $0xf0] sm:$0xff] }
 0x48b   : > { %v3163_v59 = vpop.permute.xlu1 %3162  ;;  %v2572_v28 = vpop.permute.xlu0 %2571  ;;  %v4380_v6 = vld [vmem:[#allocation5 + $0x450] sm:$0xff]  ;;  %v3371_v53 = vpack.c.bf16 %v3285_v22, %v3284_v27  ;;  %v1605_v14 = vpack.c.bf16 %v8614_v7, %v8586_v5  ;;  %v1606_v45 = vpack.c.bf16 %v8636_v26, %v8610_v37  ;;  %v3289_v26 = vld [vmem:[#allocation4 + $0x110] sm:$0xff] }
 0x48c   : > { %3261 = vst.msk [vmem:[#allocation5 + $0x488] sm:$0xff] %vm1838_vm0, %v3163_v59  ;;  %v4244_v59 = vld [vmem:[#allocation5 + $0x10] sm:$0xff]  ;;  %v8708_v22 = vld [vmem:[#allocation4 + $0x109] sm:$0xff] }
 0x48d   : > { %2672 = vst.msk [vmem:[#allocation5 + $0x468] sm:$0xff] %vm2624_vm2, %v2572_v28  ;;  %3474 = vrot.lane.b32.xlu1 %v3368_v30, %s7205_s10  ;;  %2493 = vrot.lane.b32.xlu0 %v2387_v52, %s7206_s11  ;;  %v2892_v28 = vld [vmem:[#allocation4 + $0xce] sm:$0xff]  ;;  %v3287_v7 = vld [vmem:[#allocation4 + $0x100] sm:$0xff] }
 0x48e   : > { %v1910_v30 = vld [vmem:[#allocation4 + $0xb2] sm:$0xff] }
 0x48f   : > { %v3161_v31 = vpop.permute.xlu1 %3160  ;;  %v1788_v35 = vpop.permute.xlu0 %1787  ;;  %v1997_v61 = vpack.c.bf16 %v1911_v56, %v1910_v30 }
 0x490   : > { %3260 = vst.msk [vmem:[#allocation5 + $0x470] sm:$0xff] %vm1838_vm0, %v3161_v31  ;;  %1887 = vst.msk [vmem:[#allocation5 + $0x480] sm:$0xff] %vm1838_vm0, %v1788_v35 }
 0x491   : > { %3652 = vst.msk [vmem:[#allocation5 + $0x470] sm:$0xff] %vm2231_vm1, %v8155_v63  ;;  %3866 = vrot.lane.b32.xlu1 %v3760_v51, %s7206_s11  ;;  %1709 = vrot.lane.b32.xlu0 %v1602_v0, %s7208_s9  ;;  %v4381_v13 = vld [vmem:[#allocation5 + $0x458] sm:$0xff]  ;;  %v3281_v63 = vld [vmem:[#allocation4 + $0xd0] sm:$0xff]  ;;  %v2979_v51 = vpack.c.bf16 %v2893_v60, %v2892_v28 }
 0x492   : > { %4044 = vst.msk [vmem:[#allocation5 + $0x470] sm:$0xff] %vm2624_vm2, %v3945_v49  ;;  %5080 = vmatprep.mubr.bf16.mxu1 %v4381_v13  ;;  %v3369_v19 = vpack.c.bf16 %v3281_v63, %v3280_v23  ;;  %v2304_v0 = vld [vmem:[#allocation4 + $0xd4] sm:$0xff]  ;;  %v2303_v13 = vld [vmem:[#allocation4 + $0xcc] sm:$0xff] }
 0x493   : > { %v3555_v4 = vpop.permute.xlu1 %3554  ;;  %5081 = vmatmul.mubr.bf16.gmra.mrb[72].mxu1 %v4380_v6  ;;  %v2181_v16 = vpop.permute.xlu0 %2180  ;;  %v2308_v60 = vld [vmem:[#allocation4 + $0xf4] sm:$0xff]  ;;  %v2307_v28 = vld [vmem:[#allocation4 + $0xec] sm:$0xff] }
 0x494   : > { %3653 = vst.msk [vmem:[#allocation5 + $0x488] sm:$0xff] %vm2231_vm1, %v3555_v4  ;;  %2280 = vst.msk [vmem:[#allocation5 + $0x480] sm:$0xff] %vm2231_vm1, %v2181_v16  ;;  %v4383_v32 = vld [vmem:[#allocation5 + $0x468] sm:$0xff]  ;;  %v2390_v4 = vpack.c.bf16 %v2304_v0, %v2303_v13 }
 0x495   : > { %2673 = vst.msk [vmem:[#allocation5 + $0x480] sm:$0xff] %vm2624_vm2, %v2574_v18  ;;  %3084 = vrot.lane.b32.xlu1 %v2977_v38, %s7208_s9  ;;  %2102 = vrot.lane.b32.xlu0 %v1995_v40, %s7205_s10  ;;  %v2389_v18 = vpack.c.bf16 %v2302_v2, %v2301_v12  ;;  %v8655_v16 = vld [vmem:[#allocation4 + $0xf1] sm:$0xff]  ;;  %v8659_v40 = vld [vmem:[#allocation4 + $0xe9] sm:$0xff] }
 0x496   : > { %v4247_v38 = vld [vmem:[#allocation5 + $0x28] sm:$0xff]  ;;  %v3763_v23 = vpack.c.bf16 %v8655_v16, %v8659_v40  ;;  %v1607_v13 = vpack.c.bf16 %v8659_v40, %v8630_v21  ;;  %v3291_v40 = vld [vmem:[#allocation4 + $0x120] sm:$0xff] }
 0x497   : > { %v3947_v41 = vpop.permute.xlu1 %3946  ;;  %v1692_v15 = vpop.permute.xlu0 %1691  ;;  %v2897_v12 = vld [vmem:[#allocation4 + $0xf6] sm:$0xff] }
 0x498   : > { %4045 = vst.msk [vmem:[#allocation5 + $0x488] sm:$0xff] %vm2624_vm2, %v3947_v41  ;;  %v2895_v41 = vld [vmem:[#allocation4 + $0xe6] sm:$0xff] }
 0x499   : > { %1839 = vst.msk [vmem:[#allocation5] sm:$0xff] %vm1838_vm0, %v1692_v15  ;;  %3476 = vrot.lane.b32.xlu1 %v3369_v19, %s7205_s10  ;;  %2495 = vrot.lane.b32.xlu0 %v2388_v20, %s7206_s11  ;;  %v4384_v24 = vld [vmem:[#allocation5 + $0x470] sm:$0xff]  ;;  %v1913_v15 = vld [vmem:[#allocation4 + $0xca] sm:$0xff] }
 0x49a   : > { %5088 = vmatprep.mubr.bf16.mxu1 %v4384_v24  ;;  %v2894_v19 = vld [vmem:[#allocation4 + $0xde] sm:$0xff] }
 0x49b   : > { %v3067_v48 = vpop.permute.xlu1 %3066  ;;  %5089 = vmatmul.mubr.bf16.gmra.mrb[76].mxu1 %v4383_v32  ;;  %v2085_v46 = vpop.permute.xlu0 %2084  ;;  %v1912_v20 = vld [vmem:[#allocation4 + $0xc2] sm:$0xff] }
 0x49c   : > { %3213 = vst.msk [vmem:[#allocation5 + $0x8] sm:$0xff] %vm1838_vm0, %v3067_v48  ;;  %v4386_v43 = vld [vmem:[#allocation5 + $0x480] sm:$0xff]  ;;  %v1998_v5 = vpack.c.bf16 %v1913_v15, %v1912_v20  ;;  %v4259_v15 = vld [vmem:[#allocation5 + $0x88] sm:$0xff] }
 0x49d   : > { %2232 = vst.msk [vmem:[#allocation5] sm:$0xff] %vm2231_vm1, %v2085_v46  ;;  %3868 = vrot.lane.b32.xlu1 %v3761_v25, %s7206_s11  ;;  %1711 = vrot.lane.b32.xlu0 %v1603_v58, %s7208_s9  ;;  %v2980_v46 = vpack.c.bf16 %v2895_v41, %v2894_v19  ;;  %v2306_v25 = vld [vmem:[#allocation4 + $0xe4] sm:$0xff]  ;;  %v3290_v19 = vld [vmem:[#allocation4 + $0x118] sm:$0xff] }
 0x49e   : > { %v2309_v20 = vld [vmem:[#allocation4 + $0xfc] sm:$0xff] }
 0x49f   : > { %v3459_v3 = vpop.permute.xlu1 %3458  ;;  %v2478_v36 = vpop.permute.xlu0 %2477  ;;  %v4387_v49 = vld [vmem:[#allocation5 + $0x488] sm:$0xff] }
 0x4a0   : > { %3605 = vst.msk [vmem:[#allocation5 + $0x8] sm:$0xff] %vm2231_vm1, %v3459_v3  ;;  %5096 = vmatprep.mubr.bf16.mxu1 %v4387_v49  ;;  %v2391_v49 = vpack.c.bf16 %v2306_v25, %v2305_v62  ;;  %v2901_v62 = vld [vmem:[#allocation4 + $0x116] sm:$0xff] }
 0x4a1   : > { %2625 = vst.msk [vmem:[#allocation5] sm:$0xff] %vm2624_vm2, %v2478_v36  ;;  %3086 = vrot.lane.b32.xlu1 %v2978_v10, %s7208_s9  ;;  %2104 = vrot.lane.b32.xlu0 %v1996_v39, %s7205_s10  ;;  %v3372_v36 = vpack.c.bf16 %v3287_v7, %v3286_v33  ;;  %v8679_v10 = vld [vmem:[#allocation4 + $0x101] sm:$0xff]  ;;  %v8685_v39 = vld [vmem:[#allocation4 + $0xf9] sm:$0xff] }
 0x4a2   : > { %v8734_v7 = vld [vmem:[#allocation4 + $0x119] sm:$0xff]  ;;  %v1608_v33 = vpack.c.bf16 %v8685_v39, %v8655_v16 }
 0x4a3   : > { %v3851_v47 = vpop.permute.xlu1 %3850  ;;  %5097 = vmatmul.mubr.bf16.gmra.mrb[80].mxu1 %v4386_v43  ;;  %v1694_v17 = vpop.permute.xlu0 %1693  ;;  %v3764_v43 = vpack.c.bf16 %v8679_v10, %v8685_v39  ;;  %v3293_v39 = vld [vmem:[#allocation4 + $0x130] sm:$0xff] }
 0x4a4   : > { %3997 = vst.msk [vmem:[#allocation5 + $0x8] sm:$0xff] %vm2624_vm2, %v3851_v47  ;;  %6645 = vmatprep.mubr.msk.bf16.mxu1 %vm7204_vm5, %v7195_v1  ;;  %v1915_v47 = vld [vmem:[#allocation4 + $0xda] sm:$0xff] }
 0x4a5   : > { %1840 = vst.msk [vmem:[#allocation5 + $0x18] sm:$0xff] %vm1838_vm0, %v1694_v17  ;;  %3478 = vrot.lane.b32.xlu1 %v3370_v55, %s7205_s10  ;;  %2497 = vrot.lane.b32.xlu0 %v2389_v18, %s7206_s11  ;;  %v4253_v17 = vld [vmem:[#allocation5 + $0x58] sm:$0xff]  ;;  %v1914_v18 = vld [vmem:[#allocation4 + $0xd2] sm:$0xff] }
 0x4a6   : > { %v2896_v55 = vld [vmem:[#allocation4 + $0xee] sm:$0xff]  ;;  %v1999_v37 = vpack.c.bf16 %v1915_v47, %v1914_v18 }
 0x4a7   : > { %v3069_v50 = vpop.permute.xlu1 %3068  ;;  %v2087_v42 = vpop.permute.xlu0 %2086 }
 0x4a8   : > { %3214 = vst.msk [vmem:[#allocation5 + $0x20] sm:$0xff] %vm1838_vm0, %v3069_v50  ;;  %v4242_v8 = vld [vmem:[#allocation5] sm:$0xff] }
 0x4a9   : > { %2233 = vst.msk [vmem:[#allocation5 + $0x18] sm:$0xff] %vm2231_vm1, %v2087_v42  ;;  %3870 = vrot.lane.b32.xlu1 %v3762_v11, %s7206_s11  ;;  %1713 = vrot.lane.b32.xlu0 %v1604_v44, %s7208_s9  ;;  %v2981_v44 = vpack.c.bf16 %v2897_v12, %v2896_v55  ;;  %v2312_v12 = vld [vmem:[#allocation4 + $0x114] sm:$0xff]  ;;  %v2311_v55 = vld [vmem:[#allocation4 + $0x10c] sm:$0xff] }
 0x4ab   : > { %v3461_v52 = vpop.permute.xlu1 %3460  ;;  %6646 = vmatmul.mubr.msk.bf16.vlgmr.msra.gmra.mrb[84].mxu1 %vm277_vm15, %v4244_v59  ;;  %v2480_v31 = vpop.permute.xlu0 %2479  ;;  %v4243_v35 = vld [vmem:[#allocation5 + $0x8] sm:$0xff]  ;;  %v3288_v59 = vld [vmem:[#allocation4 + $0x108] sm:$0xff] }
 0x4ac   : > { %3606 = vst.msk [vmem:[#allocation5 + $0x20] sm:$0xff] %vm2231_vm1, %v3461_v52  ;;  %4712 = vmatprep.mubr.bf16.mxu0 %v4243_v35  ;;  %6649 = vmatprep.mubr.msk.bf16.mxu1 %vm7204_vm5, %v7195_v1  ;;  %v2392_v35 = vpack.c.bf16 %v2308_v60, %v2307_v28  ;;  %v1609_v28 = vpack.c.bf16 %v8708_v22, %v8679_v10 }
 0x4ad   : > { %2626 = vst.msk [vmem:[#allocation5 + $0x18] sm:$0xff] %vm2624_vm2, %v2480_v31  ;;  %3088 = vrot.lane.b32.xlu1 %v2979_v51, %s7208_s9  ;;  %2106 = vrot.lane.b32.xlu0 %v1997_v61, %s7205_s10  ;;  %v3373_v31 = vpack.c.bf16 %v3289_v26, %v3288_v59  ;;  %v8704_v51 = vld [vmem:[#allocation4 + $0x111] sm:$0xff]  ;;  %v4256_v61 = vld [vmem:[#allocation5 + $0x70] sm:$0xff]  ;;  %v8757_v26 = vld [vmem:[#allocation4 + $0x129] sm:$0xff] }
 0x4ae   : > { %4713 = vmatmul.mubr.bf16.vlgmr.msra.gmra.mrb[196].mxu0 %v4242_v8  ;;  %v3765_v27 = vpack.c.bf16 %v8704_v51, %v8708_v22  ;;  %v3295_v22 = vld [vmem:[#allocation4 + $0x140] sm:$0xff] }
 0x4af   : > { %v3853_v6 = vpop.permute.xlu1 %3852  ;;  %v1696_v9 = vpop.permute.xlu0 %1695 }
 0x4b0   : > { %3998 = vst.msk [vmem:[#allocation5 + $0x20] sm:$0xff] %vm2624_vm2, %v3853_v6  ;;  %v2899_v6 = vld [vmem:[#allocation4 + $0x106] sm:$0xff] }
 0x4b1   : > { %1841 = vst.msk [vmem:[#allocation5 + $0x30] sm:$0xff] %vm1838_vm0, %v1696_v9  ;;  %3480 = vrot.lane.b32.xlu1 %v3371_v53, %s7205_s10  ;;  %2499 = vrot.lane.b32.xlu0 %v2390_v4, %s7206_s11  ;;  %v1917_v9 = vld [vmem:[#allocation4 + $0xea] sm:$0xff]  ;;  %v2898_v53 = vld [vmem:[#allocation4 + $0xfe] sm:$0xff] }
 0x4b2   : > { %v1916_v4 = vld [vmem:[#allocation4 + $0xe2] sm:$0xff] }
 0x4b3   : > { %v3071_v63 = vpop.permute.xlu1 %3070  ;;  %6650 = vmatmul.mubr.msk.bf16.gmra.mrb[88].mxu1 %vm277_vm15, %v4247_v38  ;;  %v2089_v57 = vpop.permute.xlu0 %2088  ;;  %v2000_v21 = vpack.c.bf16 %v1917_v9, %v1916_v4  ;;  %v4268_v9 = vld [vmem:[#allocation5 + $0xd0] sm:$0xff] }
 0x4b4   : > { %3215 = vst.msk [vmem:[#allocation5 + $0x38] sm:$0xff] %vm1838_vm0, %v3071_v63  ;;  %6653 = vmatprep.mubr.msk.bf16.mxu1 %vm7204_vm5, %v7195_v1  ;;  %v4245_v58 = vld [vmem:[#allocation5 + $0x18] sm:$0xff]  ;;  %v2313_v4 = vld [vmem:[#allocation4 + $0x11c] sm:$0xff] }
 0x4b5   : > { %2234 = vst.msk [vmem:[#allocation5 + $0x30] sm:$0xff] %vm2231_vm1, %v2089_v57  ;;  %3872 = vrot.lane.b32.xlu1 %v3763_v23, %s7206_s11  ;;  %1715 = vrot.lane.b32.xlu0 %v1605_v14, %s7208_s9  ;;  %v2982_v23 = vpack.c.bf16 %v2899_v6, %v2898_v53  ;;  %v2310_v14 = vld [vmem:[#allocation4 + $0x104] sm:$0xff]  ;;  %v3294_v53 = vld [vmem:[#allocation4 + $0x138] sm:$0xff] }
 0x4b7   : > { %v3463_v24 = vpop.permute.xlu1 %3462  ;;  %v2482_v32 = vpop.permute.xlu0 %2481  ;;  %v4246_v48 = vld [vmem:[#allocation5 + $0x20] sm:$0xff] }
 0x4b8   : > { %3607 = vst.msk [vmem:[#allocation5 + $0x38] sm:$0xff] %vm2231_vm1, %v3463_v24  ;;  %4720 = vmatprep.mubr.bf16.mxu0 %v4246_v48  ;;  %v3374_v48 = vpack.c.bf16 %v3291_v40, %v3290_v19  ;;  %v8783_v40 = vld [vmem:[#allocation4 + $0x139] sm:$0xff]  ;;  %v1610_v19 = vpack.c.bf16 %v8734_v7, %v8704_v51 }
 0x4b9   : > { %2627 = vst.msk [vmem:[#allocation5 + $0x30] sm:$0xff] %vm2624_vm2, %v2482_v32  ;;  %3090 = vrot.lane.b32.xlu1 %v2980_v46, %s7208_s9  ;;  %2108 = vrot.lane.b32.xlu0 %v1998_v5, %s7205_s10  ;;  %v2393_v46 = vpack.c.bf16 %v2310_v14, %v2309_v20  ;;  %v8728_v5 = vld [vmem:[#allocation4 + $0x121] sm:$0xff]  ;;  %v2905_v20 = vld [vmem:[#allocation4 + $0x136] sm:$0xff] }
 0x4ba   : > { %4721 = vmatmul.mubr.bf16.gmra.mrb[200].mxu0 %v4245_v58 }
 0x4bb   : > { %v3855_v54 = vpop.permute.xlu1 %3854  ;;  %6654 = vmatmul.mubr.msk.bf16.gmra.mrb[92].mxu1 %vm277_vm15, %v4250_v29  ;;  %v1698_v3 = vpop.permute.xlu0 %1697  ;;  %v3766_v29 = vpack.c.bf16 %v8728_v5, %v8734_v7  ;;  %v3297_v7 = vld [vmem:[#allocation4 + $0x150] sm:$0xff] }
 0x4bc   : > { %3999 = vst.msk [vmem:[#allocation5 + $0x38] sm:$0xff] %vm2624_vm2, %v3855_v54  ;;  %6657 = vmatprep.mubr.msk.bf16.mxu1 %vm7204_vm5, %v7195_v1  ;;  %v1919_v54 = vld [vmem:[#allocation4 + $0xfa] sm:$0xff] }
 0x4bd   : > { %1842 = vst.msk [vmem:[#allocation5 + $0x48] sm:$0xff] %vm1838_vm0, %v1698_v3  ;;  %3482 = vrot.lane.b32.xlu1 %v3372_v36, %s7205_s10  ;;  %2501 = vrot.lane.b32.xlu0 %v2391_v49, %s7206_s11  ;;  %v4262_v3 = vld [vmem:[#allocation5 + $0xa0] sm:$0xff] }
 0x4be   : > { %v2900_v36 = vld [vmem:[#allocation4 + $0x10e] sm:$0xff] }
 0x4bf   : > { %v3073_v34 = vpop.permute.xlu1 %3072  ;;  %v2091_v2 = vpop.permute.xlu0 %2090  ;;  %v1918_v49 = vld [vmem:[#allocation4 + $0xf2] sm:$0xff] }
 0x4c0   : > { %3216 = vst.msk [vmem:[#allocation5 + $0x50] sm:$0xff] %vm1838_vm0, %v3073_v34  ;;  %v4248_v56 = vld [vmem:[#allocation5 + $0x30] sm:$0xff]  ;;  %v2001_v16 = vpack.c.bf16 %v1919_v54, %v1918_v49 }
 0x4c1   : > { %2235 = vst.msk [vmem:[#allocation5 + $0x48] sm:$0xff] %vm2231_vm1, %v2091_v2  ;;  %3874 = vrot.lane.b32.xlu1 %v3764_v43, %s7206_s11  ;;  %1717 = vrot.lane.b32.xlu0 %v1606_v45, %s7208_s9  ;;  %v2983_v45 = vpack.c.bf16 %v2901_v62, %v2900_v36  ;;  %v2316_v62 = vld [vmem:[#allocation4 + $0x134] sm:$0xff]  ;;  %v2315_v36 = vld [vmem:[#allocation4 + $0x12c] sm:$0xff] }
 0x4c3   : > { %v3465_v50 = vpop.permute.xlu1 %3464  ;;  %6658 = vmatmul.mubr.msk.bf16.gmra.mrb[96].mxu1 %vm277_vm15, %v4253_v17  ;;  %v2484_v42 = vpop.permute.xlu0 %2483  ;;  %v4249_v11 = vld [vmem:[#allocation5 + $0x38] sm:$0xff] }
 0x4c4   : > { %3608 = vst.msk [vmem:[#allocation5 + $0x50] sm:$0xff] %vm2231_vm1, %v3465_v50  ;;  %4728 = vmatprep.mubr.bf16.mxu0 %v4249_v11  ;;  %6661 = vmatprep.mubr.msk.bf16.mxu1 %vm7204_vm5, %v7195_v1  ;;  %v3292_v17 = vld [vmem:[#allocation4 + $0x128] sm:$0xff]  ;;  %v2394_v11 = vpack.c.bf16 %v2312_v12, %v2311_v55  ;;  %v1611_v55 = vpack.c.bf16 %v8757_v26, %v8728_v5 }
 0x4c5   : > { %2628 = vst.msk [vmem:[#allocation5 + $0x48] sm:$0xff] %vm2624_vm2, %v2484_v42  ;;  %3092 = vrot.lane.b32.xlu1 %v2981_v44, %s7208_s9  ;;  %2110 = vrot.lane.b32.xlu0 %v1999_v37, %s7205_s10  ;;  %v3375_v42 = vpack.c.bf16 %v3293_v39, %v3292_v17  ;;  %v8753_v44 = vld [vmem:[#allocation4 + $0x131] sm:$0xff]  ;;  %v4265_v37 = vld [vmem:[#allocation5 + $0xb8] sm:$0xff] }
 0x4c6   : > { %4729 = vmatmul.mubr.bf16.gmra.mrb[204].mxu0 %v4248_v56  ;;  %v3767_v59 = vpack.c.bf16 %v8753_v44, %v8757_v26  ;;  %v8806_v39 = vld [vmem:[#allocation4 + $0x149] sm:$0xff]  ;;  %v3299_v26 = vld [vmem:[#allocation4 + $0x160] sm:$0xff] }
 0x4c7   : > { %v3857_v30 = vpop.permute.xlu1 %3856  ;;  %v1700_v52 = vpop.permute.xlu0 %1699 }
 0x4c8   : > { %4000 = vst.msk [vmem:[#allocation5 + $0x50] sm:$0xff] %vm2624_vm2, %v3857_v30  ;;  %v2903_v30 = vld [vmem:[#allocation4 + $0x126] sm:$0xff] }
 0x4c9   : > { %1843 = vst.msk [vmem:[#allocation5 + $0x60] sm:$0xff] %vm1838_vm0, %v1700_v52  ;;  %3484 = vrot.lane.b32.xlu1 %v3373_v31, %s7205_s10  ;;  %2503 = vrot.lane.b32.xlu0 %v2392_v35, %s7206_s11  ;;  %v1921_v52 = vld [vmem:[#allocation4 + $0x10a] sm:$0xff]  ;;  %v2902_v31 = vld [vmem:[#allocation4 + $0x11e] sm:$0xff] }
 0x4ca   : > { %v1920_v35 = vld [vmem:[#allocation4 + $0x102] sm:$0xff] }
 0x4cb   : > { %v3075_v0 = vpop.permute.xlu1 %3074  ;;  %6662 = vmatmul.mubr.msk.bf16.gmra.mrb[100].mxu1 %vm277_vm15, %v4256_v61  ;;  %v2093_v8 = vpop.permute.xlu0 %2092  ;;  %v2002_v10 = vpack.c.bf16 %v1921_v52, %v1920_v35  ;;  %v4277_v52 = vld [vmem:[#allocation5 + $0x118] sm:$0xff]  ;;  %v2317_v35 = vld [vmem:[#allocation4 + $0x13c] sm:$0xff] }
 0x4cc   : > { %3217 = vst.msk [vmem:[#allocation5 + $0x68] sm:$0xff] %vm1838_vm0, %v3075_v0  ;;  %6665 = vmatprep.mubr.msk.bf16.mxu1 %vm7204_vm5, %v7195_v1  ;;  %v4251_v41 = vld [vmem:[#allocation5 + $0x48] sm:$0xff] }
 0x4cd   : > { %2236 = vst.msk [vmem:[#allocation5 + $0x60] sm:$0xff] %vm2231_vm1, %v2093_v8  ;;  %3876 = vrot.lane.b32.xlu1 %v3765_v27, %s7206_s11  ;;  %1719 = vrot.lane.b32.xlu0 %v1607_v13, %s7208_s9  ;;  %v2984_v27 = vpack.c.bf16 %v2903_v30, %v2902_v31  ;;  %v2314_v13 = vld [vmem:[#allocation4 + $0x124] sm:$0xff]  ;;  %v3298_v31 = vld [vmem:[#allocation4 + $0x158] sm:$0xff] }
 0x4cf   : > { %v3467_v38 = vpop.permute.xlu1 %3466  ;;  %v2486_v63 = vpop.permute.xlu0 %2485  ;;  %v4252_v57 = vld [vmem:[#allocation5 + $0x50] sm:$0xff] }
 0x4d0   : > { %3609 = vst.msk [vmem:[#allocation5 + $0x68] sm:$0xff] %vm2231_vm1, %v3467_v38  ;;  %4736 = vmatprep.mubr.bf16.mxu0 %v4252_v57  ;;  %v3376_v57 = vpack.c.bf16 %v3295_v22, %v3294_v53  ;;  %v8832_v22 = vld [vmem:[#allocation4 + $0x159] sm:$0xff]  ;;  %v1612_v53 = vpack.c.bf16 %v8783_v40, %v8753_v44 }
 0x4d1   : > { %2629 = vst.msk [vmem:[#allocation5 + $0x60] sm:$0xff] %vm2624_vm2, %v2486_v63  ;;  %3094 = vrot.lane.b32.xlu1 %v2982_v23, %s7208_s9  ;;  %2112 = vrot.lane.b32.xlu0 %v2000_v21, %s7205_s10  ;;  %v2395_v23 = vpack.c.bf16 %v2314_v13, %v2313_v4  ;;  %v8777_v21 = vld [vmem:[#allocation4 + $0x141] sm:$0xff]  ;;  %v2909_v4 = vld [vmem:[#allocation4 + $0x156] sm:$0xff] }
 0x4d2   : > { %4737 = vmatmul.mubr.bf16.gmra.mrb[208].mxu0 %v4251_v41 }
 0x4d3   : > { %v3859_v24 = vpop.permute.xlu1 %3858  ;;  %6666 = vmatmul.mubr.msk.bf16.gmra.mrb[104].mxu1 %vm277_vm15, %v4259_v15  ;;  %v1702_v32 = vpop.permute.xlu0 %1701  ;;  %v3768_v15 = vpack.c.bf16 %v8777_v21, %v8783_v40  ;;  %v3301_v40 = vld [vmem:[#allocation4 + $0x170] sm:$0xff] }
 0x4d4   : > { %4001 = vst.msk [vmem:[#allocation5 + $0x68] sm:$0xff] %vm2624_vm2, %v3859_v24  ;;  %6669 = vmatprep.mubr.msk.bf16.mxu1 %vm7204_vm5, %v7195_v1  ;;  %v1923_v24 = vld [vmem:[#allocation4 + $0x11a] sm:$0xff] }
 0x4d5   : > { %1844 = vst.msk [vmem:[#allocation5 + $0x78] sm:$0xff] %vm1838_vm0, %v1702_v32  ;;  %3486 = vrot.lane.b32.xlu1 %v3374_v48, %s7205_s10  ;;  %2505 = vrot.lane.b32.xlu0 %v2393_v46, %s7206_s11  ;;  %v4271_v32 = vld [vmem:[#allocation5 + $0xe8] sm:$0xff]  ;;  %v2904_v48 = vld [vmem:[#allocation4 + $0x12e] sm:$0xff] }
 0x4d6   : > { %v1922_v46 = vld [vmem:[#allocation4 + $0x112] sm:$0xff] }
 0x4d7   : > { %v3077_v25 = vpop.permute.xlu1 %3076  ;;  %v2095_v58 = vpop.permute.xlu0 %2094  ;;  %v2003_v51 = vpack.c.bf16 %v1923_v24, %v1922_v46 }
 0x4d8   : > { %3218 = vst.msk [vmem:[#allocation5 + $0x80] sm:$0xff] %vm1838_vm0, %v3077_v25  ;;  %v4254_v47 = vld [vmem:[#allocation5 + $0x60] sm:$0xff] }
 0x4d9   : > { %2237 = vst.msk [vmem:[#allocation5 + $0x78] sm:$0xff] %vm2231_vm1, %v2095_v58  ;;  %3878 = vrot.lane.b32.xlu1 %v3766_v29, %s7206_s11  ;;  %1721 = vrot.lane.b32.xlu0 %v1608_v33, %s7208_s9  ;;  %v2985_v33 = vpack.c.bf16 %v2905_v20, %v2904_v48  ;;  %v2320_v20 = vld [vmem:[#allocation4 + $0x154] sm:$0xff]  ;;  %v2319_v48 = vld [vmem:[#allocation4 + $0x14c] sm:$0xff] }
 0x4db   : > { %v3469_v34 = vpop.permute.xlu1 %3468  ;;  %6670 = vmatmul.mubr.msk.bf16.gmra.mrb[108].mxu1 %vm277_vm15, %v4262_v3  ;;  %v2488_v2 = vpop.permute.xlu0 %2487  ;;  %v4255_v43 = vld [vmem:[#allocation5 + $0x68] sm:$0xff]  ;;  %v3296_v3 = vld [vmem:[#allocation4 + $0x148] sm:$0xff] }
 0x4dc   : > { %3610 = vst.msk [vmem:[#allocation5 + $0x80] sm:$0xff] %vm2231_vm1, %v3469_v34  ;;  %4744 = vmatprep.mubr.bf16.mxu0 %v4255_v43  ;;  %6673 = vmatprep.mubr.msk.bf16.mxu1 %vm7204_vm5, %v7195_v1  ;;  %v2396_v43 = vpack.c.bf16 %v2316_v62, %v2315_v36  ;;  %v1613_v36 = vpack.c.bf16 %v8806_v39, %v8777_v21 }
 0x4dd   : > { %2630 = vst.msk [vmem:[#allocation5 + $0x78] sm:$0xff] %vm2624_vm2, %v2488_v2  ;;  %3096 = vrot.lane.b32.xlu1 %v2983_v45, %s7208_s9  ;;  %2114 = vrot.lane.b32.xlu0 %v2001_v16, %s7205_s10  ;;  %v3377_v2 = vpack.c.bf16 %v3297_v7, %v3296_v3  ;;  %v8802_v45 = vld [vmem:[#allocation4 + $0x151] sm:$0xff]  ;;  %v8855_v7 = vld [vmem:[#allocation4 + $0x169] sm:$0xff] }
 0x4de   : > { %4745 = vmatmul.mubr.bf16.gmra.mrb[212].mxu0 %v4254_v47  ;;  %v4274_v16 = vld [vmem:[#allocation5 + $0x100] sm:$0xff]  ;;  %v3769_v17 = vpack.c.bf16 %v8802_v45, %v8806_v39  ;;  %v3303_v39 = vld [vmem:[#allocation4 + $0x180] sm:$0xff] }
 0x4df   : > { %v3861_v18 = vpop.permute.xlu1 %3860  ;;  %v1704_v50 = vpop.permute.xlu0 %1703 }
 0x4e0   : > { %4002 = vst.msk [vmem:[#allocation5 + $0x80] sm:$0xff] %vm2624_vm2, %v3861_v18  ;;  %v2907_v18 = vld [vmem:[#allocation4 + $0x146] sm:$0xff] }
 0x4e1   : > { %1845 = vst.msk [vmem:[#allocation5 + $0x90] sm:$0xff] %vm1838_vm0, %v1704_v50  ;;  %3488 = vrot.lane.b32.xlu1 %v3375_v42, %s7205_s10  ;;  %2507 = vrot.lane.b32.xlu0 %v2394_v11, %s7206_s11  ;;  %v1925_v50 = vld [vmem:[#allocation4 + $0x12a] sm:$0xff]  ;;  %v2906_v42 = vld [vmem:[#allocation4 + $0x13e] sm:$0xff] }
 0x4e2   : > { %v1924_v11 = vld [vmem:[#allocation4 + $0x122] sm:$0xff] }
 0x4e3   : > { %v3079_v60 = vpop.permute.xlu1 %3078  ;;  %6674 = vmatmul.mubr.msk.bf16.gmra.mrb[112].mxu1 %vm277_vm15, %v4265_v37  ;;  %v2097_v56 = vpop.permute.xlu0 %2096  ;;  %v2004_v5 = vpack.c.bf16 %v1925_v50, %v1924_v11  ;;  %v4286_v50 = vld [vmem:[#allocation5 + $0x160] sm:$0xff]  ;;  %v2321_v11 = vld [vmem:[#allocation4 + $0x15c] sm:$0xff] }
 0x4e4   : > { %3219 = vst.msk [vmem:[#allocation5 + $0x98] sm:$0xff] %vm1838_vm0, %v3079_v60  ;;  %6677 = vmatprep.mubr.msk.bf16.mxu1 %vm7204_vm5, %v7195_v1  ;;  %v4257_v6 = vld [vmem:[#allocation5 + $0x78] sm:$0xff] }
 0x4e5   : > { %2238 = vst.msk [vmem:[#allocation5 + $0x90] sm:$0xff] %vm2231_vm1, %v2097_v56  ;;  %3880 = vrot.lane.b32.xlu1 %v3767_v59, %s7206_s11  ;;  %1723 = vrot.lane.b32.xlu0 %v1609_v28, %s7208_s9  ;;  %v2986_v59 = vpack.c.bf16 %v2907_v18, %v2906_v42  ;;  %v2318_v28 = vld [vmem:[#allocation4 + $0x144] sm:$0xff]  ;;  %v3302_v42 = vld [vmem:[#allocation4 + $0x178] sm:$0xff] }
 0x4e7   : > { %v3471_v61 = vpop.permute.xlu1 %3470  ;;  %v2490_v0 = vpop.permute.xlu0 %2489  ;;  %v4258_v8 = vld [vmem:[#allocation5 + $0x80] sm:$0xff] }
 0x4e8   : > { %3611 = vst.msk [vmem:[#allocation5 + $0x98] sm:$0xff] %vm2231_vm1, %v3471_v61  ;;  %4752 = vmatprep.mubr.bf16.mxu0 %v4258_v8  ;;  %v3378_v8 = vpack.c.bf16 %v3299_v26, %v3298_v31  ;;  %v8881_v26 = vld [vmem:[#allocation4 + $0x179] sm:$0xff]  ;;  %v1614_v31 = vpack.c.bf16 %v8832_v22, %v8802_v45 }
 0x4e9   : > { %2631 = vst.msk [vmem:[#allocation5 + $0x90] sm:$0xff] %vm2624_vm2, %v2490_v0  ;;  %3098 = vrot.lane.b32.xlu1 %v2984_v27, %s7208_s9  ;;  %2116 = vrot.lane.b32.xlu0 %v2002_v10, %s7205_s10  ;;  %v2397_v27 = vpack.c.bf16 %v2318_v28, %v2317_v35  ;;  %v8826_v10 = vld [vmem:[#allocation4 + $0x161] sm:$0xff]  ;;  %v2913_v35 = vld [vmem:[#allocation4 + $0x176] sm:$0xff] }
 0x4ea   : > { %4753 = vmatmul.mubr.bf16.gmra.mrb[216].mxu0 %v4257_v6 }
 0x4eb   : > { %v3863_v38 = vpop.permute.xlu1 %3862  ;;  %6678 = vmatmul.mubr.msk.bf16.gmra.mrb[116].mxu1 %vm277_vm15, %v4268_v9  ;;  %v1706_v63 = vpop.permute.xlu0 %1705  ;;  %v3770_v9 = vpack.c.bf16 %v8826_v10, %v8832_v22  ;;  %v3305_v22 = vld [vmem:[#allocation4 + $0x190] sm:$0xff] }
 0x4ec   : > { %4003 = vst.msk [vmem:[#allocation5 + $0x98] sm:$0xff] %vm2624_vm2, %v3863_v38  ;;  %6681 = vmatprep.mubr.msk.bf16.mxu1 %vm7204_vm5, %v7195_v1  ;;  %v1927_v38 = vld [vmem:[#allocation4 + $0x13a] sm:$0xff] }
 0x4ed   : > { %1846 = vst.msk [vmem:[#allocation5 + $0xa8] sm:$0xff] %vm1838_vm0, %v1706_v63  ;;  %3490 = vrot.lane.b32.xlu1 %v3376_v57, %s7205_s10  ;;  %2509 = vrot.lane.b32.xlu0 %v2395_v23, %s7206_s11  ;;  %v4280_v63 = vld [vmem:[#allocation5 + $0x130] sm:$0xff]  ;;  %v2908_v57 = vld [vmem:[#allocation4 + $0x14e] sm:$0xff] }
 0x4ee   : > { %v1926_v23 = vld [vmem:[#allocation4 + $0x132] sm:$0xff] }
 0x4ef   : > { %v3081_v14 = vpop.permute.xlu1 %3080  ;;  %v2099_v41 = vpop.permute.xlu0 %2098  ;;  %v2005_v44 = vpack.c.bf16 %v1927_v38, %v1926_v23 }
 0x4f0   : > { %3220 = vst.msk [vmem:[#allocation5 + $0xb0] sm:$0xff] %vm1838_vm0, %v3081_v14  ;;  %v4260_v54 = vld [vmem:[#allocation5 + $0x90] sm:$0xff] }
 0x4f1   : > { %2239 = vst.msk [vmem:[#allocation5 + $0xa8] sm:$0xff] %vm2231_vm1, %v2099_v41  ;;  %3882 = vrot.lane.b32.xlu1 %v3768_v15, %s7206_s11  ;;  %1725 = vrot.lane.b32.xlu0 %v1610_v19, %s7208_s9  ;;  %v2987_v19 = vpack.c.bf16 %v2909_v4, %v2908_v57  ;;  %v2324_v4 = vld [vmem:[#allocation4 + $0x174] sm:$0xff]  ;;  %v2323_v57 = vld [vmem:[#allocation4 + $0x16c] sm:$0xff] }
 0x4f3   : > { %v3473_v25 = vpop.permute.xlu1 %3472  ;;  %6682 = vmatmul.mubr.msk.bf16.gmra.mrb[120].mxu1 %vm277_vm15, %v4271_v32  ;;  %v2492_v58 = vpop.permute.xlu0 %2491  ;;  %v4261_v29 = vld [vmem:[#allocation5 + $0x98] sm:$0xff] }
 0x4f4   : > { %3612 = vst.msk [vmem:[#allocation5 + $0xb0] sm:$0xff] %vm2231_vm1, %v3473_v25  ;;  %4760 = vmatprep.mubr.bf16.mxu0 %v4261_v29  ;;  %6685 = vmatprep.mubr.msk.bf16.mxu1 %vm7204_vm5, %v7195_v1  ;;  %v3300_v32 = vld [vmem:[#allocation4 + $0x168] sm:$0xff]  ;;  %v2398_v29 = vpack.c.bf16 %v2320_v20, %v2319_v48  ;;  %v1615_v48 = vpack.c.bf16 %v8855_v7, %v8826_v10 }
 0x4f5   : > { %2632 = vst.msk [vmem:[#allocation5 + $0xa8] sm:$0xff] %vm2624_vm2, %v2492_v58  ;;  %3100 = vrot.lane.b32.xlu1 %v2985_v33, %s7208_s9  ;;  %2118 = vrot.lane.b32.xlu0 %v2003_v51, %s7205_s10  ;;  %v3379_v58 = vpack.c.bf16 %v3301_v40, %v3300_v32  ;;  %v8851_v33 = vld [vmem:[#allocation4 + $0x171] sm:$0xff]  ;;  %v8904_v40 = vld [vmem:[#allocation4 + $0x189] sm:$0xff] }
 0x4f6   : > { %4761 = vmatmul.mubr.bf16.gmra.mrb[220].mxu0 %v4260_v54  ;;  %v4283_v51 = vld [vmem:[#allocation5 + $0x148] sm:$0xff]  ;;  %v3771_v3 = vpack.c.bf16 %v8851_v33, %v8855_v7  ;;  %v3307_v7 = vld [vmem:[#allocation4 + $0x1a0] sm:$0xff] }
 0x4f7   : > { %v3865_v49 = vpop.permute.xlu1 %3864  ;;  %v1708_v34 = vpop.permute.xlu0 %1707 }
 0x4f8   : > { %4004 = vst.msk [vmem:[#allocation5 + $0xb0] sm:$0xff] %vm2624_vm2, %v3865_v49  ;;  %v2911_v49 = vld [vmem:[#allocation4 + $0x166] sm:$0xff] }
 0x4f9   : > { %1847 = vst.msk [vmem:[#allocation5 + $0xc0] sm:$0xff] %vm1838_vm0, %v1708_v34  ;;  %3492 = vrot.lane.b32.xlu1 %v3377_v2, %s7205_s10  ;;  %2511 = vrot.lane.b32.xlu0 %v2396_v43, %s7206_s11  ;;  %v1929_v34 = vld [vmem:[#allocation4 + $0x14a] sm:$0xff]  ;;  %v2910_v2 = vld [vmem:[#allocation4 + $0x15e] sm:$0xff] }
 0x4fa   : > { %v1928_v43 = vld [vmem:[#allocation4 + $0x142] sm:$0xff] }
 0x4fb   : > { %v3083_v12 = vpop.permute.xlu1 %3082  ;;  %6686 = vmatmul.mubr.msk.bf16.gmra.mrb[124].mxu1 %vm277_vm15, %v4274_v16  ;;  %v2101_v47 = vpop.permute.xlu0 %2100  ;;  %v2006_v21 = vpack.c.bf16 %v1929_v34, %v1928_v43  ;;  %v4295_v34 = vld [vmem:[#allocation5 + $0x1a8] sm:$0xff] }
 0x4fc   : > { %3221 = vst.msk [vmem:[#allocation5 + $0xc8] sm:$0xff] %vm1838_vm0, %v3083_v12  ;;  %6689 = vmatprep.mubr.msk.bf16.mxu1 %vm7204_vm5, %v7195_v1  ;;  %v4263_v30 = vld [vmem:[#allocation5 + $0xa8] sm:$0xff] }
 0x4fd   : > { %2240 = vst.msk [vmem:[#allocation5 + $0xc0] sm:$0xff] %vm2231_vm1, %v2101_v47  ;;  %3884 = vrot.lane.b32.xlu1 %v3769_v17, %s7206_s11  ;;  %1727 = vrot.lane.b32.xlu0 %v1611_v55, %s7208_s9  ;;  %v2988_v17 = vpack.c.bf16 %v2911_v49, %v2910_v2  ;;  %v2322_v55 = vld [vmem:[#allocation4 + $0x164] sm:$0xff]  ;;  %v3306_v2 = vld [vmem:[#allocation4 + $0x198] sm:$0xff] }
 0x4fe   : > { %v2325_v43 = vld [vmem:[#allocation4 + $0x17c] sm:$0xff] }
 0x4ff   : > { %v3475_v37 = vpop.permute.xlu1 %3474  ;;  %v2494_v60 = vpop.permute.xlu0 %2493  ;;  %v4264_v56 = vld [vmem:[#allocation5 + $0xb0] sm:$0xff] }
 0x500   : > { %3613 = vst.msk [vmem:[#allocation5 + $0xc8] sm:$0xff] %vm2231_vm1, %v3475_v37  ;;  %4768 = vmatprep.mubr.bf16.mxu0 %v4264_v56  ;;  %v3380_v56 = vpack.c.bf16 %v3303_v39, %v3302_v42  ;;  %v8930_v39 = vld [vmem:[#allocation4 + $0x199] sm:$0xff]  ;;  %v1616_v42 = vpack.c.bf16 %v8881_v26, %v8851_v33 }
 0x501   : > { %2633 = vst.msk [vmem:[#allocation5 + $0xc0] sm:$0xff] %vm2624_vm2, %v2494_v60  ;;  %3102 = vrot.lane.b32.xlu1 %v2986_v59, %s7208_s9  ;;  %2120 = vrot.lane.b32.xlu0 %v2004_v5, %s7205_s10  ;;  %v2399_v59 = vpack.c.bf16 %v2322_v55, %v2321_v11  ;;  %v8875_v5 = vld [vmem:[#allocation4 + $0x181] sm:$0xff]  ;;  %v2917_v11 = vld [vmem:[#allocation4 + $0x196] sm:$0xff] }
 0x502   : > { %4769 = vmatmul.mubr.bf16.gmra.mrb[224].mxu0 %v4263_v30 }
 0x503   : > { %v3867_v61 = vpop.permute.xlu1 %3866  ;;  %6690 = vmatmul.mubr.msk.bf16.gmra.mrb[128].mxu1 %vm277_vm15, %v4277_v52  ;;  %v1710_v0 = vpop.permute.xlu0 %1709  ;;  %v3772_v52 = vpack.c.bf16 %v8875_v5, %v8881_v26  ;;  %v3309_v26 = vld [vmem:[#allocation4 + $0x1b0] sm:$0xff] }
 0x504   : > { %4005 = vst.msk [vmem:[#allocation5 + $0xc8] sm:$0xff] %vm2624_vm2, %v3867_v61  ;;  %6693 = vmatprep.mubr.msk.bf16.mxu1 %vm7204_vm5, %v7195_v1  ;;  %v1931_v61 = vld [vmem:[#allocation4 + $0x15a] sm:$0xff] }
 0x505   : > { %1848 = vst.msk [vmem:[#allocation5 + $0xd8] sm:$0xff] %vm1838_vm0, %v1710_v0  ;;  %3494 = vrot.lane.b32.xlu1 %v3378_v8, %s7205_s10  ;;  %2513 = vrot.lane.b32.xlu0 %v2397_v27, %s7206_s11  ;;  %v4289_v0 = vld [vmem:[#allocation5 + $0x178] sm:$0xff]  ;;  %v1930_v27 = vld [vmem:[#allocation4 + $0x152] sm:$0xff] }
 0x506   : > { %v2912_v8 = vld [vmem:[#allocation4 + $0x16e] sm:$0xff]  ;;  %v2007_v45 = vpack.c.bf16 %v1931_v61, %v1930_v27 }
 0x507   : > { %v3085_v13 = vpop.permute.xlu1 %3084  ;;  %v2103_v6 = vpop.permute.xlu0 %2102 }
 0x508   : > { %3222 = vst.msk [vmem:[#allocation5 + $0xe0] sm:$0xff] %vm1838_vm0, %v3085_v13  ;;  %v4266_v24 = vld [vmem:[#allocation5 + $0xc0] sm:$0xff] }
 0x509   : > { %2241 = vst.msk [vmem:[#allocation5 + $0xd8] sm:$0xff] %vm2231_vm1, %v2103_v6  ;;  %3886 = vrot.lane.b32.xlu1 %v3770_v9, %s7206_s11  ;;  %1729 = vrot.lane.b32.xlu0 %v1612_v53, %s7208_s9  ;;  %v2989_v53 = vpack.c.bf16 %v2913_v35, %v2912_v8  ;;  %v2328_v35 = vld [vmem:[#allocation4 + $0x194] sm:$0xff]  ;;  %v2327_v8 = vld [vmem:[#allocation4 + $0x18c] sm:$0xff] }
 0x50b   : > { %v3477_v14 = vpop.permute.xlu1 %3476  ;;  %6694 = vmatmul.mubr.msk.bf16.gmra.mrb[132].mxu1 %vm277_vm15, %v4280_v63  ;;  %v2496_v41 = vpop.permute.xlu0 %2495  ;;  %v4267_v15 = vld [vmem:[#allocation5 + $0xc8] sm:$0xff]  ;;  %v3304_v63 = vld [vmem:[#allocation4 + $0x188] sm:$0xff] }
 0x50c   : > { %3614 = vst.msk [vmem:[#allocation5 + $0xe0] sm:$0xff] %vm2231_vm1, %v3477_v14  ;;  %4776 = vmatprep.mubr.bf16.mxu0 %v4267_v15  ;;  %6697 = vmatprep.mubr.msk.bf16.mxu1 %vm7204_vm5, %v7195_v1  ;;  %v2400_v15 = vpack.c.bf16 %v2324_v4, %v2323_v57  ;;  %v1617_v57 = vpack.c.bf16 %v8904_v40, %v8875_v5 }
 0x50d   : > { %2634 = vst.msk [vmem:[#allocation5 + $0xd8] sm:$0xff] %vm2624_vm2, %v2496_v41  ;;  %3104 = vrot.lane.b32.xlu1 %v2987_v19, %s7208_s9  ;;  %2122 = vrot.lane.b32.xlu0 %v2005_v44, %s7205_s10  ;;  %v3381_v41 = vpack.c.bf16 %v3305_v22, %v3304_v63  ;;  %v8900_v19 = vld [vmem:[#allocation4 + $0x191] sm:$0xff]  ;;  %v4292_v44 = vld [vmem:[#allocation5 + $0x190] sm:$0xff]  ;;  %v8953_v22 = vld [vmem:[#allocation4 + $0x1a9] sm:$0xff] }
 0x50e   : > { %4777 = vmatmul.mubr.bf16.gmra.mrb[228].mxu0 %v4266_v24  ;;  %v3773_v32 = vpack.c.bf16 %v8900_v19, %v8904_v40  ;;  %v3311_v40 = vld [vmem:[#allocation4 + $0x1c0] sm:$0xff] }
 0x50f   : > { %v3869_v46 = vpop.permute.xlu1 %3868  ;;  %v1712_v25 = vpop.permute.xlu0 %1711 }
 0x510   : > { %4006 = vst.msk [vmem:[#allocation5 + $0xe0] sm:$0xff] %vm2624_vm2, %v3869_v46  ;;  %v2915_v46 = vld [vmem:[#allocation4 + $0x186] sm:$0xff] }
 0x511   : > { %1849 = vst.msk [vmem:[#allocation5 + $0xf0] sm:$0xff] %vm1838_vm0, %v1712_v25  ;;  %3496 = vrot.lane.b32.xlu1 %v3379_v58, %s7205_s10  ;;  %2515 = vrot.lane.b32.xlu0 %v2398_v29, %s7206_s11  ;;  %v1933_v25 = vld [vmem:[#allocation4 + $0x16a] sm:$0xff]  ;;  %v2914_v58 = vld [vmem:[#allocation4 + $0x17e] sm:$0xff] }
 0x512   : > { %v1932_v29 = vld [vmem:[#allocation4 + $0x162] sm:$0xff] }
 0x513   : > { %v3087_v62 = vpop.permute.xlu1 %3086  ;;  %6698 = vmatmul.mubr.msk.bf16.gmra.mrb[136].mxu1 %vm277_vm15, %v4283_v51  ;;  %v2105_v54 = vpop.permute.xlu0 %2104  ;;  %v2008_v10 = vpack.c.bf16 %v1933_v25, %v1932_v29  ;;  %v4304_v25 = vld [vmem:[#allocation5 + $0x1f0] sm:$0xff] }
 0x514   : > { %3223 = vst.msk [vmem:[#allocation5 + $0xf8] sm:$0xff] %vm1838_vm0, %v3087_v62  ;;  %6701 = vmatprep.mubr.msk.bf16.mxu1 %vm7204_vm5, %v7195_v1  ;;  %v4269_v18 = vld [vmem:[#allocation5 + $0xd8] sm:$0xff]  ;;  %v2329_v29 = vld [vmem:[#allocation4 + $0x19c] sm:$0xff] }
 0x515   : > { %2242 = vst.msk [vmem:[#allocation5 + $0xf0] sm:$0xff] %vm2231_vm1, %v2105_v54  ;;  %3888 = vrot.lane.b32.xlu1 %v3771_v3, %s7206_s11  ;;  %1731 = vrot.lane.b32.xlu0 %v1613_v36, %s7208_s9  ;;  %v2990_v3 = vpack.c.bf16 %v2915_v46, %v2914_v58  ;;  %v2326_v36 = vld [vmem:[#allocation4 + $0x184] sm:$0xff]  ;;  %v3310_v58 = vld [vmem:[#allocation4 + $0x1b8] sm:$0xff] }
 0x517   : > { %v3479_v16 = vpop.permute.xlu1 %3478  ;;  %v2498_v12 = vpop.permute.xlu0 %2497  ;;  %v4270_v47 = vld [vmem:[#allocation5 + $0xe0] sm:$0xff] }
 0x518   : > { %3615 = vst.msk [vmem:[#allocation5 + $0xf8] sm:$0xff] %vm2231_vm1, %v3479_v16  ;;  %4784 = vmatprep.mubr.bf16.mxu0 %v4270_v47  ;;  %v3382_v47 = vpack.c.bf16 %v3307_v7, %v3306_v2  ;;  %v8977_v7 = vld [vmem:[#allocation4 + $0x1b9] sm:$0xff]  ;;  %v1618_v2 = vpack.c.bf16 %v8930_v39, %v8900_v19 }
 0x519   : > { %2635 = vst.msk [vmem:[#allocation5 + $0xf0] sm:$0xff] %vm2624_vm2, %v2498_v12  ;;  %3106 = vrot.lane.b32.xlu1 %v2988_v17, %s7208_s9  ;;  %2124 = vrot.lane.b32.xlu0 %v2006_v21, %s7205_s10  ;;  %v2401_v17 = vpack.c.bf16 %v2326_v36, %v2325_v43  ;;  %v8924_v21 = vld [vmem:[#allocation4 + $0x1a1] sm:$0xff]  ;;  %v2921_v43 = vld [vmem:[#allocation4 + $0x1b6] sm:$0xff] }
 0x51a   : > { %4785 = vmatmul.mubr.bf16.gmra.mrb[232].mxu0 %v4269_v18 }
 0x51b   : > { %v3871_v37 = vpop.permute.xlu1 %3870  ;;  %6702 = vmatmul.mubr.msk.bf16.gmra.mrb[140].mxu1 %vm277_vm15, %v4286_v50  ;;  %v1714_v60 = vpop.permute.xlu0 %1713  ;;  %v3774_v50 = vpack.c.bf16 %v8924_v21, %v8930_v39  ;;  %v3313_v39 = vld [vmem:[#allocation4 + $0x1d0] sm:$0xff] }
 0x51c   : > { %4007 = vst.msk [vmem:[#allocation5 + $0xf8] sm:$0xff] %vm2624_vm2, %v3871_v37  ;;  %6705 = vmatprep.mubr.msk.bf16.mxu1 %vm7204_vm5, %v7195_v1  ;;  %v1935_v37 = vld [vmem:[#allocation4 + $0x17a] sm:$0xff] }
 0x51d   : > { %1850 = vst.msk [vmem:[#allocation5 + $0x108] sm:$0xff] %vm1838_vm0, %v1714_v60  ;;  %3498 = vrot.lane.b32.xlu1 %v3380_v56, %s7205_s10  ;;  %2517 = vrot.lane.b32.xlu0 %v2399_v59, %s7206_s11  ;;  %v4298_v60 = vld [vmem:[#allocation5 + $0x1c0] sm:$0xff] }
 0x51e   : > { %v2916_v56 = vld [vmem:[#allocation4 + $0x18e] sm:$0xff] }
 0x51f   : > { %v3089_v28 = vpop.permute.xlu1 %3088  ;;  %v2107_v30 = vpop.permute.xlu0 %2106  ;;  %v1934_v59 = vld [vmem:[#allocation4 + $0x172] sm:$0xff] }
 0x520   : > { %3224 = vst.msk [vmem:[#allocation5 + $0x110] sm:$0xff] %vm1838_vm0, %v3089_v28  ;;  %v4272_v38 = vld [vmem:[#allocation5 + $0xf0] sm:$0xff]  ;;  %v2009_v33 = vpack.c.bf16 %v1935_v37, %v1934_v59 }
 0x521   : > { %2243 = vst.msk [vmem:[#allocation5 + $0x108] sm:$0xff] %vm2231_vm1, %v2107_v30  ;;  %3890 = vrot.lane.b32.xlu1 %v3772_v52, %s7206_s11  ;;  %1733 = vrot.lane.b32.xlu0 %v1614_v31, %s7208_s9  ;;  %v2991_v31 = vpack.c.bf16 %v2917_v11, %v2916_v56  ;;  %v2332_v11 = vld [vmem:[#allocation4 + $0x1b4] sm:$0xff]  ;;  %v2331_v56 = vld [vmem:[#allocation4 + $0x1ac] sm:$0xff] }
 0x523   : > { %v3481_v13 = vpop.permute.xlu1 %3480  ;;  %6706 = vmatmul.mubr.msk.bf16.gmra.mrb[144].mxu1 %vm277_vm15, %v4289_v0  ;;  %v2500_v6 = vpop.permute.xlu0 %2499  ;;  %v4273_v9 = vld [vmem:[#allocation5 + $0xf8] sm:$0xff] }
 0x524   : > { %3616 = vst.msk [vmem:[#allocation5 + $0x110] sm:$0xff] %vm2231_vm1, %v3481_v13  ;;  %4792 = vmatprep.mubr.bf16.mxu0 %v4273_v9  ;;  %6709 = vmatprep.mubr.msk.bf16.mxu1 %vm7204_vm5, %v7195_v1  ;;  %v3308_v0 = vld [vmem:[#allocation4 + $0x1a8] sm:$0xff]  ;;  %v2402_v9 = vpack.c.bf16 %v2328_v35, %v2327_v8  ;;  %v1619_v8 = vpack.c.bf16 %v8953_v22, %v8924_v21 }
 0x525   : > { %2636 = vst.msk [vmem:[#allocation5 + $0x108] sm:$0xff] %vm2624_vm2, %v2500_v6  ;;  %3108 = vrot.lane.b32.xlu1 %v2989_v53, %s7208_s9  ;;  %2126 = vrot.lane.b32.xlu0 %v2007_v45, %s7205_s10  ;;  %v3383_v6 = vpack.c.bf16 %v3309_v26, %v3308_v0  ;;  %v8949_v53 = vld [vmem:[#allocation4 + $0x1b1] sm:$0xff]  ;;  %v4301_v45 = vld [vmem:[#allocation5 + $0x1d8] sm:$0xff] }
 0x526   : > { %4793 = vmatmul.mubr.bf16.gmra.mrb[236].mxu0 %v4272_v38  ;;  %v3775_v63 = vpack.c.bf16 %v8949_v53, %v8953_v22  ;;  %v3704_v26 = vld [vmem:[#allocation4 + $0x1c9] sm:$0xff]  ;;  %v3315_v22 = vld [vmem:[#allocation4 + $0x1e0] sm:$0xff] }
 0x527   : > { %v3873_v23 = vpop.permute.xlu1 %3872  ;;  %v1716_v14 = vpop.permute.xlu0 %1715 }
 0x528   : > { %4008 = vst.msk [vmem:[#allocation5 + $0x110] sm:$0xff] %vm2624_vm2, %v3873_v23  ;;  %v2919_v23 = vld [vmem:[#allocation4 + $0x1a6] sm:$0xff] }
 0x529   : > { %1851 = vst.msk [vmem:[#allocation5 + $0x120] sm:$0xff] %vm1838_vm0, %v1716_v14  ;;  %3500 = vrot.lane.b32.xlu1 %v3381_v41, %s7205_s10  ;;  %2519 = vrot.lane.b32.xlu0 %v2400_v15, %s7206_s11  ;;  %v1937_v14 = vld [vmem:[#allocation4 + $0x18a] sm:$0xff]  ;;  %v2918_v41 = vld [vmem:[#allocation4 + $0x19e] sm:$0xff] }
 0x52a   : > { %v1936_v15 = vld [vmem:[#allocation4 + $0x182] sm:$0xff] }
 0x52b   : > { %v3091_v20 = vpop.permute.xlu1 %3090  ;;  %6710 = vmatmul.mubr.msk.bf16.gmra.mrb[148].mxu1 %vm277_vm15, %v4292_v44  ;;  %v2109_v24 = vpop.permute.xlu0 %2108  ;;  %v2010_v5 = vpack.c.bf16 %v1937_v14, %v1936_v15  ;;  %v4313_v14 = vld [vmem:[#allocation5 + $0x238] sm:$0xff]  ;;  %v2333_v15 = vld [vmem:[#allocation4 + $0x1bc] sm:$0xff] }
 0x52c   : > { %3225 = vst.msk [vmem:[#allocation5 + $0x128] sm:$0xff] %vm1838_vm0, %v3091_v20  ;;  %6713 = vmatprep.mubr.msk.bf16.mxu1 %vm7204_vm5, %v7195_v1  ;;  %v4275_v49 = vld [vmem:[#allocation5 + $0x108] sm:$0xff] }
 0x52d   : > { %2244 = vst.msk [vmem:[#allocation5 + $0x120] sm:$0xff] %vm2231_vm1, %v2109_v24  ;;  %3892 = vrot.lane.b32.xlu1 %v3773_v32, %s7206_s11  ;;  %1735 = vrot.lane.b32.xlu0 %v1615_v48, %s7208_s9  ;;  %v2992_v32 = vpack.c.bf16 %v2919_v23, %v2918_v41  ;;  %v2330_v48 = vld [vmem:[#allocation4 + $0x1a4] sm:$0xff]  ;;  %v3314_v41 = vld [vmem:[#allocation4 + $0x1d8] sm:$0xff] }
 0x52f   : > { %v3483_v51 = vpop.permute.xlu1 %3482  ;;  %v2502_v62 = vpop.permute.xlu0 %2501  ;;  %v4276_v54 = vld [vmem:[#allocation5 + $0x110] sm:$0xff] }
 0x530   : > { %3617 = vst.msk [vmem:[#allocation5 + $0x128] sm:$0xff] %vm2231_vm1, %v3483_v51  ;;  %4800 = vmatprep.mubr.bf16.mxu0 %v4276_v54  ;;  %v3384_v54 = vpack.c.bf16 %v3311_v40, %v3310_v58  ;;  %v3706_v40 = vld [vmem:[#allocation4 + $0x1d9] sm:$0xff]  ;;  %v1620_v58 = vpack.c.bf16 %v8977_v7, %v8949_v53 }
 0x531   : > { %2637 = vst.msk [vmem:[#allocation5 + $0x120] sm:$0xff] %vm2624_vm2, %v2502_v62  ;;  %3110 = vrot.lane.b32.xlu1 %v2990_v3, %s7208_s9  ;;  %2128 = vrot.lane.b32.xlu0 %v2008_v10, %s7205_s10  ;;  %v2403_v3 = vpack.c.bf16 %v2330_v48, %v2329_v29  ;;  %v3703_v10 = vld [vmem:[#allocation4 + $0x1c1] sm:$0xff]  ;;  %v2925_v29 = vld [vmem:[#allocation4 + $0x1d6] sm:$0xff] }
 0x532   : > { %4801 = vmatmul.mubr.bf16.gmra.mrb[240].mxu0 %v4275_v49 }
 0x533   : > { %v3875_v16 = vpop.permute.xlu1 %3874  ;;  %6714 = vmatmul.mubr.msk.bf16.gmra.mrb[152].mxu1 %vm277_vm15, %v4295_v34  ;;  %v1718_v12 = vpop.permute.xlu0 %1717  ;;  %v3776_v34 = vpack.c.bf16 %v3703_v10, %v8977_v7  ;;  %v3317_v7 = vld [vmem:[#allocation4 + $0x1f0] sm:$0xff] }
 0x534   : > { %4009 = vst.msk [vmem:[#allocation5 + $0x128] sm:$0xff] %vm2624_vm2, %v3875_v16  ;;  %6717 = vmatprep.mubr.msk.bf16.mxu1 %vm7204_vm5, %v7195_v1  ;;  %v1939_v16 = vld [vmem:[#allocation4 + $0x19a] sm:$0xff] }
 0x535   : > { %1852 = vst.msk [vmem:[#allocation5 + $0x138] sm:$0xff] %vm1838_vm0, %v1718_v12  ;;  %3502 = vrot.lane.b32.xlu1 %v3382_v47, %s7205_s10  ;;  %2521 = vrot.lane.b32.xlu0 %v2401_v17, %s7206_s11  ;;  %v4307_v12 = vld [vmem:[#allocation5 + $0x208] sm:$0xff]  ;;  %v2920_v47 = vld [vmem:[#allocation4 + $0x1ae] sm:$0xff] }
 0x536   : > { %v1938_v17 = vld [vmem:[#allocation4 + $0x192] sm:$0xff] }
 0x537   : > { %v3093_v55 = vpop.permute.xlu1 %3092  ;;  %v2111_v18 = vpop.permute.xlu0 %2110  ;;  %v2011_v19 = vpack.c.bf16 %v1939_v16, %v1938_v17  ;;  %v3316_v16 = vld [vmem:[#allocation4 + $0x1e8] sm:$0xff] }
 0x538   : > { %3226 = vst.msk [vmem:[#allocation5 + $0x140] sm:$0xff] %vm1838_vm0, %v3093_v55  ;;  %v4278_v61 = vld [vmem:[#allocation5 + $0x120] sm:$0xff] }
 0x539   : > { %2245 = vst.msk [vmem:[#allocation5 + $0x138] sm:$0xff] %vm2231_vm1, %v2111_v18  ;;  %3894 = vrot.lane.b32.xlu1 %v3774_v50, %s7206_s11  ;;  %1737 = vrot.lane.b32.xlu0 %v1616_v42, %s7208_s9  ;;  %v2993_v42 = vpack.c.bf16 %v2921_v43, %v2920_v47 }
 0x53b   : > { %v3485_v28 = vpop.permute.xlu1 %3484  ;;  %6718 = vmatmul.mubr.msk.bf16.gmra.mrb[156].mxu1 %vm277_vm15, %v4298_v60  ;;  %v2504_v30 = vpop.permute.xlu0 %2503  ;;  %v4279_v52 = vld [vmem:[#allocation5 + $0x128] sm:$0xff]  ;;  %v3312_v60 = vld [vmem:[#allocation4 + $0x1c8] sm:$0xff] }
 0x53c   : > { %3618 = vst.msk [vmem:[#allocation5 + $0x140] sm:$0xff] %vm2231_vm1, %v3485_v28  ;;  %4808 = vmatprep.mubr.bf16.mxu0 %v4279_v52  ;;  %6721 = vmatprep.mubr.msk.bf16.mxu1 %vm7204_vm5, %v7195_v1  ;;  %v2404_v52 = vpack.c.bf16 %v2332_v11, %v2331_v56 }
 0x53d   : > { %2638 = vst.msk [vmem:[#allocation5 + $0x138] sm:$0xff] %vm2624_vm2, %v2504_v30  ;;  %3112 = vrot.lane.b32.xlu1 %v2991_v31, %s7208_s9  ;;  %2130 = vrot.lane.b32.xlu0 %v2009_v33, %s7205_s10  ;;  %v3385_v30 = vpack.c.bf16 %v3313_v39, %v3312_v60  ;;  %v3705_v31 = vld [vmem:[#allocation4 + $0x1d1] sm:$0xff] }
 0x53e   : > { %4809 = vmatmul.mubr.bf16.gmra.mrb[244].mxu0 %v4278_v61  ;;  %v4310_v33 = vld [vmem:[#allocation5 + $0x220] sm:$0xff]  ;;  %v3777_v0 = vpack.c.bf16 %v3705_v31, %v3704_v26 }
 0x53f   : > { %v3877_v27 = vpop.permute.xlu1 %3876  ;;  %v1720_v13 = vpop.permute.xlu0 %1719 }
 0x540   : > { %4010 = vst.msk [vmem:[#allocation5 + $0x140] sm:$0xff] %vm2624_vm2, %v3877_v27  ;;  %v2923_v27 = vld [vmem:[#allocation4 + $0x1c6] sm:$0xff] }
 0x541   : > { %1853 = vst.msk [vmem:[#allocation5 + $0x150] sm:$0xff] %vm1838_vm0, %v1720_v13  ;;  %3504 = vrot.lane.b32.xlu1 %v3383_v6, %s7205_s10  ;;  %2523 = vrot.lane.b32.xlu0 %v2402_v9, %s7206_s11  ;;  %v1941_v13 = vld [vmem:[#allocation4 + $0x1aa] sm:$0xff]  ;;  %v2922_v6 = vld [vmem:[#allocation4 + $0x1be] sm:$0xff] }
 0x542   : > { %v1940_v9 = vld [vmem:[#allocation4 + $0x1a2] sm:$0xff] }
 0x543   : > { %v3095_v4 = vpop.permute.xlu1 %3094  ;;  %6722 = vmatmul.mubr.msk.bf16.gmra.mrb[160].mxu1 %vm277_vm15, %v4301_v45  ;;  %v2113_v38 = vpop.permute.xlu0 %2112  ;;  %v2012_v21 = vpack.c.bf16 %v1941_v13, %v1940_v9  ;;  %v4325_v9 = vld [vmem:[#allocation5 + $0x298] sm:$0xff] }
 0x544   : > { %3227 = vst.msk [vmem:[#allocation5 + $0x158] sm:$0xff] %vm1838_vm0, %v3095_v4  ;;  %6725 = vmatprep.mubr.msk.bf16.mxu1 %vm7204_vm5, %v7195_v1  ;;  %v4281_v46 = vld [vmem:[#allocation5 + $0x138] sm:$0xff] }
 0x545   : > { %2246 = vst.msk [vmem:[#allocation5 + $0x150] sm:$0xff] %vm2231_vm1, %v2113_v38  ;;  %3896 = vrot.lane.b32.xlu1 %v3775_v63, %s7206_s11  ;;  %1739 = vrot.lane.b32.xlu0 %v1617_v57, %s7208_s9  ;;  %v2994_v63 = vpack.c.bf16 %v2923_v27, %v2922_v6  ;;  %v2334_v57 = vld [vmem:[#allocation4 + $0x1c4] sm:$0xff] }
 0x547   : > { %v3487_v44 = vpop.permute.xlu1 %3486  ;;  %v2506_v20 = vpop.permute.xlu0 %2505  ;;  %v4282_v24 = vld [vmem:[#allocation5 + $0x140] sm:$0xff] }
 0x548   : > { %3619 = vst.msk [vmem:[#allocation5 + $0x158] sm:$0xff] %vm2231_vm1, %v3487_v44  ;;  %4816 = vmatprep.mubr.bf16.mxu0 %v4282_v24  ;;  %v3386_v24 = vpack.c.bf16 %v3315_v22, %v3314_v41 }
 0x549   : > { %2639 = vst.msk [vmem:[#allocation5 + $0x150] sm:$0xff] %vm2624_vm2, %v2506_v20  ;;  %3114 = vrot.lane.b32.xlu1 %v2992_v32, %s7208_s9  ;;  %2132 = vrot.lane.b32.xlu0 %v2010_v5, %s7205_s10  ;;  %v2405_v32 = vpack.c.bf16 %v2334_v57, %v2333_v15  ;;  %v3707_v5 = vld [vmem:[#allocation4 + $0x1e1] sm:$0xff] }
 0x54a   : > { %4817 = vmatmul.mubr.bf16.gmra.mrb[248].mxu0 %v4281_v46 }
 0x54b   : > { %v3879_v51 = vpop.permute.xlu1 %3878  ;;  %6726 = vmatmul.mubr.msk.bf16.gmra.mrb[164].mxu1 %vm277_vm15, %v4304_v25  ;;  %v1722_v62 = vpop.permute.xlu0 %1721  ;;  %v3778_v25 = vpack.c.bf16 %v3707_v5, %v3706_v40 }
 0x54c   : > { %4011 = vst.msk [vmem:[#allocation5 + $0x158] sm:$0xff] %vm2624_vm2, %v3879_v51  ;;  %6729 = vmatprep.mubr.msk.bf16.mxu1 %vm7204_vm5, %v7195_v1  ;;  %v1943_v51 = vld [vmem:[#allocation4 + $0x1ba] sm:$0xff] }
 0x54d   : > { %1854 = vst.msk [vmem:[#allocation5 + $0x168] sm:$0xff] %vm1838_vm0, %v1722_v62  ;;  %3506 = vrot.lane.b32.xlu1 %v3384_v54, %s7205_s10  ;;  %2525 = vrot.lane.b32.xlu0 %v2403_v3, %s7206_s11  ;;  %v4316_v62 = vld [vmem:[#allocation5 + $0x250] sm:$0xff]  ;;  %v2924_v54 = vld [vmem:[#allocation4 + $0x1ce] sm:$0xff] }
 0x54e   : > { %v1942_v3 = vld [vmem:[#allocation4 + $0x1b2] sm:$0xff] }
 0x54f   : > { %v3097_v36 = vpop.permute.xlu1 %3096  ;;  %v2115_v49 = vpop.permute.xlu0 %2114  ;;  %v2013_v53 = vpack.c.bf16 %v1943_v51, %v1942_v3 }
 0x550   : > { %3228 = vst.msk [vmem:[#allocation5 + $0x170] sm:$0xff] %vm1838_vm0, %v3097_v36  ;;  %v4284_v37 = vld [vmem:[#allocation5 + $0x150] sm:$0xff] }
 0x551   : > { %2247 = vst.msk [vmem:[#allocation5 + $0x168] sm:$0xff] %vm2231_vm1, %v2115_v49  ;;  %3898 = vrot.lane.b32.xlu1 %v3776_v34, %s7206_s11  ;;  %1741 = vrot.lane.b32.xlu0 %v1618_v2, %s7208_s9  ;;  %v2995_v34 = vpack.c.bf16 %v2925_v29, %v2924_v54  ;;  %v2336_v2 = vld [vmem:[#allocation4 + $0x1d4] sm:$0xff] }
 0x553   : > { %v3489_v55 = vpop.permute.xlu1 %3488  ;;  %6730 = vmatmul.mubr.msk.bf16.gmra.mrb[168].mxu1 %vm277_vm15, %v4307_v12  ;;  %v2508_v18 = vpop.permute.xlu0 %2507  ;;  %v4285_v50 = vld [vmem:[#allocation5 + $0x158] sm:$0xff] }
 0x554   : > { %3620 = vst.msk [vmem:[#allocation5 + $0x170] sm:$0xff] %vm2231_vm1, %v3489_v55  ;;  %4824 = vmatprep.mubr.bf16.mxu0 %v4285_v50  ;;  %6733 = vmatprep.mubr.msk.bf16.mxu1 %vm7204_vm5, %v7195_v1  ;;  %v2335_v12 = vld [vmem:[#allocation4 + $0x1cc] sm:$0xff]  ;;  %v3387_v55 = vpack.c.bf16 %v3317_v7, %v3316_v16  ;;  %v4138_v16 = vld [vmem:[#allocation4 + $0x31a] sm:$0xff] }
 0x555   : > { %2640 = vst.msk [vmem:[#allocation5 + $0x168] sm:$0xff] %vm2624_vm2, %v2508_v18  ;;  %3116 = vrot.lane.b32.xlu1 %v2993_v42, %s7208_s9  ;;  %2134 = vrot.lane.b32.xlu0 %v2011_v19, %s7205_s10  ;;  %v2406_v18 = vpack.c.bf16 %v2336_v2, %v2335_v12  ;;  %v3709_v50 = vld [vmem:[#allocation4 + $0x1f1] sm:$0xff]  ;;  %v3708_v19 = vld [vmem:[#allocation4 + $0x1e9] sm:$0xff] }
 0x556   : > { %4825 = vmatmul.mubr.bf16.gmra.mrb[252].mxu0 %v4284_v37  ;;  %v4319_v42 = vld [vmem:[#allocation5 + $0x268] sm:$0xff]  ;;  %v3779_v37 = vpack.c.bf16 %v3709_v50, %v3708_v19  ;;  %v4139_v12 = vld [vmem:[#allocation4 + $0x322] sm:$0xff] }
 0x557   : > { %v3881_v59 = vpop.permute.xlu1 %3880  ;;  %v1724_v28 = vpop.permute.xlu0 %1723 }
 0x558   : > { %4012 = vst.msk [vmem:[#allocation5 + $0x170] sm:$0xff] %vm2624_vm2, %v3881_v59 }
 0x559   : > { %1855 = vst.msk [vmem:[#allocation5 + $0x180] sm:$0xff] %vm1838_vm0, %v1724_v28  ;;  %3508 = vrot.lane.b32.xlu1 %v3385_v30, %s7205_s10  ;;  %2527 = vrot.lane.b32.xlu0 %v2404_v52, %s7206_s11  ;;  %v4322_v30 = vld [vmem:[#allocation5 + $0x280] sm:$0xff] }
 0x55b   : > { %v3099_v35 = vpop.permute.xlu1 %3098  ;;  %6734 = vmatmul.mubr.msk.bf16.gmra.mrb[172].mxu1 %vm277_vm15, %v4310_v33  ;;  %v2117_v61 = vpop.permute.xlu0 %2116 }
 0x55c   : > { %3229 = vst.msk [vmem:[#allocation5 + $0x188] sm:$0xff] %vm1838_vm0, %v3099_v35  ;;  %6737 = vmatprep.mubr.msk.bf16.mxu1 %vm7204_vm5, %v7195_v1  ;;  %v4287_v23 = vld [vmem:[#allocation5 + $0x168] sm:$0xff] }
 0x55d   : > { %2248 = vst.msk [vmem:[#allocation5 + $0x180] sm:$0xff] %vm2231_vm1, %v2117_v61  ;;  %3900 = vrot.lane.b32.xlu1 %v3777_v0, %s7206_s11  ;;  %1743 = vrot.lane.b32.xlu0 %v1619_v8, %s7208_s9 }
 0x55f   : > { %v3491_v45 = vpop.permute.xlu1 %3490  ;;  %v2510_v4 = vpop.permute.xlu0 %2509  ;;  %v4288_v38 = vld [vmem:[#allocation5 + $0x170] sm:$0xff] }
 0x560   : > { %3621 = vst.msk [vmem:[#allocation5 + $0x188] sm:$0xff] %vm2231_vm1, %v3491_v45  ;;  %4832 = vmatprep.mubr.bf16.mxu0 %v4288_v38 }
 0x561   : > { %2641 = vst.msk [vmem:[#allocation5 + $0x180] sm:$0xff] %vm2624_vm2, %v2510_v4  ;;  %3118 = vrot.lane.b32.xlu1 %v2994_v63, %s7208_s9  ;;  %2136 = vrot.lane.b32.xlu0 %v2012_v21, %s7205_s10 }
 0x562   : > { %4833 = vmatmul.mubr.bf16.gmra.mrb[0].mxu0 %v4287_v23 }
 0x563   : > { %v3883_v44 = vpop.permute.xlu1 %3882  ;;  %6738 = vmatmul.mubr.msk.bf16.gmra.mrb[176].mxu1 %vm277_vm15, %v4313_v14  ;;  %v1726_v20 = vpop.permute.xlu0 %1725 }
 0x564   : > { %4013 = vst.msk [vmem:[#allocation5 + $0x188] sm:$0xff] %vm2624_vm2, %v3883_v44  ;;  %6741 = vmatprep.mubr.msk.bf16.mxu1 %vm7204_vm5, %v7195_v1 }
 0x565   : > { %1856 = vst.msk [vmem:[#allocation5 + $0x198] sm:$0xff] %vm1838_vm0, %v1726_v20  ;;  %3510 = vrot.lane.b32.xlu1 %v3386_v24, %s7205_s10  ;;  %2529 = vrot.lane.b32.xlu0 %v2405_v32, %s7206_s11  ;;  %v4328_v24 = vld [vmem:[#allocation5 + $0x2b0] sm:$0xff] }
 0x567   : > { %v3101_v48 = vpop.permute.xlu1 %3100  ;;  %v2119_v46 = vpop.permute.xlu0 %2118 }
 0x568   : > { %3230 = vst.msk [vmem:[#allocation5 + $0x1a0] sm:$0xff] %vm1838_vm0, %v3101_v48  ;;  %v4290_v43 = vld [vmem:[#allocation5 + $0x180] sm:$0xff] }
 0x569   : > { %2249 = vst.msk [vmem:[#allocation5 + $0x198] sm:$0xff] %vm2231_vm1, %v2119_v46  ;;  %3902 = vrot.lane.b32.xlu1 %v3778_v25, %s7206_s11  ;;  %1745 = vrot.lane.b32.xlu0 %v1620_v58, %s7208_s9 }
 0x56b   : > { %v3493_v10 = vpop.permute.xlu1 %3492  ;;  %6742 = vmatmul.mubr.msk.bf16.gmra.mrb[180].mxu1 %vm277_vm15, %v4316_v62  ;;  %v2512_v36 = vpop.permute.xlu0 %2511  ;;  %v4291_v49 = vld [vmem:[#allocation5 + $0x188] sm:$0xff] }
 0x56c   : > { %3622 = vst.msk [vmem:[#allocation5 + $0x1a0] sm:$0xff] %vm2231_vm1, %v3493_v10  ;;  %4840 = vmatprep.mubr.bf16.mxu0 %v4291_v49  ;;  %6745 = vmatprep.mubr.msk.bf16.mxu1 %vm7204_vm5, %v7195_v1 }
 0x56d   : > { %2642 = vst.msk [vmem:[#allocation5 + $0x198] sm:$0xff] %vm2624_vm2, %v2512_v36  ;;  %3120 = vrot.lane.b32.xlu1 %v2995_v34, %s7208_s9  ;;  %2138 = vrot.lane.b32.xlu0 %v2013_v53, %s7205_s10  ;;  %v4331_v53 = vld [vmem:[#allocation5 + $0x2c8] sm:$0xff] }
 0x56e   : > { %4841 = vmatmul.mubr.bf16.gmra.mrb[4].mxu0 %v4290_v43 }
 0x56f   : > { %v3885_v47 = vpop.permute.xlu1 %3884  ;;  %v1728_v17 = vpop.permute.xlu0 %1727 }
 0x570   : > { %4014 = vst.msk [vmem:[#allocation5 + $0x1a0] sm:$0xff] %vm2624_vm2, %v3885_v47 }
 0x571   : > { %1857 = vst.msk [vmem:[#allocation5 + $0x1b0] sm:$0xff] %vm1838_vm0, %v1728_v17  ;;  %3512 = vrot.lane.b32.xlu1 %v3387_v55, %s7205_s10  ;;  %2531 = vrot.lane.b32.xlu0 %v2406_v18, %s7206_s11  ;;  %v4190_v55 = vpack.c.bf16 %v4139_v12, %v4138_v16 }
 0x573   : > { %v3103_v39 = vpop.permute.xlu1 %3102  ;;  %6746 = vmatmul.mubr.msk.bf16.gmra.mrb[184].mxu1 %vm277_vm15, %v4319_v42  ;;  %v2121_v11 = vpop.permute.xlu0 %2120  ;;  %4239 = vst.msk [vmem:[#allocation5 + $0x460] sm:$0xff] %vm277_vm15, %v4190_v55 }
 0x574   : > { %3231 = vst.msk [vmem:[#allocation5 + $0x1b8] sm:$0xff] %vm1838_vm0, %v3103_v39  ;;  %6749 = vmatprep.mubr.msk.bf16.mxu1 %vm7204_vm5, %v7195_v1  ;;  %v4293_v28 = vld [vmem:[#allocation5 + $0x198] sm:$0xff] }
 0x575   : > { %2250 = vst.msk [vmem:[#allocation5 + $0x1b0] sm:$0xff] %vm2231_vm1, %v2121_v11  ;;  %3904 = vrot.lane.b32.xlu1 %v3779_v37, %s7206_s11  ;;  %v4334_v37 = vld [vmem:[#allocation5 + $0x2e0] sm:$0xff]  ;;  %s257_s11 = smul.u32 9, %s7245_s21 }
 0x577   : > { %v3495_v60 = vpop.permute.xlu1 %3494  ;;  %v2514_v56 = vpop.permute.xlu0 %2513  ;;  %v4294_v59 = vld [vmem:[#allocation5 + $0x1a0] sm:$0xff]  ;;  %p258_p5 = scmp.lt.s32.totalorder %s257_s11, 17 }
 0x578   : > { %3623 = vst.msk [vmem:[#allocation5 + $0x1b8] sm:$0xff] %vm2231_vm1, %v3495_v60  ;;  %4848 = vmatprep.mubr.bf16.mxu0 %v4294_v59 }
 0x579   : > { %2643 = vst.msk [vmem:[#allocation5 + $0x1b0] sm:$0xff] %vm2624_vm2, %v2514_v56  ;;  %4849 = vmatmul.mubr.bf16.gmra.mrb[8].mxu0 %v4293_v28  ;;  %s9479_s11 = smov (!%p258_p5, %s257_s11), 17 }
 0x57a   : > { %s6191_s21 = sshll.u32 %s9479_s11, 2 }
 0x57b   : > { %v3887_v52 = vpop.permute.xlu1 %3886  ;;  %6750 = vmatmul.mubr.msk.bf16.gmra.mrb[188].mxu1 %vm277_vm15, %v4322_v30  ;;  %v1730_v31 = vpop.permute.xlu0 %1729  ;;  %s9325_s6 = scalar_lea.vmem %s9463_s5, %s6191_s21 }
 0x57c   : > { %4015 = vst.msk [vmem:[#allocation5 + $0x1b8] sm:$0xff] %vm2624_vm2, %v3887_v52  ;;  %6753 = vmatprep.mubr.msk.bf16.mxu1 %vm7204_vm5, %v7195_v1 }
 0x57d   : > { %1858 = vst.msk [vmem:[#allocation5 + $0x1c8] sm:$0xff] %vm1838_vm0, %v1730_v31 }
 0x57e   : > { %v5139_v33 = vpop.f32.mrb[84].mxu1 }
 0x57f   : > { %v3105_v26 = vpop.permute.xlu1 %3104  ;;  %v6647_v35 = vpop.f32.mrb[85].mxu1 }
 0x580   : > { %3232 = vst.msk [vmem:[#allocation5 + $0x1d0] sm:$0xff] %vm1838_vm0, %v3105_v26  ;;  %v2123_v61 = vpop.permute.xlu0 %2122  ;;  %v5142_v0 = vpop.f32.mrb[86].mxu1  ;;  %v4296_v57 = vld [vmem:[#allocation5 + $0x1b0] sm:$0xff]  ;;  %v4140_v26 = vld [vmem:[#allocation4 + $0x32a] sm:$0xff]  ;;  %v4141_v35 = vld [vmem:[#allocation4 + $0x332] sm:$0xff] }
 0x581   : > { %2251 = vst.msk [vmem:[#allocation5 + $0x1c8] sm:$0xff] %vm2231_vm1, %v2123_v61  ;;  %v4714_v8 = vpop.f32.mrb[196].mxu0  ;;  %v6648_v27 = vpop.f32.mrb[87].mxu1 }
 0x582   : > { %v5140_v13 = vadd.f32 %v5139_v33, %v4714_v8  ;;  %v4716_v6 = vpop.f32.mrb[197].mxu0  ;;  %v4191_v8 = vpack.c.bf16 %v4141_v35, %v4140_v26 }
 0x583   : > { %v4717_v45 = vpop.f32.mrb[198].mxu0  ;;  %v3497_v4 = vpop.permute.xlu1 %3496  ;;  %6754 = vmatmul.mubr.msk.bf16.gmra.mrb[192].mxu1 %vm277_vm15, %v4325_v9  ;;  %v4297_v38 = vld [vmem:[#allocation5 + $0x1b8] sm:$0xff] }
 0x584   : > { %5531 = vst.msk [vmem:[#allocation6] sm:$0xff] %vm5530_vm3, %v5140_v13  ;;  %v5143_v63 = vadd.f32 %v5142_v0, %v4717_v45  ;;  %v4719_v21 = vpop.f32.mrb[199].mxu0  ;;  %v2516_v22 = vpop.permute.xlu0 %2515  ;;  %4856 = vmatprep.mubr.bf16.mxu0 %v4297_v38  ;;  %6757 = vmatprep.mubr.msk.bf16.mxu1 %vm7204_vm5, %v7195_v1  ;;  %v4337_v9 = vld [vmem:[#allocation5 + $0x2f8] sm:$0xff] }
 0x585   : > { %3624 = vst.msk [vmem:[#allocation5 + $0x1d0] sm:$0xff] %vm2231_vm1, %v3497_v4  ;;  %4857 = vmatmul.mubr.bf16.gmra.mrb[12].mxu0 %v4296_v57  ;;  %v4142_v57 = vld [vmem:[#allocation4 + $0x33a] sm:$0xff] }
 0x586   : > { %2644 = vst.msk [vmem:[#allocation5 + $0x1c8] sm:$0xff] %vm2624_vm2, %v2516_v22  ;;  %v5147_v23 = vpop.f32.mrb[88].mxu1 }
 0x587   : > { %5532 = vst.msk [vmem:[#allocation6 + $0x8] sm:$0xff] %vm5530_vm3, %v5143_v63  ;;  %v3889_v14 = vpop.permute.xlu1 %3888  ;;  %v6651_v41 = vpop.f32.mrb[89].mxu1 }
 0x588   : > { %4016 = vst.msk [vmem:[#allocation5 + $0x1d0] sm:$0xff] %vm2624_vm2, %v3889_v14  ;;  %v1732_v15 = vpop.permute.xlu0 %1731  ;;  %v5150_v44 = vpop.f32.mrb[90].mxu1 }
 0x589   : > { %1859 = vst.msk [vmem:[#allocation5 + $0x1e0] sm:$0xff] %vm1838_vm0, %v1732_v15  ;;  %v6652_v20 = vpop.f32.mrb[91].mxu1 }
 0x58a   : > { %4240 = vst.msk [vmem:[#allocation5 + $0x478] sm:$0xff] %vm277_vm15, %v4191_v8 }
 0x58b   : > { %v3107_v32 = vpop.permute.xlu1 %3106  ;;  %6758 = vmatmul.mubr.msk.bf16.gmra.mrb[0].mxu1 %vm277_vm15, %v4328_v24 }
 0x58c   : > { %3233 = vst.msk [vmem:[#allocation5 + $0x1e8] sm:$0xff] %vm1838_vm0, %v3107_v32  ;;  %v2125_v5 = vpop.permute.xlu0 %2124  ;;  %6761 = vmatprep.mubr.msk.bf16.mxu1 %vm7204_vm5, %v7195_v1 }
 0x58d   : > { %2252 = vst.msk [vmem:[#allocation5 + $0x1e0] sm:$0xff] %vm2231_vm1, %v2125_v5  ;;  %v4722_v40 = vpop.f32.mrb[200].mxu0  ;;  %v4299_v10 = vld [vmem:[#allocation5 + $0x1c8] sm:$0xff] }
 0x58e   : > { %v5148_v48 = vadd.f32 %v5147_v23, %v4722_v40  ;;  %v4724_v46 = vpop.f32.mrb[201].mxu0  ;;  %v5155_v25 = vpop.f32.mrb[92].mxu1  ;;  %v4143_v23 = vld [vmem:[#allocation4 + $0x342] sm:$0xff] }
 0x58f   : > { %v4725_v58 = vpop.f32.mrb[202].mxu0  ;;  %v3499_v29 = vpop.permute.xlu1 %3498  ;;  %v4300_v51 = vld [vmem:[#allocation5 + $0x1d0] sm:$0xff] }
 0x590   : > { %5533 = vst.msk [vmem:[#allocation6 + $0x10] sm:$0xff] %vm5530_vm3, %v5148_v48  ;;  %v5151_v62 = vadd.f32 %v5150_v44, %v4725_v58  ;;  %v4727_v54 = vpop.f32.mrb[203].mxu0  ;;  %v6655_v3 = vpop.f32.mrb[93].mxu1  ;;  %4864 = vmatprep.mubr.bf16.mxu0 %v4300_v51  ;;  %v4192_v44 = vpack.c.bf16 %v4143_v23, %v4142_v57 }
 0x591   : > { %3625 = vst.msk [vmem:[#allocation5 + $0x1e8] sm:$0xff] %vm2231_vm1, %v3499_v29  ;;  %v2518_v36 = vpop.permute.xlu0 %2517  ;;  %v5158_v49 = vpop.f32.mrb[94].mxu1  ;;  %4865 = vmatmul.mubr.bf16.gmra.mrb[16].mxu0 %v4299_v10 }
 0x592   : > { %5534 = vst.msk [vmem:[#allocation6 + $0x18] sm:$0xff] %vm5530_vm3, %v5151_v62  ;;  %v6656_v34 = vpop.f32.mrb[95].mxu1 }
 0x593   : > { %2645 = vst.msk [vmem:[#allocation5 + $0x1e0] sm:$0xff] %vm2624_vm2, %v2518_v36  ;;  %v3891_v7 = vpop.permute.xlu1 %3890  ;;  %6762 = vmatmul.mubr.msk.bf16.gmra.mrb[4].mxu1 %vm277_vm15, %v4331_v53 }
 0x594   : > { %4017 = vst.msk [vmem:[#allocation5 + $0x1e8] sm:$0xff] %vm2624_vm2, %v3891_v7  ;;  %6765 = vmatprep.mubr.msk.bf16.mxu1 %vm7204_vm5, %v7195_v1  ;;  %v4343_v7 = vld [vmem:[#allocation5 + $0x328] sm:$0xff] }
 0x595   : > { %v1734_v2 = vpop.permute.xlu0 %1733  ;;  %4241 = vst.msk [vmem:[#allocation5 + $0x490] sm:$0xff] %vm277_vm15, %v4192_v44  ;;  %v4352_v44 = vld [vmem:[#allocation5 + $0x370] sm:$0xff] }
 0x596   : > { %1860 = vst.msk [vmem:[#allocation5 + $0x1f8] sm:$0xff] %vm1838_vm0, %v1734_v2  ;;  %v5163_v43 = vpop.f32.mrb[96].mxu1 }
 0x597   : > { %v3109_v47 = vpop.permute.xlu1 %3108  ;;  %v6659_v17 = vpop.f32.mrb[97].mxu1 }
 0x598   : > { %3234 = vst.msk [vmem:[#allocation5 + $0x200] sm:$0xff] %vm1838_vm0, %v3109_v47  ;;  %v5166_v18 = vpop.f32.mrb[98].mxu1 }
 0x599   : > { %v2127_v50 = vpop.permute.xlu0 %2126  ;;  %v4730_v42 = vpop.f32.mrb[204].mxu0 }
 0x59a   : > { %2253 = vst.msk [vmem:[#allocation5 + $0x1f8] sm:$0xff] %vm2231_vm1, %v2127_v50  ;;  %v5156_v19 = vadd.f32 %v5155_v25, %v4730_v42  ;;  %v4732_v39 = vpop.f32.mrb[205].mxu0  ;;  %v6660_v11 = vpop.f32.mrb[99].mxu1  ;;  %v4302_v52 = vld [vmem:[#allocation5 + $0x1e0] sm:$0xff]  ;;  %v4340_v25 = vld [vmem:[#allocation5 + $0x310] sm:$0xff] }
 0x59b   : > { %v4733_v60 = vpop.f32.mrb[206].mxu0  ;;  %v3501_v56 = vpop.permute.xlu1 %3500  ;;  %6766 = vmatmul.mubr.msk.bf16.gmra.mrb[8].mxu1 %vm277_vm15, %v4334_v37  ;;  %v4303_v59 = vld [vmem:[#allocation5 + $0x1e8] sm:$0xff]  ;;  %v4346_v37 = vld [vmem:[#allocation5 + $0x340] sm:$0xff] }
 0x59c   : > { %5535 = vst.msk [vmem:[#allocation6 + $0x20] sm:$0xff] %vm5530_vm3, %v5156_v19  ;;  %v5159_v28 = vadd.f32 %v5158_v49, %v4733_v60  ;;  %v4735_v30 = vpop.f32.mrb[207].mxu0  ;;  %4872 = vmatprep.mubr.bf16.mxu0 %v4303_v59  ;;  %6769 = vmatprep.mubr.msk.bf16.mxu1 %vm7204_vm5, %v7195_v1 }
 0x59d   : > { %3626 = vst.msk [vmem:[#allocation5 + $0x200] sm:$0xff] %vm2231_vm1, %v3501_v56  ;;  %v2520_v31 = vpop.permute.xlu0 %2519  ;;  %4873 = vmatmul.mubr.bf16.gmra.mrb[20].mxu0 %v4302_v52 }
 0x59e   : > { %5536 = vst.msk [vmem:[#allocation6 + $0x28] sm:$0xff] %vm5530_vm3, %v5159_v28  ;;  %v5171_v33 = vpop.f32.mrb[100].mxu1 }
 0x59f   : > { %2646 = vst.msk [vmem:[#allocation5 + $0x1f8] sm:$0xff] %vm2624_vm2, %v2520_v31  ;;  %v3893_v61 = vpop.permute.xlu1 %3892  ;;  %v6663_v0 = vpop.f32.mrb[101].mxu1 }
 0x5a0   : > { %4018 = vst.msk [vmem:[#allocation5 + $0x200] sm:$0xff] %vm2624_vm2, %v3893_v61  ;;  %v5174_v27 = vpop.f32.mrb[102].mxu1 }
 0x5a1   : > { %v1736_v13 = vpop.permute.xlu0 %1735  ;;  %v6664_v6 = vpop.f32.mrb[103].mxu1 }
 0x5a2   : > { %1861 = vst.msk [vmem:[#allocation5 + $0x210] sm:$0xff] %vm1838_vm0, %v1736_v13 }
 0x5a3   : > { %v3111_v45 = vpop.permute.xlu1 %3110  ;;  %6770 = vmatmul.mubr.msk.bf16.gmra.mrb[12].mxu1 %vm277_vm15, %v4337_v9  ;;  %v4349_v9 = vld [vmem:[#allocation5 + $0x358] sm:$0xff] }
 0x5a4   : > { %3235 = vst.msk [vmem:[#allocation5 + $0x218] sm:$0xff] %vm1838_vm0, %v3111_v45  ;;  %6773 = vmatprep.mubr.msk.bf16.mxu1 %vm7204_vm5, %v7195_v1 }
 0x5a5   : > { %v2129_v4 = vpop.permute.xlu0 %2128  ;;  %v4738_v38 = vpop.f32.mrb[208].mxu0 }
 0x5a6   : > { %2254 = vst.msk [vmem:[#allocation5 + $0x210] sm:$0xff] %vm2231_vm1, %v2129_v4  ;;  %v5164_v63 = vadd.f32 %v5163_v43, %v4738_v38  ;;  %v4740_v21 = vpop.f32.mrb[209].mxu0  ;;  %v9090_v22 = vpop.f32.mrb[104].mxu1  ;;  %v4305_v5 = vld [vmem:[#allocation5 + $0x1f8] sm:$0xff] }
 0x5a7   : > { %v4741_v14 = vpop.f32.mrb[210].mxu0  ;;  %v3503_v41 = vpop.permute.xlu1 %3502  ;;  %v4306_v15 = vld [vmem:[#allocation5 + $0x200] sm:$0xff] }
 0x5a8   : > { %5537 = vst.msk [vmem:[#allocation6 + $0x30] sm:$0xff] %vm5530_vm3, %v5164_v63  ;;  %v5167_v20 = vadd.f32 %v5166_v18, %v4741_v14  ;;  %v4743_v24 = vpop.f32.mrb[211].mxu0  ;;  %v6667_v32 = vpop.f32.mrb[105].mxu1  ;;  %4880 = vmatprep.mubr.bf16.mxu0 %v4306_v15 }
 0x5a9   : > { %3627 = vst.msk [vmem:[#allocation5 + $0x218] sm:$0xff] %vm2231_vm1, %v3503_v41  ;;  %v2522_v40 = vpop.permute.xlu0 %2521  ;;  %v9094_v48 = vpop.f32.mrb[106].mxu1  ;;  %4881 = vmatmul.mubr.bf16.gmra.mrb[24].mxu0 %v4305_v5 }
 0x5aa   : > { %5538 = vst.msk [vmem:[#allocation6 + $0x38] sm:$0xff] %vm5530_vm3, %v5167_v20  ;;  %v6668_v46 = vpop.f32.mrb[107].mxu1 }
 0x5ab   : > { %2647 = vst.msk [vmem:[#allocation5 + $0x210] sm:$0xff] %vm2624_vm2, %v2522_v40  ;;  %v3895_v58 = vpop.permute.xlu1 %3894  ;;  %6774 = vmatmul.mubr.msk.bf16.gmra.mrb[16].mxu1 %vm277_vm15, %v4340_v25 }
 0x5ac   : > { %4019 = vst.msk [vmem:[#allocation5 + $0x218] sm:$0xff] %vm2624_vm2, %v3895_v58  ;;  %6777 = vmatprep.mubr.msk.bf16.mxu1 %vm7204_vm5, %v7195_v1 }
 0x5ad   : > { %v1738_v29 = vpop.permute.xlu0 %1737 }
 0x5ae   : > { %1862 = vst.msk [vmem:[#allocation5 + $0x228] sm:$0xff] %vm1838_vm0, %v1738_v29  ;;  %v9104_v51 = vpop.f32.mrb[108].mxu1 }
 0x5af   : > { %v3113_v62 = vpop.permute.xlu1 %3112  ;;  %v6671_v54 = vpop.f32.mrb[109].mxu1 }
 0x5b0   : > { %3236 = vst.msk [vmem:[#allocation5 + $0x230] sm:$0xff] %vm1838_vm0, %v3113_v62  ;;  %v9107_v3 = vpop.f32.mrb[110].mxu1 }
 0x5b1   : > { %v2131_v10 = vpop.permute.xlu0 %2130  ;;  %v4746_v36 = vpop.f32.mrb[212].mxu0 }
 0x5b2   : > { %2255 = vst.msk [vmem:[#allocation5 + $0x228] sm:$0xff] %vm2231_vm1, %v2131_v10  ;;  %v5172_v49 = vadd.f32 %v5171_v33, %v4746_v36  ;;  %v4748_v34 = vpop.f32.mrb[213].mxu0  ;;  %v6672_v53 = vpop.f32.mrb[111].mxu1  ;;  %v4308_v17 = vld [vmem:[#allocation5 + $0x210] sm:$0xff]  ;;  %v4355_v36 = vld [vmem:[#allocation5 + $0x388] sm:$0xff] }
 0x5b3   : > { %v4749_v2 = vpop.f32.mrb[214].mxu0  ;;  %v3505_v43 = vpop.permute.xlu1 %3504  ;;  %6778 = vmatmul.mubr.msk.bf16.gmra.mrb[20].mxu1 %vm277_vm15, %v4343_v7  ;;  %v4309_v16 = vld [vmem:[#allocation5 + $0x218] sm:$0xff] }
 0x5b4   : > { %5539 = vst.msk [vmem:[#allocation6 + $0x40] sm:$0xff] %vm5530_vm3, %v5172_v49  ;;  %v5175_v12 = vadd.f32 %v5174_v27, %v4749_v2  ;;  %v4751_v47 = vpop.f32.mrb[215].mxu0  ;;  %4888 = vmatprep.mubr.bf16.mxu0 %v4309_v16  ;;  %6781 = vmatprep.mubr.msk.bf16.mxu1 %vm7204_vm5, %v7195_v1 }
 0x5b5   : > { %3628 = vst.msk [vmem:[#allocation5 + $0x230] sm:$0xff] %vm2231_vm1, %v3505_v43  ;;  %v2524_v55 = vpop.permute.xlu0 %2523  ;;  %4889 = vmatmul.mubr.bf16.gmra.mrb[28].mxu0 %v4308_v17 }
 0x5b6   : > { %5540 = vst.msk [vmem:[#allocation6 + $0x48] sm:$0xff] %vm5530_vm3, %v5175_v12  ;;  %v9117_v18 = vpop.f32.mrb[112].mxu1 }
 0x5b7   : > { %2648 = vst.msk [vmem:[#allocation5 + $0x228] sm:$0xff] %vm2624_vm2, %v2524_v55  ;;  %v3897_v50 = vpop.permute.xlu1 %3896  ;;  %v6675_v42 = vpop.f32.mrb[113].mxu1 }
 0x5b8   : > { %4020 = vst.msk [vmem:[#allocation5 + $0x230] sm:$0xff] %vm2624_vm2, %v3897_v50  ;;  %v9120_v19 = vpop.f32.mrb[114].mxu1 }
 0x5b9   : > { %v1740_v39 = vpop.permute.xlu0 %1739  ;;  %v6676_v11 = vpop.f32.mrb[115].mxu1 }
 0x5ba   : > { %1863 = vst.msk [vmem:[#allocation5 + $0x240] sm:$0xff] %vm1838_vm0, %v1740_v39 }
 0x5bb   : > { %v3115_v60 = vpop.permute.xlu1 %3114  ;;  %6782 = vmatmul.mubr.msk.bf16.gmra.mrb[24].mxu1 %vm277_vm15, %v4346_v37  ;;  %v5655_v10 = vld [vmem:[#allocation6 + $0x39] ss:$2 sm:$0xff] }
 0x5bc   : > { %3237 = vst.msk [vmem:[#allocation5 + $0x248] sm:$0xff] %vm1838_vm0, %v3115_v60  ;;  %6785 = vmatprep.mubr.msk.bf16.mxu1 %vm7204_vm5, %v7195_v1 }
 0x5bd   : > { %v2133_v56 = vpop.permute.xlu0 %2132  ;;  %v4754_v59 = vpop.f32.mrb[216].mxu0  ;;  %v5653_v43 = vld [vmem:[#allocation6 + $0x48] ss:$2 sm:$0xf] }
 0x5be   : > { %2256 = vst.msk [vmem:[#allocation5 + $0x240] sm:$0xff] %vm2231_vm1, %v2133_v56  ;;  %v5180_v28 = vadd.f32 %v9090_v22, %v4754_v59  ;;  %v4756_v30 = vpop.f32.mrb[217].mxu0  ;;  %v9129_v52 = vpop.f32.mrb[116].mxu1  ;;  %v4311_v8 = vld [vmem:[#allocation5 + $0x228] sm:$0xff] }
 0x5bf   : > { %v4757_v31 = vpop.f32.mrb[218].mxu0  ;;  %v3507_v33 = vpop.permute.xlu1 %3506  ;;  %v4312_v26 = vld [vmem:[#allocation5 + $0x230] sm:$0xff]  ;;  %v5657_v16 = vld [vmem:[#allocation6 + $0x49] ss:$2 sm:$0xf] }
 0x5c0   : > { %5541 = vst.msk [vmem:[#allocation6 + $0x50] sm:$0xff] %vm5530_vm3, %v5180_v28  ;;  %v5183_v35 = vadd.f32 %v9094_v48, %v4757_v31  ;;  %v4759_v61 = vpop.f32.mrb[219].mxu0  ;;  %v6679_v0 = vpop.f32.mrb[117].mxu1  ;;  %4896 = vmatprep.mubr.bf16.mxu0 %v4312_v26  ;;  %v5667_v59 = vmax.f32 %v5653_v43, %v5657_v16 }
 0x5c1   : > { %3629 = vst.msk [vmem:[#allocation5 + $0x248] sm:$0xff] %vm2231_vm1, %v3507_v33  ;;  %v2526_v27 = vpop.permute.xlu0 %2525  ;;  %v9134_v13 = vpop.f32.mrb[118].mxu1  ;;  %4897 = vmatmul.mubr.bf16.gmra.mrb[32].mxu0 %v4311_v8  ;;  %v4358_v8 = vld [vmem:[#allocation5 + $0x3a0] sm:$0xff] }
 0x5c2   : > { %5542 = vst.msk [vmem:[#allocation6 + $0x58] sm:$0xff] %vm5530_vm3, %v5183_v35  ;;  %v6680_v6 = vpop.f32.mrb[119].mxu1 }
 0x5c3   : > { %2649 = vst.msk [vmem:[#allocation5 + $0x240] sm:$0xff] %vm2624_vm2, %v2526_v27  ;;  %v3899_v45 = vpop.permute.xlu1 %3898  ;;  %6786 = vmatmul.mubr.msk.bf16.gmra.mrb[28].mxu1 %vm277_vm15, %v4349_v9 }
 0x5c4   : > { %4021 = vst.msk [vmem:[#allocation5 + $0x248] sm:$0xff] %vm2624_vm2, %v3899_v45  ;;  %6789 = vmatprep.mubr.msk.bf16.mxu1 %vm7204_vm5, %v7195_v1 }
 0x5c5   : > { %v1742_v4 = vpop.permute.xlu0 %1741 }
 0x5c6   : > { %1864 = vst.msk [vmem:[#allocation5 + $0x258] sm:$0xff] %vm1838_vm0, %v1742_v4  ;;  %v9143_v38 = vpop.f32.mrb[120].mxu1 }
 0x5c7   : > { %v3117_v63 = vpop.permute.xlu1 %3116  ;;  %v6683_v21 = vpop.f32.mrb[121].mxu1 }
 0x5c8   : > { %3238 = vst.msk [vmem:[#allocation5 + $0x260] sm:$0xff] %vm1838_vm0, %v3117_v63  ;;  %v9146_v22 = vpop.f32.mrb[122].mxu1 }
 0x5c9   : > { %v2135_v57 = vpop.permute.xlu0 %2134  ;;  %v4762_v23 = vpop.f32.mrb[220].mxu0 }
 0x5ca   : > { %2257 = vst.msk [vmem:[#allocation5 + $0x258] sm:$0xff] %vm2231_vm1, %v2135_v57  ;;  %v5188_v14 = vadd.f32 %v9104_v51, %v4762_v23  ;;  %v4764_v41 = vpop.f32.mrb[221].mxu0  ;;  %v6684_v15 = vpop.f32.mrb[123].mxu1  ;;  %v4314_v48 = vld [vmem:[#allocation5 + $0x240] sm:$0xff] }
 0x5cb   : > { %v4765_v20 = vpop.f32.mrb[222].mxu0  ;;  %v3509_v24 = vpop.permute.xlu1 %3508  ;;  %6790 = vmatmul.mubr.msk.bf16.gmra.mrb[32].mxu1 %vm277_vm15, %v4352_v44  ;;  %v4315_v32 = vld [vmem:[#allocation5 + $0x248] sm:$0xff]  ;;  %v4361_v41 = vld [vmem:[#allocation5 + $0x3b8] sm:$0xff] }
 0x5cc   : > { %5543 = vst.msk [vmem:[#allocation6 + $0x60] sm:$0xff] %vm5530_vm3, %v5188_v14  ;;  %v5191_v5 = vadd.f32 %v9107_v3, %v4765_v20  ;;  %v4767_v40 = vpop.f32.mrb[223].mxu0  ;;  %4904 = vmatprep.mubr.bf16.mxu0 %v4315_v32  ;;  %6793 = vmatprep.mubr.msk.bf16.mxu1 %vm7204_vm5, %v7195_v1  ;;  %v5651_v3 = vld [vmem:[#allocation6 + $0x38] ss:$2 sm:$0xff] }
 0x5cd   : > { %3630 = vst.msk [vmem:[#allocation5 + $0x260] sm:$0xff] %vm2231_vm1, %v3509_v24  ;;  %v2528_v46 = vpop.permute.xlu0 %2527  ;;  %4905 = vmatmul.mubr.bf16.gmra.mrb[36].mxu0 %v4314_v48  ;;  %v5666_v7 = vmax.f32 %v5651_v3, %v5655_v10 }
 0x5ce   : > { %5544 = vst.msk [vmem:[#allocation6 + $0x68] sm:$0xff] %vm5530_vm3, %v5191_v5  ;;  %v9158_v25 = vpop.f32.mrb[124].mxu1 }
 0x5cf   : > { %2650 = vst.msk [vmem:[#allocation5 + $0x258] sm:$0xff] %vm2624_vm2, %v2528_v46  ;;  %v3901_v58 = vpop.permute.xlu1 %3900  ;;  %v6687_v29 = vpop.f32.mrb[125].mxu1 }
 0x5d0   : > { %4022 = vst.msk [vmem:[#allocation5 + $0x260] sm:$0xff] %vm2624_vm2, %v3901_v58  ;;  %v9161_v51 = vpop.f32.mrb[126].mxu1  ;;  %v4364_v29 = vld [vmem:[#allocation5 + $0x3d0] sm:$0xff] }
 0x5d1   : > { %v1744_v62 = vpop.permute.xlu0 %1743  ;;  %v6688_v54 = vpop.f32.mrb[127].mxu1 }
 0x5d2   : > { %1865 = vst.msk [vmem:[#allocation5 + $0x270] sm:$0xff] %vm1838_vm0, %v1744_v62 }
 0x5d3   : > { %v3119_v49 = vpop.permute.xlu1 %3118  ;;  %6794 = vmatmul.mubr.msk.bf16.gmra.mrb[36].mxu1 %vm277_vm15, %v4355_v36  ;;  %v5659_v34 = vld [vmem:[#allocation6 + $0x54] ss:$2 sm:$0xff]  ;;  %v5663_v53 = vld [vmem:[#allocation6 + $0x55] ss:$2 sm:$0xff] }
 0x5d4   : > { %3239 = vst.msk [vmem:[#allocation5 + $0x278] sm:$0xff] %vm1838_vm0, %v3119_v49  ;;  %v5668_v2 = vmax.f32 %v5659_v34, %v5663_v53  ;;  %6797 = vmatprep.mubr.msk.bf16.mxu1 %vm7204_vm5, %v7195_v1 }
 0x5d5   : > { %v2137_v12 = vpop.permute.xlu0 %2136  ;;  %v4770_v47 = vpop.f32.mrb[224].mxu0  ;;  %v5661_v17 = vld [vmem:[#allocation6 + $0x64] ss:$2 sm:$0xf] }
 0x5d6   : > { %2258 = vst.msk [vmem:[#allocation5 + $0x270] sm:$0xff] %vm2231_vm1, %v2137_v12  ;;  %v5196_v55 = vadd.f32 %v9117_v18, %v4770_v47  ;;  %v4772_v50 = vpop.f32.mrb[225].mxu0  ;;  %v9170_v42 = vpop.f32.mrb[128].mxu1  ;;  %v5670_v39 = vmax.f32 %v5666_v7, %v5668_v2  ;;  %v5665_v11 = vld [vmem:[#allocation6 + $0x65] ss:$2 sm:$0xf] }
 0x5d7   : > { %v4773_v37 = vpop.f32.mrb[226].mxu0  ;;  %v3511_v60 = vpop.permute.xlu1 %3510  ;;  %v4318_v56 = vld [vmem:[#allocation5 + $0x260] sm:$0xff]  ;;  %v5669_v28 = vmax.f32 %v5661_v17, %v5665_v11  ;;  %v4317_v33 = vld [vmem:[#allocation5 + $0x258] sm:$0xff] }
 0x5d8   : > { %5545 = vst.msk [vmem:[#allocation6 + $0x70] sm:$0xff] %vm5530_vm3, %v5196_v55  ;;  %v5199_v30 = vadd.f32 %v9120_v19, %v4773_v37  ;;  %v6691_v31 = vpop.f32.mrb[129].mxu1  ;;  %5674 = vrot.lane.b32.xlu1 %v5670_v39, %s7205_s10  ;;  %v4775_v18 = vpop.f32.mrb[227].mxu0  ;;  %4912 = vmatprep.mubr.bf16.mxu0 %v4318_v56  ;;  %v4370_v11 = vld [vmem:[#allocation5 + $0x400] sm:$0xff] }
 0x5d9   : > { %3631 = vst.msk [vmem:[#allocation5 + $0x278] sm:$0xff] %vm2231_vm1, %v3511_v60  ;;  %v2530_v26 = vpop.permute.xlu0 %2529  ;;  %v9176_v35 = vpop.f32.mrb[130].mxu1  ;;  %v5671_v61 = vmax.f32 %v5667_v59, %v5669_v28  ;;  %4913 = vmatmul.mubr.bf16.gmra.mrb[40].mxu0 %v4317_v33  ;;  %v4373_v31 = vld [vmem:[#allocation5 + $0x418] sm:$0xff] }
 0x5da   : > { %5546 = vst.msk [vmem:[#allocation6 + $0x78] sm:$0xff] %vm5530_vm3, %v5199_v30  ;;  %v6692_v0 = vpop.f32.mrb[131].mxu1 }
 0x5db   : > { %2651 = vst.msk [vmem:[#allocation5 + $0x270] sm:$0xff] %vm2624_vm2, %v2530_v26  ;;  %5676 = vrot.lane.b32.xlu0 %v5671_v61, %s7205_s10  ;;  %v3903_v19 = vpop.permute.xlu1 %3902  ;;  %6798 = vmatmul.mubr.msk.bf16.gmra.mrb[40].mxu1 %vm277_vm15, %v4358_v8 }
 0x5dc   : > { %4023 = vst.msk [vmem:[#allocation5 + $0x278] sm:$0xff] %vm2624_vm2, %v3903_v19  ;;  %6801 = vmatprep.mubr.msk.bf16.mxu1 %vm7204_vm5, %v7195_v1 }
 0x5dd   : > { %v1746_v27 = vpop.permute.xlu0 %1745 }
 0x5de   : > { %1866 = vst.msk [vmem:[#allocation5 + $0x288] sm:$0xff] %vm1838_vm0, %v1746_v27  ;;  %v9186_v6 = vpop.f32.mrb[132].mxu1 }
 0x5df   : > { %v3121_v9 = vpop.permute.xlu1 %3120  ;;  %v6695_v45 = vpop.f32.mrb[133].mxu1 }
 0x5e0   : > { %3240 = vst.msk [vmem:[#allocation5 + $0x290] sm:$0xff] %vm1838_vm0, %v3121_v9  ;;  %v9189_v4 = vpop.f32.mrb[134].mxu1  ;;  %v4376_v45 = vld [vmem:[#allocation5 + $0x430] sm:$0xff] }
 0x5e1   : > { %v2139_v63 = vpop.permute.xlu0 %2138  ;;  %v4778_v21 = vpop.f32.mrb[228].mxu0 }
 0x5e2   : > { %2259 = vst.msk [vmem:[#allocation5 + $0x288] sm:$0xff] %vm2231_vm1, %v2139_v63  ;;  %v5204_v57 = vadd.f32 %v9129_v52, %v4778_v21  ;;  %v4780_v23 = vpop.f32.mrb[229].mxu0  ;;  %v6696_v14 = vpop.f32.mrb[135].mxu1  ;;  %v4320_v5 = vld [vmem:[#allocation5 + $0x270] sm:$0xff] }
 0x5e3   : > { %v4781_v15 = vpop.f32.mrb[230].mxu0  ;;  %v3513_v44 = vpop.permute.xlu1 %3512  ;;  %6802 = vmatmul.mubr.msk.bf16.gmra.mrb[44].mxu1 %vm277_vm15, %v4361_v41  ;;  %v4321_v20 = vld [vmem:[#allocation5 + $0x278] sm:$0xff]  ;;  %v4379_v41 = vld [vmem:[#allocation5 + $0x448] sm:$0xff] }
 0x5e4   : > { %5547 = vst.msk [vmem:[#allocation6 + $0x80] sm:$0xff] %vm5530_vm3, %v5204_v57  ;;  %v5207_v24 = vadd.f32 %v9134_v13, %v4781_v15  ;;  %v4783_v32 = vpop.f32.mrb[231].mxu0  ;;  %4920 = vmatprep.mubr.bf16.mxu0 %v4321_v20  ;;  %6805 = vmatprep.mubr.msk.bf16.mxu1 %vm7204_vm5, %v7195_v1 }
 0x5e5   : > { %3632 = vst.msk [vmem:[#allocation5 + $0x290] sm:$0xff] %vm2231_vm1, %v3513_v44  ;;  %v2532_v52 = vpop.permute.xlu0 %2531  ;;  %4921 = vmatmul.mubr.bf16.gmra.mrb[44].mxu0 %v4320_v5 }
 0x5e6   : > { %5548 = vst.msk [vmem:[#allocation6 + $0x88] sm:$0xff] %vm5530_vm3, %v5207_v24  ;;  %v9201_v40 = vpop.f32.mrb[136].mxu1 }
 0x5e7   : > { %2652 = vst.msk [vmem:[#allocation5 + $0x288] sm:$0xff] %vm2624_vm2, %v2532_v52  ;;  %v3905_v48 = vpop.permute.xlu1 %3904  ;;  %v6699_v46 = vpop.f32.mrb[137].mxu1 }
 0x5e8   : > { %4024 = vst.msk [vmem:[#allocation5 + $0x290] sm:$0xff] %vm2624_vm2, %v3905_v48  ;;  %v9204_v13 = vpop.f32.mrb[138].mxu1 }
 0x5e9   : > { %v6700_v58 = vpop.f32.mrb[139].mxu1 }
 0x5eb   : > { %6806 = vmatmul.mubr.msk.bf16.gmra.mrb[48].mxu1 %vm277_vm15, %v4364_v29 }
 0x5ec   : > { %6809 = vmatprep.mubr.msk.bf16.mxu1 %vm7204_vm5, %v7195_v1 }
 0x5ed   : > { %v4786_v62 = vpop.f32.mrb[232].mxu0 }
 0x5ee   : > { %v5212_v54 = vadd.f32 %v9143_v38, %v4786_v62  ;;  %v4788_v3 = vpop.f32.mrb[233].mxu0  ;;  %v9210_v10 = vpop.f32.mrb[140].mxu1  ;;  %v4323_v43 = vld [vmem:[#allocation5 + $0x288] sm:$0xff] }
 0x5ef   : > { %v4789_v36 = vpop.f32.mrb[234].mxu0  ;;  %v6703_v49 = vpop.f32.mrb[141].mxu1  ;;  %v4324_v34 = vld [vmem:[#allocation5 + $0x290] sm:$0xff]  ;;  %v4367_v38 = vld [vmem:[#allocation5 + $0x3e8] sm:$0xff] }
 0x5f0   : > { %5549 = vst.msk [vmem:[#allocation6 + $0x90] sm:$0xff] %vm5530_vm3, %v5212_v54  ;;  %v5215_v53 = vadd.f32 %v9146_v22, %v4789_v36  ;;  %v4791_v7 = vpop.f32.mrb[235].mxu0  ;;  %4928 = vmatprep.mubr.bf16.mxu0 %v4324_v34  ;;  %v9214_v2 = vpop.f32.mrb[142].mxu1  ;;  %v4385_v49 = vld [vmem:[#allocation5 + $0x478] sm:$0xff] }
 0x5f1   : > { %4929 = vmatmul.mubr.bf16.gmra.mrb[48].mxu0 %v4323_v43  ;;  %v6704_v16 = vpop.f32.mrb[143].mxu1 }
 0x5f2   : > { %5550 = vst.msk [vmem:[#allocation6 + $0x98] sm:$0xff] %vm5530_vm3, %v5215_v53 }
 0x5f3   : > { %6810 = vmatmul.mubr.msk.bf16.gmra.mrb[52].mxu1 %vm277_vm15, %v4367_v38 }
 0x5f4   : > { %6813 = vmatprep.mubr.msk.bf16.mxu1 %vm7204_vm5, %v7195_v1 }
 0x5f6   : > { %v9220_v12 = vpop.f32.mrb[144].mxu1 }
 0x5f7   : > { %v6707_v47 = vpop.f32.mrb[145].mxu1 }
 0x5f8   : > { %v9222_v17 = vpop.f32.mrb[146].mxu1 }
 0x5f9   : > { %v4794_v22 = vpop.f32.mrb[236].mxu0  ;;  %v6708_v55 = vpop.f32.mrb[147].mxu1 }
 0x5fa   : > { %v5220_v50 = vadd.f32 %v9158_v25, %v4794_v22  ;;  %v4796_v39 = vpop.f32.mrb[237].mxu0  ;;  %v4388_v22 = vld [vmem:[#allocation5 + $0x490] sm:$0xff] }
 0x5fb   : > { %v4797_v37 = vpop.f32.mrb[238].mxu0  ;;  %6814 = vmatmul.mubr.msk.bf16.gmra.mrb[56].mxu1 %vm277_vm15, %v4370_v11 }
 0x5fc   : > { %5551 = vst.msk [vmem:[#allocation6 + $0xa0] sm:$0xff] %vm5530_vm3, %v5220_v50  ;;  %v5223_v60 = vadd.f32 %v9161_v51, %v4797_v37  ;;  %v4799_v56 = vpop.f32.mrb[239].mxu0  ;;  %6817 = vmatprep.mubr.msk.bf16.mxu1 %vm7204_vm5, %v7195_v1 }
 0x5fe   : > { %5552 = vst.msk [vmem:[#allocation6 + $0xa8] sm:$0xff] %vm5530_vm3, %v5223_v60  ;;  %v9231_v59 = vpop.f32.mrb[148].mxu1 }
 0x5ff   : > { %v6711_v28 = vpop.f32.mrb[149].mxu1 }
 0x600   : > { %v9233_v30 = vpop.f32.mrb[150].mxu1 }
 0x601   : > { %v6712_v25 = vpop.f32.mrb[151].mxu1 }
 0x603   : > { %6818 = vmatmul.mubr.msk.bf16.gmra.mrb[60].mxu1 %vm277_vm15, %v4373_v31 }
 0x604   : > { %6821 = vmatprep.mubr.msk.bf16.mxu1 %vm7204_vm5, %v7195_v1 }
 0x605   : > { %v4802_v18 = vpop.f32.mrb[240].mxu0 }
 0x606   : > { %v5228_v51 = vadd.f32 %v9170_v42, %v4802_v18  ;;  %v4804_v33 = vpop.f32.mrb[241].mxu0  ;;  %v9239_v26 = vpop.f32.mrb[152].mxu1 }
 0x607   : > { %v4805_v61 = vpop.f32.mrb[242].mxu0  ;;  %v6715_v0 = vpop.f32.mrb[153].mxu1 }
 0x608   : > { %5553 = vst.msk [vmem:[#allocation6 + $0xb0] sm:$0xff] %vm5530_vm3, %v5228_v51  ;;  %v5231_v8 = vadd.f32 %v9176_v35, %v4805_v61  ;;  %v4807_v19 = vpop.f32.mrb[243].mxu0  ;;  %v9243_v27 = vpop.f32.mrb[154].mxu1 }
 0x609   : > { %v6716_v9 = vpop.f32.mrb[155].mxu1 }
 0x60a   : > { %5554 = vst.msk [vmem:[#allocation6 + $0xb8] sm:$0xff] %vm5530_vm3, %v5231_v8 }
 0x60b   : > { %6822 = vmatmul.mubr.msk.bf16.gmra.mrb[64].mxu1 %vm277_vm15, %v4376_v45 }
 0x60c   : > { %6825 = vmatprep.mubr.msk.bf16.mxu1 %vm7204_vm5, %v7195_v1 }
 0x60e   : > { %v9249_v42 = vpop.f32.mrb[156].mxu1 }
 0x60f   : > { %v6719_v63 = vpop.f32.mrb[157].mxu1  ;;  %v5730_v53 = vld [vmem:[#allocation6 + $0xa9] ss:$2 sm:$0xff] }
 0x610   : > { %v9251_v21 = vpop.f32.mrb[158].mxu1 }
 0x611   : > { %v4810_v57 = vpop.f32.mrb[244].mxu0  ;;  %v6720_v23 = vpop.f32.mrb[159].mxu1  ;;  %v5728_v43 = vld [vmem:[#allocation6 + $0xb8] ss:$2 sm:$0xf] }
 0x612   : > { %v5236_v35 = vadd.f32 %v9186_v6, %v4810_v57  ;;  %v4812_v14 = vpop.f32.mrb[245].mxu0  ;;  %v4382_v6 = vld [vmem:[#allocation5 + $0x460] sm:$0xff]  ;;  %v5732_v39 = vld [vmem:[#allocation6 + $0xb9] ss:$2 sm:$0xf] }
 0x613   : > { %v4813_v15 = vpop.f32.mrb[246].mxu0  ;;  %6826 = vmatmul.mubr.msk.bf16.gmra.mrb[68].mxu1 %vm277_vm15, %v4379_v41  ;;  %v5742_v18 = vmax.f32 %v5728_v43, %v5732_v39  ;;  %v9314_v39 = vld [vmem:[#allocation11] ss:$0 sm:$0xff] }
 0x614   : > { %5555 = vst.msk [vmem:[#allocation6 + $0xc0] sm:$0xff] %vm5530_vm3, %v5236_v35  ;;  %v5239_v44 = vadd.f32 %v9189_v4, %v4813_v15  ;;  %v4815_v20 = vpop.f32.mrb[247].mxu0  ;;  %6829 = vmatprep.mubr.msk.bf16.mxu1 %vm7204_vm5, %v7195_v1 }
 0x616   : > { %5556 = vst.msk [vmem:[#allocation6 + $0xc8] sm:$0xff] %vm5530_vm3, %v5239_v44  ;;  %v9260_v24 = vpop.f32.mrb[160].mxu1 }
 0x617   : > { %v6723_v32 = vpop.f32.mrb[161].mxu1 }
 0x618   : > { %v9262_v5 = vpop.f32.mrb[162].mxu1 }
 0x619   : > { %v6724_v52 = vpop.f32.mrb[163].mxu1 }
 0x61b   : > { %6830 = vmatmul.mubr.msk.bf16.gmra.mrb[72].mxu1 %vm277_vm15, %v4382_v6 }
 0x61c   : > { %6833 = vmatprep.mubr.msk.bf16.mxu1 %vm7204_vm5, %v7195_v1 }
 0x61d   : > { %v4818_v48 = vpop.f32.mrb[248].mxu0 }
 0x61e   : > { %v5244_v4 = vadd.f32 %v9201_v40, %v4818_v48  ;;  %v4820_v46 = vpop.f32.mrb[249].mxu0  ;;  %v9268_v58 = vpop.f32.mrb[164].mxu1  ;;  %v5726_v40 = vld [vmem:[#allocation6 + $0xa8] ss:$2 sm:$0xff] }
 0x61f   : > { %v4821_v29 = vpop.f32.mrb[250].mxu0  ;;  %v6727_v62 = vpop.f32.mrb[165].mxu1  ;;  %v5741_v55 = vmax.f32 %v5726_v40, %v5730_v53  ;;  %v5637_v46 = vld [vmem:[#allocation6 + $0x1c] ss:$2 sm:$0xff] }
 0x620   : > { %5557 = vst.msk [vmem:[#allocation6 + $0xd0] sm:$0xff] %vm5530_vm3, %v5244_v4  ;;  %v5247_v54 = vadd.f32 %v9204_v13, %v4821_v29  ;;  %v4823_v3 = vpop.f32.mrb[251].mxu0  ;;  %v9272_v36 = vpop.f32.mrb[166].mxu1  ;;  %v5641_v29 = vld [vmem:[#allocation6 + $0x1d] ss:$2 sm:$0xff] }
 0x621   : > { %v6728_v34 = vpop.f32.mrb[167].mxu1  ;;  %v5629_v3 = vld [vmem:[#allocation6] ss:$2 sm:$0xff]  ;;  %v5643_v53 = vld [vmem:[#allocation6 + $0x2d] ss:$2 sm:$0xf] }
 0x622   : > { %5558 = vst.msk [vmem:[#allocation6 + $0xd8] sm:$0xff] %vm5530_vm3, %v5247_v54  ;;  %v5646_v34 = vmax.f32 %v5637_v46, %v5641_v29  ;;  %v5639_v40 = vld [vmem:[#allocation6 + $0x2c] ss:$2 sm:$0xf] }
 0x623   : > { %6834 = vmatmul.mubr.msk.bf16.gmra.mrb[76].mxu1 %vm277_vm15, %v4385_v49  ;;  %v5633_v49 = vld [vmem:[#allocation6 + $0x1] ss:$2 sm:$0xff] }
 0x624   : > { %6837 = vmatprep.mubr.msk.bf16.mxu1 %vm7204_vm5, %v7195_v1  ;;  %vm5775_vm5 = vcmask 1045508  }
 0x625   : > { %vm9391_vm6 = vmor %vm5774_vm4, %vm5775_vm5 }
 0x626   : > { %v9278_v7 = vpop.f32.mrb[168].mxu1 }
 0x627   : > { %v6731_v16 = vpop.f32.mrb[169].mxu1  ;;  %v5734_v38 = vld [vmem:[#allocation6 + $0xc4] ss:$2 sm:$0xff]  ;;  %v5738_v13 = vld [vmem:[#allocation6 + $0xc5] ss:$2 sm:$0xff] }
 0x628   : > { %v9280_v47 = vpop.f32.mrb[170].mxu1  ;;  %v5743_v50 = vmax.f32 %v5734_v38, %v5738_v13  ;;  %v5644_v38 = vmax.f32 %v5629_v3, %v5633_v49  ;;  %v5635_v13 = vld [vmem:[#allocation6 + $0x11] ss:$2 sm:$0xf] }
 0x629   : > { %v4826_v11 = vpop.f32.mrb[252].mxu0  ;;  %v6732_v37 = vpop.f32.mrb[171].mxu1  ;;  %v5736_v60 = vld [vmem:[#allocation6 + $0xd4] ss:$2 sm:$0xf] }
 0x62a   : > { %v5252_v56 = vadd.f32 %v9210_v10, %v4826_v11  ;;  %v4828_v1 = vpop.f32.mrb[253].mxu0  ;;  %v5745_v28 = vmax.f32 %v5741_v55, %v5743_v50  ;;  %v5740_v25 = vld [vmem:[#allocation6 + $0xd5] ss:$2 sm:$0xf]  ;;  %v5647_v55 = vmax.f32 %v5639_v40, %v5643_v53  ;;  %v5648_v50 = vmax.f32 %v5644_v38, %v5646_v34 }
 0x62b   : > { %v4829_v31 = vpop.f32.mrb[254].mxu0  ;;  %6838 = vmatmul.mubr.msk.bf16.gmra.mrb[80].mxu1 %vm277_vm15, %v4388_v22  ;;  %v5744_v51 = vmax.f32 %v5736_v60, %v5740_v25 }
 0x62c   : > { %5559 = vst.msk [vmem:[#allocation6 + $0xe0] sm:$0xff] %vm5530_vm3, %v5252_v56  ;;  %v5255_v33 = vadd.f32 %v9214_v2, %v4829_v31  ;;  %5749 = vrot.lane.b32.xlu1 %v5745_v28, %s7205_s10  ;;  %v4831_v61 = vpop.f32.mrb[255].mxu0 }
 0x62d   : > { %v5746_v0 = vmax.f32 %v5742_v18, %v5744_v51 }
 0x62e   : > { %5560 = vst.msk [vmem:[#allocation6 + $0xe8] sm:$0xff] %vm5530_vm3, %v5255_v33  ;;  %v9288_v8 = vpop.f32.mrb[172].mxu1 }
 0x62f   : > { %5751 = vrot.lane.b32.xlu0 %v5746_v0, %s7205_s10  ;;  %v6735_v10 = vpop.f32.mrb[173].mxu1 }
 0x630   : > { %v9291_v19 = vpop.f32.mrb[174].mxu1 }
 0x631   : > { %v6736_v9 = vpop.f32.mrb[175].mxu1 }
 0x635   : > { %v4834_v45 = vpop.f32.mrb[0].mxu0 }
 0x636   : > { %v5260_v63 = vadd.f32 %v9220_v12, %v4834_v45  ;;  %v4836_v57 = vpop.f32.mrb[1].mxu0  ;;  %v9294_v2 = vpop.f32.mrb[176].mxu1 }
 0x637   : > { %v4837_v23 = vpop.f32.mrb[2].mxu0  ;;  %v6739_v35 = vpop.f32.mrb[177].mxu1 }
 0x638   : > { %5561 = vst.msk [vmem:[#allocation6 + $0xf0] sm:$0xff] %vm5530_vm3, %v5260_v63  ;;  %v5263_v14 = vadd.f32 %v9222_v17, %v4837_v23  ;;  %v4839_v41 = vpop.f32.mrb[3].mxu0  ;;  %v9298_v15 = vpop.f32.mrb[178].mxu1 }
 0x639   : > { %v6740_v44 = vpop.f32.mrb[179].mxu1 }
 0x63a   : > { %5562 = vst.msk [vmem:[#allocation6 + $0xf8] sm:$0xff] %vm5530_vm3, %v5263_v14 }
 0x63e   : > { %v9301_v20 = vpop.f32.mrb[180].mxu1 }
 0x63f   : > { %v6743_v32 = vpop.f32.mrb[181].mxu1 }
 0x640   : > { %v9303_v6 = vpop.f32.mrb[182].mxu1 }
 0x641   : > { %v4842_v12 = vpop.f32.mrb[4].mxu0  ;;  %v6744_v52 = vpop.f32.mrb[183].mxu1 }
 0x642   : > { %v5268_v48 = vadd.f32 %v9231_v59, %v4842_v12  ;;  %v4844_v4 = vpop.f32.mrb[5].mxu0  ;;  %v5631_v59 = vld [vmem:[#allocation6 + $0x10] ss:$2 sm:$0xf] }
 0x643   : > { %v4845_v17 = vpop.f32.mrb[6].mxu0  ;;  %v5645_v37 = vmax.f32 %v5631_v59, %v5635_v13 }
 0x644   : > { %5563 = vst.msk [vmem:[#allocation6 + $0x100] sm:$0xff] %vm5530_vm3, %v5268_v48  ;;  %v5271_v62 = vadd.f32 %v9233_v30, %v4845_v17  ;;  %v4847_v54 = vpop.f32.mrb[7].mxu0 }
 0x645   : > { %v5649_v1 = vmax.f32 %v5645_v37, %v5647_v55 }
 0x646   : > { %5564 = vst.msk [vmem:[#allocation6 + $0x108] sm:$0xff] %vm5530_vm3, %v5271_v62  ;;  %v9310_v43 = vpop.f32.mrb[184].mxu1 }
 0x647   : > { %v6747_v16 = vpop.f32.mrb[185].mxu1 }
 0x648   : > { %v9312_v22 = vpop.f32.mrb[186].mxu1 }
 0x649   : > { %v6748_v30 = vpop.f32.mrb[187].mxu1 }
 0x64a   : > { %v5675_v11 = vpop.permute.xlu1 %5674 }
 0x64b   : > { %v5680_v60 = vsel %vm5530_vm3, %v5648_v50, %v5675_v11 }
 0x64c   : > { %v5689_v56 = vadd.f32 %v9314_v39, %v5680_v60  ;;  %v4850_v28 = vpop.f32.mrb[8].mxu0 }
 0x64d   : > { %v5677_v25 = vpop.permute.xlu0 %5676  ;;  %v5276_v31 = vadd.f32 %v9239_v26, %v4850_v28  ;;  %v4852_v18 = vpop.f32.mrb[9].mxu0 }
 0x64e   : > { %v5691_v51 = vmax.f32 %v5689_v56, 0.0  ;;  %v5681_v33 = vsel %vm5530_vm3, %v5649_v1, %v5677_v25  ;;  %v4853_v61 = vpop.f32.mrb[10].mxu0  ;;  %v9320_v0 = vpop.f32.mrb[188].mxu1 }
 0x64f   : > { %v5690_v10 = vadd.f32 %v9314_v39, %v5681_v33  ;;  %5565 = vst.msk [vmem:[#allocation6 + $0x110] sm:$0xff] %vm5530_vm3, %v5276_v31  ;;  %v5279_v26 = vadd.f32 %v9243_v27, %v4853_v61  ;;  %v4855_v9 = vpop.f32.mrb[11].mxu0  ;;  %v6751_v45 = vpop.f32.mrb[189].mxu1 }
 0x650   : > { %v6330_v63 = vpack.c.bf16 %v5691_v51, %v5691_v51  ;;  %v9330_v57 = vpop.f32.mrb[190].mxu1 }
 0x651   : > { %v5692_v23 = vmax.f32 %v5690_v10, 0.0  ;;  %5566 = vst.msk [vmem:[#allocation6 + $0x118] sm:$0xff] %vm5530_vm3, %v5279_v26  ;;  %v6752_v35 = vpop.f32.mrb[191].mxu1 }
 0x652   : > { %5701 = vst [vmem:[%s9325_s6] sm:$0xf] %v6330_v63 }
 0x653   : > { %v6331_v14 = vpack.c.bf16 %v5692_v23, %v5692_v23 }
 0x655   : > { %5702 = vst [vmem:[%s9325_s6 + $0x4] sm:$0x3] %v6331_v14 }
 0x656   : > { %v9335_v41 = vpop.f32.mrb[192].mxu1 }
 0x657   : > { %v6755_v44 = vpop.f32.mrb[193].mxu1 }
 0x658   : > { %v4858_v32 = vpop.f32.mrb[12].mxu0  ;;  %v9337_v12 = vpop.f32.mrb[194].mxu1 }
 0x659   : > { %v5284_v27 = vadd.f32 %v9249_v42, %v4858_v32  ;;  %v4860_v52 = vpop.f32.mrb[13].mxu0  ;;  %v6756_v48 = vpop.f32.mrb[195].mxu1 }
 0x65a   : > { %v4861_v4 = vpop.f32.mrb[14].mxu0 }
 0x65b   : > { %5567 = vst.msk [vmem:[#allocation6 + $0x120] sm:$0xff] %vm5530_vm3, %v5284_v27  ;;  %v5287_v46 = vadd.f32 %v9251_v21, %v4861_v4  ;;  %v4863_v29 = vpop.f32.mrb[15].mxu0 }
 0x65d   : > { %5568 = vst.msk [vmem:[#allocation6 + $0x128] sm:$0xff] %vm5530_vm3, %v5287_v46 }
 0x65e   : > { %v5363_v17 = vpop.f32.mrb[0].mxu1 }
 0x65f   : > { %5587 = vst.msk [vmem:[#allocation6 + $0x1c0] sm:$0xff] %vm5530_vm3, %v5363_v17  ;;  %v6759_v62 = vpop.f32.mrb[1].mxu1 }
 0x660   : > { %v5366_v54 = vpop.f32.mrb[2].mxu1 }
 0x661   : > { %5588 = vst.msk [vmem:[#allocation6 + $0x1c8] sm:$0xff] %vm5530_vm3, %v5366_v54  ;;  %v6760_v3 = vpop.f32.mrb[3].mxu1 }
 0x664   : > { %v4866_v49 = vpop.f32.mrb[16].mxu0 }
 0x665   : > { %v5292_v42 = vadd.f32 %v9260_v24, %v4866_v49  ;;  %v4868_v34 = vpop.f32.mrb[17].mxu0 }
 0x666   : > { %v4869_v40 = vpop.f32.mrb[18].mxu0  ;;  %v5371_v53 = vpop.f32.mrb[4].mxu1  ;;  %v5716_v34 = vld [vmem:[#allocation6 + $0x8d] ss:$2 sm:$0xff] }
 0x667   : > { %5569 = vst.msk [vmem:[#allocation6 + $0x130] sm:$0xff] %vm5530_vm3, %v5292_v42  ;;  %v5295_v21 = vadd.f32 %v9262_v5, %v4869_v40  ;;  %5589 = vst.msk [vmem:[#allocation6 + $0x1d0] sm:$0xff] %vm5530_vm3, %v5371_v53  ;;  %v4871_v59 = vpop.f32.mrb[19].mxu0  ;;  %v6763_v16 = vpop.f32.mrb[5].mxu1  ;;  %v5712_v42 = vld [vmem:[#allocation6 + $0x8c] ss:$2 sm:$0xff] }
 0x668   : > { %v5374_v38 = vpop.f32.mrb[6].mxu1  ;;  %v5708_v16 = vld [vmem:[#allocation6 + $0x71] ss:$2 sm:$0xff] }
 0x669   : > { %5570 = vst.msk [vmem:[#allocation6 + $0x138] sm:$0xff] %vm5530_vm3, %v5295_v21  ;;  %5590 = vst.msk [vmem:[#allocation6 + $0x1d8] sm:$0xff] %vm5530_vm3, %v5374_v38  ;;  %v6764_v13 = vpop.f32.mrb[7].mxu1  ;;  %v5704_v21 = vld [vmem:[#allocation6 + $0x70] ss:$2 sm:$0xff] }
 0x66a   : > { %v5714_v38 = vld [vmem:[#allocation6 + $0x9c] ss:$2 sm:$0xf]  ;;  %v5721_v13 = vmax.f32 %v5712_v42, %v5716_v34 }
 0x66e   : > { %v5379_v55 = vpop.f32.mrb[8].mxu1 }
 0x66f   : > { %5591 = vst.msk [vmem:[#allocation6 + $0x1e0] sm:$0xff] %vm5530_vm3, %v5379_v55  ;;  %v6767_v24 = vpop.f32.mrb[9].mxu1  ;;  %v5718_v55 = vld [vmem:[#allocation6 + $0x9d] ss:$2 sm:$0xf] }
 0x670   : > { %v4874_v30 = vpop.f32.mrb[20].mxu0  ;;  %v5382_v50 = vpop.f32.mrb[10].mxu1  ;;  %v5719_v24 = vmax.f32 %v5704_v21, %v5708_v16 }
 0x671   : > { %v5300_v11 = vadd.f32 %v9268_v58, %v4874_v30  ;;  %5592 = vst.msk [vmem:[#allocation6 + $0x1e8] sm:$0xff] %vm5530_vm3, %v5382_v50  ;;  %v4876_v5 = vpop.f32.mrb[21].mxu0  ;;  %v6768_v37 = vpop.f32.mrb[11].mxu1  ;;  %v5706_v30 = vld [vmem:[#allocation6 + $0x80] ss:$2 sm:$0xf] }
 0x672   : > { %v4877_v60 = vpop.f32.mrb[22].mxu0  ;;  %v5710_v50 = vld [vmem:[#allocation6 + $0x81] ss:$2 sm:$0xf] }
 0x673   : > { %5571 = vst.msk [vmem:[#allocation6 + $0x140] sm:$0xff] %vm5530_vm3, %v5300_v11  ;;  %v5303_v56 = vadd.f32 %v9272_v36, %v4877_v60  ;;  %v4879_v1 = vpop.f32.mrb[23].mxu0  ;;  %v5722_v11 = vmax.f32 %v5714_v38, %v5718_v55  ;;  %v5720_v60 = vmax.f32 %v5706_v30, %v5710_v50 }
 0x675   : > { %5572 = vst.msk [vmem:[#allocation6 + $0x148] sm:$0xff] %vm5530_vm3, %v5303_v56 }
 0x676   : > { %v5387_v28 = vpop.f32.mrb[12].mxu1 }
 0x677   : > { %5593 = vst.msk [vmem:[#allocation6 + $0x1f0] sm:$0xff] %vm5530_vm3, %v5387_v28  ;;  %v6771_v25 = vpop.f32.mrb[13].mxu1 }
 0x678   : > { %v5390_v31 = vpop.f32.mrb[14].mxu1  ;;  %v5724_v25 = vmax.f32 %v5720_v60, %v5722_v11 }
 0x679   : > { %5594 = vst.msk [vmem:[#allocation6 + $0x1f8] sm:$0xff] %vm5530_vm3, %v5390_v31  ;;  %v6772_v58 = vpop.f32.mrb[15].mxu1 }
 0x67c   : > { %v4882_v18 = vpop.f32.mrb[24].mxu0 }
 0x67d   : > { %v5308_v51 = vadd.f32 %v9278_v7, %v4882_v18  ;;  %v4884_v33 = vpop.f32.mrb[25].mxu0 }
 0x67e   : > { %v4885_v61 = vpop.f32.mrb[26].mxu0  ;;  %v5395_v10 = vpop.f32.mrb[16].mxu1 }
 0x67f   : > { %5573 = vst.msk [vmem:[#allocation6 + $0x150] sm:$0xff] %vm5530_vm3, %v5308_v51  ;;  %v5311_v36 = vadd.f32 %v9280_v47, %v4885_v61  ;;  %5595 = vst.msk [vmem:[#allocation6 + $0x200] sm:$0xff] %vm5530_vm3, %v5395_v10  ;;  %v4887_v26 = vpop.f32.mrb[27].mxu0  ;;  %v6775_v9 = vpop.f32.mrb[17].mxu1 }
 0x680   : > { %v5398_v45 = vpop.f32.mrb[18].mxu1 }
 0x681   : > { %5574 = vst.msk [vmem:[#allocation6 + $0x158] sm:$0xff] %vm5530_vm3, %v5311_v36  ;;  %5596 = vst.msk [vmem:[#allocation6 + $0x208] sm:$0xff] %vm5530_vm3, %v5398_v45  ;;  %v6776_v63 = vpop.f32.mrb[19].mxu1 }
 0x686   : > { %v5403_v23 = vpop.f32.mrb[20].mxu1 }
 0x687   : > { %5597 = vst.msk [vmem:[#allocation6 + $0x210] sm:$0xff] %vm5530_vm3, %v5403_v23  ;;  %v6779_v7 = vpop.f32.mrb[21].mxu1 }
 0x688   : > { %v4890_v35 = vpop.f32.mrb[28].mxu0  ;;  %v5406_v14 = vpop.f32.mrb[22].mxu1 }
 0x689   : > { %v5316_v44 = vadd.f32 %v9288_v8, %v4890_v35  ;;  %5598 = vst.msk [vmem:[#allocation6 + $0x218] sm:$0xff] %vm5530_vm3, %v5406_v14  ;;  %v4892_v47 = vpop.f32.mrb[29].mxu0  ;;  %v6780_v32 = vpop.f32.mrb[23].mxu1 }
 0x68a   : > { %v4893_v27 = vpop.f32.mrb[30].mxu0 }
 0x68b   : > { %5575 = vst.msk [vmem:[#allocation6 + $0x160] sm:$0xff] %vm5530_vm3, %v5316_v44  ;;  %v5319_v52 = vadd.f32 %v9291_v19, %v4893_v27  ;;  %v4895_v48 = vpop.f32.mrb[31].mxu0 }
 0x68d   : > { %5576 = vst.msk [vmem:[#allocation6 + $0x168] sm:$0xff] %vm5530_vm3, %v5319_v52 }
 0x68e   : > { %v5411_v4 = vpop.f32.mrb[24].mxu1 }
 0x68f   : > { %5599 = vst.msk [vmem:[#allocation6 + $0x220] sm:$0xff] %vm5530_vm3, %v5411_v4  ;;  %v6783_v46 = vpop.f32.mrb[25].mxu1 }
 0x690   : > { %v5414_v29 = vpop.f32.mrb[26].mxu1 }
 0x691   : > { %5600 = vst.msk [vmem:[#allocation6 + $0x228] sm:$0xff] %vm5530_vm3, %v5414_v29  ;;  %v6784_v8 = vpop.f32.mrb[27].mxu1 }
 0x694   : > { %v4898_v17 = vpop.f32.mrb[32].mxu0 }
 0x695   : > { %v5324_v62 = vadd.f32 %v9294_v2, %v4898_v17  ;;  %v4900_v54 = vpop.f32.mrb[33].mxu0 }
 0x696   : > { %v4901_v3 = vpop.f32.mrb[34].mxu0  ;;  %v5419_v49 = vpop.f32.mrb[28].mxu1 }
 0x697   : > { %5577 = vst.msk [vmem:[#allocation6 + $0x170] sm:$0xff] %vm5530_vm3, %v5324_v62  ;;  %v5327_v19 = vadd.f32 %v9298_v15, %v4901_v3  ;;  %5601 = vst.msk [vmem:[#allocation6 + $0x230] sm:$0xff] %vm5530_vm3, %v5419_v49  ;;  %v4903_v40 = vpop.f32.mrb[35].mxu0  ;;  %v6787_v53 = vpop.f32.mrb[29].mxu1  ;;  %v5723_v15 = vmax.f32 %v5719_v24, %v5721_v13 }
 0x698   : > { %v5422_v59 = vpop.f32.mrb[30].mxu1 }
 0x699   : > { %5578 = vst.msk [vmem:[#allocation6 + $0x178] sm:$0xff] %vm5530_vm3, %v5327_v19  ;;  %5602 = vst.msk [vmem:[#allocation6 + $0x238] sm:$0xff] %vm5530_vm3, %v5422_v59  ;;  %v6788_v2 = vpop.f32.mrb[31].mxu1 }
 0x69e   : > { %v5750_v5 = vpop.permute.xlu1 %5749  ;;  %v5427_v37 = vpop.f32.mrb[32].mxu1 }
 0x69f   : > { %v5755_v56 = vsel %vm5530_vm3, %v5723_v15, %v5750_v5  ;;  %5603 = vst.msk [vmem:[#allocation6 + $0x240] sm:$0xff] %vm5530_vm3, %v5427_v37  ;;  %v6791_v1 = vpop.f32.mrb[33].mxu1 }
 0x6a0   : > { %v5764_v28 = vadd.f32 %v9314_v39, %v5755_v56  ;;  %v4906_v31 = vpop.f32.mrb[36].mxu0  ;;  %v5430_v58 = vpop.f32.mrb[34].mxu1 }
 0x6a1   : > { %v5752_v18 = vpop.permute.xlu0 %5751  ;;  %v5332_v51 = vadd.f32 %v9301_v20, %v4906_v31  ;;  %5604 = vst.msk [vmem:[#allocation6 + $0x248] sm:$0xff] %vm5530_vm3, %v5430_v58  ;;  %v4908_v33 = vpop.f32.mrb[37].mxu0  ;;  %v5822_v31 = vld [vmem:[#allocation6 + $0x145] ss:$2 sm:$0xf] }
 0x6a2   : > { %v5766_v61 = vmax.f32 %v5764_v28, 0.0  ;;  %v5756_v10 = vsel %vm5530_vm3, %v5724_v25, %v5752_v18  ;;  %v6792_v36 = vpop.f32.mrb[35].mxu1  ;;  %v4909_v26 = vpop.f32.mrb[38].mxu0  ;;  %v5810_v33 = vld [vmem:[#allocation6 + $0x128] ss:$2 sm:$0xf] }
 0x6a3   : > { %v5765_v9 = vadd.f32 %v9314_v39, %v5756_v10  ;;  %5579 = vst.msk [vmem:[#allocation6 + $0x180] sm:$0xff] %vm5530_vm3, %v5332_v51  ;;  %v5335_v45 = vadd.f32 %v9303_v6, %v4909_v26  ;;  %v4911_v63 = vpop.f32.mrb[39].mxu0 }
 0x6a4   : > { %v6332_v23 = vpack.c.bf16 %v5766_v61, %v5766_v61 }
 0x6a5   : > { %v5767_v20 = vmax.f32 %v5765_v9, 0.0  ;;  %5580 = vst.msk [vmem:[#allocation6 + $0x188] sm:$0xff] %vm5530_vm3, %v5335_v45 }
 0x6a6   : > { %v5777_v7 = vrot.slane %v6332_v23, 6  ;;  %v5435_v35 = vpop.f32.mrb[36].mxu1 }
 0x6a7   : > { %v6333_v14 = vpack.c.bf16 %v5767_v20, %v5767_v20  ;;  %5605 = vst.msk [vmem:[#allocation6 + $0x250] sm:$0xff] %vm5530_vm3, %v5435_v35  ;;  %v6795_v44 = vpop.f32.mrb[37].mxu1 }
 0x6a8   : > { %v5778_v47 = vrot.slane %v5777_v7, 4  ;;  %5783 = vst [vmem:[%s9325_s6 + $0x4] sm:$0xc] %v5777_v7  ;;  %v5438_v6 = vpop.f32.mrb[38].mxu1 }
 0x6a9   : > { %v5779_v27 = vrot.slane %v6333_v14, 6  ;;  %5606 = vst.msk [vmem:[#allocation6 + $0x258] sm:$0xff] %vm5530_vm3, %v5438_v6  ;;  %v6796_v52 = vpop.f32.mrb[39].mxu1 }
 0x6ab   : > { %v5780_v48 = vsel %vm9391_vm6, %v5778_v47, %v5779_v27 }
 0x6ac   : > { %5784 = vst [vmem:[%s9325_s6 + $0x8] sm:$0xf] %v5780_v48  ;;  %v4914_v4 = vpop.f32.mrb[40].mxu0 }
 0x6ad   : > { %v5340_v46 = vadd.f32 %v9310_v43, %v4914_v4  ;;  %v4916_v29 = vpop.f32.mrb[41].mxu0 }
 0x6ae   : > { %v4917_v8 = vpop.f32.mrb[42].mxu0  ;;  %v5443_v17 = vpop.f32.mrb[40].mxu1 }
 0x6af   : > { %5581 = vst.msk [vmem:[#allocation6 + $0x190] sm:$0xff] %vm5530_vm3, %v5340_v46  ;;  %v5343_v62 = vadd.f32 %v9312_v22, %v4917_v8  ;;  %5607 = vst.msk [vmem:[#allocation6 + $0x260] sm:$0xff] %vm5530_vm3, %v5443_v17  ;;  %v4919_v54 = vpop.f32.mrb[43].mxu0  ;;  %v6799_v3 = vpop.f32.mrb[41].mxu1  ;;  %v5816_v46 = vld [vmem:[#allocation6 + $0x134] ss:$2 sm:$0xff] }
 0x6b0   : > { %v5446_v49 = vpop.f32.mrb[42].mxu1 }
 0x6b1   : > { %5582 = vst.msk [vmem:[#allocation6 + $0x198] sm:$0xff] %vm5530_vm3, %v5343_v62  ;;  %5608 = vst.msk [vmem:[#allocation6 + $0x268] sm:$0xff] %vm5530_vm3, %v5446_v49  ;;  %v6800_v42 = vpop.f32.mrb[43].mxu1  ;;  %v5820_v49 = vld [vmem:[#allocation6 + $0x135] ss:$2 sm:$0xff] }
 0x6b2   : > { %v5972_v42 = vld [vmem:[#allocation6 + $0x224] ss:$2 sm:$0xf] }
 0x6b6   : > { %v5451_v34 = vpop.f32.mrb[44].mxu1  ;;  %v5883_v1 = vld [vmem:[#allocation6 + $0x188] ss:$2 sm:$0xff]  ;;  %v5887_v28 = vld [vmem:[#allocation6 + $0x189] ss:$2 sm:$0xff] }
 0x6b7   : > { %5609 = vst.msk [vmem:[#allocation6 + $0x270] sm:$0xff] %vm5530_vm3, %v5451_v34  ;;  %v6803_v43 = vpop.f32.mrb[45].mxu1  ;;  %v5898_v10 = vmax.f32 %v5883_v1, %v5887_v28 }
 0x6b8   : > { %v4922_v19 = vpop.f32.mrb[44].mxu0  ;;  %v5454_v40 = vpop.f32.mrb[46].mxu1  ;;  %v5885_v25 = vld [vmem:[#allocation6 + $0x198] ss:$2 sm:$0xf] }
 0x6b9   : > { %v5348_v53 = vadd.f32 %v9320_v0, %v4922_v19  ;;  %5610 = vst.msk [vmem:[#allocation6 + $0x278] sm:$0xff] %vm5530_vm3, %v5454_v40  ;;  %v4924_v22 = vpop.f32.mrb[45].mxu0  ;;  %v6804_v21 = vpop.f32.mrb[47].mxu1  ;;  %v5889_v26 = vld [vmem:[#allocation6 + $0x199] ss:$2 sm:$0xf] }
 0x6ba   : > { %v4925_v59 = vpop.f32.mrb[46].mxu0  ;;  %v5899_v44 = vmax.f32 %v5885_v25, %v5889_v26  ;;  %v5808_v19 = vld [vmem:[#allocation6 + $0x118] ss:$2 sm:$0xff]  ;;  %v5976_v40 = vld [vmem:[#allocation6 + $0x225] ss:$2 sm:$0xf] }
 0x6bb   : > { %5583 = vst.msk [vmem:[#allocation6 + $0x1a0] sm:$0xff] %vm5530_vm3, %v5348_v53  ;;  %v5351_v16 = vadd.f32 %v9330_v57, %v4925_v59  ;;  %v4927_v38 = vpop.f32.mrb[47].mxu0  ;;  %v5812_v21 = vld [vmem:[#allocation6 + $0x119] ss:$2 sm:$0xff] }
 0x6bc   : > { %v5964_v59 = vld [vmem:[#allocation6 + $0x208] ss:$2 sm:$0xf] }
 0x6bd   : > { %5584 = vst.msk [vmem:[#allocation6 + $0x1a8] sm:$0xff] %vm5530_vm3, %v5351_v16 }
 0x6be   : > { %v5459_v2 = vpop.f32.mrb[48].mxu1  ;;  %v6037_v48 = vld [vmem:[#allocation6 + $0x268] ss:$2 sm:$0xff]  ;;  %v6041_v4 = vld [vmem:[#allocation6 + $0x269] ss:$2 sm:$0xff] }
 0x6bf   : > { %5611 = vst.msk [vmem:[#allocation6 + $0x280] sm:$0xff] %vm5530_vm3, %v5459_v2  ;;  %v6807_v13 = vpop.f32.mrb[49].mxu1  ;;  %v6052_v43 = vmax.f32 %v6037_v48, %v6041_v4  ;;  %v5825_v2 = vmax.f32 %v5816_v46, %v5820_v49  ;;  %v5871_v48 = vld [vmem:[#allocation6 + $0x17c] ss:$2 sm:$0xf] }
 0x6c0   : > { %v5462_v55 = vpop.f32.mrb[50].mxu1  ;;  %v6039_v17 = vld [vmem:[#allocation6 + $0x278] ss:$2 sm:$0xf] }
 0x6c1   : > { %5612 = vst.msk [vmem:[#allocation6 + $0x288] sm:$0xff] %vm5530_vm3, %v5462_v55  ;;  %v6808_v0 = vpop.f32.mrb[51].mxu1  ;;  %v6043_v62 = vld [vmem:[#allocation6 + $0x279] ss:$2 sm:$0xf] }
 0x6c2   : > { %v6053_v22 = vmax.f32 %v6039_v17, %v6043_v62  ;;  %v5968_v13 = vld [vmem:[#allocation6 + $0x209] ss:$2 sm:$0xf]  ;;  %v5875_v4 = vld [vmem:[#allocation6 + $0x17d] ss:$2 sm:$0xf] }
 0x6c3   : > { %v5796_v46 = vld [vmem:[#allocation6 + $0x10c] ss:$2 sm:$0xf]  ;;  %v5863_v17 = vld [vmem:[#allocation6 + $0x160] ss:$2 sm:$0xf] }
 0x6c4   : > { %v4930_v24 = vpop.f32.mrb[48].mxu0  ;;  %v5867_v62 = vld [vmem:[#allocation6 + $0x161] ss:$2 sm:$0xf] }
 0x6c5   : > { %v5356_v30 = vadd.f32 %v9335_v41, %v4930_v24  ;;  %v4932_v50 = vpop.f32.mrb[49].mxu0  ;;  %v5818_v41 = vld [vmem:[#allocation6 + $0x144] ss:$2 sm:$0xf]  ;;  %v5980_v24 = vmax.f32 %v5972_v42, %v5976_v40 }
 0x6c6   : > { %v4933_v11 = vpop.f32.mrb[50].mxu0  ;;  %v5467_v15 = vpop.f32.mrb[52].mxu1  ;;  %v5826_v35 = vmax.f32 %v5818_v41, %v5822_v31  ;;  %v5974_v50 = vld [vmem:[#allocation6 + $0x215] ss:$2 sm:$0xff]  ;;  %v5794_v40 = vld [vmem:[#allocation6 + $0xfc] ss:$2 sm:$0xff] }
 0x6c7   : > { %5585 = vst.msk [vmem:[#allocation6 + $0x1b0] sm:$0xff] %vm5530_vm3, %v5356_v30  ;;  %v5359_v57 = vadd.f32 %v9337_v12, %v4933_v11  ;;  %5613 = vst.msk [vmem:[#allocation6 + $0x290] sm:$0xff] %vm5530_vm3, %v5467_v15  ;;  %v4935_v5 = vpop.f32.mrb[51].mxu0  ;;  %v6811_v37 = vpop.f32.mrb[53].mxu1  ;;  %v5970_v30 = vld [vmem:[#allocation6 + $0x214] ss:$2 sm:$0xff]  ;;  %v5823_v11 = vmax.f32 %v5808_v19, %v5812_v21  ;;  %v5978_v15 = vmax.f32 %v5964_v59, %v5968_v13 }
 0x6c8   : > { %v5470_v60 = vpop.f32.mrb[54].mxu1  ;;  %v5814_v12 = vld [vmem:[#allocation6 + $0x129] ss:$2 sm:$0xf]  ;;  %v5966_v5 = vld [vmem:[#allocation6 + $0x1f9] ss:$2 sm:$0xff] }
 0x6c9   : > { %5586 = vst.msk [vmem:[#allocation6 + $0x1b8] sm:$0xff] %vm5530_vm3, %v5359_v57  ;;  %5614 = vst.msk [vmem:[#allocation6 + $0x298] sm:$0xff] %vm5530_vm3, %v5470_v60  ;;  %v6812_v56 = vpop.f32.mrb[55].mxu1  ;;  %v5824_v52 = vmax.f32 %v5810_v33, %v5814_v12  ;;  %v5962_v57 = vld [vmem:[#allocation6 + $0x1f8] ss:$2 sm:$0xff]  ;;  %v5827_v37 = vmax.f32 %v5823_v11, %v5825_v2  ;;  %v5979_v60 = vmax.f32 %v5970_v30, %v5974_v50 }
 0x6ca   : > { %v5982_v56 = vmax.f32 %v5978_v15, %v5980_v24  ;;  %v5977_v28 = vmax.f32 %v5962_v57, %v5966_v5  ;;  %v5792_v49 = vld [vmem:[#allocation6 + $0xf1] ss:$2 sm:$0xf]  ;;  %v6025_v21 = vld [vmem:[#allocation6 + $0x25c] ss:$2 sm:$0xf] }
 0x6cb   : > { %v5828_v54 = vmax.f32 %v5824_v52, %v5826_v35  ;;  %v6027_v19 = vld [vmem:[#allocation6 + $0x24d] ss:$2 sm:$0xff]  ;;  %v6029_v59 = vld [vmem:[#allocation6 + $0x25d] ss:$2 sm:$0xf] }
 0x6cc   : > { %v5981_v31 = vmax.f32 %v5977_v28, %v5979_v60  ;;  %v6015_v2 = vld [vmem:[#allocation6 + $0x230] ss:$2 sm:$0xff]  ;;  %v6019_v13 = vld [vmem:[#allocation6 + $0x231] ss:$2 sm:$0xff]  ;;  %v5790_v60 = vld [vmem:[#allocation6 + $0xe1] ss:$2 sm:$0xff] }
 0x6cd   : > { %v6017_v11 = vld [vmem:[#allocation6 + $0x240] ss:$2 sm:$0xf]  ;;  %v6021_v15 = vld [vmem:[#allocation6 + $0x241] ss:$2 sm:$0xf] }
 0x6ce   : > { %v5475_v58 = vpop.f32.mrb[56].mxu1  ;;  %v5891_v18 = vld [vmem:[#allocation6 + $0x1a4] ss:$2 sm:$0xff]  ;;  %v5895_v51 = vld [vmem:[#allocation6 + $0x1a5] ss:$2 sm:$0xff] }
 0x6cf   : > { %v6815_v61 = vpop.f32.mrb[57].mxu1  ;;  %v5900_v36 = vmax.f32 %v5891_v18, %v5895_v51  ;;  %v6045_v63 = vld [vmem:[#allocation6 + $0x284] ss:$2 sm:$0xff]  ;;  %v6049_v14 = vld [vmem:[#allocation6 + $0x285] ss:$2 sm:$0xff] }
 0x6d0   : > { %v5478_v9 = vpop.f32.mrb[58].mxu1  ;;  %v5893_v45 = vld [vmem:[#allocation6 + $0x1b4] ss:$2 sm:$0xf]  ;;  %v6054_v8 = vmax.f32 %v6045_v63, %v6049_v14 }
 0x6d1   : > { %v6816_v23 = vpop.f32.mrb[59].mxu1  ;;  %v5902_v20 = vmax.f32 %v5898_v10, %v5900_v36  ;;  %v5897_v7 = vld [vmem:[#allocation6 + $0x1b5] ss:$2 sm:$0xf] }
 0x6d2   : > { %v5901_v47 = vmax.f32 %v5893_v45, %v5897_v7  ;;  %v6047_v6 = vld [vmem:[#allocation6 + $0x294] ss:$2 sm:$0xf]  ;;  %v6051_v27 = vld [vmem:[#allocation6 + $0x295] ss:$2 sm:$0xf]  ;;  %v6056_v38 = vmax.f32 %v6052_v43, %v6054_v8 }
 0x6d3   : > { %5906 = vrot.lane.b32.xlu0 %v5902_v20, %s7205_s10  ;;  %v6055_v3 = vmax.f32 %v6047_v6, %v6051_v27  ;;  %v5861_v6 = vld [vmem:[#allocation6 + $0x150] ss:$2 sm:$0xff]  ;;  %v5865_v27 = vld [vmem:[#allocation6 + $0x151] ss:$2 sm:$0xff] }
 0x6d4   : > { %v5903_v29 = vmax.f32 %v5899_v44, %v5901_v47  ;;  %v5869_v44 = vld [vmem:[#allocation6 + $0x16c] ss:$2 sm:$0xff]  ;;  %v5873_v47 = vld [vmem:[#allocation6 + $0x16d] ss:$2 sm:$0xff]  ;;  %v5876_v8 = vmax.f32 %v5861_v6, %v5865_v27 }
 0x6d5   : > { %v6057_v0 = vmax.f32 %v6053_v22, %v6055_v3  ;;  %v5878_v52 = vmax.f32 %v5869_v44, %v5873_v47  ;;  %v5788_v3 = vld [vmem:[#allocation6 + $0xf0] ss:$2 sm:$0xf]  ;;  %v5877_v22 = vmax.f32 %v5863_v17, %v5867_v62 }
 0x6d6   : > { %5908 = vrot.lane.b32.xlu1 %v5903_v29, %s7205_s10  ;;  %v5483_v34 = vpop.f32.mrb[60].mxu1  ;;  %v5800_v29 = vld [vmem:[#allocation6 + $0x10d] ss:$2 sm:$0xf]  ;;  %v6023_v43 = vld [vmem:[#allocation6 + $0x24c] ss:$2 sm:$0xff] }
 0x6d7   : > { %v6819_v53 = vpop.f32.mrb[61].mxu1  ;;  %5833 = vrot.lane.b32.xlu0 %v5828_v54, %s7205_s10  ;;  %v5879_v54 = vmax.f32 %v5871_v48, %v5875_v4  ;;  %v5880_v42 = vmax.f32 %v5876_v8, %v5878_v52  ;;  %v5804_v34 = vmax.f32 %v5796_v46, %v5800_v29  ;;  %v6032_v50 = vmax.f32 %v6023_v43, %v6027_v19  ;;  %v5940_v29 = vld [vmem:[#allocation6 + $0x1c0] ss:$2 sm:$0xff]  ;;  %v5944_v8 = vld [vmem:[#allocation6 + $0x1c1] ss:$2 sm:$0xff] }
 0x6d8   : > { %v5486_v16 = vpop.f32.mrb[62].mxu1 }
 0x6d9   : > { %v6820_v55 = vpop.f32.mrb[63].mxu1  ;;  %v5881_v30 = vmax.f32 %v5877_v22, %v5879_v54  ;;  %v5955_v22 = vmax.f32 %v5940_v29, %v5944_v8 }
 0x6da   : > { %6060 = vrot.lane.b32.xlu1 %v6056_v38, %s7205_s10  ;;  %v5802_v38 = vmax.f32 %v5788_v3, %v5792_v49  ;;  %v5786_v55 = vld [vmem:[#allocation6 + $0xe0] ss:$2 sm:$0xff] }
 0x6db   : > { %6062 = vrot.lane.b32.xlu0 %v6057_v0, %s7205_s10  ;;  %v5798_v0 = vld [vmem:[#allocation6 + $0xfd] ss:$2 sm:$0xff] }
 0x6dc   : > { %v5806_v5 = vmax.f32 %v5802_v38, %v5804_v34 }
 0x6de   : > { %5831 = vrot.lane.b32.xlu1 %v5827_v37, %s7205_s10  ;;  %v5491_v1 = vpop.f32.mrb[64].mxu1  ;;  %v6033_v37 = vmax.f32 %v6025_v21, %v6029_v59 }
 0x6df   : > { %v6823_v41 = vpop.f32.mrb[65].mxu1  ;;  %5987 = vrot.lane.b32.xlu0 %v5982_v56, %s7205_s10  ;;  %v5950_v56 = vld [vmem:[#allocation6 + $0x1ec] ss:$2 sm:$0xf] }
 0x6e0   : > { %v5494_v25 = vpop.f32.mrb[66].mxu1 }
 0x6e1   : > { %v6824_v58 = vpop.f32.mrb[67].mxu1  ;;  %v6030_v25 = vmax.f32 %v6015_v2, %v6019_v13 }
 0x6e2   : > { %5985 = vrot.lane.b32.xlu1 %v5981_v31, %s7205_s10  ;;  %v5803_v31 = vmax.f32 %v5794_v40, %v5798_v0  ;;  %v5954_v58 = vld [vmem:[#allocation6 + $0x1ed] ss:$2 sm:$0xf] }
 0x6e6   : > { %v5499_v18 = vpop.f32.mrb[68].mxu1 }
 0x6e7   : > { %v6827_v51 = vpop.f32.mrb[69].mxu1 }
 0x6e8   : > { %v5502_v33 = vpop.f32.mrb[70].mxu1 }
 0x6e9   : > { %v6828_v12 = vpop.f32.mrb[71].mxu1  ;;  %v6031_v33 = vmax.f32 %v6017_v11, %v6021_v15 }
 0x6ee   : > { %v5507_v61 = vpop.f32.mrb[72].mxu1 }
 0x6ef   : > { %v6831_v10 = vpop.f32.mrb[73].mxu1 }
 0x6f0   : > { %v5510_v36 = vpop.f32.mrb[74].mxu1  ;;  %v6034_v10 = vmax.f32 %v6030_v25, %v6032_v50 }
 0x6f1   : > { %v6832_v26 = vpop.f32.mrb[75].mxu1  ;;  %v5801_v36 = vmax.f32 %v5786_v55, %v5790_v60 }
 0x6f2   : > { %v5942_v26 = vld [vmem:[#allocation6 + $0x1d0] ss:$2 sm:$0xf] }
 0x6f3   : > { %v5805_v27 = vmax.f32 %v5801_v36, %v5803_v31 }
 0x6f6   : > { %v5515_v9 = vpop.f32.mrb[76].mxu1 }
 0x6f7   : > { %v6835_v45 = vpop.f32.mrb[77].mxu1  ;;  %v5946_v9 = vld [vmem:[#allocation6 + $0x1d1] ss:$2 sm:$0xf] }
 0x6f8   : > { %v5518_v63 = vpop.f32.mrb[78].mxu1  ;;  %v5956_v46 = vmax.f32 %v5942_v26, %v5946_v9 }
 0x6f9   : > { %v6836_v23 = vpop.f32.mrb[79].mxu1 }
 0x6fa   : > { %v6035_v23 = vmax.f32 %v6031_v33, %v6033_v37 }
 0x6fe   : > { %v5523_v20 = vpop.f32.mrb[80].mxu1 }
 0x6ff   : > { %v6839_v7 = vpop.f32.mrb[81].mxu1  ;;  %v5958_v20 = vmax.f32 %v5950_v56, %v5954_v58 }
 0x700   : > { %v5526_v35 = vpop.f32.mrb[82].mxu1  ;;  %v5948_v7 = vld [vmem:[#allocation6 + $0x1dc] ss:$2 sm:$0xff] }
 0x701   : > { %v6840_v14 = vpop.f32.mrb[83].mxu1  ;;  %v5952_v35 = vld [vmem:[#allocation6 + $0x1dd] ss:$2 sm:$0xff]  ;;  %v5960_v43 = vmax.f32 %v5956_v46, %v5958_v20 }
 0x702   : > { %v5957_v3 = vmax.f32 %v5948_v7, %v5952_v35 }
 0x704   : > { %v5959_v55 = vmax.f32 %v5955_v22, %v5957_v3 }
 0x745   : > { %v5907_v53 = vpop.permute.xlu0 %5906 }
 0x746   : > { %v5912_v16 = vsel %vm5530_vm3, %v5880_v42, %v5907_v53 }
 0x747   : > { %v5921_v24 = vadd.f32 %v9314_v39, %v5912_v16 }
 0x748   : > { %v5909_v57 = vpop.permute.xlu1 %5908 }
 0x749   : > { %v5923_v1 = vmax.f32 %v5921_v24, 0.0  ;;  %v5913_v28 = vsel %vm5530_vm3, %v5881_v30, %v5909_v57  ;;  %v5834_v41 = vpop.permute.xlu0 %5833 }
 0x74a   : > { %v5922_v18 = vadd.f32 %v9314_v39, %v5913_v28  ;;  %v5838_v51 = vsel %vm5530_vm3, %v5806_v5, %v5834_v41 }
 0x74b   : > { %v6336_v12 = vpack.c.bf16 %v5923_v1, %v5923_v1  ;;  %v5847_v61 = vadd.f32 %v9314_v39, %v5838_v51 }
 0x74c   : > { %v5924_v45 = vmax.f32 %v5922_v18, 0.0  ;;  %v6061_v63 = vpop.permute.xlu1 %6060 }
 0x74d   : > { %v5931_v14 = vrot.slane %v6336_v12, 6  ;;  %v5849_v44 = vmax.f32 %v5847_v61, 0.0  ;;  %v6066_v47 = vsel %vm5530_vm3, %v6034_v10, %v6061_v63  ;;  %v6063_v6 = vpop.permute.xlu0 %6062 }
 0x74e   : > { %v6337_v52 = vpack.c.bf16 %v5924_v45, %v5924_v45  ;;  %v6075_v48 = vadd.f32 %v9314_v39, %v6066_v47  ;;  %v6067_v4 = vsel %vm5530_vm3, %v6035_v23, %v6063_v6 }
 0x74f   : > { %v5932_v17 = vrot.slane %v5931_v14, 4  ;;  %5937 = vst [vmem:[%s9325_s6 + $0x10] sm:$0xc] %v5931_v14  ;;  %v6335_v62 = vpack.c.bf16 %v5849_v44, %v5849_v44  ;;  %v6076_v54 = vadd.f32 %v9314_v39, %v6067_v4 }
 0x750   : > { %v5933_v49 = vrot.slane %v6337_v52, 6  ;;  %v6077_v42 = vmax.f32 %v6075_v48, 0.0  ;;  %v5832_v34 = vpop.permute.xlu1 %5831 }
 0x751   : > { %5859 = vst [vmem:[%s9325_s6 + $0x10] sm:$0x3] %v6335_v62  ;;  %v6078_v19 = vmax.f32 %v6076_v54, 0.0  ;;  %v5837_v40 = vsel %vm5530_vm3, %v5805_v27, %v5832_v34  ;;  %v5988_v53 = vpop.permute.xlu0 %5987 }
 0x752   : > { %v5934_v21 = vsel %vm9391_vm6, %v5932_v17, %v5933_v49  ;;  %v6340_v59 = vpack.c.bf16 %v6077_v42, %v6077_v42  ;;  %v5846_v16 = vadd.f32 %v9314_v39, %v5837_v40  ;;  %v5992_v38 = vsel %vm5530_vm3, %v5960_v43, %v5988_v53 }
 0x753   : > { %5938 = vst [vmem:[%s9325_s6 + $0x14] sm:$0xf] %v5934_v21  ;;  %v6341_v2 = vpack.c.bf16 %v6078_v19, %v6078_v19  ;;  %v6001_v13 = vadd.f32 %v9314_v39, %v5992_v38 }
 0x754   : > { %v6085_v0 = vrot.slane %v6340_v59, 6  ;;  %v5848_v24 = vmax.f32 %v5846_v16, 0.0  ;;  %v5986_v30 = vpop.permute.xlu1 %5985 }
 0x755   : > { %v6087_v50 = vrot.slane %v6341_v2, 6  ;;  %v6003_v11 = vmax.f32 %v6001_v13, 0.0  ;;  %v5991_v15 = vsel %vm5530_vm3, %v5959_v55, %v5986_v30 }
 0x756   : > { %v6086_v57 = vrot.slane %v6085_v0, 4  ;;  %6091 = vst [vmem:[%s9325_s6 + $0x1c] sm:$0xc] %v6085_v0  ;;  %v6334_v5 = vpack.c.bf16 %v5848_v24, %v5848_v24  ;;  %v6000_v37 = vadd.f32 %v9314_v39, %v5991_v15 }
 0x757   : > { %v6339_v60 = vpack.c.bf16 %v6003_v11, %v6003_v11 }
 0x758   : > { %v6088_v56 = vsel %vm9391_vm6, %v6086_v57, %v6087_v50  ;;  %5858 = vst [vmem:[%s9325_s6 + $0xc] sm:$0xf] %v6334_v5  ;;  %v6002_v1 = vmax.f32 %v6000_v37, 0.0 }
 0x759   : > { %6092 = vst [vmem:[%s9325_s6 + $0x20] sm:$0xf] %v6088_v56  ;;  %6013 = vst [vmem:[%s9325_s6 + $0x1c] sm:$0x3] %v6339_v60 }
 0x75a   : > { %v6338_v28 = vpack.c.bf16 %v6002_v1, %v6002_v1 }
 0x75c   : > { %6012 = vst [vmem:[%s9325_s6 + $0x18] sm:$0xf] %v6338_v28 }
 0x75d PF: > { %s17_s18 = sadd.s32 1, %s7188_s18  }
 0x75e   : > { %p14_p10 = scmp.ge.s32.totalorder %s17_s18, 4  }
 0x760   :  { %16 = sbr.rel (!%p14_p10) target bundleno = 2 (0x2), region = 186 }
 0x767   :  { %6115 = vsyncpa [#allocation8], 1 }
 0x768   :  { %6117 = vsyncpa [#allocation8 + $0x1], 1 }
 0x769   :  { %6118 = vsyncpa [#allocation10], 1 }

// kernel: net_forward.3
= control target key start
LH: loop header
LB: loop body
LE: loop exit
PB: predicated region body
PF: predicated region fallthrough
CT: control target
= control target key end

     0   :  { %10 = vsyncpa [#allocation3], 0  ;;  %s9212_s0 = inlined_call_operand.vmem [shape: bf16[2,9216], index: 0, kind: input, shape index: {}]   ;;  %s9213_s1 = inlined_call_operand.hbm [shape: bf16[9216,128], index: 1, kind: input, shape index: {}]   ;;  %s9214_s2 = inlined_call_operand.hbm [shape: f32[1,128], index: 2, kind: input, shape index: {}]   ;;  %s9215_s3 = inlined_call_operand.vmem [shape: f32[128,10], index: 3, kind: input, shape index: {}]   ;;  %s9216_s4 = inlined_call_operand.hbm [shape: f32[1,10], index: 4, kind: input, shape index: {}]   ;;  %s9217_s5 = inlined_call_operand.hbm [shape: f32[2,10], index: 5, kind: output, shape index: {}]  }
   0x1   :  { %11 = vsyncpa [#allocation6], 0 }
   0x2   :  { %12 = vsyncpa [#allocation4], 0  ;;  %s8908_s18 = smov [#allocation5]   ;;  %s8909_s20 = smov [#allocation2]  }
   0x3   :  { %s33_s19 = sshll.u32 %s8908_s18, 4  ;;  %s20_s21 = sshll.u32 %s8909_s20, 4  ;;  %s34_s19 = int_to_ptr.vmem [resolvable:$true] %s33_s19  ;;  %s8948_s21 = int_to_ptr.vmem [resolvable:$true] %s20_s21 }
   0x4   :  { %s8814_s24 = scalar_lea.hbm %s9214_s2, 16 }
   0x5   :  { %p8815_p0 = scmp.ne.s32.totalorder %s9214_s2, %s8814_s24  ;;  %p8818_p1 = scmp.lt.u32.totalorder %s8814_s24, %s9214_s2 }
   0x7   :  { %p8820_p2 = pnand %p8818_p1, %p8815_p0 }
   0x9   :  { %8823 = shalt.err (!%p8820_p2)
}
   0xa   :  { %s8824_s29 = scalar_lea.vmem %s34_s19, 16  ;;  %s8828_s30 = scalar_lea.vmem %s34_s19, 32 }
   0xb   :  { %p8825_p3 = scmp.ne.s32.totalorder %s34_s19, %s8824_s29  ;;  %p8829_p4 = scmp.lt.s32.totalorder %s34_s19, %s34_s19 }
   0xc   :  { %p8830_p5 = scmp.lt.s32.totalorder %s8828_s30, %s8824_s29 }
   0xe   :  { %p8831_p6 = por %p8830_p5, %p8829_p4 }
  0x10   :  { %p8832_p7 = pnand %p8831_p6, %p8825_p3 }
  0x12   :  { %8835 = shalt.err (!%p8832_p7)
}
  0x13   :  { %36 = dma.hbm_to_vmem [thread:$0]  %s9214_s2, 16, %s34_s19, [#allocation6]  }
  0x14   :  { %s8836_s10 = scalar_lea.hbm %s9213_s1, 73728 }
  0x15   :  { %p8837_p8 = scmp.ne.s32.totalorder %s9213_s1, %s8836_s10  ;;  %p8840_p9 = scmp.lt.u32.totalorder %s8836_s10, %s9213_s1 }
  0x17   :  { %p8842_p10 = pnand %p8840_p9, %p8837_p8 }
  0x19   :  { %8845 = shalt.err (!%p8842_p10)
}
  0x1a   :  { %s8846_s15 = scalar_lea.vmem %s8948_s21, 73728  ;;  %p8851_p12 = scmp.lt.s32.totalorder %s8948_s21, %s8948_s21 }
  0x1b   :  { %p8847_p11 = scmp.ne.s32.totalorder %s8948_s21, %s8846_s15  ;;  %p8852_p13 = scmp.lt.s32.totalorder %s8846_s15, %s8846_s15 }
  0x1d   :  { %p8853_p0 = por %p8852_p13, %p8851_p12 }
  0x1f   :  { %p8854_p1 = pnand %p8853_p0, %p8847_p11 }
  0x21   :  { %8857 = shalt.err (!%p8854_p1)
}
  0x22   :  { %s8910_s2 = smov 64   ;;  %s8911_s16 = smov 4  }
  0x23   :  { %26 = dma.hbm_to_vmem [thread:$0]  %s9213_s1, 73728, %s8948_s21, [#allocation3], %s8910_s2, %s8910_s2, %s8911_s16  }
  0x24   :  { %s8912_s19 = smov [#allocation7]   ;;  %s8858_s24 = scalar_lea.hbm %s9216_s4, 16 }
  0x25   :  { %s45_s20 = sshll.u32 %s8912_s19, 4  ;;  %p8859_p2 = scmp.ne.s32.totalorder %s9216_s4, %s8858_s24  ;;  %s46_s20 = int_to_ptr.vmem [resolvable:$true] %s45_s20 }
  0x26   :  { %p8862_p3 = scmp.lt.u32.totalorder %s8858_s24, %s9216_s4 }
  0x28   :  { %p8864_p4 = pnand %p8862_p3, %p8859_p2 }
  0x2a   :  { %8867 = shalt.err (!%p8864_p4)
}
  0x2b   :  { %s8868_s29 = scalar_lea.vmem %s46_s20, 16  ;;  %s8872_s1 = scalar_lea.vmem %s46_s20, 32 }
  0x2c   :  { %p8869_p5 = scmp.ne.s32.totalorder %s46_s20, %s8868_s29  ;;  %p8873_p6 = scmp.lt.s32.totalorder %s46_s20, %s46_s20 }
  0x2d   :  { %p8874_p7 = scmp.lt.s32.totalorder %s8872_s1, %s8868_s29 }
  0x2f   :  { %p8875_p8 = por %p8874_p7, %p8873_p6 }
  0x31   :  { %p8876_p9 = pnand %p8875_p8, %p8869_p5 }
  0x33   :  { %8879 = shalt.err (!%p8876_p9)
}
  0x34   :  { %48 = dma.hbm_to_vmem [thread:$0]  %s9216_s4, 16, %s46_s20, [#allocation6]  }
  0x35   :  { %8902 = dma.done.wait [#allocation3], 73728  }
  0x36   :  { %8903 = vsyncadd [#allocation3], 4294893568 }
  0x37   :  { %8904 = dma.done.wait [#allocation6], 32  }
  0x38   :  { %8905 = vsyncadd [#allocation6], 4294967264  ;;  %v8225_v0 = vld [vmem:[#allocation2 + $0x40] sm:$0xff]   ;;  %v8229_v4 = vld [vmem:[#allocation2 + $0x48] sm:$0xff]   ;;  %v8913_v22 = vmov 1966171168   ;;  %v1240_v24 = vlaneseq }
  0x39   :  { %v8226_v1 = vld [vmem:[#allocation2 + $0xc0] sm:$0xff]   ;;  %7347 = vmatprep.subr.bf16.mxu0 %v8225_v0  ;;  %v8230_v5 = vld [vmem:[#allocation2 + $0xc8] sm:$0xff]   ;;  %v8233_v8 = vld [vmem:[#allocation2 + $0x50] sm:$0xff]   ;;  %v1238_v23 = vunpack.c.l.s4 %v8913_v22  ;;  %vm8915_vm0 = vmmov 0   ;;  %vm6739_vm1 = vcmask 74752  }
  0x3a   :  { %v8227_v2 = vld [vmem:[#allocation2] sm:$0xff]   ;;  %7369 = vmatprep.subr.bf16.mxu1 %v8226_v1  ;;  %v8231_v6 = vld [vmem:[#allocation2 + $0x8] sm:$0xff]   ;;  %v8234_v9 = vld [vmem:[#allocation2 + $0xd0] sm:$0xff]   ;;  %v1241_v30 = vshrl.u32 %v1240_v24, 7 }
  0x3b   :  { %v8228_v3 = vld [vmem:[#allocation2 + $0x80] sm:$0xff]   ;;  %7348 = vmatpush3.bf16.msra.mxu0 %v8227_v2  ;;  %v8232_v7 = vld [vmem:[#allocation2 + $0x88] sm:$0xff]   ;;  %v8235_v10 = vld [vmem:[#allocation2 + $0x10] sm:$0xff]   ;;  %v1239_v29 = vunpack.c.0.s8 %v1238_v23 }
  0x3c   :  { %7370 = vmatpush3.bf16.msra.mxu1 %v8228_v3  ;;  %7349 = vmatprep.subr.bf16.mxu0 %v8229_v4  ;;  %v8236_v11 = vld [vmem:[#allocation2 + $0x90] sm:$0xff]   ;;  %v8237_v12 = vld [vmem:[#allocation2 + $0x58] sm:$0xff]   ;;  %v8241_v16 = vld [vmem:[#allocation2 + $0x60] sm:$0xff]  }
  0x3d   :  { %7371 = vmatprep.subr.bf16.mxu1 %v8230_v5  ;;  %v8238_v13 = vld [vmem:[#allocation2 + $0xd8] sm:$0xff]   ;;  %v8242_v17 = vld [vmem:[#allocation2 + $0xe0] sm:$0xff]   ;;  %v8245_v20 = vld [vmem:[#allocation2 + $0x68] sm:$0xff]   ;;  %v8991_v35 = vsub.s32 %v1239_v29, %v1241_v30 }
  0x3e   :  { %v8239_v14 = vld [vmem:[#allocation2 + $0x18] sm:$0xff]   ;;  %v8243_v18 = vld [vmem:[#allocation2 + $0x20] sm:$0xff]   ;;  %v8246_v21 = vld [vmem:[#allocation2 + $0xe8] sm:$0xff]  }
  0x3f   :  { %7350 = vmatpush3.bf16.msra.mxu0 %v8231_v6  ;;  %v8240_v15 = vld [vmem:[#allocation2 + $0x98] sm:$0xff]   ;;  %v8244_v19 = vld [vmem:[#allocation2 + $0xa0] sm:$0xff]   ;;  %v8247_v25 = vld [vmem:[#allocation2 + $0x28] sm:$0xff]  }
  0x40   :  { %7372 = vmatpush3.bf16.msra.mxu1 %v8232_v7  ;;  %7351 = vmatprep.subr.bf16.mxu0 %v8233_v8  ;;  %v8248_v26 = vld [vmem:[#allocation2 + $0xa8] sm:$0xff]   ;;  %v8249_v27 = vld [vmem:[#allocation2 + $0x70] sm:$0xff]   ;;  %v8253_v33 = vld [vmem:[#allocation2 + $0x78] sm:$0xff]  }
  0x41   :  { %7373 = vmatprep.subr.bf16.mxu1 %v8234_v9  ;;  %v8250_v28 = vld [vmem:[#allocation2 + $0xf0] sm:$0xff]   ;;  %v8254_v34 = vld [vmem:[#allocation2 + $0xf8] sm:$0xff]   ;;  %v59_v38 = vld [vmem:[%s9212_s0] sm:$0xff] }
  0x42   :  { %v8251_v31 = vld [vmem:[#allocation2 + $0x30] sm:$0xff]   ;;  %v8255_v36 = vld [vmem:[#allocation2 + $0x38] sm:$0xff]   ;;  %v1236_v39 = vcombine.high %v59_v38, %v59_v38  ;;  %v1243_v40 = vrot.slane %v59_v38, %v8991_v35  ;;  %v8258_v41 = vld [vmem:[#allocation2 + $0x140] sm:$0xff]  }
  0x43   :  { %7352 = vmatpush3.bf16.msra.mxu0 %v8235_v10  ;;  %v8252_v32 = vld [vmem:[#allocation2 + $0xb0] sm:$0xff]   ;;  %v8256_v37 = vld [vmem:[#allocation2 + $0xb8] sm:$0xff]   ;;  %v8259_v42 = vld [vmem:[#allocation2 + $0x1c0] sm:$0xff]  }
  0x44   :  { %7374 = vmatpush3.bf16.msra.mxu1 %v8236_v11  ;;  %7353 = vmatprep.subr.bf16.mxu0 %v8237_v12  ;;  %v1251_v43 = vcombine.high %v1243_v40, %v1243_v40  ;;  %v1259_v44 = vrot.slane %v1243_v40, %v8991_v35  ;;  %v8999_v45 = vrot.slane %v1236_v39, %v8991_v35  ;;  %v8260_v46 = vld [vmem:[#allocation2 + $0x100] sm:$0xff]   ;;  %v8262_v51 = vld [vmem:[#allocation2 + $0x148] sm:$0xff]   ;;  %v8266_v58 = vld [vmem:[#allocation2 + $0x150] sm:$0xff]  }
  0x45   :  { %7375 = vmatprep.subr.bf16.mxu1 %v8238_v13  ;;  %v8261_v48 = vld [vmem:[#allocation2 + $0x180] sm:$0xff]   ;;  %v8263_v53 = vld [vmem:[#allocation2 + $0x1c8] sm:$0xff]   ;;  %v8267_v59 = vld [vmem:[#allocation2 + $0x1d0] sm:$0xff]  }
  0x46   :  { %v1273_v47 = vrot.slane %v1251_v43, %v8991_v35  ;;  %v1252_v49 = vcombine.high %v8999_v45, %v8999_v45  ;;  %v1281_v50 = vcombine.high %v1259_v44, %v1259_v44  ;;  %v8264_v55 = vld [vmem:[#allocation2 + $0x108] sm:$0xff]   ;;  %v8268_v60 = vld [vmem:[#allocation2 + $0x110] sm:$0xff]   ;;  %v8270_v62 = vld [vmem:[#allocation2 + $0x158] sm:$0xff]  }
  0x47   :  { %7354 = vmatpush3.bf16.msra.mxu0 %v8239_v14  ;;  %v8265_v56 = vld [vmem:[#allocation2 + $0x188] sm:$0xff]   ;;  %v8269_v61 = vld [vmem:[#allocation2 + $0x190] sm:$0xff]   ;;  %v8271_v63 = vld [vmem:[#allocation2 + $0x1d8] sm:$0xff]  }
  0x48   :  { %7376 = vmatpush3.bf16.msra.mxu1 %v8240_v15  ;;  %7355 = vmatprep.subr.bf16.mxu0 %v8241_v16  ;;  %v1283_v52 = vcombine.high %v1273_v47, %v1273_v47  ;;  %v1280_v54 = vrot.slane %v1252_v49, %v8991_v35  ;;  %v8272_v0 = vld [vmem:[#allocation2 + $0x118] sm:$0xff]   ;;  %v8274_v2 = vld [vmem:[#allocation2 + $0x160] sm:$0xff]   ;;  %v8278_v6 = vld [vmem:[#allocation2 + $0x168] sm:$0xff]  }
  0x49   :  { %7377 = vmatprep.subr.bf16.mxu1 %v8242_v17  ;;  %5237 = vmatprep.mubr.bf16.mxu0 %v1273_v47  ;;  %v8273_v1 = vld [vmem:[#allocation2 + $0x198] sm:$0xff]   ;;  %v8275_v3 = vld [vmem:[#allocation2 + $0x1e0] sm:$0xff]   ;;  %v8279_v7 = vld [vmem:[#allocation2 + $0x1e8] sm:$0xff]  }
  0x4a   :  { %5277 = vmatprep.mubr.bf16.mxu1 %v1283_v52  ;;  %v1284_v57 = vcombine.high %v1280_v54, %v1280_v54  ;;  %v8276_v4 = vld [vmem:[#allocation2 + $0x120] sm:$0xff]   ;;  %v8280_v8 = vld [vmem:[#allocation2 + $0x128] sm:$0xff]   ;;  %v8282_v10 = vld [vmem:[#allocation2 + $0x170] sm:$0xff]  }
  0x4b   :  { %7356 = vmatpush3.bf16.msra.mxu0 %v8243_v18  ;;  %v8277_v5 = vld [vmem:[#allocation2 + $0x1a0] sm:$0xff]   ;;  %v8281_v9 = vld [vmem:[#allocation2 + $0x1a8] sm:$0xff]   ;;  %v8283_v11 = vld [vmem:[#allocation2 + $0x1f0] sm:$0xff]   ;;  %v1266_v18 = vrot.slane %v8999_v45, %v8991_v35 }
  0x4c   :  { %7378 = vmatpush3.bf16.msra.mxu1 %v8244_v19  ;;  %7357 = vmatprep.subr.bf16.mxu0 %v8245_v20  ;;  %v8284_v12 = vld [vmem:[#allocation2 + $0x130] sm:$0xff]   ;;  %v8286_v14 = vld [vmem:[#allocation2 + $0x178] sm:$0xff]   ;;  %v8290_v19 = vld [vmem:[#allocation2 + $0x240] sm:$0xff]  }
  0x4d   :  { %7379 = vmatprep.subr.bf16.mxu1 %v8246_v21  ;;  %v8285_v13 = vld [vmem:[#allocation2 + $0x1b0] sm:$0xff]   ;;  %v8287_v15 = vld [vmem:[#allocation2 + $0x1f8] sm:$0xff]   ;;  %v8291_v20 = vld [vmem:[#allocation2 + $0x2c0] sm:$0xff]   ;;  %v1282_v23 = vcombine.high %v1266_v18, %v1266_v18 }
  0x4e   :  { %v8288_v16 = vld [vmem:[#allocation2 + $0x138] sm:$0xff]   ;;  %v8292_v21 = vld [vmem:[#allocation2 + $0x200] sm:$0xff]   ;;  %v8294_v24 = vld [vmem:[#allocation2 + $0x248] sm:$0xff]  }
  0x4f   :  { %7358 = vmatpush3.bf16.msra.mxu0 %v8247_v25  ;;  %v8289_v17 = vld [vmem:[#allocation2 + $0x1b8] sm:$0xff]   ;;  %v8293_v22 = vld [vmem:[#allocation2 + $0x280] sm:$0xff]   ;;  %v8295_v25 = vld [vmem:[#allocation2 + $0x2c8] sm:$0xff]  }
  0x50   :  { %7380 = vmatpush3.bf16.msra.mxu1 %v8248_v26  ;;  %7359 = vmatprep.subr.bf16.mxu0 %v8249_v27  ;;  %v8296_v26 = vld [vmem:[#allocation2 + $0x208] sm:$0xff]   ;;  %v8299_v29 = vld [vmem:[#allocation2 + $0x2d0] sm:$0xff]   ;;  %v8307_v38 = vld [vmem:[#allocation2 + $0x2e0] sm:$0xff]  }
  0x51   :  { %7381 = vmatprep.subr.bf16.mxu1 %v8250_v28  ;;  %v8297_v27 = vld [vmem:[#allocation2 + $0x288] sm:$0xff]   ;;  %v8298_v28 = vld [vmem:[#allocation2 + $0x250] sm:$0xff]   ;;  %v8308_v39 = vld [vmem:[#allocation2 + $0x220] sm:$0xff]  }
  0x52   :  { %v8300_v30 = vld [vmem:[#allocation2 + $0x210] sm:$0xff]   ;;  %v8309_v40 = vld [vmem:[#allocation2 + $0x2a0] sm:$0xff]   ;;  %v8312_v43 = vld [vmem:[#allocation2 + $0x228] sm:$0xff]  }
  0x53   :  { %7360 = vmatpush3.bf16.msra.mxu0 %v8251_v31  ;;  %v8301_v31 = vld [vmem:[#allocation2 + $0x290] sm:$0xff]   ;;  %v8318_v49 = vld [vmem:[#allocation2 + $0x278] sm:$0xff]   ;;  %v60_v52 = vld [vmem:[%s9212_s0 + $0x8] sm:$0xff] }
  0x54   :  { %7382 = vmatpush3.bf16.msra.mxu1 %v8252_v32  ;;  %7361 = vmatprep.subr.bf16.mxu0 %v8253_v33  ;;  %v8302_v32 = vld [vmem:[#allocation2 + $0x258] sm:$0xff]   ;;  %v8314_v45 = vld [vmem:[#allocation2 + $0x270] sm:$0xff]  }
  0x55   :  { %7383 = vmatprep.subr.bf16.mxu1 %v8254_v34  ;;  %v8303_v33 = vld [vmem:[#allocation2 + $0x2d8] sm:$0xff]   ;;  %v8316_v47 = vld [vmem:[#allocation2 + $0x230] sm:$0xff]  }
  0x56   :  { %v8304_v34 = vld [vmem:[#allocation2 + $0x218] sm:$0xff]  }
  0x57   :  { %7362 = vmatpush3.bf16.msra.mxu0 %v8255_v36  ;;  %v8305_v36 = vld [vmem:[#allocation2 + $0x298] sm:$0xff]  }
  0x58   :  { %7384 = vmatpush3.bf16.msra.mxu1 %v8256_v37  ;;  %7391 = vmatprep.subr.bf16.mxu0 %v8258_v41  ;;  %v8306_v37 = vld [vmem:[#allocation2 + $0x260] sm:$0xff]   ;;  %v8310_v41 = vld [vmem:[#allocation2 + $0x268] sm:$0xff]  }
  0x59   :  { %7413 = vmatprep.subr.bf16.mxu1 %v8259_v42  ;;  %v8311_v42 = vld [vmem:[#allocation2 + $0x2e8] sm:$0xff]  }
  0x5a   :  { %5238 = vmatmul.mubr.bf16.vlgmr.msra.gmra.mrb[0].mxu0 %v1259_v44  ;;  %v8313_v44 = vld [vmem:[#allocation2 + $0x2a8] sm:$0xff]  }
  0x5b   :  { %7392 = vmatpush3.bf16.msra.mxu0 %v8260_v46  ;;  %5278 = vmatmul.mubr.bf16.vlgmr.msra.gmra.mrb[0].mxu1 %v1281_v50  ;;  %v8315_v46 = vld [vmem:[#allocation2 + $0x2f0] sm:$0xff]   ;;  %v8319_v50 = vld [vmem:[#allocation2 + $0x2f8] sm:$0xff]  }
  0x5c   :  { %7393 = vmatprep.subr.bf16.mxu0 %v8262_v51  ;;  %7414 = vmatpush3.bf16.msra.mxu1 %v8261_v48  ;;  %v8317_v48 = vld [vmem:[#allocation2 + $0x2b0] sm:$0xff]   ;;  %v8320_v51 = vld [vmem:[#allocation2 + $0x238] sm:$0xff]  }
  0x5d   :  { %5317 = vmatprep.mubr.bf16.mxu0 %v1280_v54  ;;  %7415 = vmatprep.subr.bf16.mxu1 %v8263_v53  ;;  %v8321_v53 = vld [vmem:[#allocation2 + $0x2b8] sm:$0xff]   ;;  %v1292_v54 = vrot.slane %v60_v52, %v8991_v35 }
  0x5e   :  { %5357 = vmatprep.mubr.bf16.mxu1 %v1284_v57 }
  0x5f   :  { %7394 = vmatpush3.bf16.msra.mxu0 %v8264_v55  ;;  %v1285_v55 = vcombine.high %v60_v52, %v60_v52  ;;  %v1300_v57 = vcombine.high %v1292_v54, %v1292_v54  ;;  %v8371_v52 = vld [vmem:[#allocation2 + $0x460] sm:$0xff]  }
  0x60   :  { %7395 = vmatprep.subr.bf16.mxu0 %v8266_v58  ;;  %7416 = vmatpush3.bf16.msra.mxu1 %v8265_v56  ;;  %v8322_v56 = vld [vmem:[#allocation2 + $0x340] sm:$0xff]   ;;  %v1308_v58 = vrot.slane %v1292_v54, %v8991_v35 }
  0x61   :  { %7417 = vmatprep.subr.bf16.mxu1 %v8267_v59  ;;  %v8323_v59 = vld [vmem:[#allocation2 + $0x3c0] sm:$0xff]  }
  0x62   :  { %v8373_v54 = vld [vmem:[#allocation2 + $0x420] sm:$0xff]  }
  0x63   :  { %7396 = vmatpush3.bf16.msra.mxu0 %v8268_v60  ;;  %v9013_v60 = vrot.slane %v1285_v55, %v8991_v35  ;;  %v8374_v55 = vld [vmem:[#allocation2 + $0x4a0] sm:$0xff]  }
  0x64   :  { %7397 = vmatprep.subr.bf16.mxu0 %v8270_v62  ;;  %7418 = vmatpush3.bf16.msra.mxu1 %v8269_v61  ;;  %v8324_v61 = vld [vmem:[#allocation2 + $0x300] sm:$0xff]   ;;  %v1322_v62 = vrot.slane %v1300_v57, %v8991_v35  ;;  %v8376_v57 = vld [vmem:[#allocation2 + $0x4e8] sm:$0xff]  }
  0x65   :  { %7419 = vmatprep.subr.bf16.mxu1 %v8271_v63  ;;  %v8325_v63 = vld [vmem:[#allocation2 + $0x380] sm:$0xff]  }
  0x67   :  { %7398 = vmatpush3.bf16.msra.mxu0 %v8272_v0  ;;  %v1301_v0 = vcombine.high %v9013_v60, %v9013_v60 }
  0x68   :  { %7399 = vmatprep.subr.bf16.mxu0 %v8274_v2  ;;  %7420 = vmatpush3.bf16.msra.mxu1 %v8273_v1  ;;  %v1330_v1 = vcombine.high %v1308_v58, %v1308_v58  ;;  %v8326_v2 = vld [vmem:[#allocation2 + $0x348] sm:$0xff]  }
  0x69   :  { %7421 = vmatprep.subr.bf16.mxu1 %v8275_v3  ;;  %v1332_v3 = vcombine.high %v1322_v62, %v1322_v62 }
  0x6b   :  { %7400 = vmatpush3.bf16.msra.mxu0 %v8276_v4  ;;  %v8327_v4 = vld [vmem:[#allocation2 + $0x3c8] sm:$0xff]  }
  0x6c   :  { %7401 = vmatprep.subr.bf16.mxu0 %v8278_v6  ;;  %7422 = vmatpush3.bf16.msra.mxu1 %v8277_v5  ;;  %v1329_v5 = vrot.slane %v1301_v0, %v8991_v35  ;;  %v8328_v6 = vld [vmem:[#allocation2 + $0x308] sm:$0xff]   ;;  %v8383_v0 = vld [vmem:[#allocation2 + $0x478] sm:$0xff]  }
  0x6d   :  { %7423 = vmatprep.subr.bf16.mxu1 %v8279_v7  ;;  %v8329_v7 = vld [vmem:[#allocation2 + $0x388] sm:$0xff]  }
  0x6f   :  { %7402 = vmatpush3.bf16.msra.mxu0 %v8280_v8  ;;  %v1333_v8 = vcombine.high %v1329_v5, %v1329_v5 }
  0x70   :  { %7403 = vmatprep.subr.bf16.mxu0 %v8282_v10  ;;  %7424 = vmatpush3.bf16.msra.mxu1 %v8281_v9  ;;  %v8330_v9 = vld [vmem:[#allocation2 + $0x350] sm:$0xff]  }
  0x71   :  { %7425 = vmatprep.subr.bf16.mxu1 %v8283_v11  ;;  %v8331_v10 = vld [vmem:[#allocation2 + $0x3d0] sm:$0xff]  }
  0x72   :  { %v8332_v11 = vld [vmem:[#allocation2 + $0x310] sm:$0xff]  }
  0x73   :  { %7404 = vmatpush3.bf16.msra.mxu0 %v8284_v12  ;;  %v8333_v12 = vld [vmem:[#allocation2 + $0x390] sm:$0xff]  }
  0x74   :  { %7405 = vmatprep.subr.bf16.mxu0 %v8286_v14  ;;  %7426 = vmatpush3.bf16.msra.mxu1 %v8285_v13  ;;  %v8334_v13 = vld [vmem:[#allocation2 + $0x358] sm:$0xff]  }
  0x75   :  { %7427 = vmatprep.subr.bf16.mxu1 %v8287_v15  ;;  %v8335_v14 = vld [vmem:[#allocation2 + $0x3d8] sm:$0xff]  }
  0x76   :  { %v8336_v15 = vld [vmem:[#allocation2 + $0x318] sm:$0xff]  }
  0x77   :  { %7406 = vmatpush3.bf16.msra.mxu0 %v8288_v16  ;;  %v8337_v16 = vld [vmem:[#allocation2 + $0x398] sm:$0xff]  }
  0x78   :  { %7435 = vmatprep.subr.bf16.mxu0 %v8290_v19  ;;  %7428 = vmatpush3.bf16.msra.mxu1 %v8289_v17  ;;  %v8338_v17 = vld [vmem:[#allocation2 + $0x360] sm:$0xff]  }
  0x79   :  { %7457 = vmatprep.subr.bf16.mxu1 %v8291_v20  ;;  %v8340_v19 = vld [vmem:[#allocation2 + $0x320] sm:$0xff]  }
  0x7a   :  { %5318 = vmatmul.mubr.bf16.vlgmr.msra.gmra.mrb[4].mxu0 %v1266_v18  ;;  %v8339_v18 = vld [vmem:[#allocation2 + $0x3e0] sm:$0xff]  }
  0x7b   :  { %7436 = vmatpush3.bf16.msra.mxu0 %v8292_v21  ;;  %5358 = vmatmul.mubr.bf16.vlgmr.msra.gmra.mrb[4].mxu1 %v1282_v23  ;;  %v8341_v20 = vld [vmem:[#allocation2 + $0x3a0] sm:$0xff]   ;;  %v8342_v21 = vld [vmem:[#allocation2 + $0x368] sm:$0xff]  }
  0x7c   :  { %7437 = vmatprep.subr.bf16.mxu0 %v8294_v24  ;;  %7458 = vmatpush3.bf16.msra.mxu1 %v8293_v22  ;;  %v8343_v22 = vld [vmem:[#allocation2 + $0x3e8] sm:$0xff]  }
  0x7d   :  { %7459 = vmatprep.subr.bf16.mxu1 %v8295_v25  ;;  %5397 = vmatprep.mubr.bf16.mxu0 %v1322_v62  ;;  %v8344_v23 = vld [vmem:[#allocation2 + $0x328] sm:$0xff]   ;;  %v8346_v25 = vld [vmem:[#allocation2 + $0x370] sm:$0xff]  }
  0x7e   :  { %5437 = vmatprep.mubr.bf16.mxu1 %v1332_v3  ;;  %v8345_v24 = vld [vmem:[#allocation2 + $0x3a8] sm:$0xff]   ;;  %v8381_v62 = vld [vmem:[#allocation2 + $0x430] sm:$0xff]  }
  0x7f   :  { %7438 = vmatpush3.bf16.msra.mxu0 %v8296_v26  ;;  %v8347_v26 = vld [vmem:[#allocation2 + $0x3f0] sm:$0xff]  }
  0x80   :  { %7439 = vmatprep.subr.bf16.mxu0 %v8298_v28  ;;  %7460 = vmatpush3.bf16.msra.mxu1 %v8297_v27  ;;  %v8348_v27 = vld [vmem:[#allocation2 + $0x330] sm:$0xff]  }
  0x81   :  { %7461 = vmatprep.subr.bf16.mxu1 %v8299_v29  ;;  %v8349_v28 = vld [vmem:[#allocation2 + $0x3b0] sm:$0xff]   ;;  %v8350_v29 = vld [vmem:[#allocation2 + $0x378] sm:$0xff]  }
  0x82   :  { %v61_v3 = vld [vmem:[%s9212_s0 + $0x10] sm:$0xff] }
  0x83   :  { %7440 = vmatpush3.bf16.msra.mxu0 %v8300_v30  ;;  %v8351_v30 = vld [vmem:[#allocation2 + $0x3f8] sm:$0xff]  }
  0x84   :  { %7441 = vmatprep.subr.bf16.mxu0 %v8302_v32  ;;  %7462 = vmatpush3.bf16.msra.mxu1 %v8301_v31  ;;  %v8352_v31 = vld [vmem:[#allocation2 + $0x338] sm:$0xff]  }
  0x85   :  { %7463 = vmatprep.subr.bf16.mxu1 %v8303_v33  ;;  %v8353_v32 = vld [vmem:[#allocation2 + $0x3b8] sm:$0xff]   ;;  %v1315_v33 = vrot.slane %v9013_v60, %v8991_v35  ;;  %v8379_v60 = vld [vmem:[#allocation2 + $0x470] sm:$0xff]  }
  0x87   :  { %7442 = vmatpush3.bf16.msra.mxu0 %v8304_v34  ;;  %v8355_v34 = vld [vmem:[#allocation2 + $0x440] sm:$0xff]  }
  0x88   :  { %7443 = vmatprep.subr.bf16.mxu0 %v8306_v37  ;;  %7464 = vmatpush3.bf16.msra.mxu1 %v8305_v36  ;;  %v8356_v36 = vld [vmem:[#allocation2 + $0x4c0] sm:$0xff]  }
  0x89   :  { %7465 = vmatprep.subr.bf16.mxu1 %v8307_v38  ;;  %v8357_v37 = vld [vmem:[#allocation2 + $0x400] sm:$0xff]  }
  0x8a   :  { %v8358_v38 = vld [vmem:[#allocation2 + $0x480] sm:$0xff]  }
  0x8b   :  { %7444 = vmatpush3.bf16.msra.mxu0 %v8308_v39  ;;  %v1331_v39 = vcombine.high %v1315_v33, %v1315_v33 }
  0x8c   :  { %7445 = vmatprep.subr.bf16.mxu0 %v8310_v41  ;;  %7466 = vmatpush3.bf16.msra.mxu1 %v8309_v40  ;;  %v8359_v40 = vld [vmem:[#allocation2 + $0x448] sm:$0xff]  }
  0x8d   :  { %7467 = vmatprep.subr.bf16.mxu1 %v8311_v42  ;;  %v8360_v41 = vld [vmem:[#allocation2 + $0x4c8] sm:$0xff]  }
  0x8e   :  { %v8361_v42 = vld [vmem:[#allocation2 + $0x408] sm:$0xff]  }
  0x8f   :  { %7446 = vmatpush3.bf16.msra.mxu0 %v8312_v43  ;;  %v8362_v43 = vld [vmem:[#allocation2 + $0x488] sm:$0xff]  }
  0x90   :  { %7447 = vmatprep.subr.bf16.mxu0 %v8314_v45  ;;  %7468 = vmatpush3.bf16.msra.mxu1 %v8313_v44  ;;  %v8363_v44 = vld [vmem:[#allocation2 + $0x450] sm:$0xff]  }
  0x91   :  { %7469 = vmatprep.subr.bf16.mxu1 %v8315_v46  ;;  %v8364_v45 = vld [vmem:[#allocation2 + $0x4d0] sm:$0xff]  }
  0x92   :  { %v8365_v46 = vld [vmem:[#allocation2 + $0x410] sm:$0xff]  }
  0x93   :  { %7448 = vmatpush3.bf16.msra.mxu0 %v8316_v47  ;;  %v8366_v47 = vld [vmem:[#allocation2 + $0x490] sm:$0xff]  }
  0x94   :  { %7449 = vmatprep.subr.bf16.mxu0 %v8318_v49  ;;  %7470 = vmatpush3.bf16.msra.mxu1 %v8317_v48  ;;  %v8367_v48 = vld [vmem:[#allocation2 + $0x458] sm:$0xff]  }
  0x95   :  { %7471 = vmatprep.subr.bf16.mxu1 %v8319_v50  ;;  %v8368_v49 = vld [vmem:[#allocation2 + $0x4d8] sm:$0xff]  }
  0x96   :  { %v8369_v50 = vld [vmem:[#allocation2 + $0x418] sm:$0xff]  }
  0x97   :  { %7450 = vmatpush3.bf16.msra.mxu0 %v8320_v51  ;;  %v8370_v51 = vld [vmem:[#allocation2 + $0x498] sm:$0xff]  }
  0x98   :  { %7479 = vmatprep.subr.bf16.mxu0 %v8322_v56  ;;  %7472 = vmatpush3.bf16.msra.mxu1 %v8321_v53  ;;  %v8372_v53 = vld [vmem:[#allocation2 + $0x4e0] sm:$0xff]   ;;  %v8375_v56 = vld [vmem:[#allocation2 + $0x468] sm:$0xff]  }
  0x99   :  { %7501 = vmatprep.subr.bf16.mxu1 %v8323_v59  ;;  %v8378_v59 = vld [vmem:[#allocation2 + $0x4a8] sm:$0xff]  }
  0x9a   :  { %5398 = vmatmul.mubr.bf16.vlgmr.msra.gmra.mrb[8].mxu0 %v1308_v58  ;;  %v8377_v58 = vld [vmem:[#allocation2 + $0x428] sm:$0xff]  }
  0x9b   :  { %7480 = vmatpush3.bf16.msra.mxu0 %v8324_v61  ;;  %5438 = vmatmul.mubr.bf16.vlgmr.msra.gmra.mrb[8].mxu1 %v1330_v1  ;;  %v8380_v61 = vld [vmem:[#allocation2 + $0x4f0] sm:$0xff]   ;;  %v8384_v1 = vld [vmem:[#allocation2 + $0x4f8] sm:$0xff]  }
  0x9c   :  { %7481 = vmatprep.subr.bf16.mxu0 %v8326_v2  ;;  %7502 = vmatpush3.bf16.msra.mxu1 %v8325_v63  ;;  %v8382_v63 = vld [vmem:[#allocation2 + $0x4b0] sm:$0xff]   ;;  %v8385_v2 = vld [vmem:[#allocation2 + $0x438] sm:$0xff]  }
  0x9d   :  { %5477 = vmatprep.mubr.bf16.mxu0 %v1329_v5  ;;  %7503 = vmatprep.subr.bf16.mxu1 %v8327_v4  ;;  %v8386_v4 = vld [vmem:[#allocation2 + $0x4b8] sm:$0xff]   ;;  %v1341_v5 = vrot.slane %v61_v3, %v8991_v35 }
  0x9e   :  { %5517 = vmatprep.mubr.bf16.mxu1 %v1333_v8 }
  0x9f   :  { %7482 = vmatpush3.bf16.msra.mxu0 %v8328_v6  ;;  %v1334_v6 = vcombine.high %v61_v3, %v61_v3  ;;  %v1349_v8 = vcombine.high %v1341_v5, %v1341_v5  ;;  %v8436_v3 = vld [vmem:[#allocation2 + $0x660] sm:$0xff]  }
  0xa0   :  { %7483 = vmatprep.subr.bf16.mxu0 %v8330_v9  ;;  %7504 = vmatpush3.bf16.msra.mxu1 %v8329_v7  ;;  %v8387_v7 = vld [vmem:[#allocation2 + $0x540] sm:$0xff]   ;;  %v1357_v9 = vrot.slane %v1341_v5, %v8991_v35 }
  0xa1   :  { %7505 = vmatprep.subr.bf16.mxu1 %v8331_v10  ;;  %v8388_v10 = vld [vmem:[#allocation2 + $0x5c0] sm:$0xff]  }
  0xa2   :  { %v8438_v5 = vld [vmem:[#allocation2 + $0x620] sm:$0xff]  }
  0xa3   :  { %7484 = vmatpush3.bf16.msra.mxu0 %v8332_v11  ;;  %v9027_v11 = vrot.slane %v1334_v6, %v8991_v35  ;;  %v8439_v6 = vld [vmem:[#allocation2 + $0x6a0] sm:$0xff]  }
  0xa4   :  { %7485 = vmatprep.subr.bf16.mxu0 %v8334_v13  ;;  %7506 = vmatpush3.bf16.msra.mxu1 %v8333_v12  ;;  %v8389_v12 = vld [vmem:[#allocation2 + $0x500] sm:$0xff]   ;;  %v1371_v13 = vrot.slane %v1349_v8, %v8991_v35  ;;  %v8441_v8 = vld [vmem:[#allocation2 + $0x6e8] sm:$0xff]  }
  0xa5   :  { %7507 = vmatprep.subr.bf16.mxu1 %v8335_v14  ;;  %v8390_v14 = vld [vmem:[#allocation2 + $0x580] sm:$0xff]  }
  0xa7   :  { %7486 = vmatpush3.bf16.msra.mxu0 %v8336_v15  ;;  %v1350_v15 = vcombine.high %v9027_v11, %v9027_v11 }
  0xa8   :  { %7487 = vmatprep.subr.bf16.mxu0 %v8338_v17  ;;  %7508 = vmatpush3.bf16.msra.mxu1 %v8337_v16  ;;  %v1379_v16 = vcombine.high %v1357_v9, %v1357_v9  ;;  %v8391_v17 = vld [vmem:[#allocation2 + $0x548] sm:$0xff]  }
  0xa9   :  { %7509 = vmatprep.subr.bf16.mxu1 %v8339_v18  ;;  %v1381_v18 = vcombine.high %v1371_v13, %v1371_v13 }
  0xab   :  { %7488 = vmatpush3.bf16.msra.mxu0 %v8340_v19  ;;  %v8392_v19 = vld [vmem:[#allocation2 + $0x5c8] sm:$0xff]  }
  0xac   :  { %7489 = vmatprep.subr.bf16.mxu0 %v8342_v21  ;;  %7510 = vmatpush3.bf16.msra.mxu1 %v8341_v20  ;;  %v1378_v20 = vrot.slane %v1350_v15, %v8991_v35  ;;  %v8393_v21 = vld [vmem:[#allocation2 + $0x508] sm:$0xff]   ;;  %v8448_v15 = vld [vmem:[#allocation2 + $0x678] sm:$0xff]  }
  0xad   :  { %7511 = vmatprep.subr.bf16.mxu1 %v8343_v22  ;;  %v8394_v22 = vld [vmem:[#allocation2 + $0x588] sm:$0xff]  }
  0xaf   :  { %7490 = vmatpush3.bf16.msra.mxu0 %v8344_v23  ;;  %v1382_v23 = vcombine.high %v1378_v20, %v1378_v20 }
  0xb0   :  { %7491 = vmatprep.subr.bf16.mxu0 %v8346_v25  ;;  %7512 = vmatpush3.bf16.msra.mxu1 %v8345_v24  ;;  %v8395_v24 = vld [vmem:[#allocation2 + $0x550] sm:$0xff]  }
  0xb1   :  { %7513 = vmatprep.subr.bf16.mxu1 %v8347_v26  ;;  %v8396_v25 = vld [vmem:[#allocation2 + $0x5d0] sm:$0xff]  }
  0xb2   :  { %v8397_v26 = vld [vmem:[#allocation2 + $0x510] sm:$0xff]  }
  0xb3   :  { %7492 = vmatpush3.bf16.msra.mxu0 %v8348_v27  ;;  %v8398_v27 = vld [vmem:[#allocation2 + $0x590] sm:$0xff]  }
  0xb4   :  { %7493 = vmatprep.subr.bf16.mxu0 %v8350_v29  ;;  %7514 = vmatpush3.bf16.msra.mxu1 %v8349_v28  ;;  %v8399_v28 = vld [vmem:[#allocation2 + $0x558] sm:$0xff]  }
  0xb5   :  { %7515 = vmatprep.subr.bf16.mxu1 %v8351_v30  ;;  %v8400_v29 = vld [vmem:[#allocation2 + $0x5d8] sm:$0xff]  }
  0xb6   :  { %v8401_v30 = vld [vmem:[#allocation2 + $0x518] sm:$0xff]  }
  0xb7   :  { %7494 = vmatpush3.bf16.msra.mxu0 %v8352_v31  ;;  %v8402_v31 = vld [vmem:[#allocation2 + $0x598] sm:$0xff]  }
  0xb8   :  { %7523 = vmatprep.subr.bf16.mxu0 %v8355_v34  ;;  %7516 = vmatpush3.bf16.msra.mxu1 %v8353_v32  ;;  %v8403_v32 = vld [vmem:[#allocation2 + $0x560] sm:$0xff]  }
  0xb9   :  { %7545 = vmatprep.subr.bf16.mxu1 %v8356_v36  ;;  %v8405_v34 = vld [vmem:[#allocation2 + $0x520] sm:$0xff]  }
  0xba   :  { %5478 = vmatmul.mubr.bf16.vlgmr.msra.gmra.mrb[12].mxu0 %v1315_v33  ;;  %v8404_v33 = vld [vmem:[#allocation2 + $0x5e0] sm:$0xff]  }
  0xbb   :  { %7524 = vmatpush3.bf16.msra.mxu0 %v8357_v37  ;;  %5518 = vmatmul.mubr.bf16.vlgmr.msra.gmra.mrb[12].mxu1 %v1331_v39  ;;  %v8406_v36 = vld [vmem:[#allocation2 + $0x5a0] sm:$0xff]   ;;  %v8407_v37 = vld [vmem:[#allocation2 + $0x568] sm:$0xff]  }
  0xbc   :  { %7525 = vmatprep.subr.bf16.mxu0 %v8359_v40  ;;  %7546 = vmatpush3.bf16.msra.mxu1 %v8358_v38  ;;  %v8408_v38 = vld [vmem:[#allocation2 + $0x5e8] sm:$0xff]  }
  0xbd   :  { %7547 = vmatprep.subr.bf16.mxu1 %v8360_v41  ;;  %5557 = vmatprep.mubr.bf16.mxu0 %v1371_v13  ;;  %v8409_v39 = vld [vmem:[#allocation2 + $0x528] sm:$0xff]   ;;  %v8411_v41 = vld [vmem:[#allocation2 + $0x570] sm:$0xff]  }
  0xbe   :  { %5597 = vmatprep.mubr.bf16.mxu1 %v1381_v18  ;;  %v8410_v40 = vld [vmem:[#allocation2 + $0x5a8] sm:$0xff]   ;;  %v8446_v13 = vld [vmem:[#allocation2 + $0x630] sm:$0xff]   ;;  %v62_v18 = vld [vmem:[%s9212_s0 + $0x18] sm:$0xff] }
  0xbf   :  { %7526 = vmatpush3.bf16.msra.mxu0 %v8361_v42  ;;  %v8412_v42 = vld [vmem:[#allocation2 + $0x5f0] sm:$0xff]  }
  0xc0   :  { %7527 = vmatprep.subr.bf16.mxu0 %v8363_v44  ;;  %7548 = vmatpush3.bf16.msra.mxu1 %v8362_v43  ;;  %v8413_v43 = vld [vmem:[#allocation2 + $0x530] sm:$0xff]  }
  0xc1   :  { %7549 = vmatprep.subr.bf16.mxu1 %v8364_v45  ;;  %v8414_v44 = vld [vmem:[#allocation2 + $0x5b0] sm:$0xff]   ;;  %v8415_v45 = vld [vmem:[#allocation2 + $0x578] sm:$0xff]  }
  0xc3   :  { %7528 = vmatpush3.bf16.msra.mxu0 %v8365_v46  ;;  %v8416_v46 = vld [vmem:[#allocation2 + $0x5f8] sm:$0xff]  }
  0xc4   :  { %7529 = vmatprep.subr.bf16.mxu0 %v8367_v48  ;;  %7550 = vmatpush3.bf16.msra.mxu1 %v8366_v47  ;;  %v8417_v47 = vld [vmem:[#allocation2 + $0x538] sm:$0xff]  }
  0xc5   :  { %7551 = vmatprep.subr.bf16.mxu1 %v8368_v49  ;;  %v8418_v48 = vld [vmem:[#allocation2 + $0x5b8] sm:$0xff]   ;;  %v1364_v49 = vrot.slane %v9027_v11, %v8991_v35  ;;  %v8444_v11 = vld [vmem:[#allocation2 + $0x670] sm:$0xff]  }
  0xc7   :  { %7530 = vmatpush3.bf16.msra.mxu0 %v8369_v50  ;;  %v8420_v50 = vld [vmem:[#allocation2 + $0x640] sm:$0xff]  }
  0xc8   :  { %7531 = vmatprep.subr.bf16.mxu0 %v8371_v52  ;;  %7552 = vmatpush3.bf16.msra.mxu1 %v8370_v51  ;;  %v8421_v51 = vld [vmem:[#allocation2 + $0x6c0] sm:$0xff]  }
  0xc9   :  { %7553 = vmatprep.subr.bf16.mxu1 %v8372_v53  ;;  %v8422_v52 = vld [vmem:[#allocation2 + $0x600] sm:$0xff]  }
  0xca   :  { %v8423_v53 = vld [vmem:[#allocation2 + $0x680] sm:$0xff]  }
  0xcb   :  { %7532 = vmatpush3.bf16.msra.mxu0 %v8373_v54  ;;  %v1380_v54 = vcombine.high %v1364_v49, %v1364_v49 }
  0xcc   :  { %7533 = vmatprep.subr.bf16.mxu0 %v8375_v56  ;;  %7554 = vmatpush3.bf16.msra.mxu1 %v8374_v55  ;;  %v8424_v55 = vld [vmem:[#allocation2 + $0x648] sm:$0xff]  }
  0xcd   :  { %7555 = vmatprep.subr.bf16.mxu1 %v8376_v57  ;;  %v8425_v56 = vld [vmem:[#allocation2 + $0x6c8] sm:$0xff]  }
  0xce   :  { %v8426_v57 = vld [vmem:[#allocation2 + $0x608] sm:$0xff]  }
  0xcf   :  { %7534 = vmatpush3.bf16.msra.mxu0 %v8377_v58  ;;  %v8427_v58 = vld [vmem:[#allocation2 + $0x688] sm:$0xff]  }
  0xd0   :  { %7535 = vmatprep.subr.bf16.mxu0 %v8379_v60  ;;  %7556 = vmatpush3.bf16.msra.mxu1 %v8378_v59  ;;  %v8428_v59 = vld [vmem:[#allocation2 + $0x650] sm:$0xff]  }
  0xd1   :  { %7557 = vmatprep.subr.bf16.mxu1 %v8380_v61  ;;  %v8429_v60 = vld [vmem:[#allocation2 + $0x6d0] sm:$0xff]  }
  0xd2   :  { %v8430_v61 = vld [vmem:[#allocation2 + $0x610] sm:$0xff]  }
  0xd3   :  { %7536 = vmatpush3.bf16.msra.mxu0 %v8381_v62  ;;  %v8431_v62 = vld [vmem:[#allocation2 + $0x690] sm:$0xff]  }
  0xd4   :  { %7537 = vmatprep.subr.bf16.mxu0 %v8383_v0  ;;  %7558 = vmatpush3.bf16.msra.mxu1 %v8382_v63  ;;  %v8432_v63 = vld [vmem:[#allocation2 + $0x658] sm:$0xff]  }
  0xd5   :  { %7559 = vmatprep.subr.bf16.mxu1 %v8384_v1  ;;  %v8433_v0 = vld [vmem:[#allocation2 + $0x6d8] sm:$0xff]  }
  0xd6   :  { %v8434_v1 = vld [vmem:[#allocation2 + $0x618] sm:$0xff]  }
  0xd7   :  { %7538 = vmatpush3.bf16.msra.mxu0 %v8385_v2  ;;  %v8435_v2 = vld [vmem:[#allocation2 + $0x698] sm:$0xff]  }
  0xd8   :  { %7567 = vmatprep.subr.bf16.mxu0 %v8387_v7  ;;  %7560 = vmatpush3.bf16.msra.mxu1 %v8386_v4  ;;  %v8437_v4 = vld [vmem:[#allocation2 + $0x6e0] sm:$0xff]   ;;  %v8440_v7 = vld [vmem:[#allocation2 + $0x668] sm:$0xff]  }
  0xd9   :  { %7589 = vmatprep.subr.bf16.mxu1 %v8388_v10  ;;  %v8443_v10 = vld [vmem:[#allocation2 + $0x6a8] sm:$0xff]  }
  0xda   :  { %5558 = vmatmul.mubr.bf16.vlgmr.msra.gmra.mrb[16].mxu0 %v1357_v9  ;;  %v8442_v9 = vld [vmem:[#allocation2 + $0x628] sm:$0xff]  }
  0xdb   :  { %7568 = vmatpush3.bf16.msra.mxu0 %v8389_v12  ;;  %5598 = vmatmul.mubr.bf16.vlgmr.msra.gmra.mrb[16].mxu1 %v1379_v16  ;;  %v8445_v12 = vld [vmem:[#allocation2 + $0x6f0] sm:$0xff]   ;;  %v8449_v16 = vld [vmem:[#allocation2 + $0x6f8] sm:$0xff]  }
  0xdc   :  { %7569 = vmatprep.subr.bf16.mxu0 %v8391_v17  ;;  %7590 = vmatpush3.bf16.msra.mxu1 %v8390_v14  ;;  %v8447_v14 = vld [vmem:[#allocation2 + $0x6b0] sm:$0xff]   ;;  %v8450_v17 = vld [vmem:[#allocation2 + $0x638] sm:$0xff]  }
  0xdd   :  { %5637 = vmatprep.mubr.bf16.mxu0 %v1378_v20  ;;  %7591 = vmatprep.subr.bf16.mxu1 %v8392_v19  ;;  %v1390_v19 = vrot.slane %v62_v18, %v8991_v35  ;;  %v8452_v20 = vld [vmem:[#allocation2 + $0x740] sm:$0xff]  }
  0xde   :  { %5677 = vmatprep.mubr.bf16.mxu1 %v1382_v23 }
  0xdf   :  { %7570 = vmatpush3.bf16.msra.mxu0 %v8393_v21  ;;  %v1383_v21 = vcombine.high %v62_v18, %v62_v18  ;;  %v1398_v23 = vcombine.high %v1390_v19, %v1390_v19 }
  0xe0   :  { %7571 = vmatprep.subr.bf16.mxu0 %v8395_v24  ;;  %7592 = vmatpush3.bf16.msra.mxu1 %v8394_v22  ;;  %v8451_v22 = vld [vmem:[#allocation2 + $0x6b8] sm:$0xff]   ;;  %v1406_v24 = vrot.slane %v1390_v19, %v8991_v35  ;;  %v8489_v19 = vld [vmem:[#allocation2 + $0x848] sm:$0xff]  }
  0xe1   :  { %7593 = vmatprep.subr.bf16.mxu1 %v8396_v25  ;;  %v8453_v25 = vld [vmem:[#allocation2 + $0x7c0] sm:$0xff]  }
  0xe3   :  { %7572 = vmatpush3.bf16.msra.mxu0 %v8397_v26  ;;  %v9041_v26 = vrot.slane %v1383_v21, %v8991_v35  ;;  %v8491_v21 = vld [vmem:[#allocation2 + $0x808] sm:$0xff]  }
  0xe4   :  { %7573 = vmatprep.subr.bf16.mxu0 %v8399_v28  ;;  %7594 = vmatpush3.bf16.msra.mxu1 %v8398_v27  ;;  %v1420_v27 = vrot.slane %v1398_v23, %v8991_v35  ;;  %v8454_v28 = vld [vmem:[#allocation2 + $0x700] sm:$0xff]   ;;  %v8493_v23 = vld [vmem:[#allocation2 + $0x850] sm:$0xff]  }
  0xe5   :  { %7595 = vmatprep.subr.bf16.mxu1 %v8400_v29  ;;  %v1399_v29 = vcombine.high %v9041_v26, %v9041_v26 }
  0xe7   :  { %7574 = vmatpush3.bf16.msra.mxu0 %v8401_v30  ;;  %v1428_v30 = vcombine.high %v1406_v24, %v1406_v24 }
  0xe8   :  { %7575 = vmatprep.subr.bf16.mxu0 %v8403_v32  ;;  %7596 = vmatpush3.bf16.msra.mxu1 %v8402_v31  ;;  %v8456_v31 = vld [vmem:[#allocation2 + $0x748] sm:$0xff]   ;;  %v1430_v32 = vcombine.high %v1420_v27, %v1420_v27 }
  0xe9   :  { %7597 = vmatprep.subr.bf16.mxu1 %v8404_v33  ;;  %v8455_v33 = vld [vmem:[#allocation2 + $0x780] sm:$0xff]  }
  0xeb   :  { %7576 = vmatpush3.bf16.msra.mxu0 %v8405_v34  ;;  %v1427_v34 = vrot.slane %v1399_v29, %v8991_v35  ;;  %v8499_v29 = vld [vmem:[#allocation2 + $0x818] sm:$0xff]  }
  0xec   :  { %7577 = vmatprep.subr.bf16.mxu0 %v8407_v37  ;;  %7598 = vmatpush3.bf16.msra.mxu1 %v8406_v36  ;;  %v8457_v36 = vld [vmem:[#allocation2 + $0x7c8] sm:$0xff]  }
  0xed   :  { %7599 = vmatprep.subr.bf16.mxu1 %v8408_v38  ;;  %v8458_v37 = vld [vmem:[#allocation2 + $0x708] sm:$0xff]   ;;  %v1431_v38 = vcombine.high %v1427_v34, %v1427_v34 }
  0xef   :  { %7578 = vmatpush3.bf16.msra.mxu0 %v8409_v39  ;;  %v8460_v39 = vld [vmem:[#allocation2 + $0x750] sm:$0xff]  }
  0xf0   :  { %7579 = vmatprep.subr.bf16.mxu0 %v8411_v41  ;;  %7600 = vmatpush3.bf16.msra.mxu1 %v8410_v40  ;;  %v8459_v40 = vld [vmem:[#allocation2 + $0x788] sm:$0xff]   ;;  %v8461_v41 = vld [vmem:[#allocation2 + $0x7d0] sm:$0xff]  }
  0xf1   :  { %7601 = vmatprep.subr.bf16.mxu1 %v8412_v42  ;;  %v8462_v42 = vld [vmem:[#allocation2 + $0x710] sm:$0xff]  }
  0xf3   :  { %7580 = vmatpush3.bf16.msra.mxu0 %v8413_v43  ;;  %v8464_v43 = vld [vmem:[#allocation2 + $0x758] sm:$0xff]  }
  0xf4   :  { %7581 = vmatprep.subr.bf16.mxu0 %v8415_v45  ;;  %7602 = vmatpush3.bf16.msra.mxu1 %v8414_v44  ;;  %v8463_v44 = vld [vmem:[#allocation2 + $0x790] sm:$0xff]   ;;  %v8465_v45 = vld [vmem:[#allocation2 + $0x7d8] sm:$0xff]  }
  0xf5   :  { %7603 = vmatprep.subr.bf16.mxu1 %v8416_v46  ;;  %v8466_v46 = vld [vmem:[#allocation2 + $0x718] sm:$0xff]  }
  0xf7   :  { %7582 = vmatpush3.bf16.msra.mxu0 %v8417_v47  ;;  %v8468_v47 = vld [vmem:[#allocation2 + $0x760] sm:$0xff]  }
  0xf8   :  { %7611 = vmatprep.subr.bf16.mxu0 %v8420_v50  ;;  %7604 = vmatpush3.bf16.msra.mxu1 %v8418_v48  ;;  %v8467_v48 = vld [vmem:[#allocation2 + $0x798] sm:$0xff]   ;;  %v8470_v50 = vld [vmem:[#allocation2 + $0x720] sm:$0xff]  }
  0xf9   :  { %7633 = vmatprep.subr.bf16.mxu1 %v8421_v51  ;;  %v8472_v51 = vld [vmem:[#allocation2 + $0x768] sm:$0xff]  }
  0xfa   :  { %5638 = vmatmul.mubr.bf16.vlgmr.msra.gmra.mrb[20].mxu0 %v1364_v49  ;;  %v8469_v49 = vld [vmem:[#allocation2 + $0x7e0] sm:$0xff]  }
  0xfb   :  { %7612 = vmatpush3.bf16.msra.mxu0 %v8422_v52  ;;  %5678 = vmatmul.mubr.bf16.vlgmr.msra.gmra.mrb[20].mxu1 %v1380_v54  ;;  %v8471_v52 = vld [vmem:[#allocation2 + $0x7a0] sm:$0xff]  }
  0xfc   :  { %7613 = vmatprep.subr.bf16.mxu0 %v8424_v55  ;;  %7634 = vmatpush3.bf16.msra.mxu1 %v8423_v53  ;;  %v8473_v53 = vld [vmem:[#allocation2 + $0x7e8] sm:$0xff]   ;;  %v6769_v54 = vld [vmem:[#allocation5] ss:$0 sm:$0xff] }
  0xfd   :  { %7635 = vmatprep.subr.bf16.mxu1 %v8425_v56  ;;  %5717 = vmatprep.mubr.bf16.mxu0 %v1420_v27  ;;  %v8474_v55 = vld [vmem:[#allocation2 + $0x728] sm:$0xff]   ;;  %v8497_v27 = vld [vmem:[#allocation2 + $0x858] sm:$0xff]  }
  0xfe   :  { %5757 = vmatprep.mubr.bf16.mxu1 %v1430_v32  ;;  %v8502_v32 = vld [vmem:[#allocation2 + $0x8e0] sm:$0xff]  }
  0xff   :  { %7614 = vmatpush3.bf16.msra.mxu0 %v8426_v57  ;;  %v8476_v57 = vld [vmem:[#allocation2 + $0x770] sm:$0xff]  }
 0x100   :  { %7615 = vmatprep.subr.bf16.mxu0 %v8428_v59  ;;  %7636 = vmatpush3.bf16.msra.mxu1 %v8427_v58  ;;  %v8475_v59 = vld [vmem:[#allocation2 + $0x7a8] sm:$0xff]  }
 0x101   :  { %7637 = vmatprep.subr.bf16.mxu1 %v8429_v60 }
 0x103   :  { %7616 = vmatpush3.bf16.msra.mxu0 %v8430_v61 }
 0x104   :  { %7617 = vmatprep.subr.bf16.mxu0 %v8432_v63  ;;  %7638 = vmatpush3.bf16.msra.mxu1 %v8431_v62  ;;  %v8477_v63 = vld [vmem:[#allocation2 + $0x7f0] sm:$0xff]  }
 0x105   :  { %7639 = vmatprep.subr.bf16.mxu1 %v8433_v0  ;;  %v8478_v0 = vld [vmem:[#allocation2 + $0x730] sm:$0xff]  }
 0x107   :  { %7618 = vmatpush3.bf16.msra.mxu0 %v8434_v1 }
 0x108   :  { %7619 = vmatprep.subr.bf16.mxu0 %v8436_v3  ;;  %7640 = vmatpush3.bf16.msra.mxu1 %v8435_v2  ;;  %v8479_v3 = vld [vmem:[#allocation2 + $0x7b0] sm:$0xff]  }
 0x109   :  { %7641 = vmatprep.subr.bf16.mxu1 %v8437_v4 }
 0x10b   :  { %7620 = vmatpush3.bf16.msra.mxu0 %v8438_v5 }
 0x10c   :  { %7621 = vmatprep.subr.bf16.mxu0 %v8440_v7  ;;  %7642 = vmatpush3.bf16.msra.mxu1 %v8439_v6  ;;  %v8480_v7 = vld [vmem:[#allocation2 + $0x778] sm:$0xff]  }
 0x10d   :  { %7643 = vmatprep.subr.bf16.mxu1 %v8441_v8 }
 0x10f   :  { %7622 = vmatpush3.bf16.msra.mxu0 %v8442_v9  ;;  %v8481_v9 = vld [vmem:[#allocation2 + $0x7f8] sm:$0xff]  }
 0x110   :  { %7623 = vmatprep.subr.bf16.mxu0 %v8444_v11  ;;  %7644 = vmatpush3.bf16.msra.mxu1 %v8443_v10  ;;  %v8482_v11 = vld [vmem:[#allocation2 + $0x738] sm:$0xff]  }
 0x111   :  { %7645 = vmatprep.subr.bf16.mxu1 %v8445_v12  ;;  %v8483_v12 = vld [vmem:[#allocation2 + $0x7b8] sm:$0xff]  }
 0x113   :  { %7624 = vmatpush3.bf16.msra.mxu0 %v8446_v13  ;;  %v1413_v13 = vrot.slane %v9041_v26, %v8991_v35  ;;  %v8496_v26 = vld [vmem:[#allocation2 + $0x890] sm:$0xff]  }
 0x114   :  { %7625 = vmatprep.subr.bf16.mxu0 %v8448_v15  ;;  %7646 = vmatpush3.bf16.msra.mxu1 %v8447_v14  ;;  %v8485_v14 = vld [vmem:[#allocation2 + $0x840] sm:$0xff]  }
 0x115   :  { %7647 = vmatprep.subr.bf16.mxu1 %v8449_v16  ;;  %v8486_v15 = vld [vmem:[#allocation2 + $0x8c0] sm:$0xff]   ;;  %v1429_v18 = vcombine.high %v1413_v13, %v1413_v13 }
 0x116   :  { %v8487_v16 = vld [vmem:[#allocation2 + $0x800] sm:$0xff]  }
 0x117   :  { %7626 = vmatpush3.bf16.msra.mxu0 %v8450_v17  ;;  %v8488_v17 = vld [vmem:[#allocation2 + $0x880] sm:$0xff]  }
 0x118   :  { %7655 = vmatprep.subr.bf16.mxu0 %v8452_v20  ;;  %7648 = vmatpush3.bf16.msra.mxu1 %v8451_v22  ;;  %v8490_v20 = vld [vmem:[#allocation2 + $0x8c8] sm:$0xff]  }
 0x119   :  { %7677 = vmatprep.subr.bf16.mxu1 %v8453_v25  ;;  %v8492_v22 = vld [vmem:[#allocation2 + $0x888] sm:$0xff]   ;;  %v8495_v25 = vld [vmem:[#allocation2 + $0x810] sm:$0xff]  }
 0x11a   :  { %5718 = vmatmul.mubr.bf16.vlgmr.msra.gmra.mrb[24].mxu0 %v1406_v24  ;;  %v8494_v24 = vld [vmem:[#allocation2 + $0x8d0] sm:$0xff]  }
 0x11b   :  { %7656 = vmatpush3.bf16.msra.mxu0 %v8454_v28  ;;  %5758 = vmatmul.mubr.bf16.vlgmr.msra.gmra.mrb[24].mxu1 %v1428_v30  ;;  %v8498_v28 = vld [vmem:[#allocation2 + $0x8d8] sm:$0xff]  }
 0x11c   :  { %7657 = vmatprep.subr.bf16.mxu0 %v8456_v31  ;;  %7678 = vmatpush3.bf16.msra.mxu1 %v8455_v33  ;;  %v8500_v30 = vld [vmem:[#allocation2 + $0x898] sm:$0xff]   ;;  %v8501_v31 = vld [vmem:[#allocation2 + $0x860] sm:$0xff]  }
 0x11d   :  { %5797 = vmatprep.mubr.bf16.mxu0 %v1427_v34  ;;  %7679 = vmatprep.subr.bf16.mxu1 %v8457_v36  ;;  %v8503_v33 = vld [vmem:[#allocation2 + $0x820] sm:$0xff]   ;;  %v8505_v36 = vld [vmem:[#allocation2 + $0x868] sm:$0xff]  }
 0x11e   :  { %5837 = vmatprep.mubr.bf16.mxu1 %v1431_v38  ;;  %v8504_v34 = vld [vmem:[#allocation2 + $0x8a0] sm:$0xff]   ;;  %v8507_v38 = vld [vmem:[#allocation2 + $0x828] sm:$0xff]  }
 0x11f   :  { %7658 = vmatpush3.bf16.msra.mxu0 %v8458_v37  ;;  %v8506_v37 = vld [vmem:[#allocation2 + $0x8e8] sm:$0xff]  }
 0x120   :  { %7659 = vmatprep.subr.bf16.mxu0 %v8460_v39  ;;  %7680 = vmatpush3.bf16.msra.mxu1 %v8459_v40  ;;  %v8508_v39 = vld [vmem:[#allocation2 + $0x8a8] sm:$0xff]  }
 0x121   :  { %7681 = vmatprep.subr.bf16.mxu1 %v8461_v41  ;;  %v8509_v41 = vld [vmem:[#allocation2 + $0x870] sm:$0xff]  }
 0x123   :  { %7660 = vmatpush3.bf16.msra.mxu0 %v8462_v42 }
 0x124   :  { %7661 = vmatprep.subr.bf16.mxu0 %v8464_v43  ;;  %7682 = vmatpush3.bf16.msra.mxu1 %v8463_v44  ;;  %v8510_v43 = vld [vmem:[#allocation2 + $0x8f0] sm:$0xff]  }
 0x125   :  { %7683 = vmatprep.subr.bf16.mxu1 %v8465_v45 }
 0x127   :  { %7662 = vmatpush3.bf16.msra.mxu0 %v8466_v46 }
 0x128   :  { %7663 = vmatprep.subr.bf16.mxu0 %v8468_v47  ;;  %7684 = vmatpush3.bf16.msra.mxu1 %v8467_v48 }
 0x129   :  { %7685 = vmatprep.subr.bf16.mxu1 %v8469_v49  ;;  %v8511_v49 = vld [vmem:[#allocation2 + $0x830] sm:$0xff]  }
 0x12b   :  { %7664 = vmatpush3.bf16.msra.mxu0 %v8470_v50  ;;  %v8512_v50 = vld [vmem:[#allocation2 + $0x8b0] sm:$0xff]  }
 0x12c   :  { %7665 = vmatprep.subr.bf16.mxu0 %v8472_v51  ;;  %7686 = vmatpush3.bf16.msra.mxu1 %v8471_v52 }
 0x12d   :  { %v7363_v56 = vpop.f32.mrb[0].mxu0  ;;  %7687 = vmatprep.subr.bf16.mxu1 %v8473_v53 }
 0x12e   :  { %v7364_v58 = vpop.f32.mrb[1].mxu0  ;;  %v7385_v60 = vpop.f32.mrb[0].mxu1 }
 0x12f   :  { %v7365_v61 = vadd.f32 %v7364_v58, %v7363_v56  ;;  %v7366_v62 = vpop.f32.mrb[2].mxu0  ;;  %v7386_v1 = vpop.f32.mrb[1].mxu1  ;;  %7666 = vmatpush3.bf16.msra.mxu0 %v8474_v55  ;;  %v8514_v56 = vld [vmem:[#allocation2 + $0x8f8] sm:$0xff]  }
 0x130   :  { %v7367_v2 = vpop.f32.mrb[3].mxu0  ;;  %v7387_v5 = vadd.f32 %v7386_v1, %v7385_v60  ;;  %v7388_v6 = vpop.f32.mrb[2].mxu1  ;;  %7667 = vmatprep.subr.bf16.mxu0 %v8476_v57  ;;  %7688 = vmatpush3.bf16.msra.mxu1 %v8475_v59  ;;  %v8515_v58 = vld [vmem:[#allocation2 + $0x838] sm:$0xff]   ;;  %v63_v59 = vld [vmem:[%s9212_s0 + $0x20] sm:$0xff] }
 0x131   :  { %v5240_v4 = vadd.f32 %v7365_v61, %v6769_v54  ;;  %v7389_v8 = vpop.f32.mrb[3].mxu1  ;;  %7689 = vmatprep.subr.bf16.mxu1 %v8477_v63  ;;  %v8513_v54 = vld [vmem:[#allocation2 + $0x878] sm:$0xff]   ;;  %v1439_v60 = vrot.slane %v63_v59, %v8991_v35  ;;  %v8517_v61 = vld [vmem:[#allocation2 + $0x940] sm:$0xff]   ;;  %v1432_v62 = vcombine.high %v63_v59, %v63_v59  ;;  %v8554_v59 = vld [vmem:[#allocation2 + $0xa48] sm:$0xff]  }
 0x132   :  { %v8516_v63 = vld [vmem:[#allocation2 + $0x8b8] sm:$0xff]   ;;  %v8518_v2 = vld [vmem:[#allocation2 + $0x9c0] sm:$0xff]  }
 0x133   :  { %v9047_v10 = vadd.f32 %v7387_v5, %v5240_v4  ;;  %7668 = vmatpush3.bf16.msra.mxu0 %v8478_v0  ;;  %v1447_v0 = vcombine.high %v1439_v60, %v1439_v60  ;;  %v1455_v1 = vrot.slane %v1439_v60, %v8991_v35  ;;  %v8519_v4 = vld [vmem:[#allocation2 + $0x900] sm:$0xff]   ;;  %v8555_v60 = vld [vmem:[#allocation2 + $0xac8] sm:$0xff]  }
 0x134   :  { %7669 = vmatprep.subr.bf16.mxu0 %v8480_v7  ;;  %7690 = vmatpush3.bf16.msra.mxu1 %v8479_v3  ;;  %v9060_v3 = vrot.slane %v1432_v62, %v8991_v35  ;;  %v8520_v6 = vld [vmem:[#allocation2 + $0x980] sm:$0xff]   ;;  %v8557_v62 = vld [vmem:[#allocation2 + $0xa88] sm:$0xff]  }
 0x135   :  { %7691 = vmatprep.subr.bf16.mxu1 %v8481_v9  ;;  %v1469_v5 = vrot.slane %v1447_v0, %v8991_v35  ;;  %v1477_v8 = vcombine.high %v1455_v1, %v1455_v1  ;;  %v8521_v9 = vld [vmem:[#allocation2 + $0x948] sm:$0xff]   ;;  %v8559_v0 = vld [vmem:[#allocation2 + $0xad0] sm:$0xff]  }
 0x136   :  { %v1448_v7 = vcombine.high %v9060_v3, %v9060_v3 }
 0x137   :  { %7670 = vmatpush3.bf16.msra.mxu0 %v8482_v11  ;;  %v8522_v11 = vld [vmem:[#allocation2 + $0x9c8] sm:$0xff]  }
 0x138   :  { %7699 = vmatprep.subr.bf16.mxu0 %v8485_v14  ;;  %7692 = vmatpush3.bf16.msra.mxu1 %v8483_v12  ;;  %v1476_v12 = vrot.slane %v1448_v7, %v8991_v35  ;;  %v8524_v14 = vld [vmem:[#allocation2 + $0x988] sm:$0xff]   ;;  %v8566_v7 = vld [vmem:[#allocation2 + $0xa60] sm:$0xff]  }
 0x139   :  { %7721 = vmatprep.subr.bf16.mxu1 %v8486_v15 }
 0x13a   :  { %5798 = vmatmul.mubr.bf16.vlgmr.msra.gmra.mrb[28].mxu0 %v1413_v13  ;;  %v8523_v13 = vld [vmem:[#allocation2 + $0x908] sm:$0xff]   ;;  %v1480_v15 = vcombine.high %v1476_v12, %v1476_v12 }
 0x13b   :  { %7700 = vmatpush3.bf16.msra.mxu0 %v8487_v16  ;;  %5838 = vmatmul.mubr.bf16.vlgmr.msra.gmra.mrb[28].mxu1 %v1429_v18  ;;  %v8525_v16 = vld [vmem:[#allocation2 + $0x950] sm:$0xff]  }
 0x13c   :  { %7701 = vmatprep.subr.bf16.mxu0 %v8489_v19  ;;  %7722 = vmatpush3.bf16.msra.mxu1 %v8488_v17  ;;  %v8526_v17 = vld [vmem:[#allocation2 + $0x9d0] sm:$0xff]  }
 0x13d   :  { %7723 = vmatprep.subr.bf16.mxu1 %v8490_v20  ;;  %5877 = vmatprep.mubr.bf16.mxu0 %v1469_v5  ;;  %v8527_v18 = vld [vmem:[#allocation2 + $0x910] sm:$0xff]   ;;  %v8529_v20 = vld [vmem:[#allocation2 + $0x958] sm:$0xff]  }
 0x13e   :  { %v8528_v19 = vld [vmem:[#allocation2 + $0x990] sm:$0xff]  }
 0x13f   :  { %7702 = vmatpush3.bf16.msra.mxu0 %v8491_v21  ;;  %v8530_v21 = vld [vmem:[#allocation2 + $0x9d8] sm:$0xff]  }
 0x140   :  { %7703 = vmatprep.subr.bf16.mxu0 %v8493_v23  ;;  %7724 = vmatpush3.bf16.msra.mxu1 %v8492_v22  ;;  %v8531_v22 = vld [vmem:[#allocation2 + $0x918] sm:$0xff]  }
 0x141   :  { %7725 = vmatprep.subr.bf16.mxu1 %v8494_v24  ;;  %v8532_v23 = vld [vmem:[#allocation2 + $0x998] sm:$0xff]   ;;  %v8533_v24 = vld [vmem:[#allocation2 + $0x960] sm:$0xff]  }
 0x143   :  { %7704 = vmatpush3.bf16.msra.mxu0 %v8495_v25  ;;  %v8534_v25 = vld [vmem:[#allocation2 + $0x9e0] sm:$0xff]  }
 0x144   :  { %7705 = vmatprep.subr.bf16.mxu0 %v8497_v27  ;;  %7726 = vmatpush3.bf16.msra.mxu1 %v8496_v26  ;;  %v8535_v26 = vld [vmem:[#allocation2 + $0x920] sm:$0xff]  }
 0x145   :  { %7727 = vmatprep.subr.bf16.mxu1 %v8498_v28  ;;  %v8536_v27 = vld [vmem:[#allocation2 + $0x9a0] sm:$0xff]   ;;  %v8537_v28 = vld [vmem:[#allocation2 + $0x968] sm:$0xff]  }
 0x147   :  { %7706 = vmatpush3.bf16.msra.mxu0 %v8499_v29  ;;  %v8538_v29 = vld [vmem:[#allocation2 + $0x9e8] sm:$0xff]  }
 0x148   :  { %7707 = vmatprep.subr.bf16.mxu0 %v8501_v31  ;;  %7728 = vmatpush3.bf16.msra.mxu1 %v8500_v30  ;;  %v8539_v30 = vld [vmem:[#allocation2 + $0x928] sm:$0xff]  }
 0x149   :  { %7729 = vmatprep.subr.bf16.mxu1 %v8502_v32  ;;  %v8540_v32 = vld [vmem:[#allocation2 + $0x9a8] sm:$0xff]  }
 0x14b   :  { %7708 = vmatpush3.bf16.msra.mxu0 %v8503_v33 }
 0x14c   :  { %7709 = vmatprep.subr.bf16.mxu0 %v8505_v36  ;;  %7730 = vmatpush3.bf16.msra.mxu1 %v8504_v34  ;;  %v8541_v34 = vld [vmem:[#allocation2 + $0x970] sm:$0xff]  }
 0x14d   :  { %v7407_v40 = vpop.f32.mrb[4].mxu0  ;;  %7731 = vmatprep.subr.bf16.mxu1 %v8506_v37 }
 0x14e   :  { %v7408_v42 = vpop.f32.mrb[5].mxu0  ;;  %v7429_v44 = vpop.f32.mrb[4].mxu1 }
 0x14f   :  { %v7409_v45 = vadd.f32 %v7408_v42, %v7407_v40  ;;  %v7410_v46 = vpop.f32.mrb[6].mxu0  ;;  %v7430_v47 = vpop.f32.mrb[5].mxu1  ;;  %7710 = vmatpush3.bf16.msra.mxu0 %v8507_v38  ;;  %v8543_v40 = vld [vmem:[#allocation2 + $0x930] sm:$0xff]  }
 0x150   :  { %v7411_v48 = vpop.f32.mrb[7].mxu0  ;;  %v7431_v52 = vadd.f32 %v7430_v47, %v7429_v44  ;;  %v7432_v53 = vpop.f32.mrb[6].mxu1  ;;  %7711 = vmatprep.subr.bf16.mxu0 %v8509_v41  ;;  %7732 = vmatpush3.bf16.msra.mxu1 %v8508_v39  ;;  %v8542_v39 = vld [vmem:[#allocation2 + $0x9f0] sm:$0xff]  }
 0x151   :  { %v5320_v51 = vadd.f32 %v7409_v45, %v9047_v10  ;;  %v7433_v55 = vpop.f32.mrb[7].mxu1  ;;  %7733 = vmatprep.subr.bf16.mxu1 %v8510_v43  ;;  %v1479_v10 = vcombine.high %v1469_v5, %v1469_v5  ;;  %v8544_v46 = vld [vmem:[#allocation2 + $0x9b0] sm:$0xff]   ;;  %v8545_v48 = vld [vmem:[#allocation2 + $0x978] sm:$0xff]   ;;  %v1462_v53 = vrot.slane %v9060_v3, %v8991_v35 }
 0x152   :  { %v8551_v55 = vld [vmem:[#allocation2 + $0xac0] sm:$0xff]   ;;  %v8562_v3 = vld [vmem:[#allocation2 + $0xa58] sm:$0xff]  }
 0x153   :  { %v9052_v57 = vadd.f32 %v7431_v52, %v5320_v51  ;;  %7712 = vmatpush3.bf16.msra.mxu0 %v8511_v49  ;;  %5917 = vmatprep.mubr.bf16.mxu1 %v1479_v10  ;;  %v8547_v51 = vld [vmem:[#allocation2 + $0x938] sm:$0xff]   ;;  %v8569_v10 = vld [vmem:[#allocation2 + $0xaa0] sm:$0xff]  }
 0x154   :  { %7713 = vmatprep.subr.bf16.mxu0 %v8513_v54  ;;  %7734 = vmatpush3.bf16.msra.mxu1 %v8512_v50  ;;  %v8546_v50 = vld [vmem:[#allocation2 + $0x9f8] sm:$0xff]   ;;  %v8550_v54 = vld [vmem:[#allocation2 + $0xa40] sm:$0xff]  }
 0x155   :  { %7735 = vmatprep.subr.bf16.mxu1 %v8514_v56  ;;  %v8548_v52 = vld [vmem:[#allocation2 + $0x9b8] sm:$0xff]   ;;  %v8552_v56 = vld [vmem:[#allocation2 + $0xa00] sm:$0xff]  }
 0x156   :  { %v8564_v5 = vld [vmem:[#allocation2 + $0xa18] sm:$0xff]  }
 0x157   :  { %7714 = vmatpush3.bf16.msra.mxu0 %v8515_v58  ;;  %v1478_v58 = vcombine.high %v1462_v53, %v1462_v53 }
 0x158   :  { %7743 = vmatprep.subr.bf16.mxu0 %v8517_v61  ;;  %7736 = vmatpush3.bf16.msra.mxu1 %v8516_v63  ;;  %v8556_v61 = vld [vmem:[#allocation2 + $0xa08] sm:$0xff]   ;;  %v8558_v63 = vld [vmem:[#allocation2 + $0xa50] sm:$0xff]  }
 0x159   :  { %7765 = vmatprep.subr.bf16.mxu1 %v8518_v2  ;;  %v8561_v2 = vld [vmem:[#allocation2 + $0xa90] sm:$0xff]  }
 0x15a   :  { %5878 = vmatmul.mubr.bf16.vlgmr.msra.gmra.mrb[32].mxu0 %v1455_v1  ;;  %v8560_v1 = vld [vmem:[#allocation2 + $0xa10] sm:$0xff]  }
 0x15b   :  { %7744 = vmatpush3.bf16.msra.mxu0 %v8519_v4  ;;  %5918 = vmatmul.mubr.bf16.vlgmr.msra.gmra.mrb[32].mxu1 %v1477_v8  ;;  %v8563_v4 = vld [vmem:[#allocation2 + $0xad8] sm:$0xff]   ;;  %v8567_v8 = vld [vmem:[#allocation2 + $0xae0] sm:$0xff]  }
 0x15c   :  { %7745 = vmatprep.subr.bf16.mxu0 %v8521_v9  ;;  %7766 = vmatpush3.bf16.msra.mxu1 %v8520_v6  ;;  %v8565_v6 = vld [vmem:[#allocation2 + $0xa98] sm:$0xff]   ;;  %v8568_v9 = vld [vmem:[#allocation2 + $0xa20] sm:$0xff]  }
 0x15d   :  { %5957 = vmatprep.mubr.bf16.mxu0 %v1476_v12  ;;  %7767 = vmatprep.subr.bf16.mxu1 %v8522_v11  ;;  %v8570_v11 = vld [vmem:[#allocation2 + $0xa68] sm:$0xff]  }
 0x15e   :  { %5997 = vmatprep.mubr.bf16.mxu1 %v1480_v15  ;;  %v8571_v12 = vld [vmem:[#allocation2 + $0xae8] sm:$0xff]  }
 0x15f   :  { %7746 = vmatpush3.bf16.msra.mxu0 %v8523_v13  ;;  %v8572_v13 = vld [vmem:[#allocation2 + $0xa28] sm:$0xff]  }
 0x160   :  { %7747 = vmatprep.subr.bf16.mxu0 %v8525_v16  ;;  %7768 = vmatpush3.bf16.msra.mxu1 %v8524_v14  ;;  %v8573_v15 = vld [vmem:[#allocation2 + $0xaa8] sm:$0xff]  }
 0x161   :  { %7769 = vmatprep.subr.bf16.mxu1 %v8526_v17  ;;  %v8574_v17 = vld [vmem:[#allocation2 + $0xa70] sm:$0xff]  }
 0x163   :  { %7748 = vmatpush3.bf16.msra.mxu0 %v8527_v18 }
 0x164   :  { %7749 = vmatprep.subr.bf16.mxu0 %v8529_v20  ;;  %7770 = vmatpush3.bf16.msra.mxu1 %v8528_v19 }
 0x165   :  { %7771 = vmatprep.subr.bf16.mxu1 %v8530_v21 }
 0x167   :  { %7750 = vmatpush3.bf16.msra.mxu0 %v8531_v22 }
 0x168   :  { %7751 = vmatprep.subr.bf16.mxu0 %v8533_v24  ;;  %7772 = vmatpush3.bf16.msra.mxu1 %v8532_v23  ;;  %v8575_v23 = vld [vmem:[#allocation2 + $0xaf0] sm:$0xff]  }
 0x169   :  { %7773 = vmatprep.subr.bf16.mxu1 %v8534_v25  ;;  %v8576_v24 = vld [vmem:[#allocation2 + $0xa30] sm:$0xff]  }
 0x16b   :  { %7752 = vmatpush3.bf16.msra.mxu0 %v8535_v26 }
 0x16c   :  { %7753 = vmatprep.subr.bf16.mxu0 %v8537_v28  ;;  %7774 = vmatpush3.bf16.msra.mxu1 %v8536_v27  ;;  %v8577_v28 = vld [vmem:[#allocation2 + $0xab0] sm:$0xff]  }
 0x16d   :  { %v7451_v31 = vpop.f32.mrb[8].mxu0  ;;  %7775 = vmatprep.subr.bf16.mxu1 %v8538_v29 }
 0x16e   :  { %v7452_v33 = vpop.f32.mrb[9].mxu0  ;;  %v7473_v36 = vpop.f32.mrb[8].mxu1 }
 0x16f   :  { %v7453_v37 = vadd.f32 %v7452_v33, %v7451_v31  ;;  %v7454_v38 = vpop.f32.mrb[10].mxu0  ;;  %v7474_v41 = vpop.f32.mrb[9].mxu1  ;;  %7754 = vmatpush3.bf16.msra.mxu0 %v8539_v30  ;;  %v8578_v30 = vld [vmem:[#allocation2 + $0xa78] sm:$0xff]  }
 0x170   :  { %v7455_v42 = vpop.f32.mrb[11].mxu0  ;;  %v7475_v44 = vadd.f32 %v7474_v41, %v7473_v36  ;;  %v7476_v45 = vpop.f32.mrb[10].mxu1  ;;  %7755 = vmatprep.subr.bf16.mxu0 %v8541_v34  ;;  %7776 = vmatpush3.bf16.msra.mxu1 %v8540_v32  ;;  %v8579_v32 = vld [vmem:[#allocation2 + $0xaf8] sm:$0xff]   ;;  %v64_v34 = vld [vmem:[%s9212_s0 + $0x28] sm:$0xff] }
 0x171   :  { %v5400_v43 = vadd.f32 %v7453_v37, %v9052_v57  ;;  %v7477_v47 = vpop.f32.mrb[11].mxu1  ;;  %7777 = vmatprep.subr.bf16.mxu1 %v8542_v39  ;;  %v8553_v57 = vld [vmem:[#allocation2 + $0xa80] sm:$0xff]   ;;  %v8580_v33 = vld [vmem:[#allocation2 + $0xa38] sm:$0xff]   ;;  %v1488_v36 = vrot.slane %v64_v34, %v8991_v35  ;;  %v1481_v38 = vcombine.high %v64_v34, %v64_v34  ;;  %v8619_v34 = vld [vmem:[#allocation2 + $0xc48] sm:$0xff]  }
 0x172   :  { %v8582_v37 = vld [vmem:[#allocation2 + $0xb40] sm:$0xff]   ;;  %v8581_v39 = vld [vmem:[#allocation2 + $0xab8] sm:$0xff]  }
 0x173   :  { %v9067_v49 = vadd.f32 %v7475_v44, %v5400_v43  ;;  %7756 = vmatpush3.bf16.msra.mxu0 %v8543_v40  ;;  %v1496_v40 = vcombine.high %v1488_v36, %v1488_v36  ;;  %v1504_v41 = vrot.slane %v1488_v36, %v8991_v35  ;;  %v8583_v42 = vld [vmem:[#allocation2 + $0xbc0] sm:$0xff]   ;;  %v9080_v43 = vrot.slane %v1481_v38, %v8991_v35  ;;  %v8620_v36 = vld [vmem:[#allocation2 + $0xcc8] sm:$0xff]  }
 0x174   :  { %7757 = vmatprep.subr.bf16.mxu0 %v8545_v48  ;;  %7778 = vmatpush3.bf16.msra.mxu1 %v8544_v46  ;;  %v8584_v44 = vld [vmem:[#allocation2 + $0xb00] sm:$0xff]   ;;  %v8622_v38 = vld [vmem:[#allocation2 + $0xc88] sm:$0xff]  }
 0x175   :  { %7779 = vmatprep.subr.bf16.mxu1 %v8546_v50  ;;  %v1518_v45 = vrot.slane %v1496_v40, %v8991_v35  ;;  %v8585_v46 = vld [vmem:[#allocation2 + $0xb80] sm:$0xff]   ;;  %v1497_v47 = vcombine.high %v9080_v43, %v9080_v43  ;;  %v1526_v48 = vcombine.high %v1504_v41, %v1504_v41  ;;  %v8624_v40 = vld [vmem:[#allocation2 + $0xcd0] sm:$0xff]  }
 0x177   :  { %7758 = vmatpush3.bf16.msra.mxu0 %v8547_v51  ;;  %v1528_v50 = vcombine.high %v1518_v45, %v1518_v45  ;;  %v8587_v51 = vld [vmem:[#allocation2 + $0xbc8] sm:$0xff]  }
 0x178   :  { %7787 = vmatprep.subr.bf16.mxu0 %v8550_v54  ;;  %7780 = vmatpush3.bf16.msra.mxu1 %v8548_v52  ;;  %v1525_v52 = vrot.slane %v1497_v47, %v8991_v35  ;;  %v8589_v54 = vld [vmem:[#allocation2 + $0xb88] sm:$0xff]   ;;  %v8631_v47 = vld [vmem:[#allocation2 + $0xc60] sm:$0xff]  }
 0x179   :  { %7809 = vmatprep.subr.bf16.mxu1 %v8551_v55 }
 0x17a   :  { %5958 = vmatmul.mubr.bf16.vlgmr.msra.gmra.mrb[36].mxu0 %v1462_v53  ;;  %v8588_v53 = vld [vmem:[#allocation2 + $0xb08] sm:$0xff]   ;;  %v1529_v55 = vcombine.high %v1525_v52, %v1525_v52 }
 0x17b   :  { %7788 = vmatpush3.bf16.msra.mxu0 %v8552_v56  ;;  %5998 = vmatmul.mubr.bf16.vlgmr.msra.gmra.mrb[36].mxu1 %v1478_v58  ;;  %v8590_v56 = vld [vmem:[#allocation2 + $0xb50] sm:$0xff]  }
 0x17c   :  { %7789 = vmatprep.subr.bf16.mxu0 %v8554_v59  ;;  %7810 = vmatpush3.bf16.msra.mxu1 %v8553_v57  ;;  %v8591_v57 = vld [vmem:[#allocation2 + $0xbd0] sm:$0xff]  }
 0x17d   :  { %7811 = vmatprep.subr.bf16.mxu1 %v8555_v60  ;;  %6037 = vmatprep.mubr.bf16.mxu0 %v1518_v45  ;;  %v8592_v58 = vld [vmem:[#allocation2 + $0xb10] sm:$0xff]   ;;  %v8594_v60 = vld [vmem:[#allocation2 + $0xb58] sm:$0xff]  }
 0x17e   :  { %6077 = vmatprep.mubr.bf16.mxu1 %v1528_v50  ;;  %v8593_v59 = vld [vmem:[#allocation2 + $0xb90] sm:$0xff]   ;;  %v8629_v45 = vld [vmem:[#allocation2 + $0xc18] sm:$0xff]   ;;  %v8634_v50 = vld [vmem:[#allocation2 + $0xca0] sm:$0xff]  }
 0x17f   :  { %7790 = vmatpush3.bf16.msra.mxu0 %v8556_v61  ;;  %v8595_v61 = vld [vmem:[#allocation2 + $0xbd8] sm:$0xff]  }
 0x180   :  { %7791 = vmatprep.subr.bf16.mxu0 %v8558_v63  ;;  %7812 = vmatpush3.bf16.msra.mxu1 %v8557_v62  ;;  %v8596_v62 = vld [vmem:[#allocation2 + $0xb18] sm:$0xff]  }
 0x181   :  { %7813 = vmatprep.subr.bf16.mxu1 %v8559_v0  ;;  %v8597_v63 = vld [vmem:[#allocation2 + $0xb98] sm:$0xff]   ;;  %v8598_v0 = vld [vmem:[#allocation2 + $0xb60] sm:$0xff]  }
 0x183   :  { %7792 = vmatpush3.bf16.msra.mxu0 %v8560_v1  ;;  %v8599_v1 = vld [vmem:[#allocation2 + $0xbe0] sm:$0xff]  }
 0x184   :  { %7793 = vmatprep.subr.bf16.mxu0 %v8562_v3  ;;  %7814 = vmatpush3.bf16.msra.mxu1 %v8561_v2  ;;  %v8600_v2 = vld [vmem:[#allocation2 + $0xb20] sm:$0xff]  }
 0x185   :  { %7815 = vmatprep.subr.bf16.mxu1 %v8563_v4  ;;  %v8601_v3 = vld [vmem:[#allocation2 + $0xba0] sm:$0xff]   ;;  %v8602_v4 = vld [vmem:[#allocation2 + $0xb68] sm:$0xff]  }
 0x187   :  { %7794 = vmatpush3.bf16.msra.mxu0 %v8564_v5  ;;  %v8603_v5 = vld [vmem:[#allocation2 + $0xbe8] sm:$0xff]  }
 0x188   :  { %7795 = vmatprep.subr.bf16.mxu0 %v8566_v7  ;;  %7816 = vmatpush3.bf16.msra.mxu1 %v8565_v6  ;;  %v8604_v7 = vld [vmem:[#allocation2 + $0xb28] sm:$0xff]  }
 0x189   :  { %7817 = vmatprep.subr.bf16.mxu1 %v8567_v8 }
 0x18b   :  { %7796 = vmatpush3.bf16.msra.mxu0 %v8568_v9  ;;  %v8605_v9 = vld [vmem:[#allocation2 + $0xba8] sm:$0xff]  }
 0x18c   :  { %7797 = vmatprep.subr.bf16.mxu0 %v8570_v11  ;;  %7818 = vmatpush3.bf16.msra.mxu1 %v8569_v10 }
 0x18d   :  { %v7495_v14 = vpop.f32.mrb[12].mxu0  ;;  %7819 = vmatprep.subr.bf16.mxu1 %v8571_v12 }
 0x18e   :  { %v7496_v16 = vpop.f32.mrb[13].mxu0  ;;  %v7517_v18 = vpop.f32.mrb[12].mxu1 }
 0x18f   :  { %v7497_v19 = vadd.f32 %v7496_v16, %v7495_v14  ;;  %v7498_v20 = vpop.f32.mrb[14].mxu0  ;;  %v7518_v21 = vpop.f32.mrb[13].mxu1  ;;  %7798 = vmatpush3.bf16.msra.mxu0 %v8572_v13  ;;  %v8606_v13 = vld [vmem:[#allocation2 + $0xb70] sm:$0xff]  }
 0x190   :  { %v7499_v22 = vpop.f32.mrb[15].mxu0  ;;  %v7519_v26 = vadd.f32 %v7518_v21, %v7517_v18  ;;  %v7520_v27 = vpop.f32.mrb[14].mxu1  ;;  %7799 = vmatprep.subr.bf16.mxu0 %v8574_v17  ;;  %7820 = vmatpush3.bf16.msra.mxu1 %v8573_v15  ;;  %v8607_v14 = vld [vmem:[#allocation2 + $0xbf0] sm:$0xff]  }
 0x191   :  { %v5480_v25 = vadd.f32 %v7497_v19, %v9067_v49  ;;  %v7521_v29 = vpop.f32.mrb[15].mxu1  ;;  %7821 = vmatprep.subr.bf16.mxu1 %v8575_v23  ;;  %v8586_v49 = vld [vmem:[#allocation2 + $0xb48] sm:$0xff]   ;;  %v8608_v20 = vld [vmem:[#allocation2 + $0xb30] sm:$0xff]   ;;  %v8613_v27 = vld [vmem:[#allocation2 + $0xbb8] sm:$0xff]  }
 0x192   :  { %v8609_v22 = vld [vmem:[#allocation2 + $0xbb0] sm:$0xff]   ;;  %v8615_v29 = vld [vmem:[#allocation2 + $0xc40] sm:$0xff]  }
 0x193   :  { %v9072_v31 = vadd.f32 %v7519_v26, %v5480_v25  ;;  %7800 = vmatpush3.bf16.msra.mxu0 %v8576_v24  ;;  %v8610_v24 = vld [vmem:[#allocation2 + $0xb78] sm:$0xff]  }
 0x194   :  { %7801 = vmatprep.subr.bf16.mxu0 %v8578_v30  ;;  %7822 = vmatpush3.bf16.msra.mxu1 %v8577_v28  ;;  %v8611_v25 = vld [vmem:[#allocation2 + $0xbf8] sm:$0xff]   ;;  %v1511_v28 = vrot.slane %v9080_v43, %v8991_v35  ;;  %v8616_v30 = vld [vmem:[#allocation2 + $0xcc0] sm:$0xff]  }
 0x195   :  { %7823 = vmatprep.subr.bf16.mxu1 %v8579_v32  ;;  %v8612_v26 = vld [vmem:[#allocation2 + $0xb38] sm:$0xff]   ;;  %v8618_v32 = vld [vmem:[#allocation2 + $0xc80] sm:$0xff]  }
 0x196   :  { %v8627_v43 = vld [vmem:[#allocation2 + $0xc58] sm:$0xff]  }
 0x197   :  { %7802 = vmatpush3.bf16.msra.mxu0 %v8580_v33  ;;  %v1527_v33 = vcombine.high %v1511_v28, %v1511_v28 }
 0x198   :  { %7831 = vmatprep.subr.bf16.mxu0 %v8582_v37  ;;  %7824 = vmatpush3.bf16.msra.mxu1 %v8581_v39  ;;  %v8621_v37 = vld [vmem:[#allocation2 + $0xc08] sm:$0xff]   ;;  %v8623_v39 = vld [vmem:[#allocation2 + $0xc50] sm:$0xff]  }
 0x199   :  { %7853 = vmatprep.subr.bf16.mxu1 %v8583_v42  ;;  %v8626_v42 = vld [vmem:[#allocation2 + $0xc90] sm:$0xff]  }
 0x19a   :  { %6038 = vmatmul.mubr.bf16.vlgmr.msra.gmra.mrb[40].mxu0 %v1504_v41  ;;  %v8625_v41 = vld [vmem:[#allocation2 + $0xc10] sm:$0xff]  }
 0x19b   :  { %7832 = vmatpush3.bf16.msra.mxu0 %v8584_v44  ;;  %6078 = vmatmul.mubr.bf16.vlgmr.msra.gmra.mrb[40].mxu1 %v1526_v48  ;;  %v8628_v44 = vld [vmem:[#allocation2 + $0xcd8] sm:$0xff]   ;;  %v8632_v48 = vld [vmem:[#allocation2 + $0xce0] sm:$0xff]  }
 0x19c   :  { %7833 = vmatprep.subr.bf16.mxu0 %v8586_v49  ;;  %7854 = vmatpush3.bf16.msra.mxu1 %v8585_v46  ;;  %v8630_v46 = vld [vmem:[#allocation2 + $0xc98] sm:$0xff]   ;;  %v8633_v49 = vld [vmem:[#allocation2 + $0xc20] sm:$0xff]  }
 0x19d   :  { %6117 = vmatprep.mubr.bf16.mxu0 %v1525_v52  ;;  %7855 = vmatprep.subr.bf16.mxu1 %v8587_v51  ;;  %v8635_v51 = vld [vmem:[#allocation2 + $0xc68] sm:$0xff]  }
 0x19e   :  { %6157 = vmatprep.mubr.bf16.mxu1 %v1529_v55  ;;  %v8636_v52 = vld [vmem:[#allocation2 + $0xce8] sm:$0xff]  }
 0x19f   :  { %7834 = vmatpush3.bf16.msra.mxu0 %v8588_v53 }
 0x1a0   :  { %7835 = vmatprep.subr.bf16.mxu0 %v8590_v56  ;;  %7856 = vmatpush3.bf16.msra.mxu1 %v8589_v54  ;;  %v8637_v54 = vld [vmem:[#allocation2 + $0xc28] sm:$0xff]   ;;  %v8639_v56 = vld [vmem:[#allocation2 + $0xc70] sm:$0xff]  }
 0x1a1   :  { %7857 = vmatprep.subr.bf16.mxu1 %v8591_v57 }
 0x1a3   :  { %7836 = vmatpush3.bf16.msra.mxu0 %v8592_v58 }
 0x1a4   :  { %7837 = vmatprep.subr.bf16.mxu0 %v8594_v60  ;;  %7858 = vmatpush3.bf16.msra.mxu1 %v8593_v59 }
 0x1a5   :  { %7859 = vmatprep.subr.bf16.mxu1 %v8595_v61  ;;  %v8638_v61 = vld [vmem:[#allocation2 + $0xca8] sm:$0xff]  }
 0x1a7   :  { %7838 = vmatpush3.bf16.msra.mxu0 %v8596_v62 }
 0x1a8   :  { %7839 = vmatprep.subr.bf16.mxu0 %v8598_v0  ;;  %7860 = vmatpush3.bf16.msra.mxu1 %v8597_v63  ;;  %v8640_v63 = vld [vmem:[#allocation2 + $0xcf0] sm:$0xff]  }
 0x1a9   :  { %7861 = vmatprep.subr.bf16.mxu1 %v8599_v1 }
 0x1ab   :  { %7840 = vmatpush3.bf16.msra.mxu0 %v8600_v2 }
 0x1ac   :  { %7841 = vmatprep.subr.bf16.mxu0 %v8602_v4  ;;  %7862 = vmatpush3.bf16.msra.mxu1 %v8601_v3  ;;  %v8641_v3 = vld [vmem:[#allocation2 + $0xc30] sm:$0xff]  }
 0x1ad   :  { %v7539_v6 = vpop.f32.mrb[16].mxu0  ;;  %7863 = vmatprep.subr.bf16.mxu1 %v8603_v5  ;;  %v8643_v5 = vld [vmem:[#allocation2 + $0xc78] sm:$0xff]  }
 0x1ae   :  { %v7540_v8 = vpop.f32.mrb[17].mxu0  ;;  %v7561_v10 = vpop.f32.mrb[16].mxu1 }
 0x1af   :  { %v7541_v11 = vadd.f32 %v7540_v8, %v7539_v6  ;;  %v7542_v12 = vpop.f32.mrb[18].mxu0  ;;  %v7562_v15 = vpop.f32.mrb[17].mxu1  ;;  %7842 = vmatpush3.bf16.msra.mxu0 %v8604_v7  ;;  %v8642_v7 = vld [vmem:[#allocation2 + $0xcb0] sm:$0xff]   ;;  %v8644_v8 = vld [vmem:[#allocation2 + $0xcf8] sm:$0xff]  }
 0x1b0   :  { %v7543_v16 = vpop.f32.mrb[19].mxu0  ;;  %v7563_v18 = vadd.f32 %v7562_v15, %v7561_v10  ;;  %v7564_v19 = vpop.f32.mrb[18].mxu1  ;;  %7843 = vmatprep.subr.bf16.mxu0 %v8606_v13  ;;  %7864 = vmatpush3.bf16.msra.mxu1 %v8605_v9  ;;  %v8645_v9 = vld [vmem:[#allocation2 + $0xc38] sm:$0xff]   ;;  %v65_v10 = vld [vmem:[%s9212_s0 + $0x30] sm:$0xff]  ;;  %v8647_v12 = vld [vmem:[#allocation2 + $0xd40] sm:$0xff]  }
 0x1b1   :  { %v5560_v17 = vadd.f32 %v7541_v11, %v9072_v31  ;;  %v7565_v21 = vpop.f32.mrb[19].mxu1  ;;  %7865 = vmatprep.subr.bf16.mxu1 %v8607_v14  ;;  %v8617_v31 = vld [vmem:[#allocation2 + $0xc00] sm:$0xff]   ;;  %v1537_v11 = vrot.slane %v65_v10, %v8991_v35  ;;  %v1530_v13 = vcombine.high %v65_v10, %v65_v10  ;;  %v8646_v14 = vld [vmem:[#allocation2 + $0xcb8] sm:$0xff]   ;;  %v8684_v10 = vld [vmem:[#allocation2 + $0xe48] sm:$0xff]  }
 0x1b2   :  { %v8649_v19 = vld [vmem:[#allocation2 + $0xd00] sm:$0xff]  }
 0x1b3   :  { %v9087_v23 = vadd.f32 %v7563_v18, %v5560_v17  ;;  %7844 = vmatpush3.bf16.msra.mxu0 %v8608_v20  ;;  %v1545_v15 = vcombine.high %v1537_v11, %v1537_v11  ;;  %v1553_v16 = vrot.slane %v1537_v11, %v8991_v35  ;;  %v8648_v17 = vld [vmem:[#allocation2 + $0xdc0] sm:$0xff]   ;;  %v9100_v18 = vrot.slane %v1530_v13, %v8991_v35  ;;  %v8685_v11 = vld [vmem:[#allocation2 + $0xec8] sm:$0xff]  }
 0x1b4   :  { %7845 = vmatprep.subr.bf16.mxu0 %v8610_v24  ;;  %7866 = vmatpush3.bf16.msra.mxu1 %v8609_v22  ;;  %v8650_v21 = vld [vmem:[#allocation2 + $0xd80] sm:$0xff]   ;;  %v8651_v24 = vld [vmem:[#allocation2 + $0xd48] sm:$0xff]  }
 0x1b5   :  { %7867 = vmatprep.subr.bf16.mxu1 %v8611_v25  ;;  %v1567_v20 = vrot.slane %v1545_v15, %v8991_v35  ;;  %v1546_v22 = vcombine.high %v9100_v18, %v9100_v18  ;;  %v8687_v13 = vld [vmem:[#allocation2 + $0xe88] sm:$0xff]   ;;  %v8689_v15 = vld [vmem:[#allocation2 + $0xed0] sm:$0xff]  }
 0x1b7   :  { %7846 = vmatpush3.bf16.msra.mxu0 %v8612_v26  ;;  %v1577_v25 = vcombine.high %v1567_v20, %v1567_v20  ;;  %v8652_v26 = vld [vmem:[#allocation2 + $0xdc8] sm:$0xff]  }
 0x1b8   :  { %7875 = vmatprep.subr.bf16.mxu0 %v8615_v29  ;;  %7868 = vmatpush3.bf16.msra.mxu1 %v8613_v27  ;;  %v1574_v27 = vrot.slane %v1546_v22, %v8991_v35  ;;  %v8654_v29 = vld [vmem:[#allocation2 + $0xd88] sm:$0xff]   ;;  %v8696_v22 = vld [vmem:[#allocation2 + $0xe60] sm:$0xff]  }
 0x1b9   :  { %7897 = vmatprep.subr.bf16.mxu1 %v8616_v30 }
 0x1ba   :  { %6118 = vmatmul.mubr.bf16.vlgmr.msra.gmra.mrb[44].mxu0 %v1511_v28  ;;  %v8653_v28 = vld [vmem:[#allocation2 + $0xd08] sm:$0xff]   ;;  %v1578_v30 = vcombine.high %v1574_v27, %v1574_v27 }
 0x1bb   :  { %7876 = vmatpush3.bf16.msra.mxu0 %v8617_v31  ;;  %6158 = vmatmul.mubr.bf16.vlgmr.msra.gmra.mrb[44].mxu1 %v1527_v33  ;;  %v8655_v31 = vld [vmem:[#allocation2 + $0xd50] sm:$0xff]  }
 0x1bc   :  { %7877 = vmatprep.subr.bf16.mxu0 %v8619_v34  ;;  %7898 = vmatpush3.bf16.msra.mxu1 %v8618_v32  ;;  %v8656_v32 = vld [vmem:[#allocation2 + $0xdd0] sm:$0xff]  }
 0x1bd   :  { %7899 = vmatprep.subr.bf16.mxu1 %v8620_v36  ;;  %6197 = vmatprep.mubr.bf16.mxu0 %v1567_v20  ;;  %v8657_v33 = vld [vmem:[#allocation2 + $0xd10] sm:$0xff]   ;;  %v8659_v36 = vld [vmem:[#allocation2 + $0xd58] sm:$0xff]  }
 0x1be   :  { %6237 = vmatprep.mubr.bf16.mxu1 %v1577_v25  ;;  %v8658_v34 = vld [vmem:[#allocation2 + $0xd90] sm:$0xff]   ;;  %v8694_v20 = vld [vmem:[#allocation2 + $0xe18] sm:$0xff]   ;;  %v8699_v25 = vld [vmem:[#allocation2 + $0xea0] sm:$0xff]  }
 0x1bf   :  { %7878 = vmatpush3.bf16.msra.mxu0 %v8621_v37  ;;  %v8660_v37 = vld [vmem:[#allocation2 + $0xdd8] sm:$0xff]  }
 0x1c0   :  { %7879 = vmatprep.subr.bf16.mxu0 %v8623_v39  ;;  %7900 = vmatpush3.bf16.msra.mxu1 %v8622_v38  ;;  %v8661_v38 = vld [vmem:[#allocation2 + $0xd18] sm:$0xff]  }
 0x1c1   :  { %7901 = vmatprep.subr.bf16.mxu1 %v8624_v40  ;;  %v8662_v39 = vld [vmem:[#allocation2 + $0xd98] sm:$0xff]   ;;  %v8663_v40 = vld [vmem:[#allocation2 + $0xd60] sm:$0xff]  }
 0x1c3   :  { %7880 = vmatpush3.bf16.msra.mxu0 %v8625_v41  ;;  %v8664_v41 = vld [vmem:[#allocation2 + $0xde0] sm:$0xff]  }
 0x1c4   :  { %7881 = vmatprep.subr.bf16.mxu0 %v8627_v43  ;;  %7902 = vmatpush3.bf16.msra.mxu1 %v8626_v42  ;;  %v8665_v42 = vld [vmem:[#allocation2 + $0xd20] sm:$0xff]  }
 0x1c5   :  { %7903 = vmatprep.subr.bf16.mxu1 %v8628_v44  ;;  %v8666_v43 = vld [vmem:[#allocation2 + $0xda0] sm:$0xff]   ;;  %v8667_v44 = vld [vmem:[#allocation2 + $0xd68] sm:$0xff]  }
 0x1c7   :  { %7882 = vmatpush3.bf16.msra.mxu0 %v8629_v45  ;;  %v8668_v45 = vld [vmem:[#allocation2 + $0xde8] sm:$0xff]  }
 0x1c8   :  { %7883 = vmatprep.subr.bf16.mxu0 %v8631_v47  ;;  %7904 = vmatpush3.bf16.msra.mxu1 %v8630_v46  ;;  %v8669_v47 = vld [vmem:[#allocation2 + $0xd28] sm:$0xff]  }
 0x1c9   :  { %7905 = vmatprep.subr.bf16.mxu1 %v8632_v48 }
 0x1cb   :  { %7884 = vmatpush3.bf16.msra.mxu0 %v8633_v49  ;;  %v8670_v49 = vld [vmem:[#allocation2 + $0xda8] sm:$0xff]  }
 0x1cc   :  { %7885 = vmatprep.subr.bf16.mxu0 %v8635_v51  ;;  %7906 = vmatpush3.bf16.msra.mxu1 %v8634_v50 }
 0x1cd   :  { %v7583_v53 = vpop.f32.mrb[20].mxu0  ;;  %7907 = vmatprep.subr.bf16.mxu1 %v8636_v52 }
 0x1ce   :  { %v7584_v55 = vpop.f32.mrb[21].mxu0  ;;  %v7605_v57 = vpop.f32.mrb[20].mxu1 }
 0x1cf   :  { %v7585_v58 = vadd.f32 %v7584_v55, %v7583_v53  ;;  %v7586_v59 = vpop.f32.mrb[22].mxu0  ;;  %v7606_v60 = vpop.f32.mrb[21].mxu1  ;;  %7886 = vmatpush3.bf16.msra.mxu0 %v8637_v54  ;;  %v8671_v53 = vld [vmem:[#allocation2 + $0xd70] sm:$0xff]  }
 0x1d0   :  { %v7587_v62 = vpop.f32.mrb[23].mxu0  ;;  %v7607_v1 = vadd.f32 %v7606_v60, %v7605_v57  ;;  %v7608_v2 = vpop.f32.mrb[22].mxu1  ;;  %7887 = vmatprep.subr.bf16.mxu0 %v8639_v56  ;;  %7908 = vmatpush3.bf16.msra.mxu1 %v8638_v61  ;;  %v8672_v54 = vld [vmem:[#allocation2 + $0xdf0] sm:$0xff]  }
 0x1d1   :  { %v5640_v0 = vadd.f32 %v7585_v58, %v9087_v23  ;;  %v7609_v4 = vpop.f32.mrb[23].mxu1  ;;  %7909 = vmatprep.subr.bf16.mxu1 %v8640_v63  ;;  %v1575_v23 = vcombine.high %v1553_v16, %v1553_v16  ;;  %v8673_v60 = vld [vmem:[#allocation2 + $0xd30] sm:$0xff]   ;;  %v8677_v2 = vld [vmem:[#allocation2 + $0xd38] sm:$0xff]  }
 0x1d2   :  { %v8674_v62 = vld [vmem:[#allocation2 + $0xdb0] sm:$0xff]   ;;  %v1560_v4 = vrot.slane %v9100_v18, %v8991_v35  ;;  %v8692_v18 = vld [vmem:[#allocation2 + $0xe58] sm:$0xff]  }
 0x1d3   :  { %v9092_v6 = vadd.f32 %v7607_v1, %v5640_v0  ;;  %7888 = vmatpush3.bf16.msra.mxu0 %v8641_v3  ;;  %v8675_v0 = vld [vmem:[#allocation2 + $0xd78] sm:$0xff]  }
 0x1d4   :  { %7889 = vmatprep.subr.bf16.mxu0 %v8643_v5  ;;  %7910 = vmatpush3.bf16.msra.mxu1 %v8642_v7  ;;  %v8676_v1 = vld [vmem:[#allocation2 + $0xdf8] sm:$0xff]   ;;  %v8680_v5 = vld [vmem:[#allocation2 + $0xe40] sm:$0xff]  }
 0x1d5   :  { %7911 = vmatprep.subr.bf16.mxu1 %v8644_v8  ;;  %v8678_v3 = vld [vmem:[#allocation2 + $0xdb8] sm:$0xff]   ;;  %v8682_v7 = vld [vmem:[#allocation2 + $0xe00] sm:$0xff]  }
 0x1d6   :  { %v8683_v8 = vld [vmem:[#allocation2 + $0xe80] sm:$0xff]  }
 0x1d7   :  { %7890 = vmatpush3.bf16.msra.mxu0 %v8645_v9  ;;  %v1576_v9 = vcombine.high %v1560_v4, %v1560_v4 }
 0x1d8   :  { %7919 = vmatprep.subr.bf16.mxu0 %v8647_v12  ;;  %7912 = vmatpush3.bf16.msra.mxu1 %v8646_v14  ;;  %v8686_v12 = vld [vmem:[#allocation2 + $0xe08] sm:$0xff]   ;;  %v8688_v14 = vld [vmem:[#allocation2 + $0xe50] sm:$0xff]  }
 0x1d9   :  { %7941 = vmatprep.subr.bf16.mxu1 %v8648_v17  ;;  %v8691_v17 = vld [vmem:[#allocation2 + $0xe90] sm:$0xff]  }
 0x1da   :  { %6198 = vmatmul.mubr.bf16.vlgmr.msra.gmra.mrb[48].mxu0 %v1553_v16  ;;  %v8690_v16 = vld [vmem:[#allocation2 + $0xe10] sm:$0xff]  }
 0x1db   :  { %7920 = vmatpush3.bf16.msra.mxu0 %v8649_v19  ;;  %6238 = vmatmul.mubr.bf16.vlgmr.msra.gmra.mrb[48].mxu1 %v1575_v23  ;;  %v8693_v19 = vld [vmem:[#allocation2 + $0xed8] sm:$0xff]   ;;  %v8697_v23 = vld [vmem:[#allocation2 + $0xee0] sm:$0xff]  }
 0x1dc   :  { %7921 = vmatprep.subr.bf16.mxu0 %v8651_v24  ;;  %7942 = vmatpush3.bf16.msra.mxu1 %v8650_v21  ;;  %v8695_v21 = vld [vmem:[#allocation2 + $0xe98] sm:$0xff]   ;;  %v8698_v24 = vld [vmem:[#allocation2 + $0xe20] sm:$0xff]  }
 0x1dd   :  { %6277 = vmatprep.mubr.bf16.mxu0 %v1574_v27  ;;  %7943 = vmatprep.subr.bf16.mxu1 %v8652_v26  ;;  %v8700_v26 = vld [vmem:[#allocation2 + $0xe68] sm:$0xff]  }
 0x1de   :  { %6317 = vmatprep.mubr.bf16.mxu1 %v1578_v30  ;;  %v8701_v27 = vld [vmem:[#allocation2 + $0xee8] sm:$0xff]  }
 0x1df   :  { %7922 = vmatpush3.bf16.msra.mxu0 %v8653_v28 }
 0x1e0   :  { %7923 = vmatprep.subr.bf16.mxu0 %v8655_v31  ;;  %7944 = vmatpush3.bf16.msra.mxu1 %v8654_v29  ;;  %v8702_v29 = vld [vmem:[#allocation2 + $0xe28] sm:$0xff]   ;;  %v8704_v31 = vld [vmem:[#allocation2 + $0xe70] sm:$0xff]  }
 0x1e1   :  { %7945 = vmatprep.subr.bf16.mxu1 %v8656_v32 }
 0x1e3   :  { %7924 = vmatpush3.bf16.msra.mxu0 %v8657_v33 }
 0x1e4   :  { %7925 = vmatprep.subr.bf16.mxu0 %v8659_v36  ;;  %7946 = vmatpush3.bf16.msra.mxu1 %v8658_v34 }
 0x1e5   :  { %7947 = vmatprep.subr.bf16.mxu1 %v8660_v37  ;;  %v8703_v37 = vld [vmem:[#allocation2 + $0xea8] sm:$0xff]  }
 0x1e7   :  { %7926 = vmatpush3.bf16.msra.mxu0 %v8661_v38 }
 0x1e8   :  { %7927 = vmatprep.subr.bf16.mxu0 %v8663_v40  ;;  %7948 = vmatpush3.bf16.msra.mxu1 %v8662_v39  ;;  %v8705_v39 = vld [vmem:[#allocation2 + $0xef0] sm:$0xff]  }
 0x1e9   :  { %7949 = vmatprep.subr.bf16.mxu1 %v8664_v41 }
 0x1eb   :  { %7928 = vmatpush3.bf16.msra.mxu0 %v8665_v42 }
 0x1ec   :  { %7929 = vmatprep.subr.bf16.mxu0 %v8667_v44  ;;  %7950 = vmatpush3.bf16.msra.mxu1 %v8666_v43  ;;  %v8706_v43 = vld [vmem:[#allocation2 + $0xe30] sm:$0xff]  }
 0x1ed   :  { %v7627_v46 = vpop.f32.mrb[24].mxu0  ;;  %7951 = vmatprep.subr.bf16.mxu1 %v8668_v45  ;;  %v8708_v45 = vld [vmem:[#allocation2 + $0xe78] sm:$0xff]  }
 0x1ee   :  { %v7628_v48 = vpop.f32.mrb[25].mxu0  ;;  %v7649_v50 = vpop.f32.mrb[24].mxu1 }
 0x1ef   :  { %v7629_v51 = vadd.f32 %v7628_v48, %v7627_v46  ;;  %v7630_v52 = vpop.f32.mrb[26].mxu0  ;;  %v7650_v55 = vpop.f32.mrb[25].mxu1  ;;  %7930 = vmatpush3.bf16.msra.mxu0 %v8669_v47  ;;  %v8707_v47 = vld [vmem:[#allocation2 + $0xeb0] sm:$0xff]   ;;  %v8709_v48 = vld [vmem:[#allocation2 + $0xef8] sm:$0xff]  }
 0x1f0   :  { %v7631_v56 = vpop.f32.mrb[27].mxu0  ;;  %v7651_v58 = vadd.f32 %v7650_v55, %v7649_v50  ;;  %v7652_v59 = vpop.f32.mrb[26].mxu1  ;;  %7931 = vmatprep.subr.bf16.mxu0 %v8671_v53  ;;  %7952 = vmatpush3.bf16.msra.mxu1 %v8670_v49  ;;  %v8710_v49 = vld [vmem:[#allocation2 + $0xe38] sm:$0xff]   ;;  %v8712_v52 = vld [vmem:[#allocation2 + $0xf40] sm:$0xff]  }
 0x1f1   :  { %v5720_v57 = vadd.f32 %v7629_v51, %v9092_v6  ;;  %v7653_v61 = vpop.f32.mrb[27].mxu1  ;;  %7953 = vmatprep.subr.bf16.mxu1 %v8672_v54  ;;  %v8681_v6 = vld [vmem:[#allocation2 + $0xec0] sm:$0xff]   ;;  %v66_v50 = vld [vmem:[%s9212_s0 + $0x38] sm:$0xff] }
 0x1f2   :  { %v1586_v51 = vrot.slane %v66_v50, %v8991_v35  ;;  %v1579_v53 = vcombine.high %v66_v50, %v66_v50  ;;  %v8711_v54 = vld [vmem:[#allocation2 + $0xeb8] sm:$0xff]   ;;  %v8714_v59 = vld [vmem:[#allocation2 + $0xf00] sm:$0xff]   ;;  %v8749_v50 = vld [vmem:[#allocation2 + $0x1048] sm:$0xff]  }
 0x1f3   :  { %v9107_v63 = vadd.f32 %v7651_v58, %v5720_v57  ;;  %7932 = vmatpush3.bf16.msra.mxu0 %v8673_v60  ;;  %v8713_v57 = vld [vmem:[#allocation2 + $0xfc0] sm:$0xff]  }
 0x1f4   :  { %7933 = vmatprep.subr.bf16.mxu0 %v8675_v0  ;;  %7954 = vmatpush3.bf16.msra.mxu1 %v8674_v62  ;;  %v1594_v55 = vcombine.high %v1586_v51, %v1586_v51  ;;  %v1602_v56 = vrot.slane %v1586_v51, %v8991_v35  ;;  %v9120_v58 = vrot.slane %v1579_v53, %v8991_v35  ;;  %v8715_v61 = vld [vmem:[#allocation2 + $0xf80] sm:$0xff]   ;;  %v8716_v0 = vld [vmem:[#allocation2 + $0xf48] sm:$0xff]  }
 0x1f5   :  { %7955 = vmatprep.subr.bf16.mxu1 %v8676_v1  ;;  %v8750_v51 = vld [vmem:[#allocation2 + $0x10c8] sm:$0xff]  }
 0x1f6   :  { %v1616_v60 = vrot.slane %v1594_v55, %v8991_v35  ;;  %v1595_v62 = vcombine.high %v9120_v58, %v9120_v58  ;;  %v8752_v53 = vld [vmem:[#allocation2 + $0x1088] sm:$0xff]   ;;  %v8754_v55 = vld [vmem:[#allocation2 + $0x10d0] sm:$0xff]  }
 0x1f7   :  { %7934 = vmatpush3.bf16.msra.mxu0 %v8677_v2  ;;  %v8717_v2 = vld [vmem:[#allocation2 + $0xfc8] sm:$0xff]  }
 0x1f8   :  { %7963 = vmatprep.subr.bf16.mxu0 %v8680_v5  ;;  %7956 = vmatpush3.bf16.msra.mxu1 %v8678_v3  ;;  %v1626_v1 = vcombine.high %v1616_v60, %v1616_v60  ;;  %v1623_v3 = vrot.slane %v1595_v62, %v8991_v35  ;;  %v8719_v5 = vld [vmem:[#allocation2 + $0xf88] sm:$0xff]   ;;  %v8761_v62 = vld [vmem:[#allocation2 + $0x1060] sm:$0xff]  }
 0x1f9   :  { %7985 = vmatprep.subr.bf16.mxu1 %v8681_v6 }
 0x1fa   :  { %6278 = vmatmul.mubr.bf16.vlgmr.msra.gmra.mrb[52].mxu0 %v1560_v4  ;;  %v8718_v4 = vld [vmem:[#allocation2 + $0xf08] sm:$0xff]   ;;  %v1627_v6 = vcombine.high %v1623_v3, %v1623_v3 }
 0x1fb   :  { %7964 = vmatpush3.bf16.msra.mxu0 %v8682_v7  ;;  %6318 = vmatmul.mubr.bf16.vlgmr.msra.gmra.mrb[52].mxu1 %v1576_v9  ;;  %v8720_v7 = vld [vmem:[#allocation2 + $0xf50] sm:$0xff]  }
 0x1fc   :  { %7965 = vmatprep.subr.bf16.mxu0 %v8684_v10  ;;  %7986 = vmatpush3.bf16.msra.mxu1 %v8683_v8  ;;  %v8721_v8 = vld [vmem:[#allocation2 + $0xfd0] sm:$0xff]  }
 0x1fd   :  { %7987 = vmatprep.subr.bf16.mxu1 %v8685_v11  ;;  %6357 = vmatprep.mubr.bf16.mxu0 %v1616_v60  ;;  %v8722_v9 = vld [vmem:[#allocation2 + $0xf10] sm:$0xff]   ;;  %v8724_v11 = vld [vmem:[#allocation2 + $0xf58] sm:$0xff]  }
 0x1fe   :  { %6397 = vmatprep.mubr.bf16.mxu1 %v1626_v1  ;;  %v8723_v10 = vld [vmem:[#allocation2 + $0xf90] sm:$0xff]   ;;  %v8759_v60 = vld [vmem:[#allocation2 + $0x1018] sm:$0xff]   ;;  %v8764_v1 = vld [vmem:[#allocation2 + $0x10a0] sm:$0xff]  }
 0x1ff   :  { %7966 = vmatpush3.bf16.msra.mxu0 %v8686_v12  ;;  %v8725_v12 = vld [vmem:[#allocation2 + $0xfd8] sm:$0xff]  }
 0x200   :  { %7967 = vmatprep.subr.bf16.mxu0 %v8688_v14  ;;  %7988 = vmatpush3.bf16.msra.mxu1 %v8687_v13  ;;  %v8726_v13 = vld [vmem:[#allocation2 + $0xf18] sm:$0xff]  }
 0x201   :  { %7989 = vmatprep.subr.bf16.mxu1 %v8689_v15  ;;  %v8727_v14 = vld [vmem:[#allocation2 + $0xf98] sm:$0xff]   ;;  %v8728_v15 = vld [vmem:[#allocation2 + $0xf60] sm:$0xff]  }
 0x203   :  { %7968 = vmatpush3.bf16.msra.mxu0 %v8690_v16  ;;  %v8729_v16 = vld [vmem:[#allocation2 + $0xfe0] sm:$0xff]  }
 0x204   :  { %7969 = vmatprep.subr.bf16.mxu0 %v8692_v18  ;;  %7990 = vmatpush3.bf16.msra.mxu1 %v8691_v17  ;;  %v8730_v17 = vld [vmem:[#allocation2 + $0xf20] sm:$0xff]  }
 0x205   :  { %7991 = vmatprep.subr.bf16.mxu1 %v8693_v19  ;;  %v8731_v18 = vld [vmem:[#allocation2 + $0xfa0] sm:$0xff]   ;;  %v8732_v19 = vld [vmem:[#allocation2 + $0xf68] sm:$0xff]  }
 0x207   :  { %7970 = vmatpush3.bf16.msra.mxu0 %v8694_v20  ;;  %v8733_v20 = vld [vmem:[#allocation2 + $0xfe8] sm:$0xff]  }
 0x208   :  { %7971 = vmatprep.subr.bf16.mxu0 %v8696_v22  ;;  %7992 = vmatpush3.bf16.msra.mxu1 %v8695_v21  ;;  %v8734_v22 = vld [vmem:[#allocation2 + $0xf28] sm:$0xff]  }
 0x209   :  { %7993 = vmatprep.subr.bf16.mxu1 %v8697_v23 }
 0x20b   :  { %7972 = vmatpush3.bf16.msra.mxu0 %v8698_v24  ;;  %v8735_v24 = vld [vmem:[#allocation2 + $0xfa8] sm:$0xff]  }
 0x20c   :  { %7973 = vmatprep.subr.bf16.mxu0 %v8700_v26  ;;  %7994 = vmatpush3.bf16.msra.mxu1 %v8699_v25 }
 0x20d   :  { %v7671_v28 = vpop.f32.mrb[28].mxu0  ;;  %7995 = vmatprep.subr.bf16.mxu1 %v8701_v27 }
 0x20e   :  { %v7672_v30 = vpop.f32.mrb[29].mxu0  ;;  %v7693_v32 = vpop.f32.mrb[28].mxu1 }
 0x20f   :  { %v7673_v33 = vadd.f32 %v7672_v30, %v7671_v28  ;;  %v7674_v34 = vpop.f32.mrb[30].mxu0  ;;  %v7694_v36 = vpop.f32.mrb[29].mxu1  ;;  %7974 = vmatpush3.bf16.msra.mxu0 %v8702_v29  ;;  %v8736_v28 = vld [vmem:[#allocation2 + $0xf70] sm:$0xff]  }
 0x210   :  { %v7675_v38 = vpop.f32.mrb[31].mxu0  ;;  %v7695_v41 = vadd.f32 %v7694_v36, %v7693_v32  ;;  %v7696_v42 = vpop.f32.mrb[30].mxu1  ;;  %7975 = vmatprep.subr.bf16.mxu0 %v8704_v31  ;;  %7996 = vmatpush3.bf16.msra.mxu1 %v8703_v37  ;;  %v8737_v29 = vld [vmem:[#allocation2 + $0xff0] sm:$0xff]  }
 0x211   :  { %v5800_v40 = vadd.f32 %v7673_v33, %v9107_v63  ;;  %v7697_v44 = vpop.f32.mrb[31].mxu1  ;;  %7997 = vmatprep.subr.bf16.mxu1 %v8705_v39  ;;  %v1624_v63 = vcombine.high %v1602_v56, %v1602_v56  ;;  %v8738_v36 = vld [vmem:[#allocation2 + $0xf30] sm:$0xff]   ;;  %v8742_v42 = vld [vmem:[#allocation2 + $0xf38] sm:$0xff]  }
 0x212   :  { %v8739_v38 = vld [vmem:[#allocation2 + $0xfb0] sm:$0xff]   ;;  %v1609_v44 = vrot.slane %v9120_v58, %v8991_v35  ;;  %v8757_v58 = vld [vmem:[#allocation2 + $0x1058] sm:$0xff]  }
 0x213   :  { %v9112_v46 = vadd.f32 %v7695_v41, %v5800_v40  ;;  %7976 = vmatpush3.bf16.msra.mxu0 %v8706_v43  ;;  %v8740_v40 = vld [vmem:[#allocation2 + $0xf78] sm:$0xff]  }
 0x214   :  { %7977 = vmatprep.subr.bf16.mxu0 %v8708_v45  ;;  %7998 = vmatpush3.bf16.msra.mxu1 %v8707_v47  ;;  %v8741_v41 = vld [vmem:[#allocation2 + $0xff8] sm:$0xff]   ;;  %v8745_v45 = vld [vmem:[#allocation2 + $0x1040] sm:$0xff]  }
 0x215   :  { %7999 = vmatprep.subr.bf16.mxu1 %v8709_v48  ;;  %v8743_v43 = vld [vmem:[#allocation2 + $0xfb8] sm:$0xff]   ;;  %v8747_v47 = vld [vmem:[#allocation2 + $0x1000] sm:$0xff]  }
 0x216   :  { %v8748_v48 = vld [vmem:[#allocation2 + $0x1080] sm:$0xff]  }
 0x217   :  { %7978 = vmatpush3.bf16.msra.mxu0 %v8710_v49  ;;  %v1625_v49 = vcombine.high %v1609_v44, %v1609_v44 }
 0x218   :  { %8007 = vmatprep.subr.bf16.mxu0 %v8712_v52  ;;  %8000 = vmatpush3.bf16.msra.mxu1 %v8711_v54  ;;  %v8751_v52 = vld [vmem:[#allocation2 + $0x1008] sm:$0xff]   ;;  %v8753_v54 = vld [vmem:[#allocation2 + $0x1050] sm:$0xff]  }
 0x219   :  { %8029 = vmatprep.subr.bf16.mxu1 %v8713_v57  ;;  %v8756_v57 = vld [vmem:[#allocation2 + $0x1090] sm:$0xff]  }
 0x21a   :  { %6358 = vmatmul.mubr.bf16.vlgmr.msra.gmra.mrb[56].mxu0 %v1602_v56  ;;  %v8755_v56 = vld [vmem:[#allocation2 + $0x1010] sm:$0xff]  }
 0x21b   :  { %8008 = vmatpush3.bf16.msra.mxu0 %v8714_v59  ;;  %6398 = vmatmul.mubr.bf16.vlgmr.msra.gmra.mrb[56].mxu1 %v1624_v63  ;;  %v8758_v59 = vld [vmem:[#allocation2 + $0x10d8] sm:$0xff]   ;;  %v8762_v63 = vld [vmem:[#allocation2 + $0x10e0] sm:$0xff]  }
 0x21c   :  { %8009 = vmatprep.subr.bf16.mxu0 %v8716_v0  ;;  %8030 = vmatpush3.bf16.msra.mxu1 %v8715_v61  ;;  %v8760_v61 = vld [vmem:[#allocation2 + $0x1098] sm:$0xff]   ;;  %v8763_v0 = vld [vmem:[#allocation2 + $0x1020] sm:$0xff]  }
 0x21d   :  { %6437 = vmatprep.mubr.bf16.mxu0 %v1623_v3  ;;  %8031 = vmatprep.subr.bf16.mxu1 %v8717_v2  ;;  %v8765_v2 = vld [vmem:[#allocation2 + $0x1068] sm:$0xff]  }
 0x21e   :  { %6477 = vmatprep.mubr.bf16.mxu1 %v1627_v6  ;;  %v8766_v3 = vld [vmem:[#allocation2 + $0x10e8] sm:$0xff]  }
 0x21f   :  { %8010 = vmatpush3.bf16.msra.mxu0 %v8718_v4 }
 0x220   :  { %8011 = vmatprep.subr.bf16.mxu0 %v8720_v7  ;;  %8032 = vmatpush3.bf16.msra.mxu1 %v8719_v5  ;;  %v8767_v5 = vld [vmem:[#allocation2 + $0x1028] sm:$0xff]   ;;  %v8769_v7 = vld [vmem:[#allocation2 + $0x1070] sm:$0xff]  }
 0x221   :  { %8033 = vmatprep.subr.bf16.mxu1 %v8721_v8 }
 0x223   :  { %8012 = vmatpush3.bf16.msra.mxu0 %v8722_v9 }
 0x224   :  { %8013 = vmatprep.subr.bf16.mxu0 %v8724_v11  ;;  %8034 = vmatpush3.bf16.msra.mxu1 %v8723_v10 }
 0x225   :  { %8035 = vmatprep.subr.bf16.mxu1 %v8725_v12  ;;  %v8768_v12 = vld [vmem:[#allocation2 + $0x10a8] sm:$0xff]  }
 0x227   :  { %8014 = vmatpush3.bf16.msra.mxu0 %v8726_v13 }
 0x228   :  { %8015 = vmatprep.subr.bf16.mxu0 %v8728_v15  ;;  %8036 = vmatpush3.bf16.msra.mxu1 %v8727_v14  ;;  %v8770_v14 = vld [vmem:[#allocation2 + $0x10f0] sm:$0xff]  }
 0x229   :  { %8037 = vmatprep.subr.bf16.mxu1 %v8729_v16 }
 0x22b   :  { %8016 = vmatpush3.bf16.msra.mxu0 %v8730_v17 }
 0x22c   :  { %8017 = vmatprep.subr.bf16.mxu0 %v8732_v19  ;;  %8038 = vmatpush3.bf16.msra.mxu1 %v8731_v18  ;;  %v8771_v18 = vld [vmem:[#allocation2 + $0x1030] sm:$0xff]  }
 0x22d   :  { %v7715_v21 = vpop.f32.mrb[32].mxu0  ;;  %8039 = vmatprep.subr.bf16.mxu1 %v8733_v20  ;;  %v8773_v20 = vld [vmem:[#allocation2 + $0x1078] sm:$0xff]  }
 0x22e   :  { %v7716_v23 = vpop.f32.mrb[33].mxu0  ;;  %v7737_v25 = vpop.f32.mrb[32].mxu1 }
 0x22f   :  { %v7717_v26 = vadd.f32 %v7716_v23, %v7715_v21  ;;  %v7718_v27 = vpop.f32.mrb[34].mxu0  ;;  %v7738_v30 = vpop.f32.mrb[33].mxu1  ;;  %8018 = vmatpush3.bf16.msra.mxu0 %v8734_v22  ;;  %v8772_v22 = vld [vmem:[#allocation2 + $0x10b0] sm:$0xff]   ;;  %v8774_v23 = vld [vmem:[#allocation2 + $0x10f8] sm:$0xff]  }
 0x230   :  { %v7719_v31 = vpop.f32.mrb[35].mxu0  ;;  %v7739_v33 = vadd.f32 %v7738_v30, %v7737_v25  ;;  %v7740_v34 = vpop.f32.mrb[34].mxu1  ;;  %8019 = vmatprep.subr.bf16.mxu0 %v8736_v28  ;;  %8040 = vmatpush3.bf16.msra.mxu1 %v8735_v24  ;;  %v8775_v24 = vld [vmem:[#allocation2 + $0x1038] sm:$0xff]   ;;  %v67_v25 = vld [vmem:[%s9212_s0 + $0x40] sm:$0xff] }
 0x231   :  { %v5880_v32 = vadd.f32 %v7717_v26, %v9112_v46  ;;  %v7741_v37 = vpop.f32.mrb[35].mxu1  ;;  %8041 = vmatprep.subr.bf16.mxu1 %v8737_v29  ;;  %v8746_v46 = vld [vmem:[#allocation2 + $0x10c0] sm:$0xff]   ;;  %v1635_v26 = vrot.slane %v67_v25, %v8991_v35  ;;  %v1628_v28 = vcombine.high %v67_v25, %v67_v25  ;;  %v8776_v29 = vld [vmem:[#allocation2 + $0x10b8] sm:$0xff]  }
 0x232   :  { %v8777_v27 = vld [vmem:[#allocation2 + $0x1140] sm:$0xff]  }
 0x233   :  { %v9127_v39 = vadd.f32 %v7739_v33, %v5880_v32  ;;  %8020 = vmatpush3.bf16.msra.mxu0 %v8738_v36  ;;  %v1643_v30 = vcombine.high %v1635_v26, %v1635_v26  ;;  %v1651_v31 = vrot.slane %v1635_v26, %v8991_v35  ;;  %v8778_v32 = vld [vmem:[#allocation2 + $0x11c0] sm:$0xff]   ;;  %v9140_v33 = vrot.slane %v1628_v28, %v8991_v35 }
 0x234   :  { %8021 = vmatprep.subr.bf16.mxu0 %v8740_v40  ;;  %8042 = vmatpush3.bf16.msra.mxu1 %v8739_v38  ;;  %v8779_v36 = vld [vmem:[#allocation2 + $0x1100] sm:$0xff]  }
 0x235   :  { %8043 = vmatprep.subr.bf16.mxu1 %v8741_v41  ;;  %v1665_v34 = vrot.slane %v1643_v30, %v8991_v35  ;;  %v1644_v37 = vcombine.high %v9140_v33, %v9140_v33  ;;  %v1673_v38 = vcombine.high %v1651_v31, %v1651_v31  ;;  %v8780_v41 = vld [vmem:[#allocation2 + $0x1180] sm:$0xff]  }
 0x237   :  { %8022 = vmatpush3.bf16.msra.mxu0 %v8742_v42  ;;  %v1675_v40 = vcombine.high %v1665_v34, %v1665_v34  ;;  %v1672_v42 = vrot.slane %v1644_v37, %v8991_v35 }
 0x238   :  { %8051 = vmatprep.subr.bf16.mxu0 %v8745_v45  ;;  %8044 = vmatpush3.bf16.msra.mxu1 %v8743_v43  ;;  %v8782_v43 = vld [vmem:[#allocation2 + $0x11c8] sm:$0xff]  }
 0x239   :  { %8073 = vmatprep.subr.bf16.mxu1 %v8746_v46  ;;  %v1676_v45 = vcombine.high %v1672_v42, %v1672_v42  ;;  %v8785_v46 = vld [vmem:[#allocation2 + $0x1150] sm:$0xff]  }
 0x23a   :  { %6438 = vmatmul.mubr.bf16.vlgmr.msra.gmra.mrb[60].mxu0 %v1609_v44  ;;  %v8783_v44 = vld [vmem:[#allocation2 + $0x1108] sm:$0xff]  }
 0x23b   :  { %8052 = vmatpush3.bf16.msra.mxu0 %v8747_v47  ;;  %6478 = vmatmul.mubr.bf16.vlgmr.msra.gmra.mrb[60].mxu1 %v1625_v49  ;;  %v8784_v47 = vld [vmem:[#allocation2 + $0x1188] sm:$0xff]   ;;  %v8787_v49 = vld [vmem:[#allocation2 + $0x1110] sm:$0xff]  }
 0x23c   :  { %8053 = vmatprep.subr.bf16.mxu0 %v8749_v50  ;;  %8074 = vmatpush3.bf16.msra.mxu1 %v8748_v48  ;;  %v8786_v48 = vld [vmem:[#allocation2 + $0x11d0] sm:$0xff]   ;;  %v8789_v50 = vld [vmem:[#allocation2 + $0x1158] sm:$0xff]  }
 0x23d   :  { %8075 = vmatprep.subr.bf16.mxu1 %v8750_v51  ;;  %6517 = vmatprep.mubr.bf16.mxu0 %v1665_v34  ;;  %v8788_v51 = vld [vmem:[#allocation2 + $0x1190] sm:$0xff]  }
 0x23e   :  { %6557 = vmatprep.mubr.bf16.mxu1 %v1675_v40 }
 0x23f   :  { %8054 = vmatpush3.bf16.msra.mxu0 %v8751_v52  ;;  %v8790_v52 = vld [vmem:[#allocation2 + $0x11d8] sm:$0xff]  }
 0x240   :  { %8055 = vmatprep.subr.bf16.mxu0 %v8753_v54  ;;  %8076 = vmatpush3.bf16.msra.mxu1 %v8752_v53  ;;  %v8791_v53 = vld [vmem:[#allocation2 + $0x1118] sm:$0xff]   ;;  %v8793_v54 = vld [vmem:[#allocation2 + $0x1160] sm:$0xff]  }
 0x241   :  { %8077 = vmatprep.subr.bf16.mxu1 %v8754_v55  ;;  %v8792_v55 = vld [vmem:[#allocation2 + $0x1198] sm:$0xff]  }
 0x243   :  { %8056 = vmatpush3.bf16.msra.mxu0 %v8755_v56  ;;  %v8794_v56 = vld [vmem:[#allocation2 + $0x11e0] sm:$0xff]  }
 0x244   :  { %8057 = vmatprep.subr.bf16.mxu0 %v8757_v58  ;;  %8078 = vmatpush3.bf16.msra.mxu1 %v8756_v57  ;;  %v8795_v57 = vld [vmem:[#allocation2 + $0x1120] sm:$0xff]   ;;  %v8797_v58 = vld [vmem:[#allocation2 + $0x1168] sm:$0xff]  }
 0x245   :  { %8079 = vmatprep.subr.bf16.mxu1 %v8758_v59  ;;  %v8796_v59 = vld [vmem:[#allocation2 + $0x11a0] sm:$0xff]  }
 0x247   :  { %8058 = vmatpush3.bf16.msra.mxu0 %v8759_v60 }
 0x248   :  { %8059 = vmatprep.subr.bf16.mxu0 %v8761_v62  ;;  %8080 = vmatpush3.bf16.msra.mxu1 %v8760_v61  ;;  %v8798_v61 = vld [vmem:[#allocation2 + $0x11e8] sm:$0xff]  }
 0x249   :  { %8081 = vmatprep.subr.bf16.mxu1 %v8762_v63  ;;  %v8799_v63 = vld [vmem:[#allocation2 + $0x1128] sm:$0xff]  }
 0x24b   :  { %8060 = vmatpush3.bf16.msra.mxu0 %v8763_v0 }
 0x24c   :  { %8061 = vmatprep.subr.bf16.mxu0 %v8765_v2  ;;  %8082 = vmatpush3.bf16.msra.mxu1 %v8764_v1 }
 0x24d   :  { %v7759_v4 = vpop.f32.mrb[36].mxu0  ;;  %8083 = vmatprep.subr.bf16.mxu1 %v8766_v3  ;;  %v8800_v3 = vld [vmem:[#allocation2 + $0x11a8] sm:$0xff]  }
 0x24e   :  { %v7760_v6 = vpop.f32.mrb[37].mxu0  ;;  %v7781_v8 = vpop.f32.mrb[36].mxu1 }
 0x24f   :  { %v7761_v9 = vadd.f32 %v7760_v6, %v7759_v4  ;;  %v7762_v10 = vpop.f32.mrb[38].mxu0  ;;  %v7782_v11 = vpop.f32.mrb[37].mxu1  ;;  %8062 = vmatpush3.bf16.msra.mxu0 %v8767_v5  ;;  %v8801_v4 = vld [vmem:[#allocation2 + $0x1170] sm:$0xff]  }
 0x250   :  { %v7763_v13 = vpop.f32.mrb[39].mxu0  ;;  %v7783_v16 = vadd.f32 %v7782_v11, %v7781_v8  ;;  %v7784_v17 = vpop.f32.mrb[38].mxu1  ;;  %8063 = vmatprep.subr.bf16.mxu0 %v8769_v7  ;;  %8084 = vmatpush3.bf16.msra.mxu1 %v8768_v12  ;;  %v8802_v10 = vld [vmem:[#allocation2 + $0x11f0] sm:$0xff]  }
 0x251   :  { %v5960_v15 = vadd.f32 %v7761_v9, %v9127_v39  ;;  %v7785_v19 = vpop.f32.mrb[39].mxu1  ;;  %8085 = vmatprep.subr.bf16.mxu1 %v8770_v14  ;;  %v8781_v39 = vld [vmem:[#allocation2 + $0x1148] sm:$0xff]   ;;  %v8803_v12 = vld [vmem:[#allocation2 + $0x1130] sm:$0xff]   ;;  %v8805_v14 = vld [vmem:[#allocation2 + $0x1178] sm:$0xff]  }
 0x252   :  { %v8807_v17 = vld [vmem:[#allocation2 + $0x1138] sm:$0xff]  }
 0x253   :  { %v9132_v21 = vadd.f32 %v7783_v16, %v5960_v15  ;;  %8064 = vmatpush3.bf16.msra.mxu0 %v8771_v18  ;;  %v8804_v15 = vld [vmem:[#allocation2 + $0x11b0] sm:$0xff]   ;;  %v8806_v16 = vld [vmem:[#allocation2 + $0x11f8] sm:$0xff]   ;;  %v1658_v18 = vrot.slane %v9140_v33, %v8991_v35 }
 0x254   :  { %8065 = vmatprep.subr.bf16.mxu0 %v8773_v20  ;;  %8086 = vmatpush3.bf16.msra.mxu1 %v8772_v22  ;;  %v8808_v19 = vld [vmem:[#allocation2 + $0x11b8] sm:$0xff]  }
 0x255   :  { %8087 = vmatprep.subr.bf16.mxu1 %v8774_v23  ;;  %v1674_v20 = vcombine.high %v1658_v18, %v1658_v18 }
 0x257   :  { %8066 = vmatpush3.bf16.msra.mxu0 %v8775_v24 }
 0x258   :  { %8095 = vmatprep.subr.bf16.mxu0 %v8777_v27  ;;  %8088 = vmatpush3.bf16.msra.mxu1 %v8776_v29 }
 0x259   :  { %8117 = vmatprep.subr.bf16.mxu1 %v8778_v32 }
 0x25a   :  { %6518 = vmatmul.mubr.bf16.vlgmr.msra.gmra.mrb[64].mxu0 %v1651_v31 }
 0x25b   :  { %8096 = vmatpush3.bf16.msra.mxu0 %v8779_v36  ;;  %6558 = vmatmul.mubr.bf16.vlgmr.msra.gmra.mrb[64].mxu1 %v1673_v38 }
 0x25c   :  { %8097 = vmatprep.subr.bf16.mxu0 %v8781_v39  ;;  %8118 = vmatpush3.bf16.msra.mxu1 %v8780_v41 }
 0x25d   :  { %6597 = vmatprep.mubr.bf16.mxu0 %v1672_v42  ;;  %8119 = vmatprep.subr.bf16.mxu1 %v8782_v43 }
 0x25e   :  { %6637 = vmatprep.mubr.bf16.mxu1 %v1676_v45  ;;  %v6646_v45 = vld [vmem:[%s9215_s3] sm:$0xff] }
 0x25f   :  { %8098 = vmatpush3.bf16.msra.mxu0 %v8783_v44 }
 0x260   :  { %8099 = vmatprep.subr.bf16.mxu0 %v8785_v46  ;;  %8120 = vmatpush3.bf16.msra.mxu1 %v8784_v47  ;;  %v6647_v46 = vld [vmem:[%s9215_s3 + $0x8] sm:$0xff]  ;;  %v6648_v47 = vld [vmem:[%s9215_s3 + $0x10] sm:$0xff] }
 0x261   :  { %8121 = vmatprep.subr.bf16.mxu1 %v8786_v48  ;;  %v8914_v48 = vmov 0.0|0.0  }
 0x263   :  { %8100 = vmatpush3.bf16.msra.mxu0 %v8787_v49  ;;  %v8192_v49 = vpack.c.bf16 %v6647_v46, %v6646_v45 }
 0x264   :  { %8101 = vmatprep.subr.bf16.mxu0 %v8789_v50  ;;  %8122 = vmatpush3.bf16.msra.mxu1 %v8788_v51  ;;  %v6649_v50 = vld [vmem:[%s9215_s3 + $0x18] sm:$0xff] }
 0x265   :  { %8123 = vmatprep.subr.bf16.mxu1 %v8790_v52  ;;  %v8195_v51 = vpack.c.bf16 %v6649_v50, %v6648_v47  ;;  %v6650_v52 = vld [vmem:[%s9215_s3 + $0x20] sm:$0xff] }
 0x267   :  { %8102 = vmatpush3.bf16.msra.mxu0 %v8791_v53  ;;  %v6651_v53 = vld [vmem:[%s9215_s3 + $0x28] sm:$0xff] }
 0x268   :  { %8103 = vmatprep.subr.bf16.mxu0 %v8793_v54  ;;  %8124 = vmatpush3.bf16.msra.mxu1 %v8792_v55  ;;  %v8198_v54 = vpack.c.bf16 %v6651_v53, %v6650_v52  ;;  %v6652_v55 = vld [vmem:[%s9215_s3 + $0x30] sm:$0xff] }
 0x269   :  { %8125 = vmatprep.subr.bf16.mxu1 %v8794_v56  ;;  %v6653_v56 = vld [vmem:[%s9215_s3 + $0x38] sm:$0xff] }
 0x26b   :  { %8104 = vmatpush3.bf16.msra.mxu0 %v8795_v57  ;;  %v8201_v57 = vpack.c.bf16 %v6653_v56, %v6652_v55 }
 0x26c   :  { %8105 = vmatprep.subr.bf16.mxu0 %v8797_v58  ;;  %8126 = vmatpush3.bf16.msra.mxu1 %v8796_v59  ;;  %v6654_v58 = vld [vmem:[%s9215_s3 + $0x40] sm:$0xff]  ;;  %v6655_v59 = vld [vmem:[%s9215_s3 + $0x48] sm:$0xff] }
 0x26d   :  { %v7803_v60 = vpop.f32.mrb[40].mxu0  ;;  %8127 = vmatprep.subr.bf16.mxu1 %v8798_v61  ;;  %v6656_v61 = vld [vmem:[%s9215_s3 + $0x50] sm:$0xff] }
 0x26e   :  { %v7804_v62 = vpop.f32.mrb[41].mxu0  ;;  %v7825_v0 = vpop.f32.mrb[40].mxu1 }
 0x26f   :  { %v7805_v1 = vadd.f32 %v7804_v62, %v7803_v60  ;;  %v7806_v2 = vpop.f32.mrb[42].mxu0  ;;  %v7826_v5 = vpop.f32.mrb[41].mxu1  ;;  %8106 = vmatpush3.bf16.msra.mxu0 %v8799_v63  ;;  %v8204_v60 = vpack.c.bf16 %v6655_v59, %v6654_v58  ;;  %v6657_v62 = vld [vmem:[%s9215_s3 + $0x58] sm:$0xff] }
 0x270   :  { %v7807_v6 = vpop.f32.mrb[43].mxu0  ;;  %v7827_v8 = vadd.f32 %v7826_v5, %v7825_v0  ;;  %v7828_v9 = vpop.f32.mrb[42].mxu1  ;;  %8107 = vmatprep.subr.bf16.mxu0 %v8801_v4  ;;  %8128 = vmatpush3.bf16.msra.mxu1 %v8800_v3  ;;  %v8207_v63 = vpack.c.bf16 %v6657_v62, %v6656_v61 }
 0x271   :  { %v6040_v7 = vadd.f32 %v7805_v1, %v9132_v21  ;;  %v7829_v11 = vpop.f32.mrb[43].mxu1  ;;  %8129 = vmatprep.subr.bf16.mxu1 %v8802_v10  ;;  %v6658_v10 = vld [vmem:[%s9215_s3 + $0x60] sm:$0xff] }
 0x272   :  { %v6659_v11 = vld [vmem:[%s9215_s3 + $0x68] sm:$0xff] }
 0x273   :  { %v6080_v13 = vadd.f32 %v7827_v8, %v6040_v7  ;;  %8108 = vmatpush3.bf16.msra.mxu0 %v8803_v12 }
 0x274   :  { %8109 = vmatprep.subr.bf16.mxu0 %v8805_v14  ;;  %8130 = vmatpush3.bf16.msra.mxu1 %v8804_v15  ;;  %v6660_v15 = vld [vmem:[%s9215_s3 + $0x70] sm:$0xff] }
 0x275   :  { %8131 = vmatprep.subr.bf16.mxu1 %v8806_v16  ;;  %v6661_v16 = vld [vmem:[%s9215_s3 + $0x78] sm:$0xff]  ;;  %s8917_s3 = smov [#allocation8]  }
 0x276   :  { %s6759_s25 = sshll.u32 %s8917_s3, 4  ;;  %s6760_s25 = int_to_ptr.vmem [resolvable:$true] %s6759_s25 }
 0x277   :  { %8110 = vmatpush3.bf16.msra.mxu0 %v8807_v17  ;;  %v8213_v17 = vpack.c.bf16 %v6661_v16, %v6660_v15  ;;  %s8880_s26 = scalar_lea.vmem %s6760_s25, 32  ;;  %p8885_p11 = scmp.lt.s32.totalorder %s6760_s25, %s6760_s25 }
 0x278   :  { %8132 = vmatpush3.bf16.msra.mxu1 %v8808_v19  ;;  %8191 = vmatprep.subr.bf16.mxu0 %v8914_v48  ;;  %p8881_p10 = scmp.ne.s32.totalorder %s6760_s25, %s8880_s26  ;;  %p8886_p12 = scmp.lt.s32.totalorder %s8880_s26, %s8880_s26 }
 0x27a   :  { %6598 = vmatmul.mubr.bf16.vlgmr.msra.gmra.mrb[68].mxu0 %v1658_v18  ;;  %v8916_v18 = vmov 0.0   ;;  %p8887_p13 = por %p8886_p12, %p8885_p11 }
 0x27b   :  { %6638 = vmatmul.mubr.bf16.vlgmr.msra.gmra.mrb[68].mxu1 %v1674_v20  ;;  %8193 = vmatpush3.bf16.msra.mxu0 %v8192_v49 }
 0x27c   :  { %8194 = vmatprep.subr.bf16.mxu0 %v8914_v48  ;;  %8188 = vmatprep.mubr.msk.f32.mxu0 %vm8915_vm0, %v8916_v18  ;;  %p8888_p0 = pnand %p8887_p13, %p8881_p10 }
 0x27f   :  { %8196 = vmatpush3.bf16.msra.mxu0 %v8195_v51 }
 0x280   :  { %8197 = vmatprep.subr.bf16.mxu0 %v8914_v48 }
 0x283   :  { %8199 = vmatpush3.bf16.msra.mxu0 %v8198_v54 }
 0x284   :  { %8200 = vmatprep.subr.bf16.mxu0 %v8914_v48 }
 0x287   :  { %8202 = vmatpush3.bf16.msra.mxu0 %v8201_v57 }
 0x288   :  { %8203 = vmatprep.subr.bf16.mxu0 %v8914_v48 }
 0x28b   :  { %8205 = vmatpush3.bf16.msra.mxu0 %v8204_v60 }
 0x28c   :  { %8206 = vmatprep.subr.bf16.mxu0 %v8914_v48 }
 0x28d   :  { %v7847_v21 = vpop.f32.mrb[44].mxu0 }
 0x28e   :  { %v7848_v22 = vpop.f32.mrb[45].mxu0  ;;  %v7869_v23 = vpop.f32.mrb[44].mxu1 }
 0x28f   :  { %v7849_v24 = vadd.f32 %v7848_v22, %v7847_v21  ;;  %v7850_v25 = vpop.f32.mrb[46].mxu0  ;;  %v7870_v26 = vpop.f32.mrb[45].mxu1  ;;  %8208 = vmatpush3.bf16.msra.mxu0 %v8207_v63 }
 0x290   :  { %v7851_v27 = vpop.f32.mrb[47].mxu0  ;;  %v7871_v29 = vadd.f32 %v7870_v26, %v7869_v23  ;;  %v7872_v30 = vpop.f32.mrb[46].mxu1  ;;  %8209 = vmatprep.subr.bf16.mxu0 %v8914_v48 }
 0x291   :  { %v6120_v28 = vadd.f32 %v7849_v24, %v6080_v13  ;;  %v7873_v31 = vpop.f32.mrb[47].mxu1  ;;  %v8210_v13 = vpack.c.bf16 %v6659_v11, %v6658_v10 }
 0x293   :  { %v6160_v35 = vadd.f32 %v7871_v29, %v6120_v28  ;;  %8211 = vmatpush3.bf16.msra.mxu0 %v8210_v13 }
 0x294   :  { %8212 = vmatprep.subr.bf16.mxu0 %v8914_v48 }
 0x297   :  { %8214 = vmatpush3.bf16.msra.mxu0 %v8213_v17 }
 0x2ad   :  { %v7891_v32 = vpop.f32.mrb[48].mxu0 }
 0x2ae   :  { %v7892_v33 = vpop.f32.mrb[49].mxu0  ;;  %v7913_v34 = vpop.f32.mrb[48].mxu1 }
 0x2af   :  { %v7893_v36 = vadd.f32 %v7892_v33, %v7891_v32  ;;  %v7894_v37 = vpop.f32.mrb[50].mxu0  ;;  %v7914_v38 = vpop.f32.mrb[49].mxu1 }
 0x2b0   :  { %v7895_v39 = vpop.f32.mrb[51].mxu0  ;;  %v7915_v41 = vadd.f32 %v7914_v38, %v7913_v34  ;;  %v7916_v42 = vpop.f32.mrb[50].mxu1 }
 0x2b1   :  { %v6200_v40 = vadd.f32 %v7893_v36, %v6160_v35  ;;  %v7917_v43 = vpop.f32.mrb[51].mxu1 }
 0x2b3   :  { %v6240_v44 = vadd.f32 %v7915_v41, %v6200_v40 }
 0x2cd   :  { %v7935_v0 = vpop.f32.mrb[52].mxu0 }
 0x2ce   :  { %v7936_v1 = vpop.f32.mrb[53].mxu0  ;;  %v7957_v2 = vpop.f32.mrb[52].mxu1 }
 0x2cf   :  { %v7937_v3 = vadd.f32 %v7936_v1, %v7935_v0  ;;  %v7938_v4 = vpop.f32.mrb[54].mxu0  ;;  %v7958_v5 = vpop.f32.mrb[53].mxu1 }
 0x2d0   :  { %v7939_v6 = vpop.f32.mrb[55].mxu0  ;;  %v7959_v8 = vadd.f32 %v7958_v5, %v7957_v2  ;;  %v7960_v9 = vpop.f32.mrb[54].mxu1  ;;  %v7346_v4 = vld [vmem:[#allocation7] ss:$0 sm:$0xff] }
 0x2d1   :  { %v6280_v7 = vadd.f32 %v7937_v3, %v6240_v44  ;;  %v7961_v12 = vpop.f32.mrb[55].mxu1 }
 0x2d3   :  { %v6320_v14 = vadd.f32 %v7959_v8, %v6280_v7 }
 0x2ed   :  { %v7979_v19 = vpop.f32.mrb[56].mxu0 }
 0x2ee   :  { %v7980_v20 = vpop.f32.mrb[57].mxu0  ;;  %v8001_v21 = vpop.f32.mrb[56].mxu1 }
 0x2ef   :  { %v7981_v22 = vadd.f32 %v7980_v20, %v7979_v19  ;;  %v7982_v23 = vpop.f32.mrb[58].mxu0  ;;  %v8002_v24 = vpop.f32.mrb[57].mxu1 }
 0x2f0   :  { %v7983_v25 = vpop.f32.mrb[59].mxu0  ;;  %v8003_v27 = vadd.f32 %v8002_v24, %v8001_v21  ;;  %v8004_v28 = vpop.f32.mrb[58].mxu1 }
 0x2f1   :  { %v6360_v26 = vadd.f32 %v7981_v22, %v6320_v14  ;;  %v8005_v29 = vpop.f32.mrb[59].mxu1 }
 0x2f3   :  { %v6400_v30 = vadd.f32 %v8003_v27, %v6360_v26 }
 0x30d   :  { %v8023_v31 = vpop.f32.mrb[60].mxu0 }
 0x30e   :  { %v8024_v35 = vpop.f32.mrb[61].mxu0  ;;  %v8045_v32 = vpop.f32.mrb[60].mxu1 }
 0x30f   :  { %v8025_v33 = vadd.f32 %v8024_v35, %v8023_v31  ;;  %v8026_v34 = vpop.f32.mrb[62].mxu0  ;;  %v8046_v36 = vpop.f32.mrb[61].mxu1 }
 0x310   :  { %v8027_v37 = vpop.f32.mrb[63].mxu0  ;;  %v8047_v39 = vadd.f32 %v8046_v36, %v8045_v32  ;;  %v8048_v40 = vpop.f32.mrb[62].mxu1 }
 0x311   :  { %v6440_v38 = vadd.f32 %v8025_v33, %v6400_v30  ;;  %v8049_v41 = vpop.f32.mrb[63].mxu1 }
 0x313   :  { %v6480_v42 = vadd.f32 %v8047_v39, %v6440_v38 }
 0x32d   :  { %v8067_v43 = vpop.f32.mrb[64].mxu0 }
 0x32e   :  { %v8068_v44 = vpop.f32.mrb[65].mxu0  ;;  %v8089_v45 = vpop.f32.mrb[64].mxu1 }
 0x32f   :  { %v8069_v46 = vadd.f32 %v8068_v44, %v8067_v43  ;;  %v8070_v47 = vpop.f32.mrb[66].mxu0  ;;  %v8090_v48 = vpop.f32.mrb[65].mxu1 }
 0x330   :  { %v8071_v49 = vpop.f32.mrb[67].mxu0  ;;  %v8091_v51 = vadd.f32 %v8090_v48, %v8089_v45  ;;  %v8092_v52 = vpop.f32.mrb[66].mxu1 }
 0x331   :  { %v6520_v50 = vadd.f32 %v8069_v46, %v6480_v42  ;;  %v8093_v53 = vpop.f32.mrb[67].mxu1 }
 0x333   :  { %v6560_v54 = vadd.f32 %v8091_v51, %v6520_v50 }
 0x34d   :  { %v8111_v55 = vpop.f32.mrb[68].mxu0 }
 0x34e   :  { %v8112_v56 = vpop.f32.mrb[69].mxu0  ;;  %v8133_v57 = vpop.f32.mrb[68].mxu1 }
 0x34f   :  { %v8113_v58 = vadd.f32 %v8112_v56, %v8111_v55  ;;  %v8114_v59 = vpop.f32.mrb[70].mxu0  ;;  %v8134_v60 = vpop.f32.mrb[69].mxu1 }
 0x350   :  { %v8115_v61 = vpop.f32.mrb[71].mxu0  ;;  %v8135_v63 = vadd.f32 %v8134_v60, %v8133_v57  ;;  %v8136_v0 = vpop.f32.mrb[70].mxu1 }
 0x351   :  { %v6600_v62 = vadd.f32 %v8113_v58, %v6560_v54  ;;  %v8137_v1 = vpop.f32.mrb[71].mxu1 }
 0x353   :  { %v6640_v2 = vadd.f32 %v8135_v63, %v6600_v62 }
 0x355   :  { %v6645_v3 = vmax.f32 %v6640_v2, 0.0 }
 0x357   :  { %8189 = vmatmul.mubr.f32.vlgmr.msra.gmra.mrb[72].mxu0 %v6645_v3 }
 0x42a   :  { %v6735_v5 = vpop.f32.mrb[72].mxu0 }
 0x42b   :  { %v6736_v6 = vadd.f32 %v7346_v4, %v6735_v5  ;;  %v8190_v7 = vpop.f32.mrb[73].mxu0 }
 0x42d   :  { %v6740_v8 = vsel %vm6739_vm1, %v6736_v6, -inf }
 0x42e   :  { %6741 = vmax.xlane.f32.xlu0 %v6740_v8 }
 0x4bb   :  { %v6742_v9 = vpop.xlane.xlu0 %6741 }
 0x4bc   :  { %v6743_v10 = vsub.f32 %v6736_v6, %v6742_v9 }
 0x4be   :  { %v6744_v11 = vmul.f32 1.442695, %v6743_v10 }
 0x4c0   :  { %8810 = vpow2.f32 %v6744_v11 }
 0x4ca   :  { %v8811_v12 = vpop.eup %8810 }
 0x4cb   :  { %v6746_v13 = vsel %vm6739_vm1, %v8811_v12, 0.0 }
 0x4cc   :  { %6747 = vadd.xlane.f32.xlu0 %v6746_v13 }
 0x559   :  { %v6748_v14 = vpop.xlane.xlu0 %6747 }
 0x55a   :  { %8812 = vlog2.f32 %v6748_v14 }
 0x564   :  { %v8813_v15 = vpop.eup %8812 }
 0x565   :  { %v6750_v16 = vmul.f32 0.6931472, %v8813_v15 }
 0x567   :  { %v6751_v17 = vsub.f32 %v6743_v10, %v6750_v16 }
 0x569   :  { %6752 = vst.msk [vmem:[#allocation8] sm:$0x3] %vm6739_vm1, %v6751_v17 }
 0x56a   :  { %8891 = shalt.err (!%p8888_p0)
}
 0x56b   :  { %s8892_s29 = scalar_lea.hbm %s9217_s5, 32 }
 0x56c   :  { %p8893_p1 = scmp.ne.s32.totalorder %s9217_s5, %s8892_s29  ;;  %p8896_p2 = scmp.lt.u32.totalorder %s8892_s29, %s9217_s5 }
 0x56e   :  { %p8898_p3 = pnand %p8896_p2, %p8893_p1 }
 0x570   :  { %8901 = shalt.err (!%p8898_p3)
}
 0x571   :  { %6762 = dma.vmem_to_hbm [thread:$0]  %s6760_s25, 32, %s9217_s5, [#allocation4]  }
 0x572   :  { %8906 = dma.done.wait [#allocation4], 32  }
 0x573   :  { %8907 = vsyncadd [#allocation4], 4294967264 }
 0x574   :  { %6766 = vsyncpa [#allocation3], 1 }
 0x575   :  { %6767 = vsyncpa [#allocation6], 1 }
 0x576   :  { %6768 = vsyncpa [#allocation4], 1 }

</bundles_post_ra>
